<compile_context>
chip_gen: v5e
topology: v5e:2x2
jax: 0.10.0
libtpu: 0.0.40
codegen_flags: <defaults>
</compile_context>

<pallas_src>
import functools

import jax
import jax.numpy as jnp
from jax.experimental import pallas as pl
from jax.experimental.pallas import tpu as pltpu

# ----------------------------- small, module-consistent demo config ------------------------
B = 2            # batch
V = 2            # number of image views (image.shape[1] in the torch module)
C = 3            # image channels
IMG = 16         # image size      (stands in for 224)
PATCH = 8        # ViT patch size  (stands in for 16)
D = 128          # hidden width    (stands in for 768) -- lane-dense
HEADS = 4        # stands in for 12
MLP = 4 * D
LAYERS = 2       # transformer depth for both ViT and BERT (synthetic)
SEQ = 8          # text length     (stands in for max_length = 30), sublane multiple
VOCAB = 64
ROWS = 2         # batch rows processed per grid step

N_PATCH = (IMG // PATCH) ** 2          # 4
S_REAL = N_PATCH + 1                   # 5 = CLS + patches
S_IMG = ((S_REAL + 7) // 8) * 8        # 8: padded to sublane multiple; pad keys are masked

_PARALLEL = pltpu.CompilerParams(dimension_semantics=("parallel",))


# ===================================== in-kernel helpers ===================================

def _mm(a, w):
    """bf16 MXU matmul with f32 accumulation (w already bf16, a cast at the call)."""
    return jnp.dot(a.astype(jnp.bfloat16), w, preferred_element_type=jnp.float32)


def _ln(x, g, b, eps):
    mu = jnp.mean(x, axis=-1, keepdims=True)
    var = jnp.mean(jnp.square(x - mu), axis=-1, keepdims=True)
    return (x - mu) * jax.lax.rsqrt(var + eps) * g + b


def _softmax(s):
    s = s - jnp.max(s, axis=-1, keepdims=True)
    p = jnp.exp(s)
    return p * pl.reciprocal(jnp.sum(p, axis=-1, keepdims=True), approx=True)   # EUP slot


def _mha(q, k, v, bias, heads):
    """All-heads attention for one sequence (q/k/v: (S, D) f32) -> (S, D) f32.

    QK^T uses dot_general NT contraction (no K transpose), head outputs are concatenated along
    the lane dim; the single (D, D) out-projection is done ONCE by the caller (full-K matmul
    instead of `heads` K=dh matmuls with carried f32 accumulators)."""
    S, Dm = q.shape
    dh = Dm // heads
    scale = 1.0 / float(dh) ** 0.5
    outs = []
    for h in range(heads):
        sl = slice(h * dh, (h + 1) * dh)
        qh = q[:, sl].astype(jnp.bfloat16)
        kh = k[:, sl].astype(jnp.bfloat16)
        vh = v[:, sl].astype(jnp.bfloat16)
        s = jax.lax.dot_general(qh, kh, (((1,), (1,)), ((), ())),
                                preferred_element_type=jnp.float32) * scale
        if bias is not None:
            s = s + bias                                   # (1, S) additive key-mask bias
        p = _softmax(s)
        outs.append(jnp.dot(p.astype(jnp.bfloat16), vh, preferred_element_type=jnp.float32))
    return jnp.concatenate(outs, axis=-1)                  # (S, D)


# =========================================== kernels =======================================

def _patch_embed_kernel(p_ref, w_ref, b_ref, cls_ref, pos_ref, o_ref):
    """Patch projection + CLS prepend + positional embedding + seq padding; R rows per step.
    The full (S_pad, D) row is built in registers and stored with one full-tile store."""
    R = p_ref.shape[0]
    s_pad, Dm = o_ref.shape[1], o_ref.shape[2]
    w = w_ref[...]
    bias = b_ref[...]
    pos = pos_ref[...]                                     # (S_REAL, D)
    cls_row = cls_ref[...] + pos[0:1, :]                   # (1, D)
    for r in range(R):
        proj = _mm(p_ref[r], w) + bias + pos[1:, :]        # (P, D)
        pieces = [cls_row, proj]
        if s_pad > pos.shape[0]:
            pieces.append(jnp.zeros((s_pad - pos.shape[0], Dm), jnp.float32))
        o_ref[r] = jnp.concatenate(pieces, axis=0).astype(o_ref.dtype)


def _text_embed_kernel(x_ref, pos_ref, tt_ref, g_ref, b_ref, o_ref, *, eps):
    """word-embedding (gathered in XLA) + positional + token-type embedding + embedding LN."""
    x = x_ref[...] + pos_ref[...] + tt_ref[...]
    o_ref[...] = _ln(x, g_ref[...], b_ref[...], eps).astype(o_ref.dtype)


def _vit_block_kernel(x_ref, bias_ref, wqkv_ref, bqkv_ref, wo_ref, bo_ref,
                      ln1g_ref, ln1b_ref, ln2g_ref, ln2b_ref,
                      w1_ref, b1_ref, w2_ref, b2_ref, o_ref, *, heads, eps):
    """Fused pre-norm (timm ViT) transformer block; bias masks the padded seq positions."""
    R, S, Dm = x_ref.shape
    x = x_ref[...].astype(jnp.float32).reshape(R * S, Dm)  # tile-exact reshape (S % 8 == 0)
    bias = bias_ref[...]                                   # (1, S) key mask for pad tokens
    h = _ln(x, ln1g_ref[...], ln1b_ref[...], eps)
    qkv = _mm(h, wqkv_ref[...]) + bqkv_ref[...]            # fused QKV: (R*S, 3D)
    q = qkv[:, :Dm].reshape(R, S, Dm)
    k = qkv[:, Dm:2 * Dm].reshape(R, S, Dm)
    v = qkv[:, 2 * Dm:].reshape(R, S, Dm)
    att = jnp.concatenate([_mha(q[r], k[r], v[r], bias, heads) for r in range(R)], axis=0)
    x = x + _mm(att, wo_ref[...]) + bo_ref[...]            # single full-K out-projection
    h2 = _ln(x, ln2g_ref[...], ln2b_ref[...], eps)
    h2 = jax.nn.gelu(_mm(h2, w1_ref[...]) + b1_ref[...], approximate=True)
    x = x + _mm(h2, w2_ref[...]) + b2_ref[...]
    o_ref[...] = x.reshape(R, S, Dm).astype(o_ref.dtype)


def _bert_block_kernel(x_ref, m_ref, wqkv_ref, bqkv_ref, wo_ref, bo_ref,
                       ln1g_ref, ln1b_ref, w1_ref, b1_ref, w2_ref, b2_ref,
                       ln2g_ref, ln2b_ref, o_ref, *, heads, eps):
    """Fused post-norm (HF BERT) transformer block with per-row additive attention mask."""
    R, S, Dm = x_ref.shape
    x = x_ref[...].astype(jnp.float32).reshape(R * S, Dm)
    mask = m_ref[...]                                      # (R, 1, S)
    qkv = _mm(x, wqkv_ref[...]) + bqkv_ref[...]
    q = qkv[:, :Dm].reshape(R, S, Dm)
    k = qkv[:, Dm:2 * Dm].reshape(R, S, Dm)
    v = qkv[:, 2 * Dm:].reshape(R, S, Dm)
    att = jnp.concatenate([_mha(q[r], k[r], v[r], mask[r], heads) for r in range(R)], axis=0)
    x = _ln(x + _mm(att, wo_ref[...]) + bo_ref[...], ln1g_ref[...], ln1b_ref[...], eps)
    h = jax.nn.gelu(_mm(x, w1_ref[...]) + b1_ref[...], approximate=True)
    x = _ln(x + _mm(h, w2_ref[...]) + b2_ref[...], ln2g_ref[...], ln2b_ref[...], eps)
    o_ref[...] = x.reshape(R, S, Dm).astype(o_ref.dtype)


def _head_kernel(clsv_ref, txt_ref, vg_ref, vb_ref, wp_ref, bp_ref, wk_ref, bk_ref,
                 wd1_ref, wd2_ref, bd_ref, score_ref, sim_ref, loss_ref, *, eps):
    """Final ViT LN (CLS only) + view mean + img_proj / img_key_proj + head_diff + sigmoid
    + |score - sim| mean, all fused.  LN is per-token so LN(x)[:,0] == LN(x[:,0])."""
    cv = clsv_ref[...].astype(jnp.float32)                 # (B, V, D) pre-final-LN vision CLS
    mu = jnp.mean(cv, axis=-1, keepdims=True)
    var = jnp.mean(jnp.square(cv - mu), axis=-1, keepdims=True)
    cvn = (cv - mu) * jax.lax.rsqrt(var + eps) * vg_ref[...] + vb_ref[...]
    f1 = jnp.mean(cvn, axis=1)                             # mean over views -> (B, D)
    f2 = txt_ref[...].astype(jnp.float32)                  # BERT CLS (already post-norm)
    f1 = _mm(f1, wp_ref[...]) + bp_ref[...]                # img_proj
    f2 = _mm(f2, wk_ref[...]) + bk_ref[...]                # img_key_proj
    # head_diff(cat([f1, f2], -1)) == f1 @ W[:D] + f2 @ W[D:] + b
    logits = (jnp.sum(f1 * wd1_ref[...], axis=-1, keepdims=True)
              + jnp.sum(f2 * wd2_ref[...], axis=-1, keepdims=True)
              + bd_ref[...])
    sim = jax.nn.sigmoid(logits)                           # (B, 1)
    sim_ref[...] = sim
    loss_ref[...] = jnp.mean(jnp.abs(score_ref[...] - sim), axis=(0, 1), keepdims=True)


# ====================================== pallas wrappers ====================================

def _const_spec(shape):
    """Full-extent block, constant block index -> DMA'd once, VMEM-resident across the grid."""
    return pl.BlockSpec(shape, lambda i, _n=len(shape): (0,) * _n)


def patch_embed(patches, vp):
    BR, P, K = patches.shape
    assert BR % ROWS == 0
    return pl.pallas_call(
        _patch_embed_kernel,
        out_shape=jax.ShapeDtypeStruct((BR, S_IMG, D), jnp.bfloat16),
        grid=(BR // ROWS,),
        in_specs=[
            pl.BlockSpec((ROWS, P, K), lambda i: (i, 0, 0)),
            _const_spec((K, D)),
            _const_spec((1, D)),
            _const_spec((1, D)),          # cls
            _const_spec((S_REAL, D)),     # pos
        ],
        out_specs=pl.BlockSpec((ROWS, S_IMG, D), lambda i: (i, 0, 0)),
        compiler_params=_PARALLEL,
    )(patches, vp["patch_w"], vp["patch_b"], vp["cls"], vp["pos"])


def text_embed(x, tp):
    Bm, L, Dm = x.shape
    assert Bm % ROWS == 0
    kern = functools.partial(_text_embed_kernel, eps=1e-12)
    return pl.pallas_call(
        kern,
        out_shape=jax.ShapeDtypeStruct((Bm, L, Dm), jnp.bfloat16),
        grid=(Bm // ROWS,),
        in_specs=[
            pl.BlockSpec((ROWS, L, Dm), lambda i: (i, 0, 0)),
            _const_spec((L, Dm)),
            _const_spec((1, Dm)),
            _const_spec((1, Dm)),
            _const_spec((1, Dm)),
        ],
        out_specs=pl.BlockSpec((ROWS, L, Dm), lambda i: (i, 0, 0)),
        compiler_params=_PARALLEL,
    )(x, tp["pos_emb"], tp["tok_type_emb"], tp["emb_ln_g"], tp["emb_ln_b"])


def _block_weight_specs(Dm):
    # constant-index weight BlockSpecs; at real dims these must be tiled over N/K (see NOTE).
    return [
        _const_spec((Dm, 3 * Dm)),   # wqkv
        _const_spec((1, 3 * Dm)),    # bqkv
        _const_spec((Dm, Dm)),       # wo
        _const_spec((1, Dm)),        # bo
    ]


def vit_block(x, p, key_bias):
    Brows, S, Dm = x.shape
    assert Brows % ROWS == 0
    kern = functools.partial(_vit_block_kernel, heads=HEADS, eps=1e-6)
    return pl.pallas_call(
        kern,
        out_shape=jax.ShapeDtypeStruct((Brows, S, Dm), jnp.bfloat16),
        grid=(Brows // ROWS,),
        in_specs=[pl.BlockSpec((ROWS, S, Dm), lambda i: (i, 0, 0)),
                  _const_spec((1, S))]
        + _block_weight_specs(Dm)
        + [
            _const_spec((1, Dm)), _const_spec((1, Dm)),   # ln1 g/b
            _const_spec((1, Dm)), _const_spec((1, Dm)),   # ln2 g/b
            _const_spec((Dm, MLP)), _const_spec((1, MLP)),
            _const_spec((MLP, Dm)), _const_spec((1, Dm)),
        ],
        out_specs=pl.BlockSpec((ROWS, S, Dm), lambda i: (i, 0, 0)),
        compiler_params=_PARALLEL,
    )(x, key_bias, p["wqkv"], p["bqkv"], p["wo"], p["bo"],
      p["ln1_g"], p["ln1_b"], p["ln2_g"], p["ln2_b"],
      p["w1"], p["b1"], p["w2"], p["b2"])


def bert_block(x, p, mask_bias):
    Bm, L, Dm = x.shape
    assert Bm % ROWS == 0
    kern = functools.partial(_bert_block_kernel, heads=HEADS, eps=1e-12)
    return pl.pallas_call(
        kern,
        out_shape=jax.ShapeDtypeStruct((Bm, L, Dm), jnp.bfloat16),
        grid=(Bm // ROWS,),
        in_specs=[pl.BlockSpec((ROWS, L, Dm), lambda i: (i, 0, 0)),
                  pl.BlockSpec((ROWS, 1, L), lambda i: (i, 0, 0))]
        + _block_weight_specs(Dm)
        + [
            _const_spec((1, Dm)), _const_spec((1, Dm)),   # ln1 g/b
            _const_spec((Dm, MLP)), _const_spec((1, MLP)),
            _const_spec((MLP, Dm)), _const_spec((1, Dm)),
            _const_spec((1, Dm)), _const_spec((1, Dm)),   # ln2 g/b
        ],
        out_specs=pl.BlockSpec((ROWS, L, Dm), lambda i: (i, 0, 0)),
        compiler_params=_PARALLEL,
    )(x, mask_bias, p["wqkv"], p["bqkv"], p["wo"], p["bo"],
      p["ln1_g"], p["ln1_b"], p["w1"], p["b1"], p["w2"], p["b2"],
      p["ln2_g"], p["ln2_b"])


def head_call(cls_img_views, cls_txt, vln_g, vln_b, hp, score):
    Bm, Vm, Dm = cls_img_views.shape
    kern = functools.partial(_head_kernel, eps=1e-6)
    sim, loss = pl.pallas_call(
        kern,
        out_shape=(jax.ShapeDtypeStruct((Bm, 1), jnp.float32),
                   jax.ShapeDtypeStruct((1, 1), jnp.float32)),
        grid=(1,),
        in_specs=[
            _const_spec((Bm, Vm, Dm)),   # vision CLS per view (pre-final-LN)
            _const_spec((Bm, Dm)),       # text CLS
            _const_spec((1, Dm)), _const_spec((1, Dm)),     # ViT final LN gamma/beta
            _const_spec((Dm, Dm)), _const_spec((1, Dm)),    # img_proj W/b
            _const_spec((Dm, Dm)), _const_spec((1, Dm)),    # img_key_proj W/b
            _const_spec((1, Dm)), _const_spec((1, Dm)),     # head_diff W[:D], W[D:]
            _const_spec((1, 1)),                            # head_diff b
            _const_spec((Bm, 1)),                           # score
        ],
        out_specs=(_const_spec((Bm, 1)), _const_spec((1, 1))),
    )(cls_img_views, cls_txt, vln_g, vln_b, hp["wp"], hp["bp"], hp["wk"], hp["bk"],
      hp["wd1"], hp["wd2"], hp["bd"], score.reshape(Bm, 1))
    return sim[:, 0], loss[0, 0]


# ===================================== model (glue + kernels) ==============================

def visual_encoder(img, vp):
    # img: (B*V, C, H, W) NCHW, views folded into batch
    BR, Cm, H, W = img.shape
    nh, nw = H // PATCH, W // PATCH
    # TODO(synk): patchify (== Conv2d(kernel=stride=PATCH)) done as an XLA reshape/transpose;
    #             weight flatten order is (C, ph, pw) per patch.
    patches = img.reshape(BR, Cm, nh, PATCH, nw, PATCH)
    patches = patches.transpose(0, 2, 4, 1, 3, 5).reshape(BR, nh * nw, Cm * PATCH * PATCH)
    x = patch_embed(patches, vp)                 # (B*V, S_IMG, D) bf16, padded rows zero
    # additive key mask so the padded sequence positions are never attended to
    key_bias = jnp.concatenate(
        [jnp.zeros((1, S_REAL), jnp.float32),
         jnp.full((1, S_IMG - S_REAL), -1e9, jnp.float32)], axis=-1)
    for blk in vp["blocks"]:
        x = vit_block(x, blk, key_bias)
    return x                                     # pre-final-LN; final LN on CLS fused into head


def text_encoder(input_ids, attention_mask, tp):
    Bm, L = input_ids.shape
    # TODO(synk): HF BertTokenizer is host-side string processing; gather left to XLA.
    x = jnp.take(tp["word_emb"], input_ids, axis=0)                         # (B, L, D)
    x = text_embed(x, tp)                                                   # + pos/type, LN(1e-12)
    mask_bias = ((1.0 - attention_mask.astype(jnp.float32)) * -1e9).reshape(Bm, 1, L)
    for blk in tp["layers"]:
        x = bert_block(x, blk, mask_bias)
    return x


def blip_forward(params, image, input_ids, attention_mask, score):
    # matches BLIP_Pretrain.forward semantics (view-mean of ViT CLS + BERT CLS -> head_diff)
    Bm, Vm = image.shape[0], image.shape[1]
    img = image.reshape(Bm * Vm, *image.shape[2:])            # fold views into batch
    vis = visual_encoder(img, params["vision"])               # (B*V, S_IMG, D)
    cls_img_views = vis[:, 0, :].reshape(Bm, Vm, D)           # per-view CLS (pre-final-LN)
    txt = text_encoder(input_ids, attention_mask, params["text"])
    cls_txt = txt[:, 0, :]
    sim, loss_diff = head_call(cls_img_views, cls_txt,
                               params["vision"]["ln_g"], params["vision"]["ln_b"],
                               params["head"], score)
    return (loss_diff, loss_diff, loss_diff), sim


# ========================================= parameters ======================================

def init_params(key):
    kit = iter(jax.random.split(key, 256))
    BF = jnp.bfloat16

    def dense(shape, dtype=jnp.float32, scale=0.02):
        return (jax.random.normal(next(kit), shape, jnp.float32) * scale).astype(dtype)

    def block():
        return dict(
            ln1_g=jnp.ones((1, D), jnp.float32), ln1_b=jnp.zeros((1, D), jnp.float32),
            wqkv=dense((D, 3 * D), BF), bqkv=jnp.zeros((1, 3 * D), jnp.float32),
            wo=dense((D, D), BF), bo=jnp.zeros((1, D), jnp.float32),
            ln2_g=jnp.ones((1, D), jnp.float32), ln2_b=jnp.zeros((1, D), jnp.float32),
            w1=dense((D, MLP), BF), b1=jnp.zeros((1, MLP), jnp.float32),
            w2=dense((MLP, D), BF), b2=jnp.zeros((1, D), jnp.float32),
        )

    vision = dict(
        patch_w=dense((C * PATCH * PATCH, D), BF), patch_b=jnp.zeros((1, D), jnp.float32),
        cls=dense((1, D)), pos=dense((S_REAL, D)),
        blocks=[block() for _ in range(LAYERS)],
        ln_g=jnp.ones((1, D), jnp.float32), ln_b=jnp.zeros((1, D), jnp.float32),
    )
    text = dict(
        word_emb=dense((VOCAB, D)), pos_emb=dense((SEQ, D)),
        tok_type_emb=dense((1, D)),
        emb_ln_g=jnp.ones((1, D), jnp.float32), emb_ln_b=jnp.zeros((1, D), jnp.float32),
        layers=[block() for _ in range(LAYERS)],
    )
    head = dict(
        wp=dense((D, D), BF), bp=jnp.zeros((1, D), jnp.float32),        # img_proj
        wk=dense((D, D), BF), bk=jnp.zeros((1, D), jnp.float32),        # img_key_proj
        wd1=dense((1, D)), wd2=dense((1, D)), bd=jnp.zeros((1, 1), jnp.float32),  # head_diff
    )
    return dict(vision=vision, text=text, head=head)


# ============================================ main ==========================================

if __name__ == "__main__":
    root = jax.random.PRNGKey(0)
    pkey, ikey, tkey, skey = jax.random.split(root, 4)

    params = init_params(pkey)
    image = jax.random.normal(ikey, (B, V, C, IMG, IMG), jnp.float32)          # NCHW views
    input_ids = jax.random.randint(tkey, (B, SEQ), 0, VOCAB)                   # pre-tokenized
    attention_mask = jnp.array([[1] * SEQ, [1] * (SEQ - 2) + [0, 0]], jnp.int32)
    score = jax.random.uniform(skey, (B,), jnp.float32)

    fwd = jax.jit(blip_forward)
    (loss1, loss2, loss3), sim = fwd(params, image, input_ids, attention_mask, score)
    jax.block_until_ready((loss1, loss2, loss3, sim))
    print("KERNEL_OK")
</pallas_src>

<mosaic_0001>
module attributes {stable_mosaic.version = 11 : i64} {
  func.func @_patch_embed_kernel(%arg0: i32, %arg1: memref<2x4x192xf32, #tpu.memory_space<vmem>>, %arg2: memref<192x128xbf16, #tpu.memory_space<vmem>>, %arg3: memref<1x128xf32, #tpu.memory_space<vmem>>, %arg4: memref<1x128xf32, #tpu.memory_space<vmem>>, %arg5: memref<5x128xf32, #tpu.memory_space<vmem>>, %arg6: memref<2x8x128xbf16, #tpu.memory_space<vmem>>) attributes {dimension_semantics = [#tpu.dimension_semantics<parallel>], iteration_bounds = array<i64: 2>, scalar_prefetch = 0 : i64, scratch_operands = 0 : i64, tpu.core_type = #tpu.core_type<tc>, window_params = [{transform_indices = @transform_0, window_bounds = array<i64: 2, 4, 192>}, {pipeline_mode = #tpu.pipeline_mode<synchronous>, transform_indices = @transform_1, window_bounds = array<i64: 192, 128>}, {pipeline_mode = #tpu.pipeline_mode<synchronous>, transform_indices = @transform_2, window_bounds = array<i64: 1, 128>}, {pipeline_mode = #tpu.pipeline_mode<synchronous>, transform_indices = @transform_3, window_bounds = array<i64: 1, 128>}, {pipeline_mode = #tpu.pipeline_mode<synchronous>, transform_indices = @transform_4, window_bounds = array<i64: 5, 128>}, {transform_indices = @transform_5, window_bounds = array<i64: 2, 8, 128>}]} {
    %c0 = arith.constant 0 : index
    %c0_0 = arith.constant 0 : index
    %0 = vector.load %arg2[%c0, %c0_0] : memref<192x128xbf16, #tpu.memory_space<vmem>>, vector<192x128xbf16>
    %c0_1 = arith.constant 0 : index
    %c0_2 = arith.constant 0 : index
    %1 = vector.load %arg3[%c0_1, %c0_2] : memref<1x128xf32, #tpu.memory_space<vmem>>, vector<1x128xf32>
    %c0_3 = arith.constant 0 : index
    %c0_4 = arith.constant 0 : index
    %2 = vector.load %arg5[%c0_3, %c0_4] : memref<5x128xf32, #tpu.memory_space<vmem>>, vector<5x128xf32>
    %c0_5 = arith.constant 0 : index
    %c0_6 = arith.constant 0 : index
    %3 = vector.load %arg4[%c0_5, %c0_6] : memref<1x128xf32, #tpu.memory_space<vmem>>, vector<1x128xf32>
    %4 = vector.extract_strided_slice %2 {offsets = [0, 0], sizes = [1, 128], strides = [1, 1]} : vector<5x128xf32> to vector<1x128xf32>
    %5 = arith.addf %3, %4 : vector<1x128xf32>
    %c0_7 = arith.constant 0 : index
    %c0_8 = arith.constant 0 : index
    %c0_9 = arith.constant 0 : index
    %6 = vector.load %arg1[%c0_7, %c0_8, %c0_9] : memref<2x4x192xf32, #tpu.memory_space<vmem>>, vector<1x4x192xf32>
    %7 = vector.shape_cast %6 : vector<1x4x192xf32> to vector<4x192xf32>
    %8 = arith.truncf %7 : vector<4x192xf32> to vector<4x192xbf16>
    %cst = arith.constant dense<0.000000e+00> : vector<4x128xf32>
    %9 = tpu.matmul %8, %0, %cst {dimension_numbers = #tpu.dot_dimension_numbers<[1], [0], [0], [1], [0, 0, 1, 1], [], []>} : vector<4x192xbf16>, vector<192x128xbf16>, vector<4x128xf32> -> vector<4x128xf32>
    %10 = vector.broadcast %1 : vector<1x128xf32> to vector<4x128xf32>
    %11 = arith.addf %9, %10 : vector<4x128xf32>
    %12 = vector.extract_strided_slice %2 {offsets = [1, 0], sizes = [4, 128], strides = [1, 1]} : vector<5x128xf32> to vector<4x128xf32>
    %13 = arith.addf %11, %12 : vector<4x128xf32>
    %cst_10 = arith.constant 0.000000e+00 : f32
    %14 = vector.broadcast %cst_10 : f32 to vector<3x128xf32>
    %15 = tpu.concatenate %5, %13, %14 in 0 : vector<1x128xf32>, vector<4x128xf32>, vector<3x128xf32> -> vector<8x128xf32>
    %16 = arith.truncf %15 : vector<8x128xf32> to vector<8x128xbf16>
    %c0_11 = arith.constant 0 : index
    %c0_12 = arith.constant 0 : index
    %c0_13 = arith.constant 0 : index
    %17 = vector.load %arg6[%c0_11, %c0_12, %c0_13] : memref<2x8x128xbf16, #tpu.memory_space<vmem>>, vector<1x8x128xbf16>
    %18 = vector.shape_cast %17 : vector<1x8x128xbf16> to vector<8x128xbf16>
    %19 = vector.shape_cast %16 : vector<8x128xbf16> to vector<1x8x128xbf16>
    tpu.vector_store %arg6[%c0_11, %c0_12, %c0_13], %19 {strides = array<i32>} : memref<2x8x128xbf16, #tpu.memory_space<vmem>>, vector<1x8x128xbf16>,
    %c1 = arith.constant 1 : index
    %c0_14 = arith.constant 0 : index
    %c0_15 = arith.constant 0 : index
    %20 = vector.load %arg1[%c1, %c0_14, %c0_15] : memref<2x4x192xf32, #tpu.memory_space<vmem>>, vector<1x4x192xf32>
    %21 = vector.shape_cast %20 : vector<1x4x192xf32> to vector<4x192xf32>
    %22 = arith.truncf %21 : vector<4x192xf32> to vector<4x192xbf16>
    %cst_16 = arith.constant dense<0.000000e+00> : vector<4x128xf32>
    %23 = tpu.matmul %22, %0, %cst_16 {dimension_numbers = #tpu.dot_dimension_numbers<[1], [0], [0], [1], [0, 0, 1, 1], [], []>} : vector<4x192xbf16>, vector<192x128xbf16>, vector<4x128xf32> -> vector<4x128xf32>
    %24 = vector.broadcast %1 : vector<1x128xf32> to vector<4x128xf32>
    %25 = arith.addf %23, %24 : vector<4x128xf32>
    %26 = vector.extract_strided_slice %2 {offsets = [1, 0], sizes = [4, 128], strides = [1, 1]} : vector<5x128xf32> to vector<4x128xf32>
    %27 = arith.addf %25, %26 : vector<4x128xf32>
    %cst_17 = arith.constant 0.000000e+00 : f32
    %28 = vector.broadcast %cst_17 : f32 to vector<3x128xf32>
    %29 = tpu.concatenate %5, %27, %28 in 0 : vector<1x128xf32>, vector<4x128xf32>, vector<3x128xf32> -> vector<8x128xf32>
    %30 = arith.truncf %29 : vector<8x128xf32> to vector<8x128xbf16>
    %c1_18 = arith.constant 1 : index
    %c0_19 = arith.constant 0 : index
    %c0_20 = arith.constant 0 : index
    %31 = vector.load %arg6[%c1_18, %c0_19, %c0_20] : memref<2x8x128xbf16, #tpu.memory_space<vmem>>, vector<1x8x128xbf16>
    %32 = vector.shape_cast %31 : vector<1x8x128xbf16> to vector<8x128xbf16>
    %33 = vector.shape_cast %30 : vector<8x128xbf16> to vector<1x8x128xbf16>
    tpu.vector_store %arg6[%c1_18, %c0_19, %c0_20], %33 {strides = array<i32>} : memref<2x8x128xbf16, #tpu.memory_space<vmem>>, vector<1x8x128xbf16>,
    return
  }
  func.func @transform_0(%arg0: i32) -> (i32, i32, i32) {
    %c0_i32 = arith.constant 0 : i32
    %c0_i32_0 = arith.constant 0 : i32
    %c0_i32_1 = arith.constant 0 : i32
    return %arg0, %c0_i32, %c0_i32_0 : i32, i32, i32
  }
  func.func @transform_1(%arg0: i32) -> (i32, i32) {
    %c0_i32 = arith.constant 0 : i32
    %c0_i32_0 = arith.constant 0 : i32
    %c0_i32_1 = arith.constant 0 : i32
    return %c0_i32, %c0_i32_0 : i32, i32
  }
  func.func @transform_2(%arg0: i32) -> (i32, i32) {
    %c0_i32 = arith.constant 0 : i32
    %c0_i32_0 = arith.constant 0 : i32
    %c0_i32_1 = arith.constant 0 : i32
    return %c0_i32, %c0_i32_0 : i32, i32
  }
  func.func @transform_3(%arg0: i32) -> (i32, i32) {
    %c0_i32 = arith.constant 0 : i32
    %c0_i32_0 = arith.constant 0 : i32
    %c0_i32_1 = arith.constant 0 : i32
    return %c0_i32, %c0_i32_0 : i32, i32
  }
  func.func @transform_4(%arg0: i32) -> (i32, i32) {
    %c0_i32 = arith.constant 0 : i32
    %c0_i32_0 = arith.constant 0 : i32
    %c0_i32_1 = arith.constant 0 : i32
    return %c0_i32, %c0_i32_0 : i32, i32
  }
  func.func @transform_5(%arg0: i32) -> (i32, i32, i32) {
    %c0_i32 = arith.constant 0 : i32
    %c0_i32_0 = arith.constant 0 : i32
    %c0_i32_1 = arith.constant 0 : i32
    return %arg0, %c0_i32, %c0_i32_0 : i32, i32, i32
  }
}

module attributes {stable_mosaic.version = 11 : i64} {
  func.func @_vit_block_kernel(%arg0: i32, %arg1: memref<2x8x128xbf16, #tpu.memory_space<vmem>>, %arg2: memref<1x8xf32, #tpu.memory_space<vmem>>, %arg3: memref<128x384xbf16, #tpu.memory_space<vmem>>, %arg4: memref<1x384xf32, #tpu.memory_space<vmem>>, %arg5: memref<128x128xbf16, #tpu.memory_space<vmem>>, %arg6: memref<1x128xf32, #tpu.memory_space<vmem>>, %arg7: memref<1x128xf32, #tpu.memory_space<vmem>>, %arg8: memref<1x128xf32, #tpu.memory_space<vmem>>, %arg9: memref<1x128xf32, #tpu.memory_space<vmem>>, %arg10: memref<1x128xf32, #tpu.memory_space<vmem>>, %arg11: memref<128x512xbf16, #tpu.memory_space<vmem>>, %arg12: memref<1x512xf32, #tpu.memory_space<vmem>>, %arg13: memref<512x128xbf16, #tpu.memory_space<vmem>>, %arg14: memref<1x128xf32, #tpu.memory_space<vmem>>, %arg15: memref<2x8x128xbf16, #tpu.memory_space<vmem>>) attributes {dimension_semantics = [#tpu.dimension_semantics<parallel>], iteration_bounds = array<i64: 2>, scalar_prefetch = 0 : i64, scratch_operands = 0 : i64, tpu.core_type = #tpu.core_type<tc>, window_params = [{transform_indices = @transform_0, window_bounds = array<i64: 2, 8, 128>}, {pipeline_mode = #tpu.pipeline_mode<synchronous>, transform_indices = @transform_1, window_bounds = array<i64: 1, 8>}, {pipeline_mode = #tpu.pipeline_mode<synchronous>, transform_indices = @transform_2, window_bounds = array<i64: 128, 384>}, {pipeline_mode = #tpu.pipeline_mode<synchronous>, transform_indices = @transform_3, window_bounds = array<i64: 1, 384>}, {pipeline_mode = #tpu.pipeline_mode<synchronous>, transform_indices = @transform_4, window_bounds = array<i64: 128, 128>}, {pipeline_mode = #tpu.pipeline_mode<synchronous>, transform_indices = @transform_5, window_bounds = array<i64: 1, 128>}, {pipeline_mode = #tpu.pipeline_mode<synchronous>, transform_indices = @transform_6, window_bounds = array<i64: 1, 128>}, {pipeline_mode = #tpu.pipeline_mode<synchronous>, transform_indices = @transform_7, window_bounds = array<i64: 1, 128>}, {pipeline_mode = #tpu.pipeline_mode<synchronous>, transform_indices = @transform_8, window_bounds = array<i64: 1, 128>}, {pipeline_mode = #tpu.pipeline_mode<synchronous>, transform_indices = @transform_9, window_bounds = array<i64: 1, 128>}, {pipeline_mode = #tpu.pipeline_mode<synchronous>, transform_indices = @transform_10, window_bounds = array<i64: 128, 512>}, {pipeline_mode = #tpu.pipeline_mode<synchronous>, transform_indices = @transform_11, window_bounds = array<i64: 1, 512>}, {pipeline_mode = #tpu.pipeline_mode<synchronous>, transform_indices = @transform_12, window_bounds = array<i64: 512, 128>}, {pipeline_mode = #tpu.pipeline_mode<synchronous>, transform_indices = @transform_13, window_bounds = array<i64: 1, 128>}, {transform_indices = @transform_14, window_bounds = array<i64: 2, 8, 128>}]} {
    %c0 = arith.constant 0 : index
    %c0_0 = arith.constant 0 : index
    %c0_1 = arith.constant 0 : index
    %0 = vector.load %arg1[%c0, %c0_0, %c0_1] : memref<2x8x128xbf16, #tpu.memory_space<vmem>>, vector<2x8x128xbf16>
    %1 = arith.extf %0 : vector<2x8x128xbf16> to vector<2x8x128xf32>
    %2 = vector.shape_cast %1 : vector<2x8x128xf32> to vector<16x128xf32>
    %c0_2 = arith.constant 0 : index
    %c0_3 = arith.constant 0 : index
    %3 = vector.load %arg2[%c0_2, %c0_3] : memref<1x8xf32, #tpu.memory_space<vmem>>, vector<1x8xf32>
    %c0_4 = arith.constant 0 : index
    %c0_5 = arith.constant 0 : index
    %4 = vector.load %arg7[%c0_4, %c0_5] : memref<1x128xf32, #tpu.memory_space<vmem>>, vector<1x128xf32>
    %c0_6 = arith.constant 0 : index
    %c0_7 = arith.constant 0 : index
    %5 = vector.load %arg8[%c0_6, %c0_7] : memref<1x128xf32, #tpu.memory_space<vmem>>, vector<1x128xf32>
    %cst = arith.constant dense<0.000000e+00> : vector<16xf32>
    %6 = vector.multi_reduction <add>, %2, %cst [1] : vector<16x128xf32> to vector<16xf32>
    %7 = vector.shape_cast %6 : vector<16xf32> to vector<16x1xf32>
    %cst_8 = arith.constant 1.280000e+02 : f32
    %8 = vector.broadcast %cst_8 : f32 to vector<16x1xf32>
    %9 = arith.divf %7, %8 : vector<16x1xf32>
    %10 = vector.broadcast %9 : vector<16x1xf32> to vector<16x128xf32>
    %11 = arith.subf %2, %10 : vector<16x128xf32>
    %12 = arith.mulf %11, %11 : vector<16x128xf32>
    %cst_9 = arith.constant dense<0.000000e+00> : vector<16xf32>
    %13 = vector.multi_reduction <add>, %12, %cst_9 [1] : vector<16x128xf32> to vector<16xf32>
    %14 = vector.shape_cast %13 : vector<16xf32> to vector<16x1xf32>
    %cst_10 = arith.constant 1.280000e+02 : f32
    %15 = vector.broadcast %cst_10 : f32 to vector<16x1xf32>
    %16 = arith.divf %14, %15 : vector<16x1xf32>
    %17 = vector.broadcast %9 : vector<16x1xf32> to vector<16x128xf32>
    %18 = arith.subf %2, %17 : vector<16x128xf32>
    %cst_11 = arith.constant 9.99999997E-7 : f32
    %19 = vector.broadcast %cst_11 : f32 to vector<16x1xf32>
    %20 = arith.addf %16, %19 : vector<16x1xf32>
    %21 = math.rsqrt %20 : vector<16x1xf32>
    %22 = vector.broadcast %21 : vector<16x1xf32> to vector<16x128xf32>
    %23 = arith.mulf %18, %22 : vector<16x128xf32>
    %24 = vector.broadcast %4 : vector<1x128xf32> to vector<16x128xf32>
    %25 = arith.mulf %23, %24 : vector<16x128xf32>
    %26 = vector.broadcast %5 : vector<1x128xf32> to vector<16x128xf32>
    %27 = arith.addf %25, %26 : vector<16x128xf32>
    %c0_12 = arith.constant 0 : index
    %c0_13 = arith.constant 0 : index
    %28 = vector.load %arg3[%c0_12, %c0_13] : memref<128x384xbf16, #tpu.memory_space<vmem>>, vector<128x384xbf16>
    %29 = arith.truncf %27 : vector<16x128xf32> to vector<16x128xbf16>
    %cst_14 = arith.constant dense<0.000000e+00> : vector<16x384xf32>
    %30 = tpu.matmul %29, %28, %cst_14 {dimension_numbers = #tpu.dot_dimension_numbers<[1], [0], [0], [1], [0, 0, 1, 1], [], []>} : vector<16x128xbf16>, vector<128x384xbf16>, vector<16x384xf32> -> vector<16x384xf32>
    %c0_15 = arith.constant 0 : index
    %c0_16 = arith.constant 0 : index
    %31 = vector.load %arg4[%c0_15, %c0_16] : memref<1x384xf32, #tpu.memory_space<vmem>>, vector<1x384xf32>
    %32 = vector.broadcast %31 : vector<1x384xf32> to vector<16x384xf32>
    %33 = arith.addf %30, %32 : vector<16x384xf32>
    %34 = vector.extract_strided_slice %33 {offsets = [0, 0], sizes = [16, 128], strides = [1, 1]} : vector<16x384xf32> to vector<16x128xf32>
    %35 = vector.shape_cast %34 : vector<16x128xf32> to vector<2x8x128xf32>
    %36 = vector.extract_strided_slice %33 {offsets = [0, 128], sizes = [16, 128], strides = [1, 1]} : vector<16x384xf32> to vector<16x128xf32>
    %37 = vector.shape_cast %36 : vector<16x128xf32> to vector<2x8x128xf32>
    %38 = vector.extract_strided_slice %33 {offsets = [0, 256], sizes = [16, 128], strides = [1, 1]} : vector<16x384xf32> to vector<16x128xf32>
    %39 = vector.shape_cast %38 : vector<16x128xf32> to vector<2x8x128xf32>
    %40 = vector.extract_strided_slice %35 {offsets = [0, 0, 0], sizes = [1, 8, 128], strides = [1, 1, 1]} : vector<2x8x128xf32> to vector<1x8x128xf32>
    %41 = vector.shape_cast %40 : vector<1x8x128xf32> to vector<8x128xf32>
    %42 = vector.extract_strided_slice %37 {offsets = [0, 0, 0], sizes = [1, 8, 128], strides = [1, 1, 1]} : vector<2x8x128xf32> to vector<1x8x128xf32>
    %43 = vector.shape_cast %42 : vector<1x8x128xf32> to vector<8x128xf32>
    %44 = vector.extract_strided_slice %39 {offsets = [0, 0, 0], sizes = [1, 8, 128], strides = [1, 1, 1]} : vector<2x8x128xf32> to vector<1x8x128xf32>
    %45 = vector.shape_cast %44 : vector<1x8x128xf32> to vector<8x128xf32>
    %46 = vector.extract_strided_slice %41 {offsets = [0, 0], sizes = [8, 32], strides = [1, 1]} : vector<8x128xf32> to vector<8x32xf32>
    %47 = arith.truncf %46 : vector<8x32xf32> to vector<8x32xbf16>
    %48 = vector.extract_strided_slice %43 {offsets = [0, 0], sizes = [8, 32], strides = [1, 1]} : vector<8x128xf32> to vector<8x32xf32>
    %49 = arith.truncf %48 : vector<8x32xf32> to vector<8x32xbf16>
    %50 = vector.extract_strided_slice %45 {offsets = [0, 0], sizes = [8, 32], strides = [1, 1]} : vector<8x128xf32> to vector<8x32xf32>
    %51 = arith.truncf %50 : vector<8x32xf32> to vector<8x32xbf16>
    %cst_17 = arith.constant dense<0.000000e+00> : vector<8x8xf32>
    %52 = tpu.matmul %47, %49, %cst_17 {dimension_numbers = #tpu.dot_dimension_numbers<[1], [1], [0], [0], [0, 0, 1, 0], [], []>} : vector<8x32xbf16>, vector<8x32xbf16>, vector<8x8xf32> -> vector<8x8xf32>
    %cst_18 = arith.constant 0.176776692 : f32
    %53 = vector.broadcast %cst_18 : f32 to vector<8x8xf32>
    %54 = arith.mulf %52, %53 : vector<8x8xf32>
    %55 = vector.broadcast %3 : vector<1x8xf32> to vector<8x8xf32>
    %56 = arith.addf %54, %55 : vector<8x8xf32>
    %cst_19 = arith.constant dense<0xFF800000> : vector<8xf32>
    %57 = vector.multi_reduction <maximumf>, %56, %cst_19 [1] : vector<8x8xf32> to vector<8xf32>
    %58 = vector.shape_cast %57 : vector<8xf32> to vector<8x1xf32>
    %59 = vector.broadcast %58 : vector<8x1xf32> to vector<8x8xf32>
    %60 = arith.subf %56, %59 : vector<8x8xf32>
    %61 = math.exp %60 : vector<8x8xf32>
    %cst_20 = arith.constant dense<0.000000e+00> : vector<8xf32>
    %62 = vector.multi_reduction <add>, %61, %cst_20 [1] : vector<8x8xf32> to vector<8xf32>
    %63 = vector.shape_cast %62 : vector<8xf32> to vector<8x1xf32>
    %64 = tpu.reciprocal %63 {approx = true} : vector<8x1xf32> -> vector<8x1xf32>
    %65 = vector.broadcast %64 : vector<8x1xf32> to vector<8x8xf32>
    %66 = arith.mulf %61, %65 : vector<8x8xf32>
    %67 = arith.truncf %66 : vector<8x8xf32> to vector<8x8xbf16>
    %cst_21 = arith.constant dense<0.000000e+00> : vector<8x32xf32>
    %68 = tpu.matmul %67, %51, %cst_21 {dimension_numbers = #tpu.dot_dimension_numbers<[1], [0], [0], [1], [0, 0, 1, 1], [], []>} : vector<8x8xbf16>, vector<8x32xbf16>, vector<8x32xf32> -> vector<8x32xf32>
    %69 = vector.extract_strided_slice %41 {offsets = [0, 32], sizes = [8, 32], strides = [1, 1]} : vector<8x128xf32> to vector<8x32xf32>
    %70 = arith.truncf %69 : vector<8x32xf32> to vector<8x32xbf16>
    %71 = vector.extract_strided_slice %43 {offsets = [0, 32], sizes = [8, 32], strides = [1, 1]} : vector<8x128xf32> to vector<8x32xf32>
    %72 = arith.truncf %71 : vector<8x32xf32> to vector<8x32xbf16>
    %73 = vector.extract_strided_slice %45 {offsets = [0, 32], sizes = [8, 32], strides = [1, 1]} : vector<8x128xf32> to vector<8x32xf32>
    %74 = arith.truncf %73 : vector<8x32xf32> to vector<8x32xbf16>
    %cst_22 = arith.constant dense<0.000000e+00> : vector<8x8xf32>
    %75 = tpu.matmul %70, %72, %cst_22 {dimension_numbers = #tpu.dot_dimension_numbers<[1], [1], [0], [0], [0, 0, 1, 0], [], []>} : vector<8x32xbf16>, vector<8x32xbf16>, vector<8x8xf32> -> vector<8x8xf32>
    %cst_23 = arith.constant 0.176776692 : f32
    %76 = vector.broadcast %cst_23 : f32 to vector<8x8xf32>
    %77 = arith.mulf %75, %76 : vector<8x8xf32>
    %78 = vector.broadcast %3 : vector<1x8xf32> to vector<8x8xf32>
    %79 = arith.addf %77, %78 : vector<8x8xf32>
    %cst_24 = arith.constant dense<0xFF800000> : vector<8xf32>
    %80 = vector.multi_reduction <maximumf>, %79, %cst_24 [1] : vector<8x8xf32> to vector<8xf32>
    %81 = vector.shape_cast %80 : vector<8xf32> to vector<8x1xf32>
    %82 = vector.broadcast %81 : vector<8x1xf32> to vector<8x8xf32>
    %83 = arith.subf %79, %82 : vector<8x8xf32>
    %84 = math.exp %83 : vector<8x8xf32>
    %cst_25 = arith.constant dense<0.000000e+00> : vector<8xf32>
    %85 = vector.multi_reduction <add>, %84, %cst_25 [1] : vector<8x8xf32> to vector<8xf32>
    %86 = vector.shape_cast %85 : vector<8xf32> to vector<8x1xf32>
    %87 = tpu.reciprocal %86 {approx = true} : vector<8x1xf32> -> vector<8x1xf32>
    %88 = vector.broadcast %87 : vector<8x1xf32> to vector<8x8xf32>
    %89 = arith.mulf %84, %88 : vector<8x8xf32>
    %90 = arith.truncf %89 : vector<8x8xf32> to vector<8x8xbf16>
    %cst_26 = arith.constant dense<0.000000e+00> : vector<8x32xf32>
    %91 = tpu.matmul %90, %74, %cst_26 {dimension_numbers = #tpu.dot_dimension_numbers<[1], [0], [0], [1], [0, 0, 1, 1], [], []>} : vector<8x8xbf16>, vector<8x32xbf16>, vector<8x32xf32> -> vector<8x32xf32>
    %92 = vector.extract_strided_slice %41 {offsets = [0, 64], sizes = [8, 32], strides = [1, 1]} : vector<8x128xf32> to vector<8x32xf32>
    %93 = arith.truncf %92 : vector<8x32xf32> to vector<8x32xbf16>
    %94 = vector.extract_strided_slice %43 {offsets = [0, 64], sizes = [8, 32], strides = [1, 1]} : vector<8x128xf32> to vector<8x32xf32>
    %95 = arith.truncf %94 : vector<8x32xf32> to vector<8x32xbf16>
    %96 = vector.extract_strided_slice %45 {offsets = [0, 64], sizes = [8, 32], strides = [1, 1]} : vector<8x128xf32> to vector<8x32xf32>
    %97 = arith.truncf %96 : vector<8x32xf32> to vector<8x32xbf16>
    %cst_27 = arith.constant dense<0.000000e+00> : vector<8x8xf32>
    %98 = tpu.matmul %93, %95, %cst_27 {dimension_numbers = #tpu.dot_dimension_numbers<[1], [1], [0], [0], [0, 0, 1, 0], [], []>} : vector<8x32xbf16>, vector<8x32xbf16>, vector<8x8xf32> -> vector<8x8xf32>
    %cst_28 = arith.constant 0.176776692 : f32
    %99 = vector.broadcast %cst_28 : f32 to vector<8x8xf32>
    %100 = arith.mulf %98, %99 : vector<8x8xf32>
    %101 = vector.broadcast %3 : vector<1x8xf32> to vector<8x8xf32>
    %102 = arith.addf %100, %101 : vector<8x8xf32>
    %cst_29 = arith.constant dense<0xFF800000> : vector<8xf32>
    %103 = vector.multi_reduction <maximumf>, %102, %cst_29 [1] : vector<8x8xf32> to vector<8xf32>
    %104 = vector.shape_cast %103 : vector<8xf32> to vector<8x1xf32>
    %105 = vector.broadcast %104 : vector<8x1xf32> to vector<8x8xf32>
    %106 = arith.subf %102, %105 : vector<8x8xf32>
    %107 = math.exp %106 : vector<8x8xf32>
    %cst_30 = arith.constant dense<0.000000e+00> : vector<8xf32>
    %108 = vector.multi_reduction <add>, %107, %cst_30 [1] : vector<8x8xf32> to vector<8xf32>
    %109 = vector.shape_cast %108 : vector<8xf32> to vector<8x1xf32>
    %110 = tpu.reciprocal %109 {approx = true} : vector<8x1xf32> -> vector<8x1xf32>
    %111 = vector.broadcast %110 : vector<8x1xf32> to vector<8x8xf32>
    %112 = arith.mulf %107, %111 : vector<8x8xf32>
    %113 = arith.truncf %112 : vector<8x8xf32> to vector<8x8xbf16>
    %cst_31 = arith.constant dense<0.000000e+00> : vector<8x32xf32>
    %114 = tpu.matmul %113, %97, %cst_31 {dimension_numbers = #tpu.dot_dimension_numbers<[1], [0], [0], [1], [0, 0, 1, 1], [], []>} : vector<8x8xbf16>, vector<8x32xbf16>, vector<8x32xf32> -> vector<8x32xf32>
    %115 = vector.extract_strided_slice %41 {offsets = [0, 96], sizes = [8, 32], strides = [1, 1]} : vector<8x128xf32> to vector<8x32xf32>
    %116 = arith.truncf %115 : vector<8x32xf32> to vector<8x32xbf16>
    %117 = vector.extract_strided_slice %43 {offsets = [0, 96], sizes = [8, 32], strides = [1, 1]} : vector<8x128xf32> to vector<8x32xf32>
    %118 = arith.truncf %117 : vector<8x32xf32> to vector<8x32xbf16>
    %119 = vector.extract_strided_slice %45 {offsets = [0, 96], sizes = [8, 32], strides = [1, 1]} : vector<8x128xf32> to vector<8x32xf32>
    %120 = arith.truncf %119 : vector<8x32xf32> to vector<8x32xbf16>
    %cst_32 = arith.constant dense<0.000000e+00> : vector<8x8xf32>
    %121 = tpu.matmul %116, %118, %cst_32 {dimension_numbers = #tpu.dot_dimension_numbers<[1], [1], [0], [0], [0, 0, 1, 0], [], []>} : vector<8x32xbf16>, vector<8x32xbf16>, vector<8x8xf32> -> vector<8x8xf32>
    %cst_33 = arith.constant 0.176776692 : f32
    %122 = vector.broadcast %cst_33 : f32 to vector<8x8xf32>
    %123 = arith.mulf %121, %122 : vector<8x8xf32>
    %124 = vector.broadcast %3 : vector<1x8xf32> to vector<8x8xf32>
    %125 = arith.addf %123, %124 : vector<8x8xf32>
    %cst_34 = arith.constant dense<0xFF800000> : vector<8xf32>
    %126 = vector.multi_reduction <maximumf>, %125, %cst_34 [1] : vector<8x8xf32> to vector<8xf32>
    %127 = vector.shape_cast %126 : vector<8xf32> to vector<8x1xf32>
    %128 = vector.broadcast %127 : vector<8x1xf32> to vector<8x8xf32>
    %129 = arith.subf %125, %128 : vector<8x8xf32>
    %130 = math.exp %129 : vector<8x8xf32>
    %cst_35 = arith.constant dense<0.000000e+00> : vector<8xf32>
    %131 = vector.multi_reduction <add>, %130, %cst_35 [1] : vector<8x8xf32> to vector<8xf32>
    %132 = vector.shape_cast %131 : vector<8xf32> to vector<8x1xf32>
    %133 = tpu.reciprocal %132 {approx = true} : vector<8x1xf32> -> vector<8x1xf32>
    %134 = vector.broadcast %133 : vector<8x1xf32> to vector<8x8xf32>
    %135 = arith.mulf %130, %134 : vector<8x8xf32>
    %136 = arith.truncf %135 : vector<8x8xf32> to vector<8x8xbf16>
    %cst_36 = arith.constant dense<0.000000e+00> : vector<8x32xf32>
    %137 = tpu.matmul %136, %120, %cst_36 {dimension_numbers = #tpu.dot_dimension_numbers<[1], [0], [0], [1], [0, 0, 1, 1], [], []>} : vector<8x8xbf16>, vector<8x32xbf16>, vector<8x32xf32> -> vector<8x32xf32>
    %138 = tpu.concatenate %68, %91, %114, %137 in 1 : vector<8x32xf32>, vector<8x32xf32>, vector<8x32xf32>, vector<8x32xf32> -> vector<8x128xf32>
    %139 = vector.extract_strided_slice %35 {offsets = [1, 0, 0], sizes = [1, 8, 128], strides = [1, 1, 1]} : vector<2x8x128xf32> to vector<1x8x128xf32>
    %140 = vector.shape_cast %139 : vector<1x8x128xf32> to vector<8x128xf32>
    %141 = vector.extract_strided_slice %37 {offsets = [1, 0, 0], sizes = [1, 8, 128], strides = [1, 1, 1]} : vector<2x8x128xf32> to vector<1x8x128xf32>
    %142 = vector.shape_cast %141 : vector<1x8x128xf32> to vector<8x128xf32>
    %143 = vector.extract_strided_slice %39 {offsets = [1, 0, 0], sizes = [1, 8, 128], strides = [1, 1, 1]} : vector<2x8x128xf32> to vector<1x8x128xf32>
    %144 = vector.shape_cast %143 : vector<1x8x128xf32> to vector<8x128xf32>
    %145 = vector.extract_strided_slice %140 {offsets = [0, 0], sizes = [8, 32], strides = [1, 1]} : vector<8x128xf32> to vector<8x32xf32>
    %146 = arith.truncf %145 : vector<8x32xf32> to vector<8x32xbf16>
    %147 = vector.extract_strided_slice %142 {offsets = [0, 0], sizes = [8, 32], strides = [1, 1]} : vector<8x128xf32> to vector<8x32xf32>
    %148 = arith.truncf %147 : vector<8x32xf32> to vector<8x32xbf16>
    %149 = vector.extract_strided_slice %144 {offsets = [0, 0], sizes = [8, 32], strides = [1, 1]} : vector<8x128xf32> to vector<8x32xf32>
    %150 = arith.truncf %149 : vector<8x32xf32> to vector<8x32xbf16>
    %cst_37 = arith.constant dense<0.000000e+00> : vector<8x8xf32>
    %151 = tpu.matmul %146, %148, %cst_37 {dimension_numbers = #tpu.dot_dimension_numbers<[1], [1], [0], [0], [0, 0, 1, 0], [], []>} : vector<8x32xbf16>, vector<8x32xbf16>, vector<8x8xf32> -> vector<8x8xf32>
    %cst_38 = arith.constant 0.176776692 : f32
    %152 = vector.broadcast %cst_38 : f32 to vector<8x8xf32>
    %153 = arith.mulf %151, %152 : vector<8x8xf32>
    %154 = vector.broadcast %3 : vector<1x8xf32> to vector<8x8xf32>
    %155 = arith.addf %153, %154 : vector<8x8xf32>
    %cst_39 = arith.constant dense<0xFF800000> : vector<8xf32>
    %156 = vector.multi_reduction <maximumf>, %155, %cst_39 [1] : vector<8x8xf32> to vector<8xf32>
    %157 = vector.shape_cast %156 : vector<8xf32> to vector<8x1xf32>
    %158 = vector.broadcast %157 : vector<8x1xf32> to vector<8x8xf32>
    %159 = arith.subf %155, %158 : vector<8x8xf32>
    %160 = math.exp %159 : vector<8x8xf32>
    %cst_40 = arith.constant dense<0.000000e+00> : vector<8xf32>
    %161 = vector.multi_reduction <add>, %160, %cst_40 [1] : vector<8x8xf32> to vector<8xf32>
    %162 = vector.shape_cast %161 : vector<8xf32> to vector<8x1xf32>
    %163 = tpu.reciprocal %162 {approx = true} : vector<8x1xf32> -> vector<8x1xf32>
    %164 = vector.broadcast %163 : vector<8x1xf32> to vector<8x8xf32>
    %165 = arith.mulf %160, %164 : vector<8x8xf32>
    %166 = arith.truncf %165 : vector<8x8xf32> to vector<8x8xbf16>
    %cst_41 = arith.constant dense<0.000000e+00> : vector<8x32xf32>
    %167 = tpu.matmul %166, %150, %cst_41 {dimension_numbers = #tpu.dot_dimension_numbers<[1], [0], [0], [1], [0, 0, 1, 1], [], []>} : vector<8x8xbf16>, vector<8x32xbf16>, vector<8x32xf32> -> vector<8x32xf32>
    %168 = vector.extract_strided_slice %140 {offsets = [0, 32], sizes = [8, 32], strides = [1, 1]} : vector<8x128xf32> to vector<8x32xf32>
    %169 = arith.truncf %168 : vector<8x32xf32> to vector<8x32xbf16>
    %170 = vector.extract_strided_slice %142 {offsets = [0, 32], sizes = [8, 32], strides = [1, 1]} : vector<8x128xf32> to vector<8x32xf32>
    %171 = arith.truncf %170 : vector<8x32xf32> to vector<8x32xbf16>
    %172 = vector.extract_strided_slice %144 {offsets = [0, 32], sizes = [8, 32], strides = [1, 1]} : vector<8x128xf32> to vector<8x32xf32>
    %173 = arith.truncf %172 : vector<8x32xf32> to vector<8x32xbf16>
    %cst_42 = arith.constant dense<0.000000e+00> : vector<8x8xf32>
    %174 = tpu.matmul %169, %171, %cst_42 {dimension_numbers = #tpu.dot_dimension_numbers<[1], [1], [0], [0], [0, 0, 1, 0], [], []>} : vector<8x32xbf16>, vector<8x32xbf16>, vector<8x8xf32> -> vector<8x8xf32>
    %cst_43 = arith.constant 0.176776692 : f32
    %175 = vector.broadcast %cst_43 : f32 to vector<8x8xf32>
    %176 = arith.mulf %174, %175 : vector<8x8xf32>
    %177 = vector.broadcast %3 : vector<1x8xf32> to vector<8x8xf32>
    %178 = arith.addf %176, %177 : vector<8x8xf32>
    %cst_44 = arith.constant dense<0xFF800000> : vector<8xf32>
    %179 = vector.multi_reduction <maximumf>, %178, %cst_44 [1] : vector<8x8xf32> to vector<8xf32>
    %180 = vector.shape_cast %179 : vector<8xf32> to vector<8x1xf32>
    %181 = vector.broadcast %180 : vector<8x1xf32> to vector<8x8xf32>
    %182 = arith.subf %178, %181 : vector<8x8xf32>
    %183 = math.exp %182 : vector<8x8xf32>
    %cst_45 = arith.constant dense<0.000000e+00> : vector<8xf32>
    %184 = vector.multi_reduction <add>, %183, %cst_45 [1] : vector<8x8xf32> to vector<8xf32>
    %185 = vector.shape_cast %184 : vector<8xf32> to vector<8x1xf32>
    %186 = tpu.reciprocal %185 {approx = true} : vector<8x1xf32> -> vector<8x1xf32>
    %187 = vector.broadcast %186 : vector<8x1xf32> to vector<8x8xf32>
    %188 = arith.mulf %183, %187 : vector<8x8xf32>
    %189 = arith.truncf %188 : vector<8x8xf32> to vector<8x8xbf16>
    %cst_46 = arith.constant dense<0.000000e+00> : vector<8x32xf32>
    %190 = tpu.matmul %189, %173, %cst_46 {dimension_numbers = #tpu.dot_dimension_numbers<[1], [0], [0], [1], [0, 0, 1, 1], [], []>} : vector<8x8xbf16>, vector<8x32xbf16>, vector<8x32xf32> -> vector<8x32xf32>
    %191 = vector.extract_strided_slice %140 {offsets = [0, 64], sizes = [8, 32], strides = [1, 1]} : vector<8x128xf32> to vector<8x32xf32>
    %192 = arith.truncf %191 : vector<8x32xf32> to vector<8x32xbf16>
    %193 = vector.extract_strided_slice %142 {offsets = [0, 64], sizes = [8, 32], strides = [1, 1]} : vector<8x128xf32> to vector<8x32xf32>
    %194 = arith.truncf %193 : vector<8x32xf32> to vector<8x32xbf16>
    %195 = vector.extract_strided_slice %144 {offsets = [0, 64], sizes = [8, 32], strides = [1, 1]} : vector<8x128xf32> to vector<8x32xf32>
    %196 = arith.truncf %195 : vector<8x32xf32> to vector<8x32xbf16>
    %cst_47 = arith.constant dense<0.000000e+00> : vector<8x8xf32>
    %197 = tpu.matmul %192, %194, %cst_47 {dimension_numbers = #tpu.dot_dimension_numbers<[1], [1], [0], [0], [0, 0, 1, 0], [], []>} : vector<8x32xbf16>, vector<8x32xbf16>, vector<8x8xf32> -> vector<8x8xf32>
    %cst_48 = arith.constant 0.176776692 : f32
    %198 = vector.broadcast %cst_48 : f32 to vector<8x8xf32>
    %199 = arith.mulf %197, %198 : vector<8x8xf32>
    %200 = vector.broadcast %3 : vector<1x8xf32> to vector<8x8xf32>
    %201 = arith.addf %199, %200 : vector<8x8xf32>
    %cst_49 = arith.constant dense<0xFF800000> : vector<8xf32>
    %202 = vector.multi_reduction <maximumf>, %201, %cst_49 [1] : vector<8x8xf32> to vector<8xf32>
    %203 = vector.shape_cast %202 : vector<8xf32> to vector<8x1xf32>
    %204 = vector.broadcast %203 : vector<8x1xf32> to vector<8x8xf32>
    %205 = arith.subf %201, %204 : vector<8x8xf32>
    %206 = math.exp %205 : vector<8x8xf32>
    %cst_50 = arith.constant dense<0.000000e+00> : vector<8xf32>
    %207 = vector.multi_reduction <add>, %206, %cst_50 [1] : vector<8x8xf32> to vector<8xf32>
    %208 = vector.shape_cast %207 : vector<8xf32> to vector<8x1xf32>
    %209 = tpu.reciprocal %208 {approx = true} : vector<8x1xf32> -> vector<8x1xf32>
    %210 = vector.broadcast %209 : vector<8x1xf32> to vector<8x8xf32>
    %211 = arith.mulf %206, %210 : vector<8x8xf32>
    %212 = arith.truncf %211 : vector<8x8xf32> to vector<8x8xbf16>
    %cst_51 = arith.constant dense<0.000000e+00> : vector<8x32xf32>
    %213 = tpu.matmul %212, %196, %cst_51 {dimension_numbers = #tpu.dot_dimension_numbers<[1], [0], [0], [1], [0, 0, 1, 1], [], []>} : vector<8x8xbf16>, vector<8x32xbf16>, vector<8x32xf32> -> vector<8x32xf32>
    %214 = vector.extract_strided_slice %140 {offsets = [0, 96], sizes = [8, 32], strides = [1, 1]} : vector<8x128xf32> to vector<8x32xf32>
    %215 = arith.truncf %214 : vector<8x32xf32> to vector<8x32xbf16>
    %216 = vector.extract_strided_slice %142 {offsets = [0, 96], sizes = [8, 32], strides = [1, 1]} : vector<8x128xf32> to vector<8x32xf32>
    %217 = arith.truncf %216 : vector<8x32xf32> to vector<8x32xbf16>
    %218 = vector.extract_strided_slice %144 {offsets = [0, 96], sizes = [8, 32], strides = [1, 1]} : vector<8x128xf32> to vector<8x32xf32>
    %219 = arith.truncf %218 : vector<8x32xf32> to vector<8x32xbf16>
    %cst_52 = arith.constant dense<0.000000e+00> : vector<8x8xf32>
    %220 = tpu.matmul %215, %217, %cst_52 {dimension_numbers = #tpu.dot_dimension_numbers<[1], [1], [0], [0], [0, 0, 1, 0], [], []>} : vector<8x32xbf16>, vector<8x32xbf16>, vector<8x8xf32> -> vector<8x8xf32>
    %cst_53 = arith.constant 0.176776692 : f32
    %221 = vector.broadcast %cst_53 : f32 to vector<8x8xf32>
    %222 = arith.mulf %220, %221 : vector<8x8xf32>
    %223 = vector.broadcast %3 : vector<1x8xf32> to vector<8x8xf32>
    %224 = arith.addf %222, %223 : vector<8x8xf32>
    %cst_54 = arith.constant dense<0xFF800000> : vector<8xf32>
    %225 = vector.multi_reduction <maximumf>, %224, %cst_54 [1] : vector<8x8xf32> to vector<8xf32>
    %226 = vector.shape_cast %225 : vector<8xf32> to vector<8x1xf32>
    %227 = vector.broadcast %226 : vector<8x1xf32> to vector<8x8xf32>
    %228 = arith.subf %224, %227 : vector<8x8xf32>
    %229 = math.exp %228 : vector<8x8xf32>
    %cst_55 = arith.constant dense<0.000000e+00> : vector<8xf32>
    %230 = vector.multi_reduction <add>, %229, %cst_55 [1] : vector<8x8xf32> to vector<8xf32>
    %231 = vector.shape_cast %230 : vector<8xf32> to vector<8x1xf32>
    %232 = tpu.reciprocal %231 {approx = true} : vector<8x1xf32> -> vector<8x1xf32>
    %233 = vector.broadcast %232 : vector<8x1xf32> to vector<8x8xf32>
    %234 = arith.mulf %229, %233 : vector<8x8xf32>
    %235 = arith.truncf %234 : vector<8x8xf32> to vector<8x8xbf16>
    %cst_56 = arith.constant dense<0.000000e+00> : vector<8x32xf32>
    %236 = tpu.matmul %235, %219, %cst_56 {dimension_numbers = #tpu.dot_dimension_numbers<[1], [0], [0], [1], [0, 0, 1, 1], [], []>} : vector<8x8xbf16>, vector<8x32xbf16>, vector<8x32xf32> -> vector<8x32xf32>
    %237 = tpu.concatenate %167, %190, %213, %236 in 1 : vector<8x32xf32>, vector<8x32xf32>, vector<8x32xf32>, vector<8x32xf32> -> vector<8x128xf32>
    %238 = tpu.concatenate %138, %237 in 0 : vector<8x128xf32>, vector<8x128xf32> -> vector<16x128xf32>
    %c0_57 = arith.constant 0 : index
    %c0_58 = arith.constant 0 : index
    %239 = vector.load %arg5[%c0_57, %c0_58] : memref<128x128xbf16, #tpu.memory_space<vmem>>, vector<128x128xbf16>
    %240 = arith.truncf %238 : vector<16x128xf32> to vector<16x128xbf16>
    %cst_59 = arith.constant dense<0.000000e+00> : vector<16x128xf32>
    %241 = tpu.matmul %240, %239, %cst_59 {dimension_numbers = #tpu.dot_dimension_numbers<[1], [0], [0], [1], [0, 0, 1, 1], [], []>} : vector<16x128xbf16>, vector<128x128xbf16>, vector<16x128xf32> -> vector<16x128xf32>
    %242 = arith.addf %2, %241 : vector<16x128xf32>
    %c0_60 = arith.constant 0 : index
    %c0_61 = arith.constant 0 : index
    %243 = vector.load %arg6[%c0_60, %c0_61] : memref<1x128xf32, #tpu.memory_space<vmem>>, vector<1x128xf32>
    %244 = vector.broadcast %243 : vector<1x128xf32> to vector<16x128xf32>
    %245 = arith.addf %242, %244 : vector<16x128xf32>
    %c0_62 = arith.constant 0 : index
    %c0_63 = arith.constant 0 : index
    %246 = vector.load %arg9[%c0_62, %c0_63] : memref<1x128xf32, #tpu.memory_space<vmem>>, vector<1x128xf32>
    %c0_64 = arith.constant 0 : index
    %c0_65 = arith.constant 0 : index
    %247 = vector.load %arg10[%c0_64, %c0_65] : memref<1x128xf32, #tpu.memory_space<vmem>>, vector<1x128xf32>
    %cst_66 = arith.constant dense<0.000000e+00> : vector<16xf32>
    %248 = vector.multi_reduction <add>, %245, %cst_66 [1] : vector<16x128xf32> to vector<16xf32>
    %249 = vector.shape_cast %248 : vector<16xf32> to vector<16x1xf32>
    %cst_67 = arith.constant 1.280000e+02 : f32
    %250 = vector.broadcast %cst_67 : f32 to vector<16x1xf32>
    %251 = arith.divf %249, %250 : vector<16x1xf32>
    %252 = vector.broadcast %251 : vector<16x1xf32> to vector<16x128xf32>
    %253 = arith.subf %245, %252 : vector<16x128xf32>
    %254 = arith.mulf %253, %253 : vector<16x128xf32>
    %cst_68 = arith.constant dense<0.000000e+00> : vector<16xf32>
    %255 = vector.multi_reduction <add>, %254, %cst_68 [1] : vector<16x128xf32> to vector<16xf32>
    %256 = vector.shape_cast %255 : vector<16xf32> to vector<16x1xf32>
    %cst_69 = arith.constant 1.280000e+02 : f32
    %257 = vector.broadcast %cst_69 : f32 to vector<16x1xf32>
    %258 = arith.divf %256, %257 : vector<16x1xf32>
    %259 = vector.broadcast %251 : vector<16x1xf32> to vector<16x128xf32>
    %260 = arith.subf %245, %259 : vector<16x128xf32>
    %cst_70 = arith.constant 9.99999997E-7 : f32
    %261 = vector.broadcast %cst_70 : f32 to vector<16x1xf32>
    %262 = arith.addf %258, %261 : vector<16x1xf32>
    %263 = math.rsqrt %262 : vector<16x1xf32>
    %264 = vector.broadcast %263 : vector<16x1xf32> to vector<16x128xf32>
    %265 = arith.mulf %260, %264 : vector<16x128xf32>
    %266 = vector.broadcast %246 : vector<1x128xf32> to vector<16x128xf32>
    %267 = arith.mulf %265, %266 : vector<16x128xf32>
    %268 = vector.broadcast %247 : vector<1x128xf32> to vector<16x128xf32>
    %269 = arith.addf %267, %268 : vector<16x128xf32>
    %c0_71 = arith.constant 0 : index
    %c0_72 = arith.constant 0 : index
    %270 = vector.load %arg11[%c0_71, %c0_72] : memref<128x512xbf16, #tpu.memory_space<vmem>>, vector<128x512xbf16>
    %271 = arith.truncf %269 : vector<16x128xf32> to vector<16x128xbf16>
    %cst_73 = arith.constant dense<0.000000e+00> : vector<16x512xf32>
    %272 = tpu.matmul %271, %270, %cst_73 {dimension_numbers = #tpu.dot_dimension_numbers<[1], [0], [0], [1], [0, 0, 1, 1], [], []>} : vector<16x128xbf16>, vector<128x512xbf16>, vector<16x512xf32> -> vector<16x512xf32>
    %c0_74 = arith.constant 0 : index
    %c0_75 = arith.constant 0 : index
    %273 = vector.load %arg12[%c0_74, %c0_75] : memref<1x512xf32, #tpu.memory_space<vmem>>, vector<1x512xf32>
    %274 = vector.broadcast %273 : vector<1x512xf32> to vector<16x512xf32>
    %275 = arith.addf %272, %274 : vector<16x512xf32>
    %276 = arith.mulf %275, %275 : vector<16x512xf32>
    %277 = arith.mulf %275, %276 : vector<16x512xf32>
    %cst_76 = arith.constant 4.471500e-02 : f32
    %278 = vector.broadcast %cst_76 : f32 to vector<16x512xf32>
    %279 = arith.mulf %278, %277 : vector<16x512xf32>
    %280 = arith.addf %275, %279 : vector<16x512xf32>
    %cst_77 = arith.constant 0.797884583 : f32
    %281 = vector.broadcast %cst_77 : f32 to vector<16x512xf32>
    %282 = arith.mulf %281, %280 : vector<16x512xf32>
    %283 = math.tanh %282 : vector<16x512xf32>
    %cst_78 = arith.constant 1.000000e+00 : f32
    %284 = vector.broadcast %cst_78 : f32 to vector<16x512xf32>
    %285 = arith.addf %284, %283 : vector<16x512xf32>
    %cst_79 = arith.constant 5.000000e-01 : f32
    %286 = vector.broadcast %cst_79 : f32 to vector<16x512xf32>
    %287 = arith.mulf %286, %285 : vector<16x512xf32>
    %288 = arith.mulf %275, %287 : vector<16x512xf32>
    %c0_80 = arith.constant 0 : index
    %c0_81 = arith.constant 0 : index
    %289 = vector.load %arg13[%c0_80, %c0_81] : memref<512x128xbf16, #tpu.memory_space<vmem>>, vector<512x128xbf16>
    %290 = arith.truncf %288 : vector<16x512xf32> to vector<16x512xbf16>
    %cst_82 = arith.constant dense<0.000000e+00> : vector<16x128xf32>
    %291 = tpu.matmul %290, %289, %cst_82 {dimension_numbers = #tpu.dot_dimension_numbers<[1], [0], [0], [1], [0, 0, 1, 1], [], []>} : vector<16x512xbf16>, vector<512x128xbf16>, vector<16x128xf32> -> vector<16x128xf32>
    %292 = arith.addf %245, %291 : vector<16x128xf32>
    %c0_83 = arith.constant 0 : index
    %c0_84 = arith.constant 0 : index
    %293 = vector.load %arg14[%c0_83, %c0_84] : memref<1x128xf32, #tpu.memory_space<vmem>>, vector<1x128xf32>
    %294 = vector.broadcast %293 : vector<1x128xf32> to vector<16x128xf32>
    %295 = arith.addf %292, %294 : vector<16x128xf32>
    %296 = vector.shape_cast %295 : vector<16x128xf32> to vector<2x8x128xf32>
    %297 = arith.truncf %296 : vector<2x8x128xf32> to vector<2x8x128xbf16>
    %c0_85 = arith.constant 0 : index
    %c0_86 = arith.constant 0 : index
    %c0_87 = arith.constant 0 : index
    %298 = vector.load %arg15[%c0_85, %c0_86, %c0_87] : memref<2x8x128xbf16, #tpu.memory_space<vmem>>, vector<2x8x128xbf16>
    tpu.vector_store %arg15[%c0_85, %c0_86, %c0_87], %297 {strides = array<i32>} : memref<2x8x128xbf16, #tpu.memory_space<vmem>>, vector<2x8x128xbf16>,
    return
  }
  func.func @transform_0(%arg0: i32) -> (i32, i32, i32) {
    %c0_i32 = arith.constant 0 : i32
    %c0_i32_0 = arith.constant 0 : i32
    %c0_i32_1 = arith.constant 0 : i32
    return %arg0, %c0_i32, %c0_i32_0 : i32, i32, i32
  }
  func.func @transform_1(%arg0: i32) -> (i32, i32) {
    %c0_i32 = arith.constant 0 : i32
    %c0_i32_0 = arith.constant 0 : i32
    %c0_i32_1 = arith.constant 0 : i32
    return %c0_i32, %c0_i32_0 : i32, i32
  }
  func.func @transform_2(%arg0: i32) -> (i32, i32) {
    %c0_i32 = arith.constant 0 : i32
    %c0_i32_0 = arith.constant 0 : i32
    %c0_i32_1 = arith.constant 0 : i32
    return %c0_i32, %c0_i32_0 : i32, i32
  }
  func.func @transform_3(%arg0: i32) -> (i32, i32) {
    %c0_i32 = arith.constant 0 : i32
    %c0_i32_0 = arith.constant 0 : i32
    %c0_i32_1 = arith.constant 0 : i32
    return %c0_i32, %c0_i32_0 : i32, i32
  }
  func.func @transform_4(%arg0: i32) -> (i32, i32) {
    %c0_i32 = arith.constant 0 : i32
    %c0_i32_0 = arith.constant 0 : i32
    %c0_i32_1 = arith.constant 0 : i32
    return %c0_i32, %c0_i32_0 : i32, i32
  }
  func.func @transform_5(%arg0: i32) -> (i32, i32) {
    %c0_i32 = arith.constant 0 : i32
    %c0_i32_0 = arith.constant 0 : i32
    %c0_i32_1 = arith.constant 0 : i32
    return %c0_i32, %c0_i32_0 : i32, i32
  }
  func.func @transform_6(%arg0: i32) -> (i32, i32) {
    %c0_i32 = arith.constant 0 : i32
    %c0_i32_0 = arith.constant 0 : i32
    %c0_i32_1 = arith.constant 0 : i32
    return %c0_i32, %c0_i32_0 : i32, i32
  }
  func.func @transform_7(%arg0: i32) -> (i32, i32) {
    %c0_i32 = arith.constant 0 : i32
    %c0_i32_0 = arith.constant 0 : i32
    %c0_i32_1 = arith.constant 0 : i32
    return %c0_i32, %c0_i32_0 : i32, i32
  }
  func.func @transform_8(%arg0: i32) -> (i32, i32) {
    %c0_i32 = arith.constant 0 : i32
    %c0_i32_0 = arith.constant 0 : i32
    %c0_i32_1 = arith.constant 0 : i32
    return %c0_i32, %c0_i32_0 : i32, i32
  }
  func.func @transform_9(%arg0: i32) -> (i32, i32) {
    %c0_i32 = arith.constant 0 : i32
    %c0_i32_0 = arith.constant 0 : i32
    %c0_i32_1 = arith.constant 0 : i32
    return %c0_i32, %c0_i32_0 : i32, i32
  }
  func.func @transform_10(%arg0: i32) -> (i32, i32) {
    %c0_i32 = arith.constant 0 : i32
    %c0_i32_0 = arith.constant 0 : i32
    %c0_i32_1 = arith.constant 0 : i32
    return %c0_i32, %c0_i32_0 : i32, i32
  }
  func.func @transform_11(%arg0: i32) -> (i32, i32) {
    %c0_i32 = arith.constant 0 : i32
    %c0_i32_0 = arith.constant 0 : i32
    %c0_i32_1 = arith.constant 0 : i32
    return %c0_i32, %c0_i32_0 : i32, i32
  }
  func.func @transform_12(%arg0: i32) -> (i32, i32) {
    %c0_i32 = arith.constant 0 : i32
    %c0_i32_0 = arith.constant 0 : i32
    %c0_i32_1 = arith.constant 0 : i32
    return %c0_i32, %c0_i32_0 : i32, i32
  }
  func.func @transform_13(%arg0: i32) -> (i32, i32) {
    %c0_i32 = arith.constant 0 : i32
    %c0_i32_0 = arith.constant 0 : i32
    %c0_i32_1 = arith.constant 0 : i32
    return %c0_i32, %c0_i32_0 : i32, i32
  }
  func.func @transform_14(%arg0: i32) -> (i32, i32, i32) {
    %c0_i32 = arith.constant 0 : i32
    %c0_i32_0 = arith.constant 0 : i32
    %c0_i32_1 = arith.constant 0 : i32
    return %arg0, %c0_i32, %c0_i32_0 : i32, i32, i32
  }
}

module attributes {stable_mosaic.version = 11 : i64} {
  func.func @_vit_block_kernel(%arg0: i32, %arg1: memref<2x8x128xbf16, #tpu.memory_space<vmem>>, %arg2: memref<1x8xf32, #tpu.memory_space<vmem>>, %arg3: memref<128x384xbf16, #tpu.memory_space<vmem>>, %arg4: memref<1x384xf32, #tpu.memory_space<vmem>>, %arg5: memref<128x128xbf16, #tpu.memory_space<vmem>>, %arg6: memref<1x128xf32, #tpu.memory_space<vmem>>, %arg7: memref<1x128xf32, #tpu.memory_space<vmem>>, %arg8: memref<1x128xf32, #tpu.memory_space<vmem>>, %arg9: memref<1x128xf32, #tpu.memory_space<vmem>>, %arg10: memref<1x128xf32, #tpu.memory_space<vmem>>, %arg11: memref<128x512xbf16, #tpu.memory_space<vmem>>, %arg12: memref<1x512xf32, #tpu.memory_space<vmem>>, %arg13: memref<512x128xbf16, #tpu.memory_space<vmem>>, %arg14: memref<1x128xf32, #tpu.memory_space<vmem>>, %arg15: memref<2x8x128xbf16, #tpu.memory_space<vmem>>) attributes {dimension_semantics = [#tpu.dimension_semantics<parallel>], iteration_bounds = array<i64: 2>, scalar_prefetch = 0 : i64, scratch_operands = 0 : i64, tpu.core_type = #tpu.core_type<tc>, window_params = [{transform_indices = @transform_0, window_bounds = array<i64: 2, 8, 128>}, {pipeline_mode = #tpu.pipeline_mode<synchronous>, transform_indices = @transform_1, window_bounds = array<i64: 1, 8>}, {pipeline_mode = #tpu.pipeline_mode<synchronous>, transform_indices = @transform_2, window_bounds = array<i64: 128, 384>}, {pipeline_mode = #tpu.pipeline_mode<synchronous>, transform_indices = @transform_3, window_bounds = array<i64: 1, 384>}, {pipeline_mode = #tpu.pipeline_mode<synchronous>, transform_indices = @transform_4, window_bounds = array<i64: 128, 128>}, {pipeline_mode = #tpu.pipeline_mode<synchronous>, transform_indices = @transform_5, window_bounds = array<i64: 1, 128>}, {pipeline_mode = #tpu.pipeline_mode<synchronous>, transform_indices = @transform_6, window_bounds = array<i64: 1, 128>}, {pipeline_mode = #tpu.pipeline_mode<synchronous>, transform_indices = @transform_7, window_bounds = array<i64: 1, 128>}, {pipeline_mode = #tpu.pipeline_mode<synchronous>, transform_indices = @transform_8, window_bounds = array<i64: 1, 128>}, {pipeline_mode = #tpu.pipeline_mode<synchronous>, transform_indices = @transform_9, window_bounds = array<i64: 1, 128>}, {pipeline_mode = #tpu.pipeline_mode<synchronous>, transform_indices = @transform_10, window_bounds = array<i64: 128, 512>}, {pipeline_mode = #tpu.pipeline_mode<synchronous>, transform_indices = @transform_11, window_bounds = array<i64: 1, 512>}, {pipeline_mode = #tpu.pipeline_mode<synchronous>, transform_indices = @transform_12, window_bounds = array<i64: 512, 128>}, {pipeline_mode = #tpu.pipeline_mode<synchronous>, transform_indices = @transform_13, window_bounds = array<i64: 1, 128>}, {transform_indices = @transform_14, window_bounds = array<i64: 2, 8, 128>}]} {
    %c0 = arith.constant 0 : index
    %c0_0 = arith.constant 0 : index
    %c0_1 = arith.constant 0 : index
    %0 = vector.load %arg1[%c0, %c0_0, %c0_1] : memref<2x8x128xbf16, #tpu.memory_space<vmem>>, vector<2x8x128xbf16>
    %1 = arith.extf %0 : vector<2x8x128xbf16> to vector<2x8x128xf32>
    %2 = vector.shape_cast %1 : vector<2x8x128xf32> to vector<16x128xf32>
    %c0_2 = arith.constant 0 : index
    %c0_3 = arith.constant 0 : index
    %3 = vector.load %arg2[%c0_2, %c0_3] : memref<1x8xf32, #tpu.memory_space<vmem>>, vector<1x8xf32>
    %c0_4 = arith.constant 0 : index
    %c0_5 = arith.constant 0 : index
    %4 = vector.load %arg7[%c0_4, %c0_5] : memref<1x128xf32, #tpu.memory_space<vmem>>, vector<1x128xf32>
    %c0_6 = arith.constant 0 : index
    %c0_7 = arith.constant 0 : index
    %5 = vector.load %arg8[%c0_6, %c0_7] : memref<1x128xf32, #tpu.memory_space<vmem>>, vector<1x128xf32>
    %cst = arith.constant dense<0.000000e+00> : vector<16xf32>
    %6 = vector.multi_reduction <add>, %2, %cst [1] : vector<16x128xf32> to vector<16xf32>
    %7 = vector.shape_cast %6 : vector<16xf32> to vector<16x1xf32>
    %cst_8 = arith.constant 1.280000e+02 : f32
    %8 = vector.broadcast %cst_8 : f32 to vector<16x1xf32>
    %9 = arith.divf %7, %8 : vector<16x1xf32>
    %10 = vector.broadcast %9 : vector<16x1xf32> to vector<16x128xf32>
    %11 = arith.subf %2, %10 : vector<16x128xf32>
    %12 = arith.mulf %11, %11 : vector<16x128xf32>
    %cst_9 = arith.constant dense<0.000000e+00> : vector<16xf32>
    %13 = vector.multi_reduction <add>, %12, %cst_9 [1] : vector<16x128xf32> to vector<16xf32>
    %14 = vector.shape_cast %13 : vector<16xf32> to vector<16x1xf32>
    %cst_10 = arith.constant 1.280000e+02 : f32
    %15 = vector.broadcast %cst_10 : f32 to vector<16x1xf32>
    %16 = arith.divf %14, %15 : vector<16x1xf32>
    %17 = vector.broadcast %9 : vector<16x1xf32> to vector<16x128xf32>
    %18 = arith.subf %2, %17 : vector<16x128xf32>
    %cst_11 = arith.constant 9.99999997E-7 : f32
    %19 = vector.broadcast %cst_11 : f32 to vector<16x1xf32>
    %20 = arith.addf %16, %19 : vector<16x1xf32>
    %21 = math.rsqrt %20 : vector<16x1xf32>
    %22 = vector.broadcast %21 : vector<16x1xf32> to vector<16x128xf32>
    %23 = arith.mulf %18, %22 : vector<16x128xf32>
    %24 = vector.broadcast %4 : vector<1x128xf32> to vector<16x128xf32>
    %25 = arith.mulf %23, %24 : vector<16x128xf32>
    %26 = vector.broadcast %5 : vector<1x128xf32> to vector<16x128xf32>
    %27 = arith.addf %25, %26 : vector<16x128xf32>
    %c0_12 = arith.constant 0 : index
    %c0_13 = arith.constant 0 : index
    %28 = vector.load %arg3[%c0_12, %c0_13] : memref<128x384xbf16, #tpu.memory_space<vmem>>, vector<128x384xbf16>
    %29 = arith.truncf %27 : vector<16x128xf32> to vector<16x128xbf16>
    %cst_14 = arith.constant dense<0.000000e+00> : vector<16x384xf32>
    %30 = tpu.matmul %29, %28, %cst_14 {dimension_numbers = #tpu.dot_dimension_numbers<[1], [0], [0], [1], [0, 0, 1, 1], [], []>} : vector<16x128xbf16>, vector<128x384xbf16>, vector<16x384xf32> -> vector<16x384xf32>
    %c0_15 = arith.constant 0 : index
    %c0_16 = arith.constant 0 : index
    %31 = vector.load %arg4[%c0_15, %c0_16] : memref<1x384xf32, #tpu.memory_space<vmem>>, vector<1x384xf32>
    %32 = vector.broadcast %31 : vector<1x384xf32> to vector<16x384xf32>
    %33 = arith.addf %30, %32 : vector<16x384xf32>
    %34 = vector.extract_strided_slice %33 {offsets = [0, 0], sizes = [16, 128], strides = [1, 1]} : vector<16x384xf32> to vector<16x128xf32>
    %35 = vector.shape_cast %34 : vector<16x128xf32> to vector<2x8x128xf32>
    %36 = vector.extract_strided_slice %33 {offsets = [0, 128], sizes = [16, 128], strides = [1, 1]} : vector<16x384xf32> to vector<16x128xf32>
    %37 = vector.shape_cast %36 : vector<16x128xf32> to vector<2x8x128xf32>
    %38 = vector.extract_strided_slice %33 {offsets = [0, 256], sizes = [16, 128], strides = [1, 1]} : vector<16x384xf32> to vector<16x128xf32>
    %39 = vector.shape_cast %38 : vector<16x128xf32> to vector<2x8x128xf32>
    %40 = vector.extract_strided_slice %35 {offsets = [0, 0, 0], sizes = [1, 8, 128], strides = [1, 1, 1]} : vector<2x8x128xf32> to vector<1x8x128xf32>
    %41 = vector.shape_cast %40 : vector<1x8x128xf32> to vector<8x128xf32>
    %42 = vector.extract_strided_slice %37 {offsets = [0, 0, 0], sizes = [1, 8, 128], strides = [1, 1, 1]} : vector<2x8x128xf32> to vector<1x8x128xf32>
    %43 = vector.shape_cast %42 : vector<1x8x128xf32> to vector<8x128xf32>
    %44 = vector.extract_strided_slice %39 {offsets = [0, 0, 0], sizes = [1, 8, 128], strides = [1, 1, 1]} : vector<2x8x128xf32> to vector<1x8x128xf32>
    %45 = vector.shape_cast %44 : vector<1x8x128xf32> to vector<8x128xf32>
    %46 = vector.extract_strided_slice %41 {offsets = [0, 0], sizes = [8, 32], strides = [1, 1]} : vector<8x128xf32> to vector<8x32xf32>
    %47 = arith.truncf %46 : vector<8x32xf32> to vector<8x32xbf16>
    %48 = vector.extract_strided_slice %43 {offsets = [0, 0], sizes = [8, 32], strides = [1, 1]} : vector<8x128xf32> to vector<8x32xf32>
    %49 = arith.truncf %48 : vector<8x32xf32> to vector<8x32xbf16>
    %50 = vector.extract_strided_slice %45 {offsets = [0, 0], sizes = [8, 32], strides = [1, 1]} : vector<8x128xf32> to vector<8x32xf32>
    %51 = arith.truncf %50 : vector<8x32xf32> to vector<8x32xbf16>
    %cst_17 = arith.constant dense<0.000000e+00> : vector<8x8xf32>
    %52 = tpu.matmul %47, %49, %cst_17 {dimension_numbers = #tpu.dot_dimension_numbers<[1], [1], [0], [0], [0, 0, 1, 0], [], []>} : vector<8x32xbf16>, vector<8x32xbf16>, vector<8x8xf32> -> vector<8x8xf32>
    %cst_18 = arith.constant 0.176776692 : f32
    %53 = vector.broadcast %cst_18 : f32 to vector<8x8xf32>
    %54 = arith.mulf %52, %53 : vector<8x8xf32>
    %55 = vector.broadcast %3 : vector<1x8xf32> to vector<8x8xf32>
    %56 = arith.addf %54, %55 : vector<8x8xf32>
    %cst_19 = arith.constant dense<0xFF800000> : vector<8xf32>
    %57 = vector.multi_reduction <maximumf>, %56, %cst_19 [1] : vector<8x8xf32> to vector<8xf32>
    %58 = vector.shape_cast %57 : vector<8xf32> to vector<8x1xf32>
    %59 = vector.broadcast %58 : vector<8x1xf32> to vector<8x8xf32>
    %60 = arith.subf %56, %59 : vector<8x8xf32>
    %61 = math.exp %60 : vector<8x8xf32>
    %cst_20 = arith.constant dense<0.000000e+00> : vector<8xf32>
    %62 = vector.multi_reduction <add>, %61, %cst_20 [1] : vector<8x8xf32> to vector<8xf32>
    %63 = vector.shape_cast %62 : vector<8xf32> to vector<8x1xf32>
    %64 = tpu.reciprocal %63 {approx = true} : vector<8x1xf32> -> vector<8x1xf32>
    %65 = vector.broadcast %64 : vector<8x1xf32> to vector<8x8xf32>
    %66 = arith.mulf %61, %65 : vector<8x8xf32>
    %67 = arith.truncf %66 : vector<8x8xf32> to vector<8x8xbf16>
    %cst_21 = arith.constant dense<0.000000e+00> : vector<8x32xf32>
    %68 = tpu.matmul %67, %51, %cst_21 {dimension_numbers = #tpu.dot_dimension_numbers<[1], [0], [0], [1], [0, 0, 1, 1], [], []>} : vector<8x8xbf16>, vector<8x32xbf16>, vector<8x32xf32> -> vector<8x32xf32>
    %69 = vector.extract_strided_slice %41 {offsets = [0, 32], sizes = [8, 32], strides = [1, 1]} : vector<8x128xf32> to vector<8x32xf32>
    %70 = arith.truncf %69 : vector<8x32xf32> to vector<8x32xbf16>
    %71 = vector.extract_strided_slice %43 {offsets = [0, 32], sizes = [8, 32], strides = [1, 1]} : vector<8x128xf32> to vector<8x32xf32>
    %72 = arith.truncf %71 : vector<8x32xf32> to vector<8x32xbf16>
    %73 = vector.extract_strided_slice %45 {offsets = [0, 32], sizes = [8, 32], strides = [1, 1]} : vector<8x128xf32> to vector<8x32xf32>
    %74 = arith.truncf %73 : vector<8x32xf32> to vector<8x32xbf16>
    %cst_22 = arith.constant dense<0.000000e+00> : vector<8x8xf32>
    %75 = tpu.matmul %70, %72, %cst_22 {dimension_numbers = #tpu.dot_dimension_numbers<[1], [1], [0], [0], [0, 0, 1, 0], [], []>} : vector<8x32xbf16>, vector<8x32xbf16>, vector<8x8xf32> -> vector<8x8xf32>
    %cst_23 = arith.constant 0.176776692 : f32
    %76 = vector.broadcast %cst_23 : f32 to vector<8x8xf32>
    %77 = arith.mulf %75, %76 : vector<8x8xf32>
    %78 = vector.broadcast %3 : vector<1x8xf32> to vector<8x8xf32>
    %79 = arith.addf %77, %78 : vector<8x8xf32>
    %cst_24 = arith.constant dense<0xFF800000> : vector<8xf32>
    %80 = vector.multi_reduction <maximumf>, %79, %cst_24 [1] : vector<8x8xf32> to vector<8xf32>
    %81 = vector.shape_cast %80 : vector<8xf32> to vector<8x1xf32>
    %82 = vector.broadcast %81 : vector<8x1xf32> to vector<8x8xf32>
    %83 = arith.subf %79, %82 : vector<8x8xf32>
    %84 = math.exp %83 : vector<8x8xf32>
    %cst_25 = arith.constant dense<0.000000e+00> : vector<8xf32>
    %85 = vector.multi_reduction <add>, %84, %cst_25 [1] : vector<8x8xf32> to vector<8xf32>
    %86 = vector.shape_cast %85 : vector<8xf32> to vector<8x1xf32>
    %87 = tpu.reciprocal %86 {approx = true} : vector<8x1xf32> -> vector<8x1xf32>
    %88 = vector.broadcast %87 : vector<8x1xf32> to vector<8x8xf32>
    %89 = arith.mulf %84, %88 : vector<8x8xf32>
    %90 = arith.truncf %89 : vector<8x8xf32> to vector<8x8xbf16>
    %cst_26 = arith.constant dense<0.000000e+00> : vector<8x32xf32>
    %91 = tpu.matmul %90, %74, %cst_26 {dimension_numbers = #tpu.dot_dimension_numbers<[1], [0], [0], [1], [0, 0, 1, 1], [], []>} : vector<8x8xbf16>, vector<8x32xbf16>, vector<8x32xf32> -> vector<8x32xf32>
    %92 = vector.extract_strided_slice %41 {offsets = [0, 64], sizes = [8, 32], strides = [1, 1]} : vector<8x128xf32> to vector<8x32xf32>
    %93 = arith.truncf %92 : vector<8x32xf32> to vector<8x32xbf16>
    %94 = vector.extract_strided_slice %43 {offsets = [0, 64], sizes = [8, 32], strides = [1, 1]} : vector<8x128xf32> to vector<8x32xf32>
    %95 = arith.truncf %94 : vector<8x32xf32> to vector<8x32xbf16>
    %96 = vector.extract_strided_slice %45 {offsets = [0, 64], sizes = [8, 32], strides = [1, 1]} : vector<8x128xf32> to vector<8x32xf32>
    %97 = arith.truncf %96 : vector<8x32xf32> to vector<8x32xbf16>
    %cst_27 = arith.constant dense<0.000000e+00> : vector<8x8xf32>
    %98 = tpu.matmul %93, %95, %cst_27 {dimension_numbers = #tpu.dot_dimension_numbers<[1], [1], [0], [0], [0, 0, 1, 0], [], []>} : vector<8x32xbf16>, vector<8x32xbf16>, vector<8x8xf32> -> vector<8x8xf32>
    %cst_28 = arith.constant 0.176776692 : f32
    %99 = vector.broadcast %cst_28 : f32 to vector<8x8xf32>
    %100 = arith.mulf %98, %99 : vector<8x8xf32>
    %101 = vector.broadcast %3 : vector<1x8xf32> to vector<8x8xf32>
    %102 = arith.addf %100, %101 : vector<8x8xf32>
    %cst_29 = arith.constant dense<0xFF800000> : vector<8xf32>
    %103 = vector.multi_reduction <maximumf>, %102, %cst_29 [1] : vector<8x8xf32> to vector<8xf32>
    %104 = vector.shape_cast %103 : vector<8xf32> to vector<8x1xf32>
    %105 = vector.broadcast %104 : vector<8x1xf32> to vector<8x8xf32>
    %106 = arith.subf %102, %105 : vector<8x8xf32>
    %107 = math.exp %106 : vector<8x8xf32>
    %cst_30 = arith.constant dense<0.000000e+00> : vector<8xf32>
    %108 = vector.multi_reduction <add>, %107, %cst_30 [1] : vector<8x8xf32> to vector<8xf32>
    %109 = vector.shape_cast %108 : vector<8xf32> to vector<8x1xf32>
    %110 = tpu.reciprocal %109 {approx = true} : vector<8x1xf32> -> vector<8x1xf32>
    %111 = vector.broadcast %110 : vector<8x1xf32> to vector<8x8xf32>
    %112 = arith.mulf %107, %111 : vector<8x8xf32>
    %113 = arith.truncf %112 : vector<8x8xf32> to vector<8x8xbf16>
    %cst_31 = arith.constant dense<0.000000e+00> : vector<8x32xf32>
    %114 = tpu.matmul %113, %97, %cst_31 {dimension_numbers = #tpu.dot_dimension_numbers<[1], [0], [0], [1], [0, 0, 1, 1], [], []>} : vector<8x8xbf16>, vector<8x32xbf16>, vector<8x32xf32> -> vector<8x32xf32>
    %115 = vector.extract_strided_slice %41 {offsets = [0, 96], sizes = [8, 32], strides = [1, 1]} : vector<8x128xf32> to vector<8x32xf32>
    %116 = arith.truncf %115 : vector<8x32xf32> to vector<8x32xbf16>
    %117 = vector.extract_strided_slice %43 {offsets = [0, 96], sizes = [8, 32], strides = [1, 1]} : vector<8x128xf32> to vector<8x32xf32>
    %118 = arith.truncf %117 : vector<8x32xf32> to vector<8x32xbf16>
    %119 = vector.extract_strided_slice %45 {offsets = [0, 96], sizes = [8, 32], strides = [1, 1]} : vector<8x128xf32> to vector<8x32xf32>
    %120 = arith.truncf %119 : vector<8x32xf32> to vector<8x32xbf16>
    %cst_32 = arith.constant dense<0.000000e+00> : vector<8x8xf32>
    %121 = tpu.matmul %116, %118, %cst_32 {dimension_numbers = #tpu.dot_dimension_numbers<[1], [1], [0], [0], [0, 0, 1, 0], [], []>} : vector<8x32xbf16>, vector<8x32xbf16>, vector<8x8xf32> -> vector<8x8xf32>
    %cst_33 = arith.constant 0.176776692 : f32
    %122 = vector.broadcast %cst_33 : f32 to vector<8x8xf32>
    %123 = arith.mulf %121, %122 : vector<8x8xf32>
    %124 = vector.broadcast %3 : vector<1x8xf32> to vector<8x8xf32>
    %125 = arith.addf %123, %124 : vector<8x8xf32>
    %cst_34 = arith.constant dense<0xFF800000> : vector<8xf32>
    %126 = vector.multi_reduction <maximumf>, %125, %cst_34 [1] : vector<8x8xf32> to vector<8xf32>
    %127 = vector.shape_cast %126 : vector<8xf32> to vector<8x1xf32>
    %128 = vector.broadcast %127 : vector<8x1xf32> to vector<8x8xf32>
    %129 = arith.subf %125, %128 : vector<8x8xf32>
    %130 = math.exp %129 : vector<8x8xf32>
    %cst_35 = arith.constant dense<0.000000e+00> : vector<8xf32>
    %131 = vector.multi_reduction <add>, %130, %cst_35 [1] : vector<8x8xf32> to vector<8xf32>
    %132 = vector.shape_cast %131 : vector<8xf32> to vector<8x1xf32>
    %133 = tpu.reciprocal %132 {approx = true} : vector<8x1xf32> -> vector<8x1xf32>
    %134 = vector.broadcast %133 : vector<8x1xf32> to vector<8x8xf32>
    %135 = arith.mulf %130, %134 : vector<8x8xf32>
    %136 = arith.truncf %135 : vector<8x8xf32> to vector<8x8xbf16>
    %cst_36 = arith.constant dense<0.000000e+00> : vector<8x32xf32>
    %137 = tpu.matmul %136, %120, %cst_36 {dimension_numbers = #tpu.dot_dimension_numbers<[1], [0], [0], [1], [0, 0, 1, 1], [], []>} : vector<8x8xbf16>, vector<8x32xbf16>, vector<8x32xf32> -> vector<8x32xf32>
    %138 = tpu.concatenate %68, %91, %114, %137 in 1 : vector<8x32xf32>, vector<8x32xf32>, vector<8x32xf32>, vector<8x32xf32> -> vector<8x128xf32>
    %139 = vector.extract_strided_slice %35 {offsets = [1, 0, 0], sizes = [1, 8, 128], strides = [1, 1, 1]} : vector<2x8x128xf32> to vector<1x8x128xf32>
    %140 = vector.shape_cast %139 : vector<1x8x128xf32> to vector<8x128xf32>
    %141 = vector.extract_strided_slice %37 {offsets = [1, 0, 0], sizes = [1, 8, 128], strides = [1, 1, 1]} : vector<2x8x128xf32> to vector<1x8x128xf32>
    %142 = vector.shape_cast %141 : vector<1x8x128xf32> to vector<8x128xf32>
    %143 = vector.extract_strided_slice %39 {offsets = [1, 0, 0], sizes = [1, 8, 128], strides = [1, 1, 1]} : vector<2x8x128xf32> to vector<1x8x128xf32>
    %144 = vector.shape_cast %143 : vector<1x8x128xf32> to vector<8x128xf32>
    %145 = vector.extract_strided_slice %140 {offsets = [0, 0], sizes = [8, 32], strides = [1, 1]} : vector<8x128xf32> to vector<8x32xf32>
    %146 = arith.truncf %145 : vector<8x32xf32> to vector<8x32xbf16>
    %147 = vector.extract_strided_slice %142 {offsets = [0, 0], sizes = [8, 32], strides = [1, 1]} : vector<8x128xf32> to vector<8x32xf32>
    %148 = arith.truncf %147 : vector<8x32xf32> to vector<8x32xbf16>
    %149 = vector.extract_strided_slice %144 {offsets = [0, 0], sizes = [8, 32], strides = [1, 1]} : vector<8x128xf32> to vector<8x32xf32>
    %150 = arith.truncf %149 : vector<8x32xf32> to vector<8x32xbf16>
    %cst_37 = arith.constant dense<0.000000e+00> : vector<8x8xf32>
    %151 = tpu.matmul %146, %148, %cst_37 {dimension_numbers = #tpu.dot_dimension_numbers<[1], [1], [0], [0], [0, 0, 1, 0], [], []>} : vector<8x32xbf16>, vector<8x32xbf16>, vector<8x8xf32> -> vector<8x8xf32>
    %cst_38 = arith.constant 0.176776692 : f32
    %152 = vector.broadcast %cst_38 : f32 to vector<8x8xf32>
    %153 = arith.mulf %151, %152 : vector<8x8xf32>
    %154 = vector.broadcast %3 : vector<1x8xf32> to vector<8x8xf32>
    %155 = arith.addf %153, %154 : vector<8x8xf32>
    %cst_39 = arith.constant dense<0xFF800000> : vector<8xf32>
    %156 = vector.multi_reduction <maximumf>, %155, %cst_39 [1] : vector<8x8xf32> to vector<8xf32>
    %157 = vector.shape_cast %156 : vector<8xf32> to vector<8x1xf32>
    %158 = vector.broadcast %157 : vector<8x1xf32> to vector<8x8xf32>
    %159 = arith.subf %155, %158 : vector<8x8xf32>
    %160 = math.exp %159 : vector<8x8xf32>
    %cst_40 = arith.constant dense<0.000000e+00> : vector<8xf32>
    %161 = vector.multi_reduction <add>, %160, %cst_40 [1] : vector<8x8xf32> to vector<8xf32>
    %162 = vector.shape_cast %161 : vector<8xf32> to vector<8x1xf32>
    %163 = tpu.reciprocal %162 {approx = true} : vector<8x1xf32> -> vector<8x1xf32>
    %164 = vector.broadcast %163 : vector<8x1xf32> to vector<8x8xf32>
    %165 = arith.mulf %160, %164 : vector<8x8xf32>
    %166 = arith.truncf %165 : vector<8x8xf32> to vector<8x8xbf16>
    %cst_41 = arith.constant dense<0.000000e+00> : vector<8x32xf32>
    %167 = tpu.matmul %166, %150, %cst_41 {dimension_numbers = #tpu.dot_dimension_numbers<[1], [0], [0], [1], [0, 0, 1, 1], [], []>} : vector<8x8xbf16>, vector<8x32xbf16>, vector<8x32xf32> -> vector<8x32xf32>
    %168 = vector.extract_strided_slice %140 {offsets = [0, 32], sizes = [8, 32], strides = [1, 1]} : vector<8x128xf32> to vector<8x32xf32>
    %169 = arith.truncf %168 : vector<8x32xf32> to vector<8x32xbf16>
    %170 = vector.extract_strided_slice %142 {offsets = [0, 32], sizes = [8, 32], strides = [1, 1]} : vector<8x128xf32> to vector<8x32xf32>
    %171 = arith.truncf %170 : vector<8x32xf32> to vector<8x32xbf16>
    %172 = vector.extract_strided_slice %144 {offsets = [0, 32], sizes = [8, 32], strides = [1, 1]} : vector<8x128xf32> to vector<8x32xf32>
    %173 = arith.truncf %172 : vector<8x32xf32> to vector<8x32xbf16>
    %cst_42 = arith.constant dense<0.000000e+00> : vector<8x8xf32>
    %174 = tpu.matmul %169, %171, %cst_42 {dimension_numbers = #tpu.dot_dimension_numbers<[1], [1], [0], [0], [0, 0, 1, 0], [], []>} : vector<8x32xbf16>, vector<8x32xbf16>, vector<8x8xf32> -> vector<8x8xf32>
    %cst_43 = arith.constant 0.176776692 : f32
    %175 = vector.broadcast %cst_43 : f32 to vector<8x8xf32>
    %176 = arith.mulf %174, %175 : vector<8x8xf32>
    %177 = vector.broadcast %3 : vector<1x8xf32> to vector<8x8xf32>
    %178 = arith.addf %176, %177 : vector<8x8xf32>
    %cst_44 = arith.constant dense<0xFF800000> : vector<8xf32>
    %179 = vector.multi_reduction <maximumf>, %178, %cst_44 [1] : vector<8x8xf32> to vector<8xf32>
    %180 = vector.shape_cast %179 : vector<8xf32> to vector<8x1xf32>
    %181 = vector.broadcast %180 : vector<8x1xf32> to vector<8x8xf32>
    %182 = arith.subf %178, %181 : vector<8x8xf32>
    %183 = math.exp %182 : vector<8x8xf32>
    %cst_45 = arith.constant dense<0.000000e+00> : vector<8xf32>
    %184 = vector.multi_reduction <add>, %183, %cst_45 [1] : vector<8x8xf32> to vector<8xf32>
    %185 = vector.shape_cast %184 : vector<8xf32> to vector<8x1xf32>
    %186 = tpu.reciprocal %185 {approx = true} : vector<8x1xf32> -> vector<8x1xf32>
    %187 = vector.broadcast %186 : vector<8x1xf32> to vector<8x8xf32>
    %188 = arith.mulf %183, %187 : vector<8x8xf32>
    %189 = arith.truncf %188 : vector<8x8xf32> to vector<8x8xbf16>
    %cst_46 = arith.constant dense<0.000000e+00> : vector<8x32xf32>
    %190 = tpu.matmul %189, %173, %cst_46 {dimension_numbers = #tpu.dot_dimension_numbers<[1], [0], [0], [1], [0, 0, 1, 1], [], []>} : vector<8x8xbf16>, vector<8x32xbf16>, vector<8x32xf32> -> vector<8x32xf32>
    %191 = vector.extract_strided_slice %140 {offsets = [0, 64], sizes = [8, 32], strides = [1, 1]} : vector<8x128xf32> to vector<8x32xf32>
    %192 = arith.truncf %191 : vector<8x32xf32> to vector<8x32xbf16>
    %193 = vector.extract_strided_slice %142 {offsets = [0, 64], sizes = [8, 32], strides = [1, 1]} : vector<8x128xf32> to vector<8x32xf32>
    %194 = arith.truncf %193 : vector<8x32xf32> to vector<8x32xbf16>
    %195 = vector.extract_strided_slice %144 {offsets = [0, 64], sizes = [8, 32], strides = [1, 1]} : vector<8x128xf32> to vector<8x32xf32>
    %196 = arith.truncf %195 : vector<8x32xf32> to vector<8x32xbf16>
    %cst_47 = arith.constant dense<0.000000e+00> : vector<8x8xf32>
    %197 = tpu.matmul %192, %194, %cst_47 {dimension_numbers = #tpu.dot_dimension_numbers<[1], [1], [0], [0], [0, 0, 1, 0], [], []>} : vector<8x32xbf16>, vector<8x32xbf16>, vector<8x8xf32> -> vector<8x8xf32>
    %cst_48 = arith.constant 0.176776692 : f32
    %198 = vector.broadcast %cst_48 : f32 to vector<8x8xf32>
    %199 = arith.mulf %197, %198 : vector<8x8xf32>
    %200 = vector.broadcast %3 : vector<1x8xf32> to vector<8x8xf32>
    %201 = arith.addf %199, %200 : vector<8x8xf32>
    %cst_49 = arith.constant dense<0xFF800000> : vector<8xf32>
    %202 = vector.multi_reduction <maximumf>, %201, %cst_49 [1] : vector<8x8xf32> to vector<8xf32>
    %203 = vector.shape_cast %202 : vector<8xf32> to vector<8x1xf32>
    %204 = vector.broadcast %203 : vector<8x1xf32> to vector<8x8xf32>
    %205 = arith.subf %201, %204 : vector<8x8xf32>
    %206 = math.exp %205 : vector<8x8xf32>
    %cst_50 = arith.constant dense<0.000000e+00> : vector<8xf32>
    %207 = vector.multi_reduction <add>, %206, %cst_50 [1] : vector<8x8xf32> to vector<8xf32>
    %208 = vector.shape_cast %207 : vector<8xf32> to vector<8x1xf32>
    %209 = tpu.reciprocal %208 {approx = true} : vector<8x1xf32> -> vector<8x1xf32>
    %210 = vector.broadcast %209 : vector<8x1xf32> to vector<8x8xf32>
    %211 = arith.mulf %206, %210 : vector<8x8xf32>
    %212 = arith.truncf %211 : vector<8x8xf32> to vector<8x8xbf16>
    %cst_51 = arith.constant dense<0.000000e+00> : vector<8x32xf32>
    %213 = tpu.matmul %212, %196, %cst_51 {dimension_numbers = #tpu.dot_dimension_numbers<[1], [0], [0], [1], [0, 0, 1, 1], [], []>} : vector<8x8xbf16>, vector<8x32xbf16>, vector<8x32xf32> -> vector<8x32xf32>
    %214 = vector.extract_strided_slice %140 {offsets = [0, 96], sizes = [8, 32], strides = [1, 1]} : vector<8x128xf32> to vector<8x32xf32>
    %215 = arith.truncf %214 : vector<8x32xf32> to vector<8x32xbf16>
    %216 = vector.extract_strided_slice %142 {offsets = [0, 96], sizes = [8, 32], strides = [1, 1]} : vector<8x128xf32> to vector<8x32xf32>
    %217 = arith.truncf %216 : vector<8x32xf32> to vector<8x32xbf16>
    %218 = vector.extract_strided_slice %144 {offsets = [0, 96], sizes = [8, 32], strides = [1, 1]} : vector<8x128xf32> to vector<8x32xf32>
    %219 = arith.truncf %218 : vector<8x32xf32> to vector<8x32xbf16>
    %cst_52 = arith.constant dense<0.000000e+00> : vector<8x8xf32>
    %220 = tpu.matmul %215, %217, %cst_52 {dimension_numbers = #tpu.dot_dimension_numbers<[1], [1], [0], [0], [0, 0, 1, 0], [], []>} : vector<8x32xbf16>, vector<8x32xbf16>, vector<8x8xf32> -> vector<8x8xf32>
    %cst_53 = arith.constant 0.176776692 : f32
    %221 = vector.broadcast %cst_53 : f32 to vector<8x8xf32>
    %222 = arith.mulf %220, %221 : vector<8x8xf32>
    %223 = vector.broadcast %3 : vector<1x8xf32> to vector<8x8xf32>
    %224 = arith.addf %222, %223 : vector<8x8xf32>
    %cst_54 = arith.constant dense<0xFF800000> : vector<8xf32>
    %225 = vector.multi_reduction <maximumf>, %224, %cst_54 [1] : vector<8x8xf32> to vector<8xf32>
    %226 = vector.shape_cast %225 : vector<8xf32> to vector<8x1xf32>
    %227 = vector.broadcast %226 : vector<8x1xf32> to vector<8x8xf32>
    %228 = arith.subf %224, %227 : vector<8x8xf32>
    %229 = math.exp %228 : vector<8x8xf32>
    %cst_55 = arith.constant dense<0.000000e+00> : vector<8xf32>
    %230 = vector.multi_reduction <add>, %229, %cst_55 [1] : vector<8x8xf32> to vector<8xf32>
    %231 = vector.shape_cast %230 : vector<8xf32> to vector<8x1xf32>
    %232 = tpu.reciprocal %231 {approx = true} : vector<8x1xf32> -> vector<8x1xf32>
    %233 = vector.broadcast %232 : vector<8x1xf32> to vector<8x8xf32>
    %234 = arith.mulf %229, %233 : vector<8x8xf32>
    %235 = arith.truncf %234 : vector<8x8xf32> to vector<8x8xbf16>
    %cst_56 = arith.constant dense<0.000000e+00> : vector<8x32xf32>
    %236 = tpu.matmul %235, %219, %cst_56 {dimension_numbers = #tpu.dot_dimension_numbers<[1], [0], [0], [1], [0, 0, 1, 1], [], []>} : vector<8x8xbf16>, vector<8x32xbf16>, vector<8x32xf32> -> vector<8x32xf32>
    %237 = tpu.concatenate %167, %190, %213, %236 in 1 : vector<8x32xf32>, vector<8x32xf32>, vector<8x32xf32>, vector<8x32xf32> -> vector<8x128xf32>
    %238 = tpu.concatenate %138, %237 in 0 : vector<8x128xf32>, vector<8x128xf32> -> vector<16x128xf32>
    %c0_57 = arith.constant 0 : index
    %c0_58 = arith.constant 0 : index
    %239 = vector.load %arg5[%c0_57, %c0_58] : memref<128x128xbf16, #tpu.memory_space<vmem>>, vector<128x128xbf16>
    %240 = arith.truncf %238 : vector<16x128xf32> to vector<16x128xbf16>
    %cst_59 = arith.constant dense<0.000000e+00> : vector<16x128xf32>
    %241 = tpu.matmul %240, %239, %cst_59 {dimension_numbers = #tpu.dot_dimension_numbers<[1], [0], [0], [1], [0, 0, 1, 1], [], []>} : vector<16x128xbf16>, vector<128x128xbf16>, vector<16x128xf32> -> vector<16x128xf32>
    %242 = arith.addf %2, %241 : vector<16x128xf32>
    %c0_60 = arith.constant 0 : index
    %c0_61 = arith.constant 0 : index
    %243 = vector.load %arg6[%c0_60, %c0_61] : memref<1x128xf32, #tpu.memory_space<vmem>>, vector<1x128xf32>
    %244 = vector.broadcast %243 : vector<1x128xf32> to vector<16x128xf32>
    %245 = arith.addf %242, %244 : vector<16x128xf32>
    %c0_62 = arith.constant 0 : index
    %c0_63 = arith.constant 0 : index
    %246 = vector.load %arg9[%c0_62, %c0_63] : memref<1x128xf32, #tpu.memory_space<vmem>>, vector<1x128xf32>
    %c0_64 = arith.constant 0 : index
    %c0_65 = arith.constant 0 : index
    %247 = vector.load %arg10[%c0_64, %c0_65] : memref<1x128xf32, #tpu.memory_space<vmem>>, vector<1x128xf32>
    %cst_66 = arith.constant dense<0.000000e+00> : vector<16xf32>
    %248 = vector.multi_reduction <add>, %245, %cst_66 [1] : vector<16x128xf32> to vector<16xf32>
    %249 = vector.shape_cast %248 : vector<16xf32> to vector<16x1xf32>
    %cst_67 = arith.constant 1.280000e+02 : f32
    %250 = vector.broadcast %cst_67 : f32 to vector<16x1xf32>
    %251 = arith.divf %249, %250 : vector<16x1xf32>
    %252 = vector.broadcast %251 : vector<16x1xf32> to vector<16x128xf32>
    %253 = arith.subf %245, %252 : vector<16x128xf32>
    %254 = arith.mulf %253, %253 : vector<16x128xf32>
    %cst_68 = arith.constant dense<0.000000e+00> : vector<16xf32>
    %255 = vector.multi_reduction <add>, %254, %cst_68 [1] : vector<16x128xf32> to vector<16xf32>
    %256 = vector.shape_cast %255 : vector<16xf32> to vector<16x1xf32>
    %cst_69 = arith.constant 1.280000e+02 : f32
    %257 = vector.broadcast %cst_69 : f32 to vector<16x1xf32>
    %258 = arith.divf %256, %257 : vector<16x1xf32>
    %259 = vector.broadcast %251 : vector<16x1xf32> to vector<16x128xf32>
    %260 = arith.subf %245, %259 : vector<16x128xf32>
    %cst_70 = arith.constant 9.99999997E-7 : f32
    %261 = vector.broadcast %cst_70 : f32 to vector<16x1xf32>
    %262 = arith.addf %258, %261 : vector<16x1xf32>
    %263 = math.rsqrt %262 : vector<16x1xf32>
    %264 = vector.broadcast %263 : vector<16x1xf32> to vector<16x128xf32>
    %265 = arith.mulf %260, %264 : vector<16x128xf32>
    %266 = vector.broadcast %246 : vector<1x128xf32> to vector<16x128xf32>
    %267 = arith.mulf %265, %266 : vector<16x128xf32>
    %268 = vector.broadcast %247 : vector<1x128xf32> to vector<16x128xf32>
    %269 = arith.addf %267, %268 : vector<16x128xf32>
    %c0_71 = arith.constant 0 : index
    %c0_72 = arith.constant 0 : index
    %270 = vector.load %arg11[%c0_71, %c0_72] : memref<128x512xbf16, #tpu.memory_space<vmem>>, vector<128x512xbf16>
    %271 = arith.truncf %269 : vector<16x128xf32> to vector<16x128xbf16>
    %cst_73 = arith.constant dense<0.000000e+00> : vector<16x512xf32>
    %272 = tpu.matmul %271, %270, %cst_73 {dimension_numbers = #tpu.dot_dimension_numbers<[1], [0], [0], [1], [0, 0, 1, 1], [], []>} : vector<16x128xbf16>, vector<128x512xbf16>, vector<16x512xf32> -> vector<16x512xf32>
    %c0_74 = arith.constant 0 : index
    %c0_75 = arith.constant 0 : index
    %273 = vector.load %arg12[%c0_74, %c0_75] : memref<1x512xf32, #tpu.memory_space<vmem>>, vector<1x512xf32>
    %274 = vector.broadcast %273 : vector<1x512xf32> to vector<16x512xf32>
    %275 = arith.addf %272, %274 : vector<16x512xf32>
    %276 = arith.mulf %275, %275 : vector<16x512xf32>
    %277 = arith.mulf %275, %276 : vector<16x512xf32>
    %cst_76 = arith.constant 4.471500e-02 : f32
    %278 = vector.broadcast %cst_76 : f32 to vector<16x512xf32>
    %279 = arith.mulf %278, %277 : vector<16x512xf32>
    %280 = arith.addf %275, %279 : vector<16x512xf32>
    %cst_77 = arith.constant 0.797884583 : f32
    %281 = vector.broadcast %cst_77 : f32 to vector<16x512xf32>
    %282 = arith.mulf %281, %280 : vector<16x512xf32>
    %283 = math.tanh %282 : vector<16x512xf32>
    %cst_78 = arith.constant 1.000000e+00 : f32
    %284 = vector.broadcast %cst_78 : f32 to vector<16x512xf32>
    %285 = arith.addf %284, %283 : vector<16x512xf32>
    %cst_79 = arith.constant 5.000000e-01 : f32
    %286 = vector.broadcast %cst_79 : f32 to vector<16x512xf32>
    %287 = arith.mulf %286, %285 : vector<16x512xf32>
    %288 = arith.mulf %275, %287 : vector<16x512xf32>
    %c0_80 = arith.constant 0 : index
    %c0_81 = arith.constant 0 : index
    %289 = vector.load %arg13[%c0_80, %c0_81] : memref<512x128xbf16, #tpu.memory_space<vmem>>, vector<512x128xbf16>
    %290 = arith.truncf %288 : vector<16x512xf32> to vector<16x512xbf16>
    %cst_82 = arith.constant dense<0.000000e+00> : vector<16x128xf32>
    %291 = tpu.matmul %290, %289, %cst_82 {dimension_numbers = #tpu.dot_dimension_numbers<[1], [0], [0], [1], [0, 0, 1, 1], [], []>} : vector<16x512xbf16>, vector<512x128xbf16>, vector<16x128xf32> -> vector<16x128xf32>
    %292 = arith.addf %245, %291 : vector<16x128xf32>
    %c0_83 = arith.constant 0 : index
    %c0_84 = arith.constant 0 : index
    %293 = vector.load %arg14[%c0_83, %c0_84] : memref<1x128xf32, #tpu.memory_space<vmem>>, vector<1x128xf32>
    %294 = vector.broadcast %293 : vector<1x128xf32> to vector<16x128xf32>
    %295 = arith.addf %292, %294 : vector<16x128xf32>
    %296 = vector.shape_cast %295 : vector<16x128xf32> to vector<2x8x128xf32>
    %297 = arith.truncf %296 : vector<2x8x128xf32> to vector<2x8x128xbf16>
    %c0_85 = arith.constant 0 : index
    %c0_86 = arith.constant 0 : index
    %c0_87 = arith.constant 0 : index
    %298 = vector.load %arg15[%c0_85, %c0_86, %c0_87] : memref<2x8x128xbf16, #tpu.memory_space<vmem>>, vector<2x8x128xbf16>
    tpu.vector_store %arg15[%c0_85, %c0_86, %c0_87], %297 {strides = array<i32>} : memref<2x8x128xbf16, #tpu.memory_space<vmem>>, vector<2x8x128xbf16>,
    return
  }
  func.func @transform_0(%arg0: i32) -> (i32, i32, i32) {
    %c0_i32 = arith.constant 0 : i32
    %c0_i32_0 = arith.constant 0 : i32
    %c0_i32_1 = arith.constant 0 : i32
    return %arg0, %c0_i32, %c0_i32_0 : i32, i32, i32
  }
  func.func @transform_1(%arg0: i32) -> (i32, i32) {
    %c0_i32 = arith.constant 0 : i32
    %c0_i32_0 = arith.constant 0 : i32
    %c0_i32_1 = arith.constant 0 : i32
    return %c0_i32, %c0_i32_0 : i32, i32
  }
  func.func @transform_2(%arg0: i32) -> (i32, i32) {
    %c0_i32 = arith.constant 0 : i32
    %c0_i32_0 = arith.constant 0 : i32
    %c0_i32_1 = arith.constant 0 : i32
    return %c0_i32, %c0_i32_0 : i32, i32
  }
  func.func @transform_3(%arg0: i32) -> (i32, i32) {
    %c0_i32 = arith.constant 0 : i32
    %c0_i32_0 = arith.constant 0 : i32
    %c0_i32_1 = arith.constant 0 : i32
    return %c0_i32, %c0_i32_0 : i32, i32
  }
  func.func @transform_4(%arg0: i32) -> (i32, i32) {
    %c0_i32 = arith.constant 0 : i32
    %c0_i32_0 = arith.constant 0 : i32
    %c0_i32_1 = arith.constant 0 : i32
    return %c0_i32, %c0_i32_0 : i32, i32
  }
  func.func @transform_5(%arg0: i32) -> (i32, i32) {
    %c0_i32 = arith.constant 0 : i32
    %c0_i32_0 = arith.constant 0 : i32
    %c0_i32_1 = arith.constant 0 : i32
    return %c0_i32, %c0_i32_0 : i32, i32
  }
  func.func @transform_6(%arg0: i32) -> (i32, i32) {
    %c0_i32 = arith.constant 0 : i32
    %c0_i32_0 = arith.constant 0 : i32
    %c0_i32_1 = arith.constant 0 : i32
    return %c0_i32, %c0_i32_0 : i32, i32
  }
  func.func @transform_7(%arg0: i32) -> (i32, i32) {
    %c0_i32 = arith.constant 0 : i32
    %c0_i32_0 = arith.constant 0 : i32
    %c0_i32_1 = arith.constant 0 : i32
    return %c0_i32, %c0_i32_0 : i32, i32
  }
  func.func @transform_8(%arg0: i32) -> (i32, i32) {
    %c0_i32 = arith.constant 0 : i32
    %c0_i32_0 = arith.constant 0 : i32
    %c0_i32_1 = arith.constant 0 : i32
    return %c0_i32, %c0_i32_0 : i32, i32
  }
  func.func @transform_9(%arg0: i32) -> (i32, i32) {
    %c0_i32 = arith.constant 0 : i32
    %c0_i32_0 = arith.constant 0 : i32
    %c0_i32_1 = arith.constant 0 : i32
    return %c0_i32, %c0_i32_0 : i32, i32
  }
  func.func @transform_10(%arg0: i32) -> (i32, i32) {
    %c0_i32 = arith.constant 0 : i32
    %c0_i32_0 = arith.constant 0 : i32
    %c0_i32_1 = arith.constant 0 : i32
    return %c0_i32, %c0_i32_0 : i32, i32
  }
  func.func @transform_11(%arg0: i32) -> (i32, i32) {
    %c0_i32 = arith.constant 0 : i32
    %c0_i32_0 = arith.constant 0 : i32
    %c0_i32_1 = arith.constant 0 : i32
    return %c0_i32, %c0_i32_0 : i32, i32
  }
  func.func @transform_12(%arg0: i32) -> (i32, i32) {
    %c0_i32 = arith.constant 0 : i32
    %c0_i32_0 = arith.constant 0 : i32
    %c0_i32_1 = arith.constant 0 : i32
    return %c0_i32, %c0_i32_0 : i32, i32
  }
  func.func @transform_13(%arg0: i32) -> (i32, i32) {
    %c0_i32 = arith.constant 0 : i32
    %c0_i32_0 = arith.constant 0 : i32
    %c0_i32_1 = arith.constant 0 : i32
    return %c0_i32, %c0_i32_0 : i32, i32
  }
  func.func @transform_14(%arg0: i32) -> (i32, i32, i32) {
    %c0_i32 = arith.constant 0 : i32
    %c0_i32_0 = arith.constant 0 : i32
    %c0_i32_1 = arith.constant 0 : i32
    return %arg0, %c0_i32, %c0_i32_0 : i32, i32, i32
  }
}

module attributes {stable_mosaic.version = 11 : i64} {
  func.func @_text_embed_kernel(%arg0: i32, %arg1: memref<2x8x128xf32, #tpu.memory_space<vmem>>, %arg2: memref<8x128xf32, #tpu.memory_space<vmem>>, %arg3: memref<1x128xf32, #tpu.memory_space<vmem>>, %arg4: memref<1x128xf32, #tpu.memory_space<vmem>>, %arg5: memref<1x128xf32, #tpu.memory_space<vmem>>, %arg6: memref<2x8x128xbf16, #tpu.memory_space<vmem>>) attributes {dimension_semantics = [#tpu.dimension_semantics<parallel>], iteration_bounds = array<i64: 1>, scalar_prefetch = 0 : i64, scratch_operands = 0 : i64, tpu.core_type = #tpu.core_type<tc>, window_params = [{transform_indices = @transform_0, window_bounds = array<i64: 2, 8, 128>}, {pipeline_mode = #tpu.pipeline_mode<synchronous>, transform_indices = @transform_1, window_bounds = array<i64: 8, 128>}, {pipeline_mode = #tpu.pipeline_mode<synchronous>, transform_indices = @transform_2, window_bounds = array<i64: 1, 128>}, {pipeline_mode = #tpu.pipeline_mode<synchronous>, transform_indices = @transform_3, window_bounds = array<i64: 1, 128>}, {pipeline_mode = #tpu.pipeline_mode<synchronous>, transform_indices = @transform_4, window_bounds = array<i64: 1, 128>}, {transform_indices = @transform_5, window_bounds = array<i64: 2, 8, 128>}]} {
    %c0 = arith.constant 0 : index
    %c0_0 = arith.constant 0 : index
    %c0_1 = arith.constant 0 : index
    %0 = vector.load %arg1[%c0, %c0_0, %c0_1] : memref<2x8x128xf32, #tpu.memory_space<vmem>>, vector<2x8x128xf32>
    %c0_2 = arith.constant 0 : index
    %c0_3 = arith.constant 0 : index
    %1 = vector.load %arg2[%c0_2, %c0_3] : memref<8x128xf32, #tpu.memory_space<vmem>>, vector<8x128xf32>
    %2 = vector.shape_cast %1 : vector<8x128xf32> to vector<1x8x128xf32>
    %3 = vector.broadcast %2 : vector<1x8x128xf32> to vector<2x8x128xf32>
    %4 = arith.addf %0, %3 : vector<2x8x128xf32>
    %c0_4 = arith.constant 0 : index
    %c0_5 = arith.constant 0 : index
    %5 = vector.load %arg3[%c0_4, %c0_5] : memref<1x128xf32, #tpu.memory_space<vmem>>, vector<1x128xf32>
    %6 = vector.shape_cast %5 : vector<1x128xf32> to vector<1x1x128xf32>
    %7 = vector.broadcast %6 : vector<1x1x128xf32> to vector<2x8x128xf32>
    %8 = arith.addf %4, %7 : vector<2x8x128xf32>
    %c0_6 = arith.constant 0 : index
    %c0_7 = arith.constant 0 : index
    %9 = vector.load %arg4[%c0_6, %c0_7] : memref<1x128xf32, #tpu.memory_space<vmem>>, vector<1x128xf32>
    %c0_8 = arith.constant 0 : index
    %c0_9 = arith.constant 0 : index
    %10 = vector.load %arg5[%c0_8, %c0_9] : memref<1x128xf32, #tpu.memory_space<vmem>>, vector<1x128xf32>
    %cst = arith.constant dense<0.000000e+00> : vector<2x8xf32>
    %11 = vector.multi_reduction <add>, %8, %cst [2] : vector<2x8x128xf32> to vector<2x8xf32>
    %12 = vector.shape_cast %11 : vector<2x8xf32> to vector<2x8x1xf32>
    %cst_10 = arith.constant 1.280000e+02 : f32
    %13 = vector.broadcast %cst_10 : f32 to vector<2x8x1xf32>
    %14 = arith.divf %12, %13 : vector<2x8x1xf32>
    %15 = vector.broadcast %14 : vector<2x8x1xf32> to vector<2x8x128xf32>
    %16 = arith.subf %8, %15 : vector<2x8x128xf32>
    %17 = arith.mulf %16, %16 : vector<2x8x128xf32>
    %cst_11 = arith.constant dense<0.000000e+00> : vector<2x8xf32>
    %18 = vector.multi_reduction <add>, %17, %cst_11 [2] : vector<2x8x128xf32> to vector<2x8xf32>
    %19 = vector.shape_cast %18 : vector<2x8xf32> to vector<2x8x1xf32>
    %cst_12 = arith.constant 1.280000e+02 : f32
    %20 = vector.broadcast %cst_12 : f32 to vector<2x8x1xf32>
    %21 = arith.divf %19, %20 : vector<2x8x1xf32>
    %22 = vector.broadcast %14 : vector<2x8x1xf32> to vector<2x8x128xf32>
    %23 = arith.subf %8, %22 : vector<2x8x128xf32>
    %cst_13 = arith.constant 9.99999996E-13 : f32
    %24 = vector.broadcast %cst_13 : f32 to vector<2x8x1xf32>
    %25 = arith.addf %21, %24 : vector<2x8x1xf32>
    %26 = math.rsqrt %25 : vector<2x8x1xf32>
    %27 = vector.broadcast %26 : vector<2x8x1xf32> to vector<2x8x128xf32>
    %28 = arith.mulf %23, %27 : vector<2x8x128xf32>
    %29 = vector.shape_cast %9 : vector<1x128xf32> to vector<1x1x128xf32>
    %30 = vector.broadcast %29 : vector<1x1x128xf32> to vector<2x8x128xf32>
    %31 = arith.mulf %28, %30 : vector<2x8x128xf32>
    %32 = vector.shape_cast %10 : vector<1x128xf32> to vector<1x1x128xf32>
    %33 = vector.broadcast %32 : vector<1x1x128xf32> to vector<2x8x128xf32>
    %34 = arith.addf %31, %33 : vector<2x8x128xf32>
    %35 = arith.truncf %34 : vector<2x8x128xf32> to vector<2x8x128xbf16>
    %c0_14 = arith.constant 0 : index
    %c0_15 = arith.constant 0 : index
    %c0_16 = arith.constant 0 : index
    %36 = vector.load %arg6[%c0_14, %c0_15, %c0_16] : memref<2x8x128xbf16, #tpu.memory_space<vmem>>, vector<2x8x128xbf16>
    tpu.vector_store %arg6[%c0_14, %c0_15, %c0_16], %35 {strides = array<i32>} : memref<2x8x128xbf16, #tpu.memory_space<vmem>>, vector<2x8x128xbf16>,
    return
  }
  func.func @transform_0(%arg0: i32) -> (i32, i32, i32) {
    %c0_i32 = arith.constant 0 : i32
    %c0_i32_0 = arith.constant 0 : i32
    %c0_i32_1 = arith.constant 0 : i32
    return %arg0, %c0_i32, %c0_i32_0 : i32, i32, i32
  }
  func.func @transform_1(%arg0: i32) -> (i32, i32) {
    %c0_i32 = arith.constant 0 : i32
    %c0_i32_0 = arith.constant 0 : i32
    %c0_i32_1 = arith.constant 0 : i32
    return %c0_i32, %c0_i32_0 : i32, i32
  }
  func.func @transform_2(%arg0: i32) -> (i32, i32) {
    %c0_i32 = arith.constant 0 : i32
    %c0_i32_0 = arith.constant 0 : i32
    %c0_i32_1 = arith.constant 0 : i32
    return %c0_i32, %c0_i32_0 : i32, i32
  }
  func.func @transform_3(%arg0: i32) -> (i32, i32) {
    %c0_i32 = arith.constant 0 : i32
    %c0_i32_0 = arith.constant 0 : i32
    %c0_i32_1 = arith.constant 0 : i32
    return %c0_i32, %c0_i32_0 : i32, i32
  }
  func.func @transform_4(%arg0: i32) -> (i32, i32) {
    %c0_i32 = arith.constant 0 : i32
    %c0_i32_0 = arith.constant 0 : i32
    %c0_i32_1 = arith.constant 0 : i32
    return %c0_i32, %c0_i32_0 : i32, i32
  }
  func.func @transform_5(%arg0: i32) -> (i32, i32, i32) {
    %c0_i32 = arith.constant 0 : i32
    %c0_i32_0 = arith.constant 0 : i32
    %c0_i32_1 = arith.constant 0 : i32
    return %arg0, %c0_i32, %c0_i32_0 : i32, i32, i32
  }
}

module attributes {stable_mosaic.version = 11 : i64} {
  func.func @_bert_block_kernel(%arg0: i32, %arg1: memref<2x8x128xbf16, #tpu.memory_space<vmem>>, %arg2: memref<2x1x8xf32, #tpu.memory_space<vmem>>, %arg3: memref<128x384xbf16, #tpu.memory_space<vmem>>, %arg4: memref<1x384xf32, #tpu.memory_space<vmem>>, %arg5: memref<128x128xbf16, #tpu.memory_space<vmem>>, %arg6: memref<1x128xf32, #tpu.memory_space<vmem>>, %arg7: memref<1x128xf32, #tpu.memory_space<vmem>>, %arg8: memref<1x128xf32, #tpu.memory_space<vmem>>, %arg9: memref<128x512xbf16, #tpu.memory_space<vmem>>, %arg10: memref<1x512xf32, #tpu.memory_space<vmem>>, %arg11: memref<512x128xbf16, #tpu.memory_space<vmem>>, %arg12: memref<1x128xf32, #tpu.memory_space<vmem>>, %arg13: memref<1x128xf32, #tpu.memory_space<vmem>>, %arg14: memref<1x128xf32, #tpu.memory_space<vmem>>, %arg15: memref<2x8x128xbf16, #tpu.memory_space<vmem>>) attributes {dimension_semantics = [#tpu.dimension_semantics<parallel>], iteration_bounds = array<i64: 1>, scalar_prefetch = 0 : i64, scratch_operands = 0 : i64, tpu.core_type = #tpu.core_type<tc>, window_params = [{transform_indices = @transform_0, window_bounds = array<i64: 2, 8, 128>}, {transform_indices = @transform_1, window_bounds = array<i64: 2, 1, 8>}, {pipeline_mode = #tpu.pipeline_mode<synchronous>, transform_indices = @transform_2, window_bounds = array<i64: 128, 384>}, {pipeline_mode = #tpu.pipeline_mode<synchronous>, transform_indices = @transform_3, window_bounds = array<i64: 1, 384>}, {pipeline_mode = #tpu.pipeline_mode<synchronous>, transform_indices = @transform_4, window_bounds = array<i64: 128, 128>}, {pipeline_mode = #tpu.pipeline_mode<synchronous>, transform_indices = @transform_5, window_bounds = array<i64: 1, 128>}, {pipeline_mode = #tpu.pipeline_mode<synchronous>, transform_indices = @transform_6, window_bounds = array<i64: 1, 128>}, {pipeline_mode = #tpu.pipeline_mode<synchronous>, transform_indices = @transform_7, window_bounds = array<i64: 1, 128>}, {pipeline_mode = #tpu.pipeline_mode<synchronous>, transform_indices = @transform_8, window_bounds = array<i64: 128, 512>}, {pipeline_mode = #tpu.pipeline_mode<synchronous>, transform_indices = @transform_9, window_bounds = array<i64: 1, 512>}, {pipeline_mode = #tpu.pipeline_mode<synchronous>, transform_indices = @transform_10, window_bounds = array<i64: 512, 128>}, {pipeline_mode = #tpu.pipeline_mode<synchronous>, transform_indices = @transform_11, window_bounds = array<i64: 1, 128>}, {pipeline_mode = #tpu.pipeline_mode<synchronous>, transform_indices = @transform_12, window_bounds = array<i64: 1, 128>}, {pipeline_mode = #tpu.pipeline_mode<synchronous>, transform_indices = @transform_13, window_bounds = array<i64: 1, 128>}, {transform_indices = @transform_14, window_bounds = array<i64: 2, 8, 128>}]} {
    %c0 = arith.constant 0 : index
    %c0_0 = arith.constant 0 : index
    %c0_1 = arith.constant 0 : index
    %0 = vector.load %arg1[%c0, %c0_0, %c0_1] : memref<2x8x128xbf16, #tpu.memory_space<vmem>>, vector<2x8x128xbf16>
    %1 = arith.extf %0 : vector<2x8x128xbf16> to vector<2x8x128xf32>
    %2 = vector.shape_cast %1 : vector<2x8x128xf32> to vector<16x128xf32>
    %c0_2 = arith.constant 0 : index
    %c0_3 = arith.constant 0 : index
    %c0_4 = arith.constant 0 : index
    %3 = vector.load %arg2[%c0_2, %c0_3, %c0_4] : memref<2x1x8xf32, #tpu.memory_space<vmem>>, vector<2x1x8xf32>
    %c0_5 = arith.constant 0 : index
    %c0_6 = arith.constant 0 : index
    %4 = vector.load %arg3[%c0_5, %c0_6] : memref<128x384xbf16, #tpu.memory_space<vmem>>, vector<128x384xbf16>
    %5 = arith.truncf %2 : vector<16x128xf32> to vector<16x128xbf16>
    %cst = arith.constant dense<0.000000e+00> : vector<16x384xf32>
    %6 = tpu.matmul %5, %4, %cst {dimension_numbers = #tpu.dot_dimension_numbers<[1], [0], [0], [1], [0, 0, 1, 1], [], []>} : vector<16x128xbf16>, vector<128x384xbf16>, vector<16x384xf32> -> vector<16x384xf32>
    %c0_7 = arith.constant 0 : index
    %c0_8 = arith.constant 0 : index
    %7 = vector.load %arg4[%c0_7, %c0_8] : memref<1x384xf32, #tpu.memory_space<vmem>>, vector<1x384xf32>
    %8 = vector.broadcast %7 : vector<1x384xf32> to vector<16x384xf32>
    %9 = arith.addf %6, %8 : vector<16x384xf32>
    %10 = vector.extract_strided_slice %9 {offsets = [0, 0], sizes = [16, 128], strides = [1, 1]} : vector<16x384xf32> to vector<16x128xf32>
    %11 = vector.shape_cast %10 : vector<16x128xf32> to vector<2x8x128xf32>
    %12 = vector.extract_strided_slice %9 {offsets = [0, 128], sizes = [16, 128], strides = [1, 1]} : vector<16x384xf32> to vector<16x128xf32>
    %13 = vector.shape_cast %12 : vector<16x128xf32> to vector<2x8x128xf32>
    %14 = vector.extract_strided_slice %9 {offsets = [0, 256], sizes = [16, 128], strides = [1, 1]} : vector<16x384xf32> to vector<16x128xf32>
    %15 = vector.shape_cast %14 : vector<16x128xf32> to vector<2x8x128xf32>
    %16 = vector.extract_strided_slice %11 {offsets = [0, 0, 0], sizes = [1, 8, 128], strides = [1, 1, 1]} : vector<2x8x128xf32> to vector<1x8x128xf32>
    %17 = vector.shape_cast %16 : vector<1x8x128xf32> to vector<8x128xf32>
    %18 = vector.extract_strided_slice %13 {offsets = [0, 0, 0], sizes = [1, 8, 128], strides = [1, 1, 1]} : vector<2x8x128xf32> to vector<1x8x128xf32>
    %19 = vector.shape_cast %18 : vector<1x8x128xf32> to vector<8x128xf32>
    %20 = vector.extract_strided_slice %15 {offsets = [0, 0, 0], sizes = [1, 8, 128], strides = [1, 1, 1]} : vector<2x8x128xf32> to vector<1x8x128xf32>
    %21 = vector.shape_cast %20 : vector<1x8x128xf32> to vector<8x128xf32>
    %22 = vector.extract_strided_slice %3 {offsets = [0, 0, 0], sizes = [1, 1, 8], strides = [1, 1, 1]} : vector<2x1x8xf32> to vector<1x1x8xf32>
    %23 = vector.shape_cast %22 : vector<1x1x8xf32> to vector<1x8xf32>
    %24 = vector.extract_strided_slice %17 {offsets = [0, 0], sizes = [8, 32], strides = [1, 1]} : vector<8x128xf32> to vector<8x32xf32>
    %25 = arith.truncf %24 : vector<8x32xf32> to vector<8x32xbf16>
    %26 = vector.extract_strided_slice %19 {offsets = [0, 0], sizes = [8, 32], strides = [1, 1]} : vector<8x128xf32> to vector<8x32xf32>
    %27 = arith.truncf %26 : vector<8x32xf32> to vector<8x32xbf16>
    %28 = vector.extract_strided_slice %21 {offsets = [0, 0], sizes = [8, 32], strides = [1, 1]} : vector<8x128xf32> to vector<8x32xf32>
    %29 = arith.truncf %28 : vector<8x32xf32> to vector<8x32xbf16>
    %cst_9 = arith.constant dense<0.000000e+00> : vector<8x8xf32>
    %30 = tpu.matmul %25, %27, %cst_9 {dimension_numbers = #tpu.dot_dimension_numbers<[1], [1], [0], [0], [0, 0, 1, 0], [], []>} : vector<8x32xbf16>, vector<8x32xbf16>, vector<8x8xf32> -> vector<8x8xf32>
    %cst_10 = arith.constant 0.176776692 : f32
    %31 = vector.broadcast %cst_10 : f32 to vector<8x8xf32>
    %32 = arith.mulf %30, %31 : vector<8x8xf32>
    %33 = vector.broadcast %23 : vector<1x8xf32> to vector<8x8xf32>
    %34 = arith.addf %32, %33 : vector<8x8xf32>
    %cst_11 = arith.constant dense<0xFF800000> : vector<8xf32>
    %35 = vector.multi_reduction <maximumf>, %34, %cst_11 [1] : vector<8x8xf32> to vector<8xf32>
    %36 = vector.shape_cast %35 : vector<8xf32> to vector<8x1xf32>
    %37 = vector.broadcast %36 : vector<8x1xf32> to vector<8x8xf32>
    %38 = arith.subf %34, %37 : vector<8x8xf32>
    %39 = math.exp %38 : vector<8x8xf32>
    %cst_12 = arith.constant dense<0.000000e+00> : vector<8xf32>
    %40 = vector.multi_reduction <add>, %39, %cst_12 [1] : vector<8x8xf32> to vector<8xf32>
    %41 = vector.shape_cast %40 : vector<8xf32> to vector<8x1xf32>
    %42 = tpu.reciprocal %41 {approx = true} : vector<8x1xf32> -> vector<8x1xf32>
    %43 = vector.broadcast %42 : vector<8x1xf32> to vector<8x8xf32>
    %44 = arith.mulf %39, %43 : vector<8x8xf32>
    %45 = arith.truncf %44 : vector<8x8xf32> to vector<8x8xbf16>
    %cst_13 = arith.constant dense<0.000000e+00> : vector<8x32xf32>
    %46 = tpu.matmul %45, %29, %cst_13 {dimension_numbers = #tpu.dot_dimension_numbers<[1], [0], [0], [1], [0, 0, 1, 1], [], []>} : vector<8x8xbf16>, vector<8x32xbf16>, vector<8x32xf32> -> vector<8x32xf32>
    %47 = vector.extract_strided_slice %17 {offsets = [0, 32], sizes = [8, 32], strides = [1, 1]} : vector<8x128xf32> to vector<8x32xf32>
    %48 = arith.truncf %47 : vector<8x32xf32> to vector<8x32xbf16>
    %49 = vector.extract_strided_slice %19 {offsets = [0, 32], sizes = [8, 32], strides = [1, 1]} : vector<8x128xf32> to vector<8x32xf32>
    %50 = arith.truncf %49 : vector<8x32xf32> to vector<8x32xbf16>
    %51 = vector.extract_strided_slice %21 {offsets = [0, 32], sizes = [8, 32], strides = [1, 1]} : vector<8x128xf32> to vector<8x32xf32>
    %52 = arith.truncf %51 : vector<8x32xf32> to vector<8x32xbf16>
    %cst_14 = arith.constant dense<0.000000e+00> : vector<8x8xf32>
    %53 = tpu.matmul %48, %50, %cst_14 {dimension_numbers = #tpu.dot_dimension_numbers<[1], [1], [0], [0], [0, 0, 1, 0], [], []>} : vector<8x32xbf16>, vector<8x32xbf16>, vector<8x8xf32> -> vector<8x8xf32>
    %cst_15 = arith.constant 0.176776692 : f32
    %54 = vector.broadcast %cst_15 : f32 to vector<8x8xf32>
    %55 = arith.mulf %53, %54 : vector<8x8xf32>
    %56 = vector.broadcast %23 : vector<1x8xf32> to vector<8x8xf32>
    %57 = arith.addf %55, %56 : vector<8x8xf32>
    %cst_16 = arith.constant dense<0xFF800000> : vector<8xf32>
    %58 = vector.multi_reduction <maximumf>, %57, %cst_16 [1] : vector<8x8xf32> to vector<8xf32>
    %59 = vector.shape_cast %58 : vector<8xf32> to vector<8x1xf32>
    %60 = vector.broadcast %59 : vector<8x1xf32> to vector<8x8xf32>
    %61 = arith.subf %57, %60 : vector<8x8xf32>
    %62 = math.exp %61 : vector<8x8xf32>
    %cst_17 = arith.constant dense<0.000000e+00> : vector<8xf32>
    %63 = vector.multi_reduction <add>, %62, %cst_17 [1] : vector<8x8xf32> to vector<8xf32>
    %64 = vector.shape_cast %63 : vector<8xf32> to vector<8x1xf32>
    %65 = tpu.reciprocal %64 {approx = true} : vector<8x1xf32> -> vector<8x1xf32>
    %66 = vector.broadcast %65 : vector<8x1xf32> to vector<8x8xf32>
    %67 = arith.mulf %62, %66 : vector<8x8xf32>
    %68 = arith.truncf %67 : vector<8x8xf32> to vector<8x8xbf16>
    %cst_18 = arith.constant dense<0.000000e+00> : vector<8x32xf32>
    %69 = tpu.matmul %68, %52, %cst_18 {dimension_numbers = #tpu.dot_dimension_numbers<[1], [0], [0], [1], [0, 0, 1, 1], [], []>} : vector<8x8xbf16>, vector<8x32xbf16>, vector<8x32xf32> -> vector<8x32xf32>
    %70 = vector.extract_strided_slice %17 {offsets = [0, 64], sizes = [8, 32], strides = [1, 1]} : vector<8x128xf32> to vector<8x32xf32>
    %71 = arith.truncf %70 : vector<8x32xf32> to vector<8x32xbf16>
    %72 = vector.extract_strided_slice %19 {offsets = [0, 64], sizes = [8, 32], strides = [1, 1]} : vector<8x128xf32> to vector<8x32xf32>
    %73 = arith.truncf %72 : vector<8x32xf32> to vector<8x32xbf16>
    %74 = vector.extract_strided_slice %21 {offsets = [0, 64], sizes = [8, 32], strides = [1, 1]} : vector<8x128xf32> to vector<8x32xf32>
    %75 = arith.truncf %74 : vector<8x32xf32> to vector<8x32xbf16>
    %cst_19 = arith.constant dense<0.000000e+00> : vector<8x8xf32>
    %76 = tpu.matmul %71, %73, %cst_19 {dimension_numbers = #tpu.dot_dimension_numbers<[1], [1], [0], [0], [0, 0, 1, 0], [], []>} : vector<8x32xbf16>, vector<8x32xbf16>, vector<8x8xf32> -> vector<8x8xf32>
    %cst_20 = arith.constant 0.176776692 : f32
    %77 = vector.broadcast %cst_20 : f32 to vector<8x8xf32>
    %78 = arith.mulf %76, %77 : vector<8x8xf32>
    %79 = vector.broadcast %23 : vector<1x8xf32> to vector<8x8xf32>
    %80 = arith.addf %78, %79 : vector<8x8xf32>
    %cst_21 = arith.constant dense<0xFF800000> : vector<8xf32>
    %81 = vector.multi_reduction <maximumf>, %80, %cst_21 [1] : vector<8x8xf32> to vector<8xf32>
    %82 = vector.shape_cast %81 : vector<8xf32> to vector<8x1xf32>
    %83 = vector.broadcast %82 : vector<8x1xf32> to vector<8x8xf32>
    %84 = arith.subf %80, %83 : vector<8x8xf32>
    %85 = math.exp %84 : vector<8x8xf32>
    %cst_22 = arith.constant dense<0.000000e+00> : vector<8xf32>
    %86 = vector.multi_reduction <add>, %85, %cst_22 [1] : vector<8x8xf32> to vector<8xf32>
    %87 = vector.shape_cast %86 : vector<8xf32> to vector<8x1xf32>
    %88 = tpu.reciprocal %87 {approx = true} : vector<8x1xf32> -> vector<8x1xf32>
    %89 = vector.broadcast %88 : vector<8x1xf32> to vector<8x8xf32>
    %90 = arith.mulf %85, %89 : vector<8x8xf32>
    %91 = arith.truncf %90 : vector<8x8xf32> to vector<8x8xbf16>
    %cst_23 = arith.constant dense<0.000000e+00> : vector<8x32xf32>
    %92 = tpu.matmul %91, %75, %cst_23 {dimension_numbers = #tpu.dot_dimension_numbers<[1], [0], [0], [1], [0, 0, 1, 1], [], []>} : vector<8x8xbf16>, vector<8x32xbf16>, vector<8x32xf32> -> vector<8x32xf32>
    %93 = vector.extract_strided_slice %17 {offsets = [0, 96], sizes = [8, 32], strides = [1, 1]} : vector<8x128xf32> to vector<8x32xf32>
    %94 = arith.truncf %93 : vector<8x32xf32> to vector<8x32xbf16>
    %95 = vector.extract_strided_slice %19 {offsets = [0, 96], sizes = [8, 32], strides = [1, 1]} : vector<8x128xf32> to vector<8x32xf32>
    %96 = arith.truncf %95 : vector<8x32xf32> to vector<8x32xbf16>
    %97 = vector.extract_strided_slice %21 {offsets = [0, 96], sizes = [8, 32], strides = [1, 1]} : vector<8x128xf32> to vector<8x32xf32>
    %98 = arith.truncf %97 : vector<8x32xf32> to vector<8x32xbf16>
    %cst_24 = arith.constant dense<0.000000e+00> : vector<8x8xf32>
    %99 = tpu.matmul %94, %96, %cst_24 {dimension_numbers = #tpu.dot_dimension_numbers<[1], [1], [0], [0], [0, 0, 1, 0], [], []>} : vector<8x32xbf16>, vector<8x32xbf16>, vector<8x8xf32> -> vector<8x8xf32>
    %cst_25 = arith.constant 0.176776692 : f32
    %100 = vector.broadcast %cst_25 : f32 to vector<8x8xf32>
    %101 = arith.mulf %99, %100 : vector<8x8xf32>
    %102 = vector.broadcast %23 : vector<1x8xf32> to vector<8x8xf32>
    %103 = arith.addf %101, %102 : vector<8x8xf32>
    %cst_26 = arith.constant dense<0xFF800000> : vector<8xf32>
    %104 = vector.multi_reduction <maximumf>, %103, %cst_26 [1] : vector<8x8xf32> to vector<8xf32>
    %105 = vector.shape_cast %104 : vector<8xf32> to vector<8x1xf32>
    %106 = vector.broadcast %105 : vector<8x1xf32> to vector<8x8xf32>
    %107 = arith.subf %103, %106 : vector<8x8xf32>
    %108 = math.exp %107 : vector<8x8xf32>
    %cst_27 = arith.constant dense<0.000000e+00> : vector<8xf32>
    %109 = vector.multi_reduction <add>, %108, %cst_27 [1] : vector<8x8xf32> to vector<8xf32>
    %110 = vector.shape_cast %109 : vector<8xf32> to vector<8x1xf32>
    %111 = tpu.reciprocal %110 {approx = true} : vector<8x1xf32> -> vector<8x1xf32>
    %112 = vector.broadcast %111 : vector<8x1xf32> to vector<8x8xf32>
    %113 = arith.mulf %108, %112 : vector<8x8xf32>
    %114 = arith.truncf %113 : vector<8x8xf32> to vector<8x8xbf16>
    %cst_28 = arith.constant dense<0.000000e+00> : vector<8x32xf32>
    %115 = tpu.matmul %114, %98, %cst_28 {dimension_numbers = #tpu.dot_dimension_numbers<[1], [0], [0], [1], [0, 0, 1, 1], [], []>} : vector<8x8xbf16>, vector<8x32xbf16>, vector<8x32xf32> -> vector<8x32xf32>
    %116 = tpu.concatenate %46, %69, %92, %115 in 1 : vector<8x32xf32>, vector<8x32xf32>, vector<8x32xf32>, vector<8x32xf32> -> vector<8x128xf32>
    %117 = vector.extract_strided_slice %11 {offsets = [1, 0, 0], sizes = [1, 8, 128], strides = [1, 1, 1]} : vector<2x8x128xf32> to vector<1x8x128xf32>
    %118 = vector.shape_cast %117 : vector<1x8x128xf32> to vector<8x128xf32>
    %119 = vector.extract_strided_slice %13 {offsets = [1, 0, 0], sizes = [1, 8, 128], strides = [1, 1, 1]} : vector<2x8x128xf32> to vector<1x8x128xf32>
    %120 = vector.shape_cast %119 : vector<1x8x128xf32> to vector<8x128xf32>
    %121 = vector.extract_strided_slice %15 {offsets = [1, 0, 0], sizes = [1, 8, 128], strides = [1, 1, 1]} : vector<2x8x128xf32> to vector<1x8x128xf32>
    %122 = vector.shape_cast %121 : vector<1x8x128xf32> to vector<8x128xf32>
    %123 = vector.extract_strided_slice %3 {offsets = [1, 0, 0], sizes = [1, 1, 8], strides = [1, 1, 1]} : vector<2x1x8xf32> to vector<1x1x8xf32>
    %124 = vector.shape_cast %123 : vector<1x1x8xf32> to vector<1x8xf32>
    %125 = vector.extract_strided_slice %118 {offsets = [0, 0], sizes = [8, 32], strides = [1, 1]} : vector<8x128xf32> to vector<8x32xf32>
    %126 = arith.truncf %125 : vector<8x32xf32> to vector<8x32xbf16>
    %127 = vector.extract_strided_slice %120 {offsets = [0, 0], sizes = [8, 32], strides = [1, 1]} : vector<8x128xf32> to vector<8x32xf32>
    %128 = arith.truncf %127 : vector<8x32xf32> to vector<8x32xbf16>
    %129 = vector.extract_strided_slice %122 {offsets = [0, 0], sizes = [8, 32], strides = [1, 1]} : vector<8x128xf32> to vector<8x32xf32>
    %130 = arith.truncf %129 : vector<8x32xf32> to vector<8x32xbf16>
    %cst_29 = arith.constant dense<0.000000e+00> : vector<8x8xf32>
    %131 = tpu.matmul %126, %128, %cst_29 {dimension_numbers = #tpu.dot_dimension_numbers<[1], [1], [0], [0], [0, 0, 1, 0], [], []>} : vector<8x32xbf16>, vector<8x32xbf16>, vector<8x8xf32> -> vector<8x8xf32>
    %cst_30 = arith.constant 0.176776692 : f32
    %132 = vector.broadcast %cst_30 : f32 to vector<8x8xf32>
    %133 = arith.mulf %131, %132 : vector<8x8xf32>
    %134 = vector.broadcast %124 : vector<1x8xf32> to vector<8x8xf32>
    %135 = arith.addf %133, %134 : vector<8x8xf32>
    %cst_31 = arith.constant dense<0xFF800000> : vector<8xf32>
    %136 = vector.multi_reduction <maximumf>, %135, %cst_31 [1] : vector<8x8xf32> to vector<8xf32>
    %137 = vector.shape_cast %136 : vector<8xf32> to vector<8x1xf32>
    %138 = vector.broadcast %137 : vector<8x1xf32> to vector<8x8xf32>
    %139 = arith.subf %135, %138 : vector<8x8xf32>
    %140 = math.exp %139 : vector<8x8xf32>
    %cst_32 = arith.constant dense<0.000000e+00> : vector<8xf32>
    %141 = vector.multi_reduction <add>, %140, %cst_32 [1] : vector<8x8xf32> to vector<8xf32>
    %142 = vector.shape_cast %141 : vector<8xf32> to vector<8x1xf32>
    %143 = tpu.reciprocal %142 {approx = true} : vector<8x1xf32> -> vector<8x1xf32>
    %144 = vector.broadcast %143 : vector<8x1xf32> to vector<8x8xf32>
    %145 = arith.mulf %140, %144 : vector<8x8xf32>
    %146 = arith.truncf %145 : vector<8x8xf32> to vector<8x8xbf16>
    %cst_33 = arith.constant dense<0.000000e+00> : vector<8x32xf32>
    %147 = tpu.matmul %146, %130, %cst_33 {dimension_numbers = #tpu.dot_dimension_numbers<[1], [0], [0], [1], [0, 0, 1, 1], [], []>} : vector<8x8xbf16>, vector<8x32xbf16>, vector<8x32xf32> -> vector<8x32xf32>
    %148 = vector.extract_strided_slice %118 {offsets = [0, 32], sizes = [8, 32], strides = [1, 1]} : vector<8x128xf32> to vector<8x32xf32>
    %149 = arith.truncf %148 : vector<8x32xf32> to vector<8x32xbf16>
    %150 = vector.extract_strided_slice %120 {offsets = [0, 32], sizes = [8, 32], strides = [1, 1]} : vector<8x128xf32> to vector<8x32xf32>
    %151 = arith.truncf %150 : vector<8x32xf32> to vector<8x32xbf16>
    %152 = vector.extract_strided_slice %122 {offsets = [0, 32], sizes = [8, 32], strides = [1, 1]} : vector<8x128xf32> to vector<8x32xf32>
    %153 = arith.truncf %152 : vector<8x32xf32> to vector<8x32xbf16>
    %cst_34 = arith.constant dense<0.000000e+00> : vector<8x8xf32>
    %154 = tpu.matmul %149, %151, %cst_34 {dimension_numbers = #tpu.dot_dimension_numbers<[1], [1], [0], [0], [0, 0, 1, 0], [], []>} : vector<8x32xbf16>, vector<8x32xbf16>, vector<8x8xf32> -> vector<8x8xf32>
    %cst_35 = arith.constant 0.176776692 : f32
    %155 = vector.broadcast %cst_35 : f32 to vector<8x8xf32>
    %156 = arith.mulf %154, %155 : vector<8x8xf32>
    %157 = vector.broadcast %124 : vector<1x8xf32> to vector<8x8xf32>
    %158 = arith.addf %156, %157 : vector<8x8xf32>
    %cst_36 = arith.constant dense<0xFF800000> : vector<8xf32>
    %159 = vector.multi_reduction <maximumf>, %158, %cst_36 [1] : vector<8x8xf32> to vector<8xf32>
    %160 = vector.shape_cast %159 : vector<8xf32> to vector<8x1xf32>
    %161 = vector.broadcast %160 : vector<8x1xf32> to vector<8x8xf32>
    %162 = arith.subf %158, %161 : vector<8x8xf32>
    %163 = math.exp %162 : vector<8x8xf32>
    %cst_37 = arith.constant dense<0.000000e+00> : vector<8xf32>
    %164 = vector.multi_reduction <add>, %163, %cst_37 [1] : vector<8x8xf32> to vector<8xf32>
    %165 = vector.shape_cast %164 : vector<8xf32> to vector<8x1xf32>
    %166 = tpu.reciprocal %165 {approx = true} : vector<8x1xf32> -> vector<8x1xf32>
    %167 = vector.broadcast %166 : vector<8x1xf32> to vector<8x8xf32>
    %168 = arith.mulf %163, %167 : vector<8x8xf32>
    %169 = arith.truncf %168 : vector<8x8xf32> to vector<8x8xbf16>
    %cst_38 = arith.constant dense<0.000000e+00> : vector<8x32xf32>
    %170 = tpu.matmul %169, %153, %cst_38 {dimension_numbers = #tpu.dot_dimension_numbers<[1], [0], [0], [1], [0, 0, 1, 1], [], []>} : vector<8x8xbf16>, vector<8x32xbf16>, vector<8x32xf32> -> vector<8x32xf32>
    %171 = vector.extract_strided_slice %118 {offsets = [0, 64], sizes = [8, 32], strides = [1, 1]} : vector<8x128xf32> to vector<8x32xf32>
    %172 = arith.truncf %171 : vector<8x32xf32> to vector<8x32xbf16>
    %173 = vector.extract_strided_slice %120 {offsets = [0, 64], sizes = [8, 32], strides = [1, 1]} : vector<8x128xf32> to vector<8x32xf32>
    %174 = arith.truncf %173 : vector<8x32xf32> to vector<8x32xbf16>
    %175 = vector.extract_strided_slice %122 {offsets = [0, 64], sizes = [8, 32], strides = [1, 1]} : vector<8x128xf32> to vector<8x32xf32>
    %176 = arith.truncf %175 : vector<8x32xf32> to vector<8x32xbf16>
    %cst_39 = arith.constant dense<0.000000e+00> : vector<8x8xf32>
    %177 = tpu.matmul %172, %174, %cst_39 {dimension_numbers = #tpu.dot_dimension_numbers<[1], [1], [0], [0], [0, 0, 1, 0], [], []>} : vector<8x32xbf16>, vector<8x32xbf16>, vector<8x8xf32> -> vector<8x8xf32>
    %cst_40 = arith.constant 0.176776692 : f32
    %178 = vector.broadcast %cst_40 : f32 to vector<8x8xf32>
    %179 = arith.mulf %177, %178 : vector<8x8xf32>
    %180 = vector.broadcast %124 : vector<1x8xf32> to vector<8x8xf32>
    %181 = arith.addf %179, %180 : vector<8x8xf32>
    %cst_41 = arith.constant dense<0xFF800000> : vector<8xf32>
    %182 = vector.multi_reduction <maximumf>, %181, %cst_41 [1] : vector<8x8xf32> to vector<8xf32>
    %183 = vector.shape_cast %182 : vector<8xf32> to vector<8x1xf32>
    %184 = vector.broadcast %183 : vector<8x1xf32> to vector<8x8xf32>
    %185 = arith.subf %181, %184 : vector<8x8xf32>
    %186 = math.exp %185 : vector<8x8xf32>
    %cst_42 = arith.constant dense<0.000000e+00> : vector<8xf32>
    %187 = vector.multi_reduction <add>, %186, %cst_42 [1] : vector<8x8xf32> to vector<8xf32>
    %188 = vector.shape_cast %187 : vector<8xf32> to vector<8x1xf32>
    %189 = tpu.reciprocal %188 {approx = true} : vector<8x1xf32> -> vector<8x1xf32>
    %190 = vector.broadcast %189 : vector<8x1xf32> to vector<8x8xf32>
    %191 = arith.mulf %186, %190 : vector<8x8xf32>
    %192 = arith.truncf %191 : vector<8x8xf32> to vector<8x8xbf16>
    %cst_43 = arith.constant dense<0.000000e+00> : vector<8x32xf32>
    %193 = tpu.matmul %192, %176, %cst_43 {dimension_numbers = #tpu.dot_dimension_numbers<[1], [0], [0], [1], [0, 0, 1, 1], [], []>} : vector<8x8xbf16>, vector<8x32xbf16>, vector<8x32xf32> -> vector<8x32xf32>
    %194 = vector.extract_strided_slice %118 {offsets = [0, 96], sizes = [8, 32], strides = [1, 1]} : vector<8x128xf32> to vector<8x32xf32>
    %195 = arith.truncf %194 : vector<8x32xf32> to vector<8x32xbf16>
    %196 = vector.extract_strided_slice %120 {offsets = [0, 96], sizes = [8, 32], strides = [1, 1]} : vector<8x128xf32> to vector<8x32xf32>
    %197 = arith.truncf %196 : vector<8x32xf32> to vector<8x32xbf16>
    %198 = vector.extract_strided_slice %122 {offsets = [0, 96], sizes = [8, 32], strides = [1, 1]} : vector<8x128xf32> to vector<8x32xf32>
    %199 = arith.truncf %198 : vector<8x32xf32> to vector<8x32xbf16>
    %cst_44 = arith.constant dense<0.000000e+00> : vector<8x8xf32>
    %200 = tpu.matmul %195, %197, %cst_44 {dimension_numbers = #tpu.dot_dimension_numbers<[1], [1], [0], [0], [0, 0, 1, 0], [], []>} : vector<8x32xbf16>, vector<8x32xbf16>, vector<8x8xf32> -> vector<8x8xf32>
    %cst_45 = arith.constant 0.176776692 : f32
    %201 = vector.broadcast %cst_45 : f32 to vector<8x8xf32>
    %202 = arith.mulf %200, %201 : vector<8x8xf32>
    %203 = vector.broadcast %124 : vector<1x8xf32> to vector<8x8xf32>
    %204 = arith.addf %202, %203 : vector<8x8xf32>
    %cst_46 = arith.constant dense<0xFF800000> : vector<8xf32>
    %205 = vector.multi_reduction <maximumf>, %204, %cst_46 [1] : vector<8x8xf32> to vector<8xf32>
    %206 = vector.shape_cast %205 : vector<8xf32> to vector<8x1xf32>
    %207 = vector.broadcast %206 : vector<8x1xf32> to vector<8x8xf32>
    %208 = arith.subf %204, %207 : vector<8x8xf32>
    %209 = math.exp %208 : vector<8x8xf32>
    %cst_47 = arith.constant dense<0.000000e+00> : vector<8xf32>
    %210 = vector.multi_reduction <add>, %209, %cst_47 [1] : vector<8x8xf32> to vector<8xf32>
    %211 = vector.shape_cast %210 : vector<8xf32> to vector<8x1xf32>
    %212 = tpu.reciprocal %211 {approx = true} : vector<8x1xf32> -> vector<8x1xf32>
    %213 = vector.broadcast %212 : vector<8x1xf32> to vector<8x8xf32>
    %214 = arith.mulf %209, %213 : vector<8x8xf32>
    %215 = arith.truncf %214 : vector<8x8xf32> to vector<8x8xbf16>
    %cst_48 = arith.constant dense<0.000000e+00> : vector<8x32xf32>
    %216 = tpu.matmul %215, %199, %cst_48 {dimension_numbers = #tpu.dot_dimension_numbers<[1], [0], [0], [1], [0, 0, 1, 1], [], []>} : vector<8x8xbf16>, vector<8x32xbf16>, vector<8x32xf32> -> vector<8x32xf32>
    %217 = tpu.concatenate %147, %170, %193, %216 in 1 : vector<8x32xf32>, vector<8x32xf32>, vector<8x32xf32>, vector<8x32xf32> -> vector<8x128xf32>
    %218 = tpu.concatenate %116, %217 in 0 : vector<8x128xf32>, vector<8x128xf32> -> vector<16x128xf32>
    %c0_49 = arith.constant 0 : index
    %c0_50 = arith.constant 0 : index
    %219 = vector.load %arg5[%c0_49, %c0_50] : memref<128x128xbf16, #tpu.memory_space<vmem>>, vector<128x128xbf16>
    %220 = arith.truncf %218 : vector<16x128xf32> to vector<16x128xbf16>
    %cst_51 = arith.constant dense<0.000000e+00> : vector<16x128xf32>
    %221 = tpu.matmul %220, %219, %cst_51 {dimension_numbers = #tpu.dot_dimension_numbers<[1], [0], [0], [1], [0, 0, 1, 1], [], []>} : vector<16x128xbf16>, vector<128x128xbf16>, vector<16x128xf32> -> vector<16x128xf32>
    %222 = arith.addf %2, %221 : vector<16x128xf32>
    %c0_52 = arith.constant 0 : index
    %c0_53 = arith.constant 0 : index
    %223 = vector.load %arg6[%c0_52, %c0_53] : memref<1x128xf32, #tpu.memory_space<vmem>>, vector<1x128xf32>
    %224 = vector.broadcast %223 : vector<1x128xf32> to vector<16x128xf32>
    %225 = arith.addf %222, %224 : vector<16x128xf32>
    %c0_54 = arith.constant 0 : index
    %c0_55 = arith.constant 0 : index
    %226 = vector.load %arg7[%c0_54, %c0_55] : memref<1x128xf32, #tpu.memory_space<vmem>>, vector<1x128xf32>
    %c0_56 = arith.constant 0 : index
    %c0_57 = arith.constant 0 : index
    %227 = vector.load %arg8[%c0_56, %c0_57] : memref<1x128xf32, #tpu.memory_space<vmem>>, vector<1x128xf32>
    %cst_58 = arith.constant dense<0.000000e+00> : vector<16xf32>
    %228 = vector.multi_reduction <add>, %225, %cst_58 [1] : vector<16x128xf32> to vector<16xf32>
    %229 = vector.shape_cast %228 : vector<16xf32> to vector<16x1xf32>
    %cst_59 = arith.constant 1.280000e+02 : f32
    %230 = vector.broadcast %cst_59 : f32 to vector<16x1xf32>
    %231 = arith.divf %229, %230 : vector<16x1xf32>
    %232 = vector.broadcast %231 : vector<16x1xf32> to vector<16x128xf32>
    %233 = arith.subf %225, %232 : vector<16x128xf32>
    %234 = arith.mulf %233, %233 : vector<16x128xf32>
    %cst_60 = arith.constant dense<0.000000e+00> : vector<16xf32>
    %235 = vector.multi_reduction <add>, %234, %cst_60 [1] : vector<16x128xf32> to vector<16xf32>
    %236 = vector.shape_cast %235 : vector<16xf32> to vector<16x1xf32>
    %cst_61 = arith.constant 1.280000e+02 : f32
    %237 = vector.broadcast %cst_61 : f32 to vector<16x1xf32>
    %238 = arith.divf %236, %237 : vector<16x1xf32>
    %239 = vector.broadcast %231 : vector<16x1xf32> to vector<16x128xf32>
    %240 = arith.subf %225, %239 : vector<16x128xf32>
    %cst_62 = arith.constant 9.99999996E-13 : f32
    %241 = vector.broadcast %cst_62 : f32 to vector<16x1xf32>
    %242 = arith.addf %238, %241 : vector<16x1xf32>
    %243 = math.rsqrt %242 : vector<16x1xf32>
    %244 = vector.broadcast %243 : vector<16x1xf32> to vector<16x128xf32>
    %245 = arith.mulf %240, %244 : vector<16x128xf32>
    %246 = vector.broadcast %226 : vector<1x128xf32> to vector<16x128xf32>
    %247 = arith.mulf %245, %246 : vector<16x128xf32>
    %248 = vector.broadcast %227 : vector<1x128xf32> to vector<16x128xf32>
    %249 = arith.addf %247, %248 : vector<16x128xf32>
    %c0_63 = arith.constant 0 : index
    %c0_64 = arith.constant 0 : index
    %250 = vector.load %arg9[%c0_63, %c0_64] : memref<128x512xbf16, #tpu.memory_space<vmem>>, vector<128x512xbf16>
    %251 = arith.truncf %249 : vector<16x128xf32> to vector<16x128xbf16>
    %cst_65 = arith.constant dense<0.000000e+00> : vector<16x512xf32>
    %252 = tpu.matmul %251, %250, %cst_65 {dimension_numbers = #tpu.dot_dimension_numbers<[1], [0], [0], [1], [0, 0, 1, 1], [], []>} : vector<16x128xbf16>, vector<128x512xbf16>, vector<16x512xf32> -> vector<16x512xf32>
    %c0_66 = arith.constant 0 : index
    %c0_67 = arith.constant 0 : index
    %253 = vector.load %arg10[%c0_66, %c0_67] : memref<1x512xf32, #tpu.memory_space<vmem>>, vector<1x512xf32>
    %254 = vector.broadcast %253 : vector<1x512xf32> to vector<16x512xf32>
    %255 = arith.addf %252, %254 : vector<16x512xf32>
    %256 = arith.mulf %255, %255 : vector<16x512xf32>
    %257 = arith.mulf %255, %256 : vector<16x512xf32>
    %cst_68 = arith.constant 4.471500e-02 : f32
    %258 = vector.broadcast %cst_68 : f32 to vector<16x512xf32>
    %259 = arith.mulf %258, %257 : vector<16x512xf32>
    %260 = arith.addf %255, %259 : vector<16x512xf32>
    %cst_69 = arith.constant 0.797884583 : f32
    %261 = vector.broadcast %cst_69 : f32 to vector<16x512xf32>
    %262 = arith.mulf %261, %260 : vector<16x512xf32>
    %263 = math.tanh %262 : vector<16x512xf32>
    %cst_70 = arith.constant 1.000000e+00 : f32
    %264 = vector.broadcast %cst_70 : f32 to vector<16x512xf32>
    %265 = arith.addf %264, %263 : vector<16x512xf32>
    %cst_71 = arith.constant 5.000000e-01 : f32
    %266 = vector.broadcast %cst_71 : f32 to vector<16x512xf32>
    %267 = arith.mulf %266, %265 : vector<16x512xf32>
    %268 = arith.mulf %255, %267 : vector<16x512xf32>
    %c0_72 = arith.constant 0 : index
    %c0_73 = arith.constant 0 : index
    %269 = vector.load %arg11[%c0_72, %c0_73] : memref<512x128xbf16, #tpu.memory_space<vmem>>, vector<512x128xbf16>
    %270 = arith.truncf %268 : vector<16x512xf32> to vector<16x512xbf16>
    %cst_74 = arith.constant dense<0.000000e+00> : vector<16x128xf32>
    %271 = tpu.matmul %270, %269, %cst_74 {dimension_numbers = #tpu.dot_dimension_numbers<[1], [0], [0], [1], [0, 0, 1, 1], [], []>} : vector<16x512xbf16>, vector<512x128xbf16>, vector<16x128xf32> -> vector<16x128xf32>
    %272 = arith.addf %249, %271 : vector<16x128xf32>
    %c0_75 = arith.constant 0 : index
    %c0_76 = arith.constant 0 : index
    %273 = vector.load %arg12[%c0_75, %c0_76] : memref<1x128xf32, #tpu.memory_space<vmem>>, vector<1x128xf32>
    %274 = vector.broadcast %273 : vector<1x128xf32> to vector<16x128xf32>
    %275 = arith.addf %272, %274 : vector<16x128xf32>
    %c0_77 = arith.constant 0 : index
    %c0_78 = arith.constant 0 : index
    %276 = vector.load %arg13[%c0_77, %c0_78] : memref<1x128xf32, #tpu.memory_space<vmem>>, vector<1x128xf32>
    %c0_79 = arith.constant 0 : index
    %c0_80 = arith.constant 0 : index
    %277 = vector.load %arg14[%c0_79, %c0_80] : memref<1x128xf32, #tpu.memory_space<vmem>>, vector<1x128xf32>
    %cst_81 = arith.constant dense<0.000000e+00> : vector<16xf32>
    %278 = vector.multi_reduction <add>, %275, %cst_81 [1] : vector<16x128xf32> to vector<16xf32>
    %279 = vector.shape_cast %278 : vector<16xf32> to vector<16x1xf32>
    %cst_82 = arith.constant 1.280000e+02 : f32
    %280 = vector.broadcast %cst_82 : f32 to vector<16x1xf32>
    %281 = arith.divf %279, %280 : vector<16x1xf32>
    %282 = vector.broadcast %281 : vector<16x1xf32> to vector<16x128xf32>
    %283 = arith.subf %275, %282 : vector<16x128xf32>
    %284 = arith.mulf %283, %283 : vector<16x128xf32>
    %cst_83 = arith.constant dense<0.000000e+00> : vector<16xf32>
    %285 = vector.multi_reduction <add>, %284, %cst_83 [1] : vector<16x128xf32> to vector<16xf32>
    %286 = vector.shape_cast %285 : vector<16xf32> to vector<16x1xf32>
    %cst_84 = arith.constant 1.280000e+02 : f32
    %287 = vector.broadcast %cst_84 : f32 to vector<16x1xf32>
    %288 = arith.divf %286, %287 : vector<16x1xf32>
    %289 = vector.broadcast %281 : vector<16x1xf32> to vector<16x128xf32>
    %290 = arith.subf %275, %289 : vector<16x128xf32>
    %cst_85 = arith.constant 9.99999996E-13 : f32
    %291 = vector.broadcast %cst_85 : f32 to vector<16x1xf32>
    %292 = arith.addf %288, %291 : vector<16x1xf32>
    %293 = math.rsqrt %292 : vector<16x1xf32>
    %294 = vector.broadcast %293 : vector<16x1xf32> to vector<16x128xf32>
    %295 = arith.mulf %290, %294 : vector<16x128xf32>
    %296 = vector.broadcast %276 : vector<1x128xf32> to vector<16x128xf32>
    %297 = arith.mulf %295, %296 : vector<16x128xf32>
    %298 = vector.broadcast %277 : vector<1x128xf32> to vector<16x128xf32>
    %299 = arith.addf %297, %298 : vector<16x128xf32>
    %300 = vector.shape_cast %299 : vector<16x128xf32> to vector<2x8x128xf32>
    %301 = arith.truncf %300 : vector<2x8x128xf32> to vector<2x8x128xbf16>
    %c0_86 = arith.constant 0 : index
    %c0_87 = arith.constant 0 : index
    %c0_88 = arith.constant 0 : index
    %302 = vector.load %arg15[%c0_86, %c0_87, %c0_88] : memref<2x8x128xbf16, #tpu.memory_space<vmem>>, vector<2x8x128xbf16>
    tpu.vector_store %arg15[%c0_86, %c0_87, %c0_88], %301 {strides = array<i32>} : memref<2x8x128xbf16, #tpu.memory_space<vmem>>, vector<2x8x128xbf16>,
    return
  }
  func.func @transform_0(%arg0: i32) -> (i32, i32, i32) {
    %c0_i32 = arith.constant 0 : i32
    %c0_i32_0 = arith.constant 0 : i32
    %c0_i32_1 = arith.constant 0 : i32
    return %arg0, %c0_i32, %c0_i32_0 : i32, i32, i32
  }
  func.func @transform_1(%arg0: i32) -> (i32, i32, i32) {
    %c0_i32 = arith.constant 0 : i32
    %c0_i32_0 = arith.constant 0 : i32
    %c0_i32_1 = arith.constant 0 : i32
    return %arg0, %c0_i32, %c0_i32_0 : i32, i32, i32
  }
  func.func @transform_2(%arg0: i32) -> (i32, i32) {
    %c0_i32 = arith.constant 0 : i32
    %c0_i32_0 = arith.constant 0 : i32
    %c0_i32_1 = arith.constant 0 : i32
    return %c0_i32, %c0_i32_0 : i32, i32
  }
  func.func @transform_3(%arg0: i32) -> (i32, i32) {
    %c0_i32 = arith.constant 0 : i32
    %c0_i32_0 = arith.constant 0 : i32
    %c0_i32_1 = arith.constant 0 : i32
    return %c0_i32, %c0_i32_0 : i32, i32
  }
  func.func @transform_4(%arg0: i32) -> (i32, i32) {
    %c0_i32 = arith.constant 0 : i32
    %c0_i32_0 = arith.constant 0 : i32
    %c0_i32_1 = arith.constant 0 : i32
    return %c0_i32, %c0_i32_0 : i32, i32
  }
  func.func @transform_5(%arg0: i32) -> (i32, i32) {
    %c0_i32 = arith.constant 0 : i32
    %c0_i32_0 = arith.constant 0 : i32
    %c0_i32_1 = arith.constant 0 : i32
    return %c0_i32, %c0_i32_0 : i32, i32
  }
  func.func @transform_6(%arg0: i32) -> (i32, i32) {
    %c0_i32 = arith.constant 0 : i32
    %c0_i32_0 = arith.constant 0 : i32
    %c0_i32_1 = arith.constant 0 : i32
    return %c0_i32, %c0_i32_0 : i32, i32
  }
  func.func @transform_7(%arg0: i32) -> (i32, i32) {
    %c0_i32 = arith.constant 0 : i32
    %c0_i32_0 = arith.constant 0 : i32
    %c0_i32_1 = arith.constant 0 : i32
    return %c0_i32, %c0_i32_0 : i32, i32
  }
  func.func @transform_8(%arg0: i32) -> (i32, i32) {
    %c0_i32 = arith.constant 0 : i32
    %c0_i32_0 = arith.constant 0 : i32
    %c0_i32_1 = arith.constant 0 : i32
    return %c0_i32, %c0_i32_0 : i32, i32
  }
  func.func @transform_9(%arg0: i32) -> (i32, i32) {
    %c0_i32 = arith.constant 0 : i32
    %c0_i32_0 = arith.constant 0 : i32
    %c0_i32_1 = arith.constant 0 : i32
    return %c0_i32, %c0_i32_0 : i32, i32
  }
  func.func @transform_10(%arg0: i32) -> (i32, i32) {
    %c0_i32 = arith.constant 0 : i32
    %c0_i32_0 = arith.constant 0 : i32
    %c0_i32_1 = arith.constant 0 : i32
    return %c0_i32, %c0_i32_0 : i32, i32
  }
  func.func @transform_11(%arg0: i32) -> (i32, i32) {
    %c0_i32 = arith.constant 0 : i32
    %c0_i32_0 = arith.constant 0 : i32
    %c0_i32_1 = arith.constant 0 : i32
    return %c0_i32, %c0_i32_0 : i32, i32
  }
  func.func @transform_12(%arg0: i32) -> (i32, i32) {
    %c0_i32 = arith.constant 0 : i32
    %c0_i32_0 = arith.constant 0 : i32
    %c0_i32_1 = arith.constant 0 : i32
    return %c0_i32, %c0_i32_0 : i32, i32
  }
  func.func @transform_13(%arg0: i32) -> (i32, i32) {
    %c0_i32 = arith.constant 0 : i32
    %c0_i32_0 = arith.constant 0 : i32
    %c0_i32_1 = arith.constant 0 : i32
    return %c0_i32, %c0_i32_0 : i32, i32
  }
  func.func @transform_14(%arg0: i32) -> (i32, i32, i32) {
    %c0_i32 = arith.constant 0 : i32
    %c0_i32_0 = arith.constant 0 : i32
    %c0_i32_1 = arith.constant 0 : i32
    return %arg0, %c0_i32, %c0_i32_0 : i32, i32, i32
  }
}

module attributes {stable_mosaic.version = 11 : i64} {
  func.func @_bert_block_kernel(%arg0: i32, %arg1: memref<2x8x128xbf16, #tpu.memory_space<vmem>>, %arg2: memref<2x1x8xf32, #tpu.memory_space<vmem>>, %arg3: memref<128x384xbf16, #tpu.memory_space<vmem>>, %arg4: memref<1x384xf32, #tpu.memory_space<vmem>>, %arg5: memref<128x128xbf16, #tpu.memory_space<vmem>>, %arg6: memref<1x128xf32, #tpu.memory_space<vmem>>, %arg7: memref<1x128xf32, #tpu.memory_space<vmem>>, %arg8: memref<1x128xf32, #tpu.memory_space<vmem>>, %arg9: memref<128x512xbf16, #tpu.memory_space<vmem>>, %arg10: memref<1x512xf32, #tpu.memory_space<vmem>>, %arg11: memref<512x128xbf16, #tpu.memory_space<vmem>>, %arg12: memref<1x128xf32, #tpu.memory_space<vmem>>, %arg13: memref<1x128xf32, #tpu.memory_space<vmem>>, %arg14: memref<1x128xf32, #tpu.memory_space<vmem>>, %arg15: memref<2x8x128xbf16, #tpu.memory_space<vmem>>) attributes {dimension_semantics = [#tpu.dimension_semantics<parallel>], iteration_bounds = array<i64: 1>, scalar_prefetch = 0 : i64, scratch_operands = 0 : i64, tpu.core_type = #tpu.core_type<tc>, window_params = [{transform_indices = @transform_0, window_bounds = array<i64: 2, 8, 128>}, {transform_indices = @transform_1, window_bounds = array<i64: 2, 1, 8>}, {pipeline_mode = #tpu.pipeline_mode<synchronous>, transform_indices = @transform_2, window_bounds = array<i64: 128, 384>}, {pipeline_mode = #tpu.pipeline_mode<synchronous>, transform_indices = @transform_3, window_bounds = array<i64: 1, 384>}, {pipeline_mode = #tpu.pipeline_mode<synchronous>, transform_indices = @transform_4, window_bounds = array<i64: 128, 128>}, {pipeline_mode = #tpu.pipeline_mode<synchronous>, transform_indices = @transform_5, window_bounds = array<i64: 1, 128>}, {pipeline_mode = #tpu.pipeline_mode<synchronous>, transform_indices = @transform_6, window_bounds = array<i64: 1, 128>}, {pipeline_mode = #tpu.pipeline_mode<synchronous>, transform_indices = @transform_7, window_bounds = array<i64: 1, 128>}, {pipeline_mode = #tpu.pipeline_mode<synchronous>, transform_indices = @transform_8, window_bounds = array<i64: 128, 512>}, {pipeline_mode = #tpu.pipeline_mode<synchronous>, transform_indices = @transform_9, window_bounds = array<i64: 1, 512>}, {pipeline_mode = #tpu.pipeline_mode<synchronous>, transform_indices = @transform_10, window_bounds = array<i64: 512, 128>}, {pipeline_mode = #tpu.pipeline_mode<synchronous>, transform_indices = @transform_11, window_bounds = array<i64: 1, 128>}, {pipeline_mode = #tpu.pipeline_mode<synchronous>, transform_indices = @transform_12, window_bounds = array<i64: 1, 128>}, {pipeline_mode = #tpu.pipeline_mode<synchronous>, transform_indices = @transform_13, window_bounds = array<i64: 1, 128>}, {transform_indices = @transform_14, window_bounds = array<i64: 2, 8, 128>}]} {
    %c0 = arith.constant 0 : index
    %c0_0 = arith.constant 0 : index
    %c0_1 = arith.constant 0 : index
    %0 = vector.load %arg1[%c0, %c0_0, %c0_1] : memref<2x8x128xbf16, #tpu.memory_space<vmem>>, vector<2x8x128xbf16>
    %1 = arith.extf %0 : vector<2x8x128xbf16> to vector<2x8x128xf32>
    %2 = vector.shape_cast %1 : vector<2x8x128xf32> to vector<16x128xf32>
    %c0_2 = arith.constant 0 : index
    %c0_3 = arith.constant 0 : index
    %c0_4 = arith.constant 0 : index
    %3 = vector.load %arg2[%c0_2, %c0_3, %c0_4] : memref<2x1x8xf32, #tpu.memory_space<vmem>>, vector<2x1x8xf32>
    %c0_5 = arith.constant 0 : index
    %c0_6 = arith.constant 0 : index
    %4 = vector.load %arg3[%c0_5, %c0_6] : memref<128x384xbf16, #tpu.memory_space<vmem>>, vector<128x384xbf16>
    %5 = arith.truncf %2 : vector<16x128xf32> to vector<16x128xbf16>
    %cst = arith.constant dense<0.000000e+00> : vector<16x384xf32>
    %6 = tpu.matmul %5, %4, %cst {dimension_numbers = #tpu.dot_dimension_numbers<[1], [0], [0], [1], [0, 0, 1, 1], [], []>} : vector<16x128xbf16>, vector<128x384xbf16>, vector<16x384xf32> -> vector<16x384xf32>
    %c0_7 = arith.constant 0 : index
    %c0_8 = arith.constant 0 : index
    %7 = vector.load %arg4[%c0_7, %c0_8] : memref<1x384xf32, #tpu.memory_space<vmem>>, vector<1x384xf32>
    %8 = vector.broadcast %7 : vector<1x384xf32> to vector<16x384xf32>
    %9 = arith.addf %6, %8 : vector<16x384xf32>
    %10 = vector.extract_strided_slice %9 {offsets = [0, 0], sizes = [16, 128], strides = [1, 1]} : vector<16x384xf32> to vector<16x128xf32>
    %11 = vector.shape_cast %10 : vector<16x128xf32> to vector<2x8x128xf32>
    %12 = vector.extract_strided_slice %9 {offsets = [0, 128], sizes = [16, 128], strides = [1, 1]} : vector<16x384xf32> to vector<16x128xf32>
    %13 = vector.shape_cast %12 : vector<16x128xf32> to vector<2x8x128xf32>
    %14 = vector.extract_strided_slice %9 {offsets = [0, 256], sizes = [16, 128], strides = [1, 1]} : vector<16x384xf32> to vector<16x128xf32>
    %15 = vector.shape_cast %14 : vector<16x128xf32> to vector<2x8x128xf32>
    %16 = vector.extract_strided_slice %11 {offsets = [0, 0, 0], sizes = [1, 8, 128], strides = [1, 1, 1]} : vector<2x8x128xf32> to vector<1x8x128xf32>
    %17 = vector.shape_cast %16 : vector<1x8x128xf32> to vector<8x128xf32>
    %18 = vector.extract_strided_slice %13 {offsets = [0, 0, 0], sizes = [1, 8, 128], strides = [1, 1, 1]} : vector<2x8x128xf32> to vector<1x8x128xf32>
    %19 = vector.shape_cast %18 : vector<1x8x128xf32> to vector<8x128xf32>
    %20 = vector.extract_strided_slice %15 {offsets = [0, 0, 0], sizes = [1, 8, 128], strides = [1, 1, 1]} : vector<2x8x128xf32> to vector<1x8x128xf32>
    %21 = vector.shape_cast %20 : vector<1x8x128xf32> to vector<8x128xf32>
    %22 = vector.extract_strided_slice %3 {offsets = [0, 0, 0], sizes = [1, 1, 8], strides = [1, 1, 1]} : vector<2x1x8xf32> to vector<1x1x8xf32>
    %23 = vector.shape_cast %22 : vector<1x1x8xf32> to vector<1x8xf32>
    %24 = vector.extract_strided_slice %17 {offsets = [0, 0], sizes = [8, 32], strides = [1, 1]} : vector<8x128xf32> to vector<8x32xf32>
    %25 = arith.truncf %24 : vector<8x32xf32> to vector<8x32xbf16>
    %26 = vector.extract_strided_slice %19 {offsets = [0, 0], sizes = [8, 32], strides = [1, 1]} : vector<8x128xf32> to vector<8x32xf32>
    %27 = arith.truncf %26 : vector<8x32xf32> to vector<8x32xbf16>
    %28 = vector.extract_strided_slice %21 {offsets = [0, 0], sizes = [8, 32], strides = [1, 1]} : vector<8x128xf32> to vector<8x32xf32>
    %29 = arith.truncf %28 : vector<8x32xf32> to vector<8x32xbf16>
    %cst_9 = arith.constant dense<0.000000e+00> : vector<8x8xf32>
    %30 = tpu.matmul %25, %27, %cst_9 {dimension_numbers = #tpu.dot_dimension_numbers<[1], [1], [0], [0], [0, 0, 1, 0], [], []>} : vector<8x32xbf16>, vector<8x32xbf16>, vector<8x8xf32> -> vector<8x8xf32>
    %cst_10 = arith.constant 0.176776692 : f32
    %31 = vector.broadcast %cst_10 : f32 to vector<8x8xf32>
    %32 = arith.mulf %30, %31 : vector<8x8xf32>
    %33 = vector.broadcast %23 : vector<1x8xf32> to vector<8x8xf32>
    %34 = arith.addf %32, %33 : vector<8x8xf32>
    %cst_11 = arith.constant dense<0xFF800000> : vector<8xf32>
    %35 = vector.multi_reduction <maximumf>, %34, %cst_11 [1] : vector<8x8xf32> to vector<8xf32>
    %36 = vector.shape_cast %35 : vector<8xf32> to vector<8x1xf32>
    %37 = vector.broadcast %36 : vector<8x1xf32> to vector<8x8xf32>
    %38 = arith.subf %34, %37 : vector<8x8xf32>
    %39 = math.exp %38 : vector<8x8xf32>
    %cst_12 = arith.constant dense<0.000000e+00> : vector<8xf32>
    %40 = vector.multi_reduction <add>, %39, %cst_12 [1] : vector<8x8xf32> to vector<8xf32>
    %41 = vector.shape_cast %40 : vector<8xf32> to vector<8x1xf32>
    %42 = tpu.reciprocal %41 {approx = true} : vector<8x1xf32> -> vector<8x1xf32>
    %43 = vector.broadcast %42 : vector<8x1xf32> to vector<8x8xf32>
    %44 = arith.mulf %39, %43 : vector<8x8xf32>
    %45 = arith.truncf %44 : vector<8x8xf32> to vector<8x8xbf16>
    %cst_13 = arith.constant dense<0.000000e+00> : vector<8x32xf32>
    %46 = tpu.matmul %45, %29, %cst_13 {dimension_numbers = #tpu.dot_dimension_numbers<[1], [0], [0], [1], [0, 0, 1, 1], [], []>} : vector<8x8xbf16>, vector<8x32xbf16>, vector<8x32xf32> -> vector<8x32xf32>
    %47 = vector.extract_strided_slice %17 {offsets = [0, 32], sizes = [8, 32], strides = [1, 1]} : vector<8x128xf32> to vector<8x32xf32>
    %48 = arith.truncf %47 : vector<8x32xf32> to vector<8x32xbf16>
    %49 = vector.extract_strided_slice %19 {offsets = [0, 32], sizes = [8, 32], strides = [1, 1]} : vector<8x128xf32> to vector<8x32xf32>
    %50 = arith.truncf %49 : vector<8x32xf32> to vector<8x32xbf16>
    %51 = vector.extract_strided_slice %21 {offsets = [0, 32], sizes = [8, 32], strides = [1, 1]} : vector<8x128xf32> to vector<8x32xf32>
    %52 = arith.truncf %51 : vector<8x32xf32> to vector<8x32xbf16>
    %cst_14 = arith.constant dense<0.000000e+00> : vector<8x8xf32>
    %53 = tpu.matmul %48, %50, %cst_14 {dimension_numbers = #tpu.dot_dimension_numbers<[1], [1], [0], [0], [0, 0, 1, 0], [], []>} : vector<8x32xbf16>, vector<8x32xbf16>, vector<8x8xf32> -> vector<8x8xf32>
    %cst_15 = arith.constant 0.176776692 : f32
    %54 = vector.broadcast %cst_15 : f32 to vector<8x8xf32>
    %55 = arith.mulf %53, %54 : vector<8x8xf32>
    %56 = vector.broadcast %23 : vector<1x8xf32> to vector<8x8xf32>
    %57 = arith.addf %55, %56 : vector<8x8xf32>
    %cst_16 = arith.constant dense<0xFF800000> : vector<8xf32>
    %58 = vector.multi_reduction <maximumf>, %57, %cst_16 [1] : vector<8x8xf32> to vector<8xf32>
    %59 = vector.shape_cast %58 : vector<8xf32> to vector<8x1xf32>
    %60 = vector.broadcast %59 : vector<8x1xf32> to vector<8x8xf32>
    %61 = arith.subf %57, %60 : vector<8x8xf32>
    %62 = math.exp %61 : vector<8x8xf32>
    %cst_17 = arith.constant dense<0.000000e+00> : vector<8xf32>
    %63 = vector.multi_reduction <add>, %62, %cst_17 [1] : vector<8x8xf32> to vector<8xf32>
    %64 = vector.shape_cast %63 : vector<8xf32> to vector<8x1xf32>
    %65 = tpu.reciprocal %64 {approx = true} : vector<8x1xf32> -> vector<8x1xf32>
    %66 = vector.broadcast %65 : vector<8x1xf32> to vector<8x8xf32>
    %67 = arith.mulf %62, %66 : vector<8x8xf32>
    %68 = arith.truncf %67 : vector<8x8xf32> to vector<8x8xbf16>
    %cst_18 = arith.constant dense<0.000000e+00> : vector<8x32xf32>
    %69 = tpu.matmul %68, %52, %cst_18 {dimension_numbers = #tpu.dot_dimension_numbers<[1], [0], [0], [1], [0, 0, 1, 1], [], []>} : vector<8x8xbf16>, vector<8x32xbf16>, vector<8x32xf32> -> vector<8x32xf32>
    %70 = vector.extract_strided_slice %17 {offsets = [0, 64], sizes = [8, 32], strides = [1, 1]} : vector<8x128xf32> to vector<8x32xf32>
    %71 = arith.truncf %70 : vector<8x32xf32> to vector<8x32xbf16>
    %72 = vector.extract_strided_slice %19 {offsets = [0, 64], sizes = [8, 32], strides = [1, 1]} : vector<8x128xf32> to vector<8x32xf32>
    %73 = arith.truncf %72 : vector<8x32xf32> to vector<8x32xbf16>
    %74 = vector.extract_strided_slice %21 {offsets = [0, 64], sizes = [8, 32], strides = [1, 1]} : vector<8x128xf32> to vector<8x32xf32>
    %75 = arith.truncf %74 : vector<8x32xf32> to vector<8x32xbf16>
    %cst_19 = arith.constant dense<0.000000e+00> : vector<8x8xf32>
    %76 = tpu.matmul %71, %73, %cst_19 {dimension_numbers = #tpu.dot_dimension_numbers<[1], [1], [0], [0], [0, 0, 1, 0], [], []>} : vector<8x32xbf16>, vector<8x32xbf16>, vector<8x8xf32> -> vector<8x8xf32>
    %cst_20 = arith.constant 0.176776692 : f32
    %77 = vector.broadcast %cst_20 : f32 to vector<8x8xf32>
    %78 = arith.mulf %76, %77 : vector<8x8xf32>
    %79 = vector.broadcast %23 : vector<1x8xf32> to vector<8x8xf32>
    %80 = arith.addf %78, %79 : vector<8x8xf32>
    %cst_21 = arith.constant dense<0xFF800000> : vector<8xf32>
    %81 = vector.multi_reduction <maximumf>, %80, %cst_21 [1] : vector<8x8xf32> to vector<8xf32>
    %82 = vector.shape_cast %81 : vector<8xf32> to vector<8x1xf32>
    %83 = vector.broadcast %82 : vector<8x1xf32> to vector<8x8xf32>
    %84 = arith.subf %80, %83 : vector<8x8xf32>
    %85 = math.exp %84 : vector<8x8xf32>
    %cst_22 = arith.constant dense<0.000000e+00> : vector<8xf32>
    %86 = vector.multi_reduction <add>, %85, %cst_22 [1] : vector<8x8xf32> to vector<8xf32>
    %87 = vector.shape_cast %86 : vector<8xf32> to vector<8x1xf32>
    %88 = tpu.reciprocal %87 {approx = true} : vector<8x1xf32> -> vector<8x1xf32>
    %89 = vector.broadcast %88 : vector<8x1xf32> to vector<8x8xf32>
    %90 = arith.mulf %85, %89 : vector<8x8xf32>
    %91 = arith.truncf %90 : vector<8x8xf32> to vector<8x8xbf16>
    %cst_23 = arith.constant dense<0.000000e+00> : vector<8x32xf32>
    %92 = tpu.matmul %91, %75, %cst_23 {dimension_numbers = #tpu.dot_dimension_numbers<[1], [0], [0], [1], [0, 0, 1, 1], [], []>} : vector<8x8xbf16>, vector<8x32xbf16>, vector<8x32xf32> -> vector<8x32xf32>
    %93 = vector.extract_strided_slice %17 {offsets = [0, 96], sizes = [8, 32], strides = [1, 1]} : vector<8x128xf32> to vector<8x32xf32>
    %94 = arith.truncf %93 : vector<8x32xf32> to vector<8x32xbf16>
    %95 = vector.extract_strided_slice %19 {offsets = [0, 96], sizes = [8, 32], strides = [1, 1]} : vector<8x128xf32> to vector<8x32xf32>
    %96 = arith.truncf %95 : vector<8x32xf32> to vector<8x32xbf16>
    %97 = vector.extract_strided_slice %21 {offsets = [0, 96], sizes = [8, 32], strides = [1, 1]} : vector<8x128xf32> to vector<8x32xf32>
    %98 = arith.truncf %97 : vector<8x32xf32> to vector<8x32xbf16>
    %cst_24 = arith.constant dense<0.000000e+00> : vector<8x8xf32>
    %99 = tpu.matmul %94, %96, %cst_24 {dimension_numbers = #tpu.dot_dimension_numbers<[1], [1], [0], [0], [0, 0, 1, 0], [], []>} : vector<8x32xbf16>, vector<8x32xbf16>, vector<8x8xf32> -> vector<8x8xf32>
    %cst_25 = arith.constant 0.176776692 : f32
    %100 = vector.broadcast %cst_25 : f32 to vector<8x8xf32>
    %101 = arith.mulf %99, %100 : vector<8x8xf32>
    %102 = vector.broadcast %23 : vector<1x8xf32> to vector<8x8xf32>
    %103 = arith.addf %101, %102 : vector<8x8xf32>
    %cst_26 = arith.constant dense<0xFF800000> : vector<8xf32>
    %104 = vector.multi_reduction <maximumf>, %103, %cst_26 [1] : vector<8x8xf32> to vector<8xf32>
    %105 = vector.shape_cast %104 : vector<8xf32> to vector<8x1xf32>
    %106 = vector.broadcast %105 : vector<8x1xf32> to vector<8x8xf32>
    %107 = arith.subf %103, %106 : vector<8x8xf32>
    %108 = math.exp %107 : vector<8x8xf32>
    %cst_27 = arith.constant dense<0.000000e+00> : vector<8xf32>
    %109 = vector.multi_reduction <add>, %108, %cst_27 [1] : vector<8x8xf32> to vector<8xf32>
    %110 = vector.shape_cast %109 : vector<8xf32> to vector<8x1xf32>
    %111 = tpu.reciprocal %110 {approx = true} : vector<8x1xf32> -> vector<8x1xf32>
    %112 = vector.broadcast %111 : vector<8x1xf32> to vector<8x8xf32>
    %113 = arith.mulf %108, %112 : vector<8x8xf32>
    %114 = arith.truncf %113 : vector<8x8xf32> to vector<8x8xbf16>
    %cst_28 = arith.constant dense<0.000000e+00> : vector<8x32xf32>
    %115 = tpu.matmul %114, %98, %cst_28 {dimension_numbers = #tpu.dot_dimension_numbers<[1], [0], [0], [1], [0, 0, 1, 1], [], []>} : vector<8x8xbf16>, vector<8x32xbf16>, vector<8x32xf32> -> vector<8x32xf32>
    %116 = tpu.concatenate %46, %69, %92, %115 in 1 : vector<8x32xf32>, vector<8x32xf32>, vector<8x32xf32>, vector<8x32xf32> -> vector<8x128xf32>
    %117 = vector.extract_strided_slice %11 {offsets = [1, 0, 0], sizes = [1, 8, 128], strides = [1, 1, 1]} : vector<2x8x128xf32> to vector<1x8x128xf32>
    %118 = vector.shape_cast %117 : vector<1x8x128xf32> to vector<8x128xf32>
    %119 = vector.extract_strided_slice %13 {offsets = [1, 0, 0], sizes = [1, 8, 128], strides = [1, 1, 1]} : vector<2x8x128xf32> to vector<1x8x128xf32>
    %120 = vector.shape_cast %119 : vector<1x8x128xf32> to vector<8x128xf32>
    %121 = vector.extract_strided_slice %15 {offsets = [1, 0, 0], sizes = [1, 8, 128], strides = [1, 1, 1]} : vector<2x8x128xf32> to vector<1x8x128xf32>
    %122 = vector.shape_cast %121 : vector<1x8x128xf32> to vector<8x128xf32>
    %123 = vector.extract_strided_slice %3 {offsets = [1, 0, 0], sizes = [1, 1, 8], strides = [1, 1, 1]} : vector<2x1x8xf32> to vector<1x1x8xf32>
    %124 = vector.shape_cast %123 : vector<1x1x8xf32> to vector<1x8xf32>
    %125 = vector.extract_strided_slice %118 {offsets = [0, 0], sizes = [8, 32], strides = [1, 1]} : vector<8x128xf32> to vector<8x32xf32>
    %126 = arith.truncf %125 : vector<8x32xf32> to vector<8x32xbf16>
    %127 = vector.extract_strided_slice %120 {offsets = [0, 0], sizes = [8, 32], strides = [1, 1]} : vector<8x128xf32> to vector<8x32xf32>
    %128 = arith.truncf %127 : vector<8x32xf32> to vector<8x32xbf16>
    %129 = vector.extract_strided_slice %122 {offsets = [0, 0], sizes = [8, 32], strides = [1, 1]} : vector<8x128xf32> to vector<8x32xf32>
    %130 = arith.truncf %129 : vector<8x32xf32> to vector<8x32xbf16>
    %cst_29 = arith.constant dense<0.000000e+00> : vector<8x8xf32>
    %131 = tpu.matmul %126, %128, %cst_29 {dimension_numbers = #tpu.dot_dimension_numbers<[1], [1], [0], [0], [0, 0, 1, 0], [], []>} : vector<8x32xbf16>, vector<8x32xbf16>, vector<8x8xf32> -> vector<8x8xf32>
    %cst_30 = arith.constant 0.176776692 : f32
    %132 = vector.broadcast %cst_30 : f32 to vector<8x8xf32>
    %133 = arith.mulf %131, %132 : vector<8x8xf32>
    %134 = vector.broadcast %124 : vector<1x8xf32> to vector<8x8xf32>
    %135 = arith.addf %133, %134 : vector<8x8xf32>
    %cst_31 = arith.constant dense<0xFF800000> : vector<8xf32>
    %136 = vector.multi_reduction <maximumf>, %135, %cst_31 [1] : vector<8x8xf32> to vector<8xf32>
    %137 = vector.shape_cast %136 : vector<8xf32> to vector<8x1xf32>
    %138 = vector.broadcast %137 : vector<8x1xf32> to vector<8x8xf32>
    %139 = arith.subf %135, %138 : vector<8x8xf32>
    %140 = math.exp %139 : vector<8x8xf32>
    %cst_32 = arith.constant dense<0.000000e+00> : vector<8xf32>
    %141 = vector.multi_reduction <add>, %140, %cst_32 [1] : vector<8x8xf32> to vector<8xf32>
    %142 = vector.shape_cast %141 : vector<8xf32> to vector<8x1xf32>
    %143 = tpu.reciprocal %142 {approx = true} : vector<8x1xf32> -> vector<8x1xf32>
    %144 = vector.broadcast %143 : vector<8x1xf32> to vector<8x8xf32>
    %145 = arith.mulf %140, %144 : vector<8x8xf32>
    %146 = arith.truncf %145 : vector<8x8xf32> to vector<8x8xbf16>
    %cst_33 = arith.constant dense<0.000000e+00> : vector<8x32xf32>
    %147 = tpu.matmul %146, %130, %cst_33 {dimension_numbers = #tpu.dot_dimension_numbers<[1], [0], [0], [1], [0, 0, 1, 1], [], []>} : vector<8x8xbf16>, vector<8x32xbf16>, vector<8x32xf32> -> vector<8x32xf32>
    %148 = vector.extract_strided_slice %118 {offsets = [0, 32], sizes = [8, 32], strides = [1, 1]} : vector<8x128xf32> to vector<8x32xf32>
    %149 = arith.truncf %148 : vector<8x32xf32> to vector<8x32xbf16>
    %150 = vector.extract_strided_slice %120 {offsets = [0, 32], sizes = [8, 32], strides = [1, 1]} : vector<8x128xf32> to vector<8x32xf32>
    %151 = arith.truncf %150 : vector<8x32xf32> to vector<8x32xbf16>
    %152 = vector.extract_strided_slice %122 {offsets = [0, 32], sizes = [8, 32], strides = [1, 1]} : vector<8x128xf32> to vector<8x32xf32>
    %153 = arith.truncf %152 : vector<8x32xf32> to vector<8x32xbf16>
    %cst_34 = arith.constant dense<0.000000e+00> : vector<8x8xf32>
    %154 = tpu.matmul %149, %151, %cst_34 {dimension_numbers = #tpu.dot_dimension_numbers<[1], [1], [0], [0], [0, 0, 1, 0], [], []>} : vector<8x32xbf16>, vector<8x32xbf16>, vector<8x8xf32> -> vector<8x8xf32>
    %cst_35 = arith.constant 0.176776692 : f32
    %155 = vector.broadcast %cst_35 : f32 to vector<8x8xf32>
    %156 = arith.mulf %154, %155 : vector<8x8xf32>
    %157 = vector.broadcast %124 : vector<1x8xf32> to vector<8x8xf32>
    %158 = arith.addf %156, %157 : vector<8x8xf32>
    %cst_36 = arith.constant dense<0xFF800000> : vector<8xf32>
    %159 = vector.multi_reduction <maximumf>, %158, %cst_36 [1] : vector<8x8xf32> to vector<8xf32>
    %160 = vector.shape_cast %159 : vector<8xf32> to vector<8x1xf32>
    %161 = vector.broadcast %160 : vector<8x1xf32> to vector<8x8xf32>
    %162 = arith.subf %158, %161 : vector<8x8xf32>
    %163 = math.exp %162 : vector<8x8xf32>
    %cst_37 = arith.constant dense<0.000000e+00> : vector<8xf32>
    %164 = vector.multi_reduction <add>, %163, %cst_37 [1] : vector<8x8xf32> to vector<8xf32>
    %165 = vector.shape_cast %164 : vector<8xf32> to vector<8x1xf32>
    %166 = tpu.reciprocal %165 {approx = true} : vector<8x1xf32> -> vector<8x1xf32>
    %167 = vector.broadcast %166 : vector<8x1xf32> to vector<8x8xf32>
    %168 = arith.mulf %163, %167 : vector<8x8xf32>
    %169 = arith.truncf %168 : vector<8x8xf32> to vector<8x8xbf16>
    %cst_38 = arith.constant dense<0.000000e+00> : vector<8x32xf32>
    %170 = tpu.matmul %169, %153, %cst_38 {dimension_numbers = #tpu.dot_dimension_numbers<[1], [0], [0], [1], [0, 0, 1, 1], [], []>} : vector<8x8xbf16>, vector<8x32xbf16>, vector<8x32xf32> -> vector<8x32xf32>
    %171 = vector.extract_strided_slice %118 {offsets = [0, 64], sizes = [8, 32], strides = [1, 1]} : vector<8x128xf32> to vector<8x32xf32>
    %172 = arith.truncf %171 : vector<8x32xf32> to vector<8x32xbf16>
    %173 = vector.extract_strided_slice %120 {offsets = [0, 64], sizes = [8, 32], strides = [1, 1]} : vector<8x128xf32> to vector<8x32xf32>
    %174 = arith.truncf %173 : vector<8x32xf32> to vector<8x32xbf16>
    %175 = vector.extract_strided_slice %122 {offsets = [0, 64], sizes = [8, 32], strides = [1, 1]} : vector<8x128xf32> to vector<8x32xf32>
    %176 = arith.truncf %175 : vector<8x32xf32> to vector<8x32xbf16>
    %cst_39 = arith.constant dense<0.000000e+00> : vector<8x8xf32>
    %177 = tpu.matmul %172, %174, %cst_39 {dimension_numbers = #tpu.dot_dimension_numbers<[1], [1], [0], [0], [0, 0, 1, 0], [], []>} : vector<8x32xbf16>, vector<8x32xbf16>, vector<8x8xf32> -> vector<8x8xf32>
    %cst_40 = arith.constant 0.176776692 : f32
    %178 = vector.broadcast %cst_40 : f32 to vector<8x8xf32>
    %179 = arith.mulf %177, %178 : vector<8x8xf32>
    %180 = vector.broadcast %124 : vector<1x8xf32> to vector<8x8xf32>
    %181 = arith.addf %179, %180 : vector<8x8xf32>
    %cst_41 = arith.constant dense<0xFF800000> : vector<8xf32>
    %182 = vector.multi_reduction <maximumf>, %181, %cst_41 [1] : vector<8x8xf32> to vector<8xf32>
    %183 = vector.shape_cast %182 : vector<8xf32> to vector<8x1xf32>
    %184 = vector.broadcast %183 : vector<8x1xf32> to vector<8x8xf32>
    %185 = arith.subf %181, %184 : vector<8x8xf32>
    %186 = math.exp %185 : vector<8x8xf32>
    %cst_42 = arith.constant dense<0.000000e+00> : vector<8xf32>
    %187 = vector.multi_reduction <add>, %186, %cst_42 [1] : vector<8x8xf32> to vector<8xf32>
    %188 = vector.shape_cast %187 : vector<8xf32> to vector<8x1xf32>
    %189 = tpu.reciprocal %188 {approx = true} : vector<8x1xf32> -> vector<8x1xf32>
    %190 = vector.broadcast %189 : vector<8x1xf32> to vector<8x8xf32>
    %191 = arith.mulf %186, %190 : vector<8x8xf32>
    %192 = arith.truncf %191 : vector<8x8xf32> to vector<8x8xbf16>
    %cst_43 = arith.constant dense<0.000000e+00> : vector<8x32xf32>
    %193 = tpu.matmul %192, %176, %cst_43 {dimension_numbers = #tpu.dot_dimension_numbers<[1], [0], [0], [1], [0, 0, 1, 1], [], []>} : vector<8x8xbf16>, vector<8x32xbf16>, vector<8x32xf32> -> vector<8x32xf32>
    %194 = vector.extract_strided_slice %118 {offsets = [0, 96], sizes = [8, 32], strides = [1, 1]} : vector<8x128xf32> to vector<8x32xf32>
    %195 = arith.truncf %194 : vector<8x32xf32> to vector<8x32xbf16>
    %196 = vector.extract_strided_slice %120 {offsets = [0, 96], sizes = [8, 32], strides = [1, 1]} : vector<8x128xf32> to vector<8x32xf32>
    %197 = arith.truncf %196 : vector<8x32xf32> to vector<8x32xbf16>
    %198 = vector.extract_strided_slice %122 {offsets = [0, 96], sizes = [8, 32], strides = [1, 1]} : vector<8x128xf32> to vector<8x32xf32>
    %199 = arith.truncf %198 : vector<8x32xf32> to vector<8x32xbf16>
    %cst_44 = arith.constant dense<0.000000e+00> : vector<8x8xf32>
    %200 = tpu.matmul %195, %197, %cst_44 {dimension_numbers = #tpu.dot_dimension_numbers<[1], [1], [0], [0], [0, 0, 1, 0], [], []>} : vector<8x32xbf16>, vector<8x32xbf16>, vector<8x8xf32> -> vector<8x8xf32>
    %cst_45 = arith.constant 0.176776692 : f32
    %201 = vector.broadcast %cst_45 : f32 to vector<8x8xf32>
    %202 = arith.mulf %200, %201 : vector<8x8xf32>
    %203 = vector.broadcast %124 : vector<1x8xf32> to vector<8x8xf32>
    %204 = arith.addf %202, %203 : vector<8x8xf32>
    %cst_46 = arith.constant dense<0xFF800000> : vector<8xf32>
    %205 = vector.multi_reduction <maximumf>, %204, %cst_46 [1] : vector<8x8xf32> to vector<8xf32>
    %206 = vector.shape_cast %205 : vector<8xf32> to vector<8x1xf32>
    %207 = vector.broadcast %206 : vector<8x1xf32> to vector<8x8xf32>
    %208 = arith.subf %204, %207 : vector<8x8xf32>
    %209 = math.exp %208 : vector<8x8xf32>
    %cst_47 = arith.constant dense<0.000000e+00> : vector<8xf32>
    %210 = vector.multi_reduction <add>, %209, %cst_47 [1] : vector<8x8xf32> to vector<8xf32>
    %211 = vector.shape_cast %210 : vector<8xf32> to vector<8x1xf32>
    %212 = tpu.reciprocal %211 {approx = true} : vector<8x1xf32> -> vector<8x1xf32>
    %213 = vector.broadcast %212 : vector<8x1xf32> to vector<8x8xf32>
    %214 = arith.mulf %209, %213 : vector<8x8xf32>
    %215 = arith.truncf %214 : vector<8x8xf32> to vector<8x8xbf16>
    %cst_48 = arith.constant dense<0.000000e+00> : vector<8x32xf32>
    %216 = tpu.matmul %215, %199, %cst_48 {dimension_numbers = #tpu.dot_dimension_numbers<[1], [0], [0], [1], [0, 0, 1, 1], [], []>} : vector<8x8xbf16>, vector<8x32xbf16>, vector<8x32xf32> -> vector<8x32xf32>
    %217 = tpu.concatenate %147, %170, %193, %216 in 1 : vector<8x32xf32>, vector<8x32xf32>, vector<8x32xf32>, vector<8x32xf32> -> vector<8x128xf32>
    %218 = tpu.concatenate %116, %217 in 0 : vector<8x128xf32>, vector<8x128xf32> -> vector<16x128xf32>
    %c0_49 = arith.constant 0 : index
    %c0_50 = arith.constant 0 : index
    %219 = vector.load %arg5[%c0_49, %c0_50] : memref<128x128xbf16, #tpu.memory_space<vmem>>, vector<128x128xbf16>
    %220 = arith.truncf %218 : vector<16x128xf32> to vector<16x128xbf16>
    %cst_51 = arith.constant dense<0.000000e+00> : vector<16x128xf32>
    %221 = tpu.matmul %220, %219, %cst_51 {dimension_numbers = #tpu.dot_dimension_numbers<[1], [0], [0], [1], [0, 0, 1, 1], [], []>} : vector<16x128xbf16>, vector<128x128xbf16>, vector<16x128xf32> -> vector<16x128xf32>
    %222 = arith.addf %2, %221 : vector<16x128xf32>
    %c0_52 = arith.constant 0 : index
    %c0_53 = arith.constant 0 : index
    %223 = vector.load %arg6[%c0_52, %c0_53] : memref<1x128xf32, #tpu.memory_space<vmem>>, vector<1x128xf32>
    %224 = vector.broadcast %223 : vector<1x128xf32> to vector<16x128xf32>
    %225 = arith.addf %222, %224 : vector<16x128xf32>
    %c0_54 = arith.constant 0 : index
    %c0_55 = arith.constant 0 : index
    %226 = vector.load %arg7[%c0_54, %c0_55] : memref<1x128xf32, #tpu.memory_space<vmem>>, vector<1x128xf32>
    %c0_56 = arith.constant 0 : index
    %c0_57 = arith.constant 0 : index
    %227 = vector.load %arg8[%c0_56, %c0_57] : memref<1x128xf32, #tpu.memory_space<vmem>>, vector<1x128xf32>
    %cst_58 = arith.constant dense<0.000000e+00> : vector<16xf32>
    %228 = vector.multi_reduction <add>, %225, %cst_58 [1] : vector<16x128xf32> to vector<16xf32>
    %229 = vector.shape_cast %228 : vector<16xf32> to vector<16x1xf32>
    %cst_59 = arith.constant 1.280000e+02 : f32
    %230 = vector.broadcast %cst_59 : f32 to vector<16x1xf32>
    %231 = arith.divf %229, %230 : vector<16x1xf32>
    %232 = vector.broadcast %231 : vector<16x1xf32> to vector<16x128xf32>
    %233 = arith.subf %225, %232 : vector<16x128xf32>
    %234 = arith.mulf %233, %233 : vector<16x128xf32>
    %cst_60 = arith.constant dense<0.000000e+00> : vector<16xf32>
    %235 = vector.multi_reduction <add>, %234, %cst_60 [1] : vector<16x128xf32> to vector<16xf32>
    %236 = vector.shape_cast %235 : vector<16xf32> to vector<16x1xf32>
    %cst_61 = arith.constant 1.280000e+02 : f32
    %237 = vector.broadcast %cst_61 : f32 to vector<16x1xf32>
    %238 = arith.divf %236, %237 : vector<16x1xf32>
    %239 = vector.broadcast %231 : vector<16x1xf32> to vector<16x128xf32>
    %240 = arith.subf %225, %239 : vector<16x128xf32>
    %cst_62 = arith.constant 9.99999996E-13 : f32
    %241 = vector.broadcast %cst_62 : f32 to vector<16x1xf32>
    %242 = arith.addf %238, %241 : vector<16x1xf32>
    %243 = math.rsqrt %242 : vector<16x1xf32>
    %244 = vector.broadcast %243 : vector<16x1xf32> to vector<16x128xf32>
    %245 = arith.mulf %240, %244 : vector<16x128xf32>
    %246 = vector.broadcast %226 : vector<1x128xf32> to vector<16x128xf32>
    %247 = arith.mulf %245, %246 : vector<16x128xf32>
    %248 = vector.broadcast %227 : vector<1x128xf32> to vector<16x128xf32>
    %249 = arith.addf %247, %248 : vector<16x128xf32>
    %c0_63 = arith.constant 0 : index
    %c0_64 = arith.constant 0 : index
    %250 = vector.load %arg9[%c0_63, %c0_64] : memref<128x512xbf16, #tpu.memory_space<vmem>>, vector<128x512xbf16>
    %251 = arith.truncf %249 : vector<16x128xf32> to vector<16x128xbf16>
    %cst_65 = arith.constant dense<0.000000e+00> : vector<16x512xf32>
    %252 = tpu.matmul %251, %250, %cst_65 {dimension_numbers = #tpu.dot_dimension_numbers<[1], [0], [0], [1], [0, 0, 1, 1], [], []>} : vector<16x128xbf16>, vector<128x512xbf16>, vector<16x512xf32> -> vector<16x512xf32>
    %c0_66 = arith.constant 0 : index
    %c0_67 = arith.constant 0 : index
    %253 = vector.load %arg10[%c0_66, %c0_67] : memref<1x512xf32, #tpu.memory_space<vmem>>, vector<1x512xf32>
    %254 = vector.broadcast %253 : vector<1x512xf32> to vector<16x512xf32>
    %255 = arith.addf %252, %254 : vector<16x512xf32>
    %256 = arith.mulf %255, %255 : vector<16x512xf32>
    %257 = arith.mulf %255, %256 : vector<16x512xf32>
    %cst_68 = arith.constant 4.471500e-02 : f32
    %258 = vector.broadcast %cst_68 : f32 to vector<16x512xf32>
    %259 = arith.mulf %258, %257 : vector<16x512xf32>
    %260 = arith.addf %255, %259 : vector<16x512xf32>
    %cst_69 = arith.constant 0.797884583 : f32
    %261 = vector.broadcast %cst_69 : f32 to vector<16x512xf32>
    %262 = arith.mulf %261, %260 : vector<16x512xf32>
    %263 = math.tanh %262 : vector<16x512xf32>
    %cst_70 = arith.constant 1.000000e+00 : f32
    %264 = vector.broadcast %cst_70 : f32 to vector<16x512xf32>
    %265 = arith.addf %264, %263 : vector<16x512xf32>
    %cst_71 = arith.constant 5.000000e-01 : f32
    %266 = vector.broadcast %cst_71 : f32 to vector<16x512xf32>
    %267 = arith.mulf %266, %265 : vector<16x512xf32>
    %268 = arith.mulf %255, %267 : vector<16x512xf32>
    %c0_72 = arith.constant 0 : index
    %c0_73 = arith.constant 0 : index
    %269 = vector.load %arg11[%c0_72, %c0_73] : memref<512x128xbf16, #tpu.memory_space<vmem>>, vector<512x128xbf16>
    %270 = arith.truncf %268 : vector<16x512xf32> to vector<16x512xbf16>
    %cst_74 = arith.constant dense<0.000000e+00> : vector<16x128xf32>
    %271 = tpu.matmul %270, %269, %cst_74 {dimension_numbers = #tpu.dot_dimension_numbers<[1], [0], [0], [1], [0, 0, 1, 1], [], []>} : vector<16x512xbf16>, vector<512x128xbf16>, vector<16x128xf32> -> vector<16x128xf32>
    %272 = arith.addf %249, %271 : vector<16x128xf32>
    %c0_75 = arith.constant 0 : index
    %c0_76 = arith.constant 0 : index
    %273 = vector.load %arg12[%c0_75, %c0_76] : memref<1x128xf32, #tpu.memory_space<vmem>>, vector<1x128xf32>
    %274 = vector.broadcast %273 : vector<1x128xf32> to vector<16x128xf32>
    %275 = arith.addf %272, %274 : vector<16x128xf32>
    %c0_77 = arith.constant 0 : index
    %c0_78 = arith.constant 0 : index
    %276 = vector.load %arg13[%c0_77, %c0_78] : memref<1x128xf32, #tpu.memory_space<vmem>>, vector<1x128xf32>
    %c0_79 = arith.constant 0 : index
    %c0_80 = arith.constant 0 : index
    %277 = vector.load %arg14[%c0_79, %c0_80] : memref<1x128xf32, #tpu.memory_space<vmem>>, vector<1x128xf32>
    %cst_81 = arith.constant dense<0.000000e+00> : vector<16xf32>
    %278 = vector.multi_reduction <add>, %275, %cst_81 [1] : vector<16x128xf32> to vector<16xf32>
    %279 = vector.shape_cast %278 : vector<16xf32> to vector<16x1xf32>
    %cst_82 = arith.constant 1.280000e+02 : f32
    %280 = vector.broadcast %cst_82 : f32 to vector<16x1xf32>
    %281 = arith.divf %279, %280 : vector<16x1xf32>
    %282 = vector.broadcast %281 : vector<16x1xf32> to vector<16x128xf32>
    %283 = arith.subf %275, %282 : vector<16x128xf32>
    %284 = arith.mulf %283, %283 : vector<16x128xf32>
    %cst_83 = arith.constant dense<0.000000e+00> : vector<16xf32>
    %285 = vector.multi_reduction <add>, %284, %cst_83 [1] : vector<16x128xf32> to vector<16xf32>
    %286 = vector.shape_cast %285 : vector<16xf32> to vector<16x1xf32>
    %cst_84 = arith.constant 1.280000e+02 : f32
    %287 = vector.broadcast %cst_84 : f32 to vector<16x1xf32>
    %288 = arith.divf %286, %287 : vector<16x1xf32>
    %289 = vector.broadcast %281 : vector<16x1xf32> to vector<16x128xf32>
    %290 = arith.subf %275, %289 : vector<16x128xf32>
    %cst_85 = arith.constant 9.99999996E-13 : f32
    %291 = vector.broadcast %cst_85 : f32 to vector<16x1xf32>
    %292 = arith.addf %288, %291 : vector<16x1xf32>
    %293 = math.rsqrt %292 : vector<16x1xf32>
    %294 = vector.broadcast %293 : vector<16x1xf32> to vector<16x128xf32>
    %295 = arith.mulf %290, %294 : vector<16x128xf32>
    %296 = vector.broadcast %276 : vector<1x128xf32> to vector<16x128xf32>
    %297 = arith.mulf %295, %296 : vector<16x128xf32>
    %298 = vector.broadcast %277 : vector<1x128xf32> to vector<16x128xf32>
    %299 = arith.addf %297, %298 : vector<16x128xf32>
    %300 = vector.shape_cast %299 : vector<16x128xf32> to vector<2x8x128xf32>
    %301 = arith.truncf %300 : vector<2x8x128xf32> to vector<2x8x128xbf16>
    %c0_86 = arith.constant 0 : index
    %c0_87 = arith.constant 0 : index
    %c0_88 = arith.constant 0 : index
    %302 = vector.load %arg15[%c0_86, %c0_87, %c0_88] : memref<2x8x128xbf16, #tpu.memory_space<vmem>>, vector<2x8x128xbf16>
    tpu.vector_store %arg15[%c0_86, %c0_87, %c0_88], %301 {strides = array<i32>} : memref<2x8x128xbf16, #tpu.memory_space<vmem>>, vector<2x8x128xbf16>,
    return
  }
  func.func @transform_0(%arg0: i32) -> (i32, i32, i32) {
    %c0_i32 = arith.constant 0 : i32
    %c0_i32_0 = arith.constant 0 : i32
    %c0_i32_1 = arith.constant 0 : i32
    return %arg0, %c0_i32, %c0_i32_0 : i32, i32, i32
  }
  func.func @transform_1(%arg0: i32) -> (i32, i32, i32) {
    %c0_i32 = arith.constant 0 : i32
    %c0_i32_0 = arith.constant 0 : i32
    %c0_i32_1 = arith.constant 0 : i32
    return %arg0, %c0_i32, %c0_i32_0 : i32, i32, i32
  }
  func.func @transform_2(%arg0: i32) -> (i32, i32) {
    %c0_i32 = arith.constant 0 : i32
    %c0_i32_0 = arith.constant 0 : i32
    %c0_i32_1 = arith.constant 0 : i32
    return %c0_i32, %c0_i32_0 : i32, i32
  }
  func.func @transform_3(%arg0: i32) -> (i32, i32) {
    %c0_i32 = arith.constant 0 : i32
    %c0_i32_0 = arith.constant 0 : i32
    %c0_i32_1 = arith.constant 0 : i32
    return %c0_i32, %c0_i32_0 : i32, i32
  }
  func.func @transform_4(%arg0: i32) -> (i32, i32) {
    %c0_i32 = arith.constant 0 : i32
    %c0_i32_0 = arith.constant 0 : i32
    %c0_i32_1 = arith.constant 0 : i32
    return %c0_i32, %c0_i32_0 : i32, i32
  }
  func.func @transform_5(%arg0: i32) -> (i32, i32) {
    %c0_i32 = arith.constant 0 : i32
    %c0_i32_0 = arith.constant 0 : i32
    %c0_i32_1 = arith.constant 0 : i32
    return %c0_i32, %c0_i32_0 : i32, i32
  }
  func.func @transform_6(%arg0: i32) -> (i32, i32) {
    %c0_i32 = arith.constant 0 : i32
    %c0_i32_0 = arith.constant 0 : i32
    %c0_i32_1 = arith.constant 0 : i32
    return %c0_i32, %c0_i32_0 : i32, i32
  }
  func.func @transform_7(%arg0: i32) -> (i32, i32) {
    %c0_i32 = arith.constant 0 : i32
    %c0_i32_0 = arith.constant 0 : i32
    %c0_i32_1 = arith.constant 0 : i32
    return %c0_i32, %c0_i32_0 : i32, i32
  }
  func.func @transform_8(%arg0: i32) -> (i32, i32) {
    %c0_i32 = arith.constant 0 : i32
    %c0_i32_0 = arith.constant 0 : i32
    %c0_i32_1 = arith.constant 0 : i32
    return %c0_i32, %c0_i32_0 : i32, i32
  }
  func.func @transform_9(%arg0: i32) -> (i32, i32) {
    %c0_i32 = arith.constant 0 : i32
    %c0_i32_0 = arith.constant 0 : i32
    %c0_i32_1 = arith.constant 0 : i32
    return %c0_i32, %c0_i32_0 : i32, i32
  }
  func.func @transform_10(%arg0: i32) -> (i32, i32) {
    %c0_i32 = arith.constant 0 : i32
    %c0_i32_0 = arith.constant 0 : i32
    %c0_i32_1 = arith.constant 0 : i32
    return %c0_i32, %c0_i32_0 : i32, i32
  }
  func.func @transform_11(%arg0: i32) -> (i32, i32) {
    %c0_i32 = arith.constant 0 : i32
    %c0_i32_0 = arith.constant 0 : i32
    %c0_i32_1 = arith.constant 0 : i32
    return %c0_i32, %c0_i32_0 : i32, i32
  }
  func.func @transform_12(%arg0: i32) -> (i32, i32) {
    %c0_i32 = arith.constant 0 : i32
    %c0_i32_0 = arith.constant 0 : i32
    %c0_i32_1 = arith.constant 0 : i32
    return %c0_i32, %c0_i32_0 : i32, i32
  }
  func.func @transform_13(%arg0: i32) -> (i32, i32) {
    %c0_i32 = arith.constant 0 : i32
    %c0_i32_0 = arith.constant 0 : i32
    %c0_i32_1 = arith.constant 0 : i32
    return %c0_i32, %c0_i32_0 : i32, i32
  }
  func.func @transform_14(%arg0: i32) -> (i32, i32, i32) {
    %c0_i32 = arith.constant 0 : i32
    %c0_i32_0 = arith.constant 0 : i32
    %c0_i32_1 = arith.constant 0 : i32
    return %arg0, %c0_i32, %c0_i32_0 : i32, i32, i32
  }
}

module attributes {stable_mosaic.version = 11 : i64} {
  func.func @_head_kernel(%arg0: i32, %arg1: memref<2x2x128xbf16, #tpu.memory_space<vmem>>, %arg2: memref<2x128xbf16, #tpu.memory_space<vmem>>, %arg3: memref<1x128xf32, #tpu.memory_space<vmem>>, %arg4: memref<1x128xf32, #tpu.memory_space<vmem>>, %arg5: memref<128x128xbf16, #tpu.memory_space<vmem>>, %arg6: memref<1x128xf32, #tpu.memory_space<vmem>>, %arg7: memref<128x128xbf16, #tpu.memory_space<vmem>>, %arg8: memref<1x128xf32, #tpu.memory_space<vmem>>, %arg9: memref<1x128xf32, #tpu.memory_space<vmem>>, %arg10: memref<1x128xf32, #tpu.memory_space<vmem>>, %arg11: memref<1x1xf32, #tpu.memory_space<vmem>>, %arg12: memref<2x1xf32, #tpu.memory_space<vmem>>, %arg13: memref<2x1xf32, #tpu.memory_space<vmem>>, %arg14: memref<1x1xf32, #tpu.memory_space<vmem>>) attributes {dimension_semantics = [#tpu.dimension_semantics<arbitrary>], iteration_bounds = array<i64: 1>, scalar_prefetch = 0 : i64, scratch_operands = 0 : i64, tpu.core_type = #tpu.core_type<tc>, window_params = [{pipeline_mode = #tpu.pipeline_mode<synchronous>, transform_indices = @transform_0, window_bounds = array<i64: 2, 2, 128>}, {pipeline_mode = #tpu.pipeline_mode<synchronous>, transform_indices = @transform_1, window_bounds = array<i64: 2, 128>}, {pipeline_mode = #tpu.pipeline_mode<synchronous>, transform_indices = @transform_2, window_bounds = array<i64: 1, 128>}, {pipeline_mode = #tpu.pipeline_mode<synchronous>, transform_indices = @transform_3, window_bounds = array<i64: 1, 128>}, {pipeline_mode = #tpu.pipeline_mode<synchronous>, transform_indices = @transform_4, window_bounds = array<i64: 128, 128>}, {pipeline_mode = #tpu.pipeline_mode<synchronous>, transform_indices = @transform_5, window_bounds = array<i64: 1, 128>}, {pipeline_mode = #tpu.pipeline_mode<synchronous>, transform_indices = @transform_6, window_bounds = array<i64: 128, 128>}, {pipeline_mode = #tpu.pipeline_mode<synchronous>, transform_indices = @transform_7, window_bounds = array<i64: 1, 128>}, {pipeline_mode = #tpu.pipeline_mode<synchronous>, transform_indices = @transform_8, window_bounds = array<i64: 1, 128>}, {pipeline_mode = #tpu.pipeline_mode<synchronous>, transform_indices = @transform_9, window_bounds = array<i64: 1, 128>}, {pipeline_mode = #tpu.pipeline_mode<synchronous>, transform_indices = @transform_10, window_bounds = array<i64: 1, 1>}, {pipeline_mode = #tpu.pipeline_mode<synchronous>, transform_indices = @transform_11, window_bounds = array<i64: 2, 1>}, {pipeline_mode = #tpu.pipeline_mode<synchronous>, transform_indices = @transform_12, window_bounds = array<i64: 2, 1>}, {pipeline_mode = #tpu.pipeline_mode<synchronous>, transform_indices = @transform_13, window_bounds = array<i64: 1, 1>}]} {
    %c0 = arith.constant 0 : index
    %c0_0 = arith.constant 0 : index
    %c0_1 = arith.constant 0 : index
    %0 = vector.load %arg1[%c0, %c0_0, %c0_1] : memref<2x2x128xbf16, #tpu.memory_space<vmem>>, vector<2x2x128xbf16>
    %1 = arith.extf %0 : vector<2x2x128xbf16> to vector<2x2x128xf32>
    %cst = arith.constant dense<0.000000e+00> : vector<2x2xf32>
    %2 = vector.multi_reduction <add>, %1, %cst [2] : vector<2x2x128xf32> to vector<2x2xf32>
    %3 = vector.shape_cast %2 : vector<2x2xf32> to vector<2x2x1xf32>
    %cst_2 = arith.constant 1.280000e+02 : f32
    %4 = vector.broadcast %cst_2 : f32 to vector<2x2x1xf32>
    %5 = arith.divf %3, %4 : vector<2x2x1xf32>
    %6 = vector.broadcast %5 : vector<2x2x1xf32> to vector<2x2x128xf32>
    %7 = arith.subf %1, %6 : vector<2x2x128xf32>
    %8 = arith.mulf %7, %7 : vector<2x2x128xf32>
    %cst_3 = arith.constant dense<0.000000e+00> : vector<2x2xf32>
    %9 = vector.multi_reduction <add>, %8, %cst_3 [2] : vector<2x2x128xf32> to vector<2x2xf32>
    %10 = vector.shape_cast %9 : vector<2x2xf32> to vector<2x2x1xf32>
    %cst_4 = arith.constant 1.280000e+02 : f32
    %11 = vector.broadcast %cst_4 : f32 to vector<2x2x1xf32>
    %12 = arith.divf %10, %11 : vector<2x2x1xf32>
    %13 = vector.broadcast %5 : vector<2x2x1xf32> to vector<2x2x128xf32>
    %14 = arith.subf %1, %13 : vector<2x2x128xf32>
    %cst_5 = arith.constant 9.99999997E-7 : f32
    %15 = vector.broadcast %cst_5 : f32 to vector<2x2x1xf32>
    %16 = arith.addf %12, %15 : vector<2x2x1xf32>
    %17 = math.rsqrt %16 : vector<2x2x1xf32>
    %18 = vector.broadcast %17 : vector<2x2x1xf32> to vector<2x2x128xf32>
    %19 = arith.mulf %14, %18 : vector<2x2x128xf32>
    %c0_6 = arith.constant 0 : index
    %c0_7 = arith.constant 0 : index
    %20 = vector.load %arg3[%c0_6, %c0_7] : memref<1x128xf32, #tpu.memory_space<vmem>>, vector<1x128xf32>
    %21 = vector.shape_cast %20 : vector<1x128xf32> to vector<1x1x128xf32>
    %22 = vector.broadcast %21 : vector<1x1x128xf32> to vector<2x2x128xf32>
    %23 = arith.mulf %19, %22 : vector<2x2x128xf32>
    %c0_8 = arith.constant 0 : index
    %c0_9 = arith.constant 0 : index
    %24 = vector.load %arg4[%c0_8, %c0_9] : memref<1x128xf32, #tpu.memory_space<vmem>>, vector<1x128xf32>
    %25 = vector.shape_cast %24 : vector<1x128xf32> to vector<1x1x128xf32>
    %26 = vector.broadcast %25 : vector<1x1x128xf32> to vector<2x2x128xf32>
    %27 = arith.addf %23, %26 : vector<2x2x128xf32>
    %cst_10 = arith.constant dense<0.000000e+00> : vector<2x128xf32>
    %28 = vector.multi_reduction <add>, %27, %cst_10 [1] : vector<2x2x128xf32> to vector<2x128xf32>
    %cst_11 = arith.constant 2.000000e+00 : f32
    %29 = vector.broadcast %cst_11 : f32 to vector<2x128xf32>
    %30 = arith.divf %28, %29 : vector<2x128xf32>
    %c0_12 = arith.constant 0 : index
    %c0_13 = arith.constant 0 : index
    %31 = vector.load %arg2[%c0_12, %c0_13] : memref<2x128xbf16, #tpu.memory_space<vmem>>, vector<2x128xbf16>
    %32 = arith.extf %31 : vector<2x128xbf16> to vector<2x128xf32>
    %c0_14 = arith.constant 0 : index
    %c0_15 = arith.constant 0 : index
    %33 = vector.load %arg5[%c0_14, %c0_15] : memref<128x128xbf16, #tpu.memory_space<vmem>>, vector<128x128xbf16>
    %34 = arith.truncf %30 : vector<2x128xf32> to vector<2x128xbf16>
    %cst_16 = arith.constant dense<0.000000e+00> : vector<2x128xf32>
    %35 = tpu.matmul %34, %33, %cst_16 {dimension_numbers = #tpu.dot_dimension_numbers<[1], [0], [0], [1], [0, 0, 1, 1], [], []>} : vector<2x128xbf16>, vector<128x128xbf16>, vector<2x128xf32> -> vector<2x128xf32>
    %c0_17 = arith.constant 0 : index
    %c0_18 = arith.constant 0 : index
    %36 = vector.load %arg6[%c0_17, %c0_18] : memref<1x128xf32, #tpu.memory_space<vmem>>, vector<1x128xf32>
    %37 = vector.broadcast %36 : vector<1x128xf32> to vector<2x128xf32>
    %38 = arith.addf %35, %37 : vector<2x128xf32>
    %c0_19 = arith.constant 0 : index
    %c0_20 = arith.constant 0 : index
    %39 = vector.load %arg7[%c0_19, %c0_20] : memref<128x128xbf16, #tpu.memory_space<vmem>>, vector<128x128xbf16>
    %40 = arith.truncf %32 : vector<2x128xf32> to vector<2x128xbf16>
    %cst_21 = arith.constant dense<0.000000e+00> : vector<2x128xf32>
    %41 = tpu.matmul %40, %39, %cst_21 {dimension_numbers = #tpu.dot_dimension_numbers<[1], [0], [0], [1], [0, 0, 1, 1], [], []>} : vector<2x128xbf16>, vector<128x128xbf16>, vector<2x128xf32> -> vector<2x128xf32>
    %c0_22 = arith.constant 0 : index
    %c0_23 = arith.constant 0 : index
    %42 = vector.load %arg8[%c0_22, %c0_23] : memref<1x128xf32, #tpu.memory_space<vmem>>, vector<1x128xf32>
    %43 = vector.broadcast %42 : vector<1x128xf32> to vector<2x128xf32>
    %44 = arith.addf %41, %43 : vector<2x128xf32>
    %c0_24 = arith.constant 0 : index
    %c0_25 = arith.constant 0 : index
    %45 = vector.load %arg9[%c0_24, %c0_25] : memref<1x128xf32, #tpu.memory_space<vmem>>, vector<1x128xf32>
    %46 = vector.broadcast %45 : vector<1x128xf32> to vector<2x128xf32>
    %47 = arith.mulf %38, %46 : vector<2x128xf32>
    %cst_26 = arith.constant dense<0.000000e+00> : vector<2xf32>
    %48 = vector.multi_reduction <add>, %47, %cst_26 [1] : vector<2x128xf32> to vector<2xf32>
    %49 = vector.shape_cast %48 : vector<2xf32> to vector<2x1xf32>
    %c0_27 = arith.constant 0 : index
    %c0_28 = arith.constant 0 : index
    %50 = vector.load %arg10[%c0_27, %c0_28] : memref<1x128xf32, #tpu.memory_space<vmem>>, vector<1x128xf32>
    %51 = vector.broadcast %50 : vector<1x128xf32> to vector<2x128xf32>
    %52 = arith.mulf %44, %51 : vector<2x128xf32>
    %cst_29 = arith.constant dense<0.000000e+00> : vector<2xf32>
    %53 = vector.multi_reduction <add>, %52, %cst_29 [1] : vector<2x128xf32> to vector<2xf32>
    %54 = vector.shape_cast %53 : vector<2xf32> to vector<2x1xf32>
    %55 = arith.addf %49, %54 : vector<2x1xf32>
    %c0_30 = arith.constant 0 : index
    %c0_31 = arith.constant 0 : index
    %56 = vector.load %arg11[%c0_30, %c0_31] : memref<1x1xf32, #tpu.memory_space<vmem>>, vector<1x1xf32>
    %57 = vector.broadcast %56 : vector<1x1xf32> to vector<2x1xf32>
    %58 = arith.addf %55, %57 : vector<2x1xf32>
    %59 = arith.negf %58 : vector<2x1xf32>
    %60 = math.exp %59 : vector<2x1xf32>
    %cst_32 = arith.constant 1.000000e+00 : f32
    %61 = vector.broadcast %cst_32 : f32 to vector<2x1xf32>
    %62 = arith.addf %61, %60 : vector<2x1xf32>
    %63 = arith.divf %61, %62 : vector<2x1xf32>
    %c0_33 = arith.constant 0 : index
    %c0_34 = arith.constant 0 : index
    %64 = vector.load %arg13[%c0_33, %c0_34] : memref<2x1xf32, #tpu.memory_space<vmem>>, vector<2x1xf32>
    tpu.vector_store %arg13[%c0_33, %c0_34], %63 {strides = array<i32>} : memref<2x1xf32, #tpu.memory_space<vmem>>, vector<2x1xf32>,
    %c0_35 = arith.constant 0 : index
    %c0_36 = arith.constant 0 : index
    %65 = vector.load %arg12[%c0_35, %c0_36] : memref<2x1xf32, #tpu.memory_space<vmem>>, vector<2x1xf32>
    %66 = arith.subf %65, %63 : vector<2x1xf32>
    %67 = math.absf %66 : vector<2x1xf32>
    %68 = vector.shape_cast %67 : vector<2x1xf32> to vector<1x2x1xf32>
    %cst_37 = arith.constant dense<0.000000e+00> : vector<1xf32>
    %69 = vector.multi_reduction <add>, %68, %cst_37 [1, 2] : vector<1x2x1xf32> to vector<1xf32>
    %70 = vector.shape_cast %69 : vector<1xf32> to vector<1x1x1xf32>
    %71 = vector.extract %70[0, 0, 0] : f32 from vector<1x1x1xf32>
    %72 = vector.broadcast %71 : f32 to vector<1x1xf32>
    %cst_38 = arith.constant 2.000000e+00 : f32
    %73 = vector.broadcast %cst_38 : f32 to vector<1x1xf32>
    %74 = arith.divf %72, %73 : vector<1x1xf32>
    %c0_39 = arith.constant 0 : index
    %c0_40 = arith.constant 0 : index
    %75 = vector.load %arg14[%c0_39, %c0_40] : memref<1x1xf32, #tpu.memory_space<vmem>>, vector<1x1xf32>
    tpu.vector_store %arg14[%c0_39, %c0_40], %74 {strides = array<i32>} : memref<1x1xf32, #tpu.memory_space<vmem>>, vector<1x1xf32>,
    return
  }
  func.func @transform_0(%arg0: i32) -> (i32, i32, i32) {
    %c0_i32 = arith.constant 0 : i32
    %c0_i32_0 = arith.constant 0 : i32
    %c0_i32_1 = arith.constant 0 : i32
    %c0_i32_2 = arith.constant 0 : i32
    return %c0_i32, %c0_i32_0, %c0_i32_1 : i32, i32, i32
  }
  func.func @transform_1(%arg0: i32) -> (i32, i32) {
    %c0_i32 = arith.constant 0 : i32
    %c0_i32_0 = arith.constant 0 : i32
    %c0_i32_1 = arith.constant 0 : i32
    return %c0_i32, %c0_i32_0 : i32, i32
  }
  func.func @transform_2(%arg0: i32) -> (i32, i32) {
    %c0_i32 = arith.constant 0 : i32
    %c0_i32_0 = arith.constant 0 : i32
    %c0_i32_1 = arith.constant 0 : i32
    return %c0_i32, %c0_i32_0 : i32, i32
  }
  func.func @transform_3(%arg0: i32) -> (i32, i32) {
    %c0_i32 = arith.constant 0 : i32
    %c0_i32_0 = arith.constant 0 : i32
    %c0_i32_1 = arith.constant 0 : i32
    return %c0_i32, %c0_i32_0 : i32, i32
  }
  func.func @transform_4(%arg0: i32) -> (i32, i32) {
    %c0_i32 = arith.constant 0 : i32
    %c0_i32_0 = arith.constant 0 : i32
    %c0_i32_1 = arith.constant 0 : i32
    return %c0_i32, %c0_i32_0 : i32, i32
  }
  func.func @transform_5(%arg0: i32) -> (i32, i32) {
    %c0_i32 = arith.constant 0 : i32
    %c0_i32_0 = arith.constant 0 : i32
    %c0_i32_1 = arith.constant 0 : i32
    return %c0_i32, %c0_i32_0 : i32, i32
  }
  func.func @transform_6(%arg0: i32) -> (i32, i32) {
    %c0_i32 = arith.constant 0 : i32
    %c0_i32_0 = arith.constant 0 : i32
    %c0_i32_1 = arith.constant 0 : i32
    return %c0_i32, %c0_i32_0 : i32, i32
  }
  func.func @transform_7(%arg0: i32) -> (i32, i32) {
    %c0_i32 = arith.constant 0 : i32
    %c0_i32_0 = arith.constant 0 : i32
    %c0_i32_1 = arith.constant 0 : i32
    return %c0_i32, %c0_i32_0 : i32, i32
  }
  func.func @transform_8(%arg0: i32) -> (i32, i32) {
    %c0_i32 = arith.constant 0 : i32
    %c0_i32_0 = arith.constant 0 : i32
    %c0_i32_1 = arith.constant 0 : i32
    return %c0_i32, %c0_i32_0 : i32, i32
  }
  func.func @transform_9(%arg0: i32) -> (i32, i32) {
    %c0_i32 = arith.constant 0 : i32
    %c0_i32_0 = arith.constant 0 : i32
    %c0_i32_1 = arith.constant 0 : i32
    return %c0_i32, %c0_i32_0 : i32, i32
  }
  func.func @transform_10(%arg0: i32) -> (i32, i32) {
    %c0_i32 = arith.constant 0 : i32
    %c0_i32_0 = arith.constant 0 : i32
    %c0_i32_1 = arith.constant 0 : i32
    return %c0_i32, %c0_i32_0 : i32, i32
  }
  func.func @transform_11(%arg0: i32) -> (i32, i32) {
    %c0_i32 = arith.constant 0 : i32
    %c0_i32_0 = arith.constant 0 : i32
    %c0_i32_1 = arith.constant 0 : i32
    return %c0_i32, %c0_i32_0 : i32, i32
  }
  func.func @transform_12(%arg0: i32) -> (i32, i32) {
    %c0_i32 = arith.constant 0 : i32
    %c0_i32_0 = arith.constant 0 : i32
    %c0_i32_1 = arith.constant 0 : i32
    return %c0_i32, %c0_i32_0 : i32, i32
  }
  func.func @transform_13(%arg0: i32) -> (i32, i32) {
    %c0_i32 = arith.constant 0 : i32
    %c0_i32_0 = arith.constant 0 : i32
    %c0_i32_1 = arith.constant 0 : i32
    return %c0_i32, %c0_i32_0 : i32, i32
  }
}

</mosaic_0001>

<bundles_post_ra>
// kernel: blip_forward.7
= control target key start
LH: loop header
LB: loop body
LE: loop exit
PB: predicated region body
PF: predicated region fallthrough
CT: control target
= control target key end

     0   :  { %10 = vsyncpa [#allocation3], 0  ;;  %s696_s18 = smov 0   ;;  %s731_s0 = inlined_call_operand.vmem [shape: f32[4,4,192], index: 0, kind: input, shape index: {}]   ;;  %s732_s1 = inlined_call_operand.hbm [shape: bf16[192,128], index: 1, kind: input, shape index: {}]   ;;  %s733_s2 = inlined_call_operand.vmem [shape: f32[1,128], index: 2, kind: input, shape index: {}]   ;;  %s734_s3 = inlined_call_operand.vmem [shape: f32[1,128], index: 3, kind: input, shape index: {}]   ;;  %s735_s4 = inlined_call_operand.vmem [shape: f32[5,128], index: 4, kind: input, shape index: {}]   ;;  %s736_s5 = inlined_call_operand.vmem [shape: bf16[4,8,128], index: 5, kind: output, shape index: {}]  }
   0x1 LB: > { %s168_s21 = sshll.u32 %s732_s1, 4  ;;  %s520_s22 = sadd.s32 4294967295, %s661_s18   ;;  %s661_s18 = sphi %s696_s18, %s16_s18   ;;  %s169_s21 = int_to_ptr.hbm [resolvable:$true] %s168_s21 }
   0x2   : > { %p522_p0 = scmp.ge.s32.totalorder %s661_s18, 1  ;;  %p157_p1 = scmp.lt.s32.totalorder %s661_s18, 3 }
   0x3   : > { %p607_p2 = scmp.eq.s32.totalorder %s520_s22, 0  ;;  %s663_s23 = smov [#allocation2]  }
   0x4   : > { %p158_p3 = pnand %p522_p0, %p157_p1  ;;  %s170_s24 = sshll.u32 %s663_s23, 4  ;;  %s171_s24 = int_to_ptr.vmem [resolvable:$true] %s170_s24 }
   0x5   : > { %s664_s25 = smov 64   ;;  %s665_s26 = smov 4  }
   0x6   : > { %p603_p4 = pneg %p158_p3  ;;  %205 = sbr.rel (%p158_p3) target bundleno = 190 (0xbe), region = 40 }
   0x8   : > { %p604_p5 = pnand %p607_p2, %p603_p4 }
   0xa   : > { %606 = dma.hbm_to_vmem [thread:$0]  (!%p604_p5), %s169_s21, 1536, %s171_s24, [#allocation3], %s664_s25, %s664_s25, %s665_s26  }
   0xb   : > { %656 = dma.done.wait (%p607_p2), [#allocation3], 1536  }
   0xc   : > { %658 = vsyncadd (%p607_p2), [#allocation3], 4294965760  ;;  %s527_s27 = sshll.u32 %s520_s22, 1  ;;  %v594_v0 = vld [vmem:[#allocation2 + $0x38] sm:$0xff]  ;;  %v593_v2 = vld [vmem:[#allocation2 + $0x30] sm:$0xff]  ;;  %vm361_vm0 = vcmask 523264  }
   0xd   : > { %p236_p6 = scmp.lt.s32.totalorder %s527_s27, 3  ;;  %v598_v1 = vld [vmem:[#allocation2 + $0x58] sm:$0xff]  ;;  %365 = vmatpush.bf16.msra.mxu0 %v594_v0  ;;  %417 = vmatpush.bf16.msra.mxu2 %v594_v0  ;;  %v597_v3 = vld [vmem:[#allocation2 + $0x50] sm:$0xff]  ;;  %v592_v5 = vld [vmem:[#allocation2 + $0x28] sm:$0xff]  ;;  %vm398_vm1 = vcmask 1040384   ;;  %vm400_vm2 = vcmask 1044480  }
   0xe   : > { %434 = vmatpush.bf16.msra.mxu3 %v598_v1  ;;  %382 = vmatpush.bf16.msra.mxu1 %v598_v1  ;;  %v596_v6 = vld [vmem:[#allocation2 + $0x48] sm:$0xff]  ;;  %v591_v8 = vld [vmem:[#allocation2 + $0x20] sm:$0xff]  ;;  %v590_v12 = vld [vmem:[#allocation2 + $0x18] sm:$0xff] }
   0xf   : > { %s738_s27 = smov (!%p236_p6, %s527_s27), 3  ;;  %v595_v9 = vld [vmem:[#allocation2 + $0x40] sm:$0xff]  ;;  %v589_v14 = vld [vmem:[#allocation2 + $0x10] sm:$0xff]  ;;  %v588_v17 = vld [vmem:[#allocation2 + $0x8] sm:$0xff] }
  0x10   : > { %s586_s28 = sshll.u32 %s738_s27, 3  ;;  %v587_v18 = vld [vmem:[#allocation2] sm:$0xff]  ;;  %v620_v25 = vld [vmem:[%s733_s2] ss:$0 sm:$0xff]  ;;  %s531_s13 = sshll.u32 %s738_s27, 2 }
  0x11   : > { %s240_s6 = scalar_lea.vmem %s731_s0, %s586_s28  ;;  %366 = vmatpush.bf16.msra.mxu0 %v593_v2  ;;  %418 = vmatpush.bf16.msra.mxu2 %v593_v2  ;;  %v274_v26 = vld [vmem:[%s735_s4] sm:$0x1f]  ;;  %s246_s16 = scalar_lea.vmem %s736_s5, %s531_s13 }
  0x12   : > { %v277_v4 = vld [vmem:[%s240_s6] sm:$0xff]  ;;  %435 = vmatpush.bf16.msra.mxu3 %v597_v3  ;;  %383 = vmatpush.bf16.msra.mxu1 %v597_v3  ;;  %v581_v7 = vld [vmem:[%s240_s6 + $0x8] sm:$0xff]  ;;  %v392_v29 = vrot.slane %v274_v26, 1 }
  0x13   : > { %279 = vst [vmem:[#allocation1] ss:$2 sm:$0xff] %v277_v4  ;;  %v275_v30 = vld [vmem:[%s734_s3] sm:$0x1] }
  0x14   : > { %v276_v33 = vadd.f32 %v275_v30, %v274_v26 }
  0x15   : > { %367 = vmatpush.bf16.msra.mxu0 %v592_v5  ;;  %419 = vmatpush.bf16.msra.mxu2 %v592_v5 }
  0x16   : > { %436 = vmatpush.bf16.msra.mxu3 %v596_v6  ;;  %384 = vmatpush.bf16.msra.mxu1 %v596_v6 }
  0x19   : > { %368 = vmatpush.bf16.msra.mxu0 %v591_v8  ;;  %420 = vmatpush.bf16.msra.mxu2 %v591_v8 }
  0x1a   : > { %v280_v10 = vld.sshfl [vmem:[#allocation1] sm:$0xff pattern:$0x75316420]  ;;  %v281_v11 = vld.sshfl [vmem:[#allocation1 + $0x8] sm:$0xff pattern:$0x75316420]  ;;  %437 = vmatpush.bf16.msra.mxu3 %v595_v9  ;;  %385 = vmatpush.bf16.msra.mxu1 %v595_v9 }
  0x1b   : > { %407 = vst [vmem:[#allocation1] ss:$2 sm:$0xff] %v581_v7  ;;  %v285_v13 = vpack.c.bf16 %v281_v11, %v281_v11  ;;  %v284_v20 = vpack.c.bf16 %v280_v10, %v280_v10 }
  0x1d   : > { %369 = vmatpush.bf16.msra.mxu0 %v590_v12  ;;  %421 = vmatpush.bf16.msra.mxu2 %v590_v12 }
  0x1e   : > { %580 = vmatmul.msk.bf16.vlgmr.msra.gmra.mxu1 %vm361_vm0, %v285_v13 }
  0x21   : > { %370 = vmatpush.bf16.msra.mxu0 %v589_v14  ;;  %422 = vmatpush.bf16.msra.mxu2 %v589_v14 }
  0x22   : > { %v409_v15 = vld.sshfl [vmem:[#allocation1 + $0x8] sm:$0xff pattern:$0x75316420]  ;;  %v408_v19 = vld.sshfl [vmem:[#allocation1] sm:$0xff pattern:$0x75316420] }
  0x23   : > { %v413_v16 = vpack.c.bf16 %v409_v15, %v409_v15  ;;  %v412_v21 = vpack.c.bf16 %v408_v19, %v408_v19 }
  0x25   : > { %582 = vmatmul.msk.bf16.vlgmr.msra.gmra.mxu3 %vm361_vm0, %v413_v16  ;;  %371 = vmatpush.bf16.msra.mxu0 %v588_v17 }
  0x26   : > { %423 = vmatpush.bf16.msra.mxu2 %v588_v17 }
  0x29   : > { %372 = vmatpush.bf16.msra.mxu0 %v587_v18 }
  0x2a   : > { %424 = vmatpush.bf16.msra.mxu2 %v587_v18 }
  0x2c   : > { %373 = vmatmul.bf16.vlgmr.msra.gmra.mxu0 %v284_v20 }
  0x2d   : > { %425 = vmatmul.bf16.vlgmr.msra.gmra.mxu2 %v412_v21 }
  0x9b   : > { %v387_v22 = vpop.f32.mrf.mxu1 }
  0xa3   : > { %v389_v23 = vpop.f32.mrf.mxu1 }
  0xa8   : > { %v439_v24 = vpop.f32.mrf.mxu3 }
  0xa9   : > { %v374_v27 = vpop.f32.mrf.mxu0 }
  0xaa   : > { %v375_v28 = vadd.f32 %v620_v25, %v374_v27 }
  0xac   : > { %v388_v31 = vadd.f32 %v387_v22, %v375_v28 }
  0xae   : > { %v394_v34 = vadd.f32 %v392_v29, %v388_v31 }
  0xb0   : > { %v441_v32 = vpop.f32.mrf.mxu3  ;;  %v426_v35 = vpop.f32.mrf.mxu2  ;;  %v396_v36 = vrot.slane %v394_v34, 7 }
  0xb1   : > { %v427_v37 = vadd.f32 %v620_v25, %v426_v35  ;;  %v376_v38 = vpop.f32.mrf.mxu0 }
  0xb2   : > { %v399_v39 = vsel %vm398_vm1, %v276_v33, %v396_v36 }
  0xb3   : > { %v440_v40 = vadd.f32 %v439_v24, %v427_v37  ;;  %v401_v41 = vsel %vm400_vm2, %v399_v39, 0.0 }
  0xb4   : > { %v402_v42 = vpack.c.bf16 %v401_v41, %v401_v41 }
  0xb5   : > { %v443_v43 = vadd.f32 %v440_v40, %v392_v29 }
  0xb6   : > { %403 = vst [vmem:[%s246_s16] sm:$0xf] %v402_v42 }
  0xb7   : > { %v445_v44 = vrot.slane %v443_v43, 7 }
  0xb8   : > { %v428_v45 = vpop.f32.mrf.mxu2 }
  0xb9   : > { %v447_v46 = vsel %vm398_vm1, %v276_v33, %v445_v44 }
  0xba   : > { %v448_v47 = vsel %vm400_vm2, %v447_v46, 0.0 }
  0xbb   : > { %v449_v48 = vpack.c.bf16 %v448_v47, %v448_v47 }
  0xbd   : > { %583 = vst [vmem:[%s246_s16 + $0x4] sm:$0xf] %v449_v48 }
  0xbe PF: > { %s16_s18 = sadd.s32 1, %s661_s18  }
  0xbf   : > { %p13_p7 = scmp.ge.s32.totalorder %s16_s18, 4  }
  0xc1   :  { %15 = sbr.rel (!%p13_p7) target bundleno = 1 (0x1), region = 77 }
  0xc6   :  { %474 = vsyncpa [#allocation3], 1 }
  0xc7   :  { %476 = vsyncpa [#allocation3 + $0x1], 1 }

// kernel: blip_forward.10
= control target key start
LH: loop header
LB: loop body
LE: loop exit
PB: predicated region body
PF: predicated region fallthrough
CT: control target
= control target key end

     0   :  { %10 = vsyncpa [#allocation3], 0  ;;  %s251_s0 = inlined_call_operand.vmem [shape: f32[2,8,128], index: 0, kind: input, shape index: {}]   ;;  %s252_s1 = inlined_call_operand.vmem [shape: f32[8,128], index: 1, kind: input, shape index: {}]   ;;  %s253_s2 = inlined_call_operand.vmem [shape: f32[1,128], index: 2, kind: input, shape index: {}]   ;;  %s254_s3 = inlined_call_operand.hbm [shape: f32[1,128], index: 3, kind: input, shape index: {}]   ;;  %s255_s4 = inlined_call_operand.hbm [shape: f32[1,128], index: 4, kind: input, shape index: {}]   ;;  %s256_s5 = inlined_call_operand.vmem [shape: bf16[2,8,128], index: 5, kind: output, shape index: {}]  }
   0x1   :  { %s23_s20 = sshll.u32 %s254_s3, 4  ;;  %s24_s20 = int_to_ptr.hbm [resolvable:$true] %s23_s20 }
   0x2   :  { %11 = vsyncpa [#allocation5], 0  ;;  %s197_s21 = smov [#allocation2]   ;;  %s34_s25 = sshll.u32 %s255_s4, 4  ;;  %s35_s25 = int_to_ptr.hbm [resolvable:$true] %s34_s25 }
   0x3   :  { %s25_s22 = sshll.u32 %s197_s21, 4  ;;  %s198_s26 = smov [#allocation4]   ;;  %s26_s22 = int_to_ptr.vmem [resolvable:$true] %s25_s22 }
   0x4   :  { %28 = dma.hbm_to_vmem [thread:$0]  %s24_s20, 16, %s26_s22, [#allocation3]  }
   0x5   :  { %s36_s27 = sshll.u32 %s198_s26, 4  ;;  %s37_s27 = int_to_ptr.vmem [resolvable:$true] %s36_s27 }
   0x6   :  { %39 = dma.hbm_to_vmem [thread:$0]  %s35_s25, 16, %s37_s27, [#allocation5]  }
   0x7   :  { %193 = dma.done.wait [#allocation3], 16  }
   0x8   :  { %194 = vsyncadd [#allocation3], 4294967280 }
   0x9   :  { %195 = dma.done.wait [#allocation5], 16  }
   0xa   :  { %196 = vsyncadd [#allocation5], 4294967280  ;;  %v48_v0 = vld [vmem:[%s251_s0] sm:$0xff]  ;;  %v49_v4 = vld [vmem:[%s251_s0 + $0x8] sm:$0xff]  ;;  %v199_v8 = vmov 128.0  }
   0xb   :  { %v50_v1 = vld [vmem:[%s252_s1] sm:$0xff]  ;;  %139 = vrcp.f32 %v199_v8 }
   0xc   :  { %v51_v2 = vadd.f32 %v50_v1, %v48_v0  ;;  %v136_v3 = vld [vmem:[%s253_s2] ss:$0 sm:$0xff]  ;;  %v52_v6 = vadd.f32 %v50_v1, %v49_v4  ;;  %v138_v45 = vld [vmem:[#allocation4] ss:$0 sm:$0xff] }
   0xd   :  { %v137_v41 = vld [vmem:[#allocation2] ss:$0 sm:$0xff] }
   0xe   :  { %v57_v5 = vadd.f32 %v136_v3, %v51_v2  ;;  %v58_v7 = vadd.f32 %v136_v3, %v52_v6 }
  0x10   :  { %61 = vadd.xlane.f32.xlu0 %v57_v5 }
  0x11   :  { %v140_v9 = vpop.eup %139 }
  0x12   :  { %v66_v10 = vmul.f32 128.0, %v140_v9  ;;  %vm70_vm0 = vweird.f32 %v140_v9 }
  0x14   :  { %v67_v11 = vsub.f32 1.0, %v66_v10 }
  0x16   :  { %v68_v12 = vmul.f32 %v140_v9, %v67_v11 }
  0x18   :  { %63 = vadd.xlane.f32.xlu0 %v58_v7  ;;  %v69_v13 = vadd.f32 %v140_v9, %v68_v12 }
  0x1a   :  { %v71_v14 = vsel %vm70_vm0, %v140_v9, %v69_v13 }
  0x83   :  { %v62_v15 = vpop.xlane.xlu0 %61 }
  0x84   :  { %v72_v16 = vmul.f32 %v71_v14, %v62_v15 }
  0x86   :  { %v74_v17 = vsub.f32 %v57_v5, %v72_v16 }
  0x88   :  { %v76_v18 = vmul.f32 %v74_v17, %v74_v17 }
  0x8a   :  { %78 = vadd.xlane.f32.xlu1 %v76_v18 }
  0x8b   :  { %v64_v19 = vpop.xlane.xlu0 %63 }
  0x8c   :  { %v73_v20 = vmul.f32 %v71_v14, %v64_v19 }
  0x8e   :  { %v75_v21 = vsub.f32 %v58_v7, %v73_v20 }
  0x90   :  { %v77_v22 = vmul.f32 %v75_v21, %v75_v21 }
  0x92   :  { %80 = vadd.xlane.f32.xlu1 %v77_v22 }
  0xfd   :  { %v79_v23 = vpop.xlane.xlu1 %78 }
  0xfe   :  { %v82_v24 = vmul.f32 %v79_v23, %v71_v14 }
 0x100   :  { %v84_v25 = vadd.f32 1e-12, %v82_v24 }
 0x102   :  { %141 = vrsqrt.f32 %v84_v25  ;;  %vm92_vm2 = vweird.f32 %v84_v25 }
 0x105   :  { %v81_v26 = vpop.xlane.xlu1 %80 }
 0x106   :  { %v83_v27 = vmul.f32 %v81_v26, %v71_v14 }
 0x108   :  { %v142_v28 = vpop.eup %141  ;;  %v85_v29 = vadd.f32 1e-12, %v83_v27 }
 0x109   :  { %v87_v30 = vmul.f32 %v142_v28, %v84_v25  ;;  %vm93_vm1 = vweird.f32 %v142_v28 }
 0x10a   :  { %143 = vrsqrt.f32 %v85_v29  ;;  %vm94_vm3 = vmor %vm92_vm2, %vm93_vm1  ;;  %vm102_vm5 = vweird.f32 %v85_v29 }
 0x10b   :  { %v88_v31 = vmul.f32 %v142_v28, %v87_v30 }
 0x10d   :  { %v89_v32 = vmul.f32 0.5, %v88_v31 }
 0x10f   :  { %v90_v33 = vsub.f32 1.5, %v89_v32 }
 0x110   :  { %v144_v34 = vpop.eup %143 }
 0x111   :  { %v91_v35 = vmul.f32 %v142_v28, %v90_v33  ;;  %v97_v36 = vmul.f32 %v144_v34, %v85_v29  ;;  %vm103_vm4 = vweird.f32 %v144_v34 }
 0x112   :  { %vm104_vm6 = vmor %vm102_vm5, %vm103_vm4 }
 0x113   :  { %v98_v37 = vmul.f32 %v144_v34, %v97_v36  ;;  %v95_v38 = vsel %vm94_vm3, %v142_v28, %v91_v35 }
 0x114   :  { %v106_v42 = vmul.f32 %v95_v38, %v74_v17 }
 0x115   :  { %v99_v39 = vmul.f32 0.5, %v98_v37 }
 0x116   :  { %v111_v46 = vmul.f32 %v137_v41, %v106_v42 }
 0x117   :  { %v100_v40 = vsub.f32 1.5, %v99_v39 }
 0x118   :  { %v116_v49 = vadd.f32 %v138_v45, %v111_v46 }
 0x119   :  { %v101_v43 = vmul.f32 %v144_v34, %v100_v40 }
 0x11b   :  { %v105_v44 = vsel %vm104_vm6, %v144_v34, %v101_v43 }
 0x11c   :  { %v107_v47 = vmul.f32 %v105_v44, %v75_v21 }
 0x11e   :  { %v112_v48 = vmul.f32 %v137_v41, %v107_v47 }
 0x120   :  { %v117_v50 = vadd.f32 %v138_v45, %v112_v48 }
 0x122   :  { %v131_v51 = vpack.c.bf16 %v117_v50, %v116_v49 }
 0x124   :  { %132 = vst [vmem:[%s256_s5] sm:$0xff] %v131_v51  }
 0x125   :  { %126 = vsyncpa [#allocation3], 1 }
 0x126   :  { %127 = vsyncpa [#allocation5], 1 }

// kernel: blip_forward.8
= control target key start
LH: loop header
LB: loop body
LE: loop exit
PB: predicated region body
PF: predicated region fallthrough
CT: control target
= control target key end

     0   :  { %19 = vsyncpa [#allocation3], 0  ;;  %s2873_s29 = smov 0   ;;  %s3591_s0 = inlined_call_operand.vmem [shape: bf16[4,8,128], index: 0, kind: input, shape index: {}]   ;;  %s3592_s1 = inlined_call_operand.vmem [shape: f32[1,8], index: 1, kind: input, shape index: {}]   ;;  %s3593_s2 = inlined_call_operand.vmem [shape: bf16[128,384], index: 2, kind: input, shape index: {}]   ;;  %s3594_s3 = inlined_call_operand.vmem [shape: f32[1,384], index: 3, kind: input, shape index: {}]   ;;  %s3595_s4 = inlined_call_operand.vmem [shape: bf16[128,128], index: 4, kind: input, shape index: {}]   ;;  %s3596_s5 = inlined_call_operand.vmem [shape: f32[1,128], index: 5, kind: input, shape index: {}]   ;;  %s3597_s6 = inlined_call_operand.vmem [shape: f32[1,128], index: 6, kind: input, shape index: {}]   ;;  %s3598_s7 = inlined_call_operand.vmem [shape: f32[1,128], index: 7, kind: input, shape index: {}]   ;;  %s3599_s8 = inlined_call_operand.vmem [shape: f32[1,128], index: 8, kind: input, shape index: {}]   ;;  %s3600_s9 = inlined_call_operand.vmem [shape: f32[1,128], index: 9, kind: input, shape index: {}]   ;;  %s3601_s10 = inlined_call_operand.vmem [shape: bf16[128,512], index: 10, kind: input, shape index: {}]   ;;  %s3602_s11 = inlined_call_operand.vmem [shape: f32[1,512], index: 11, kind: input, shape index: {}]   ;;  %s3603_s12 = inlined_call_operand.vmem [shape: bf16[512,128], index: 12, kind: input, shape index: {}]   ;;  %s3604_s13 = inlined_call_operand.hbm [shape: f32[1,128], index: 13, kind: input, shape index: {}]   ;;  %s3605_s14 = inlined_call_operand.vmem [shape: bf16[4,8,128], index: 14, kind: output, shape index: {}]  }
   0x1 LB: > { %s2130_s30 = sadd.s32 4294967295, %s2791_s29   ;;  %p2132_p0 = scmp.ge.s32.totalorder %s2791_s29, 1  ;;  %s2791_s29 = sphi %s2873_s29, %s25_s29  }
   0x2   : > { %p355_p1 = scmp.lt.s32.totalorder %s2791_s29, 3  ;;  %s403_s17 = sshll.u32 %s3604_s13, 4  ;;  %s404_s17 = int_to_ptr.hbm [resolvable:$true] %s403_s17 }
   0x3   : > { %p2656_p3 = scmp.eq.s32.totalorder %s2130_s30, 0  ;;  %s2793_s18 = smov [#allocation2]  }
   0x4   : > { %p356_p2 = pnand %p2132_p0, %p355_p1  ;;  %s405_s19 = sshll.u32 %s2793_s18, 4  ;;  %s406_s19 = int_to_ptr.vmem [resolvable:$true] %s405_s19 }
   0x6   : > { %p2652_p4 = pneg %p356_p2  ;;  %427 = sbr.rel (%p356_p2) target bundleno = 2346 (0x92a), region = 76 }
   0x8   : > { %p2653_p5 = pnand %p2656_p3, %p2652_p4 }
   0xa   : > { %2655 = dma.hbm_to_vmem [thread:$0]  (!%p2653_p5), %s404_s17, 16, %s406_s19, [#allocation3]  }
   0xb   : > { %2786 = dma.done.wait (%p2656_p3), [#allocation3], 16  }
   0xc   : > { %2788 = vsyncadd (%p2656_p3), [#allocation3], 4294967280  ;;  %s2137_s20 = sshll.u32 %s2130_s30, 1  ;;  %v2794_v3 = vmov 128.0   ;;  %v2227_v18 = vld [vmem:[%s3593_s2 + $0xa8] sm:$0xf] }
   0xd   : > { %p475_p6 = scmp.lt.s32.totalorder %s2137_s20, 3  ;;  %2693 = vrcp.f32 %v2794_v3  ;;  %v2565_v19 = vld [vmem:[%s3593_s2 + $0xb0] sm:$0xf0]  ;;  %v2564_v20 = vld [vmem:[%s3593_s2 + $0xac] sm:$0xf]  ;;  %vm765_vm7 = vcmask 261120  }
   0xe   : > { %v2228_v21 = vor.u32 %v2565_v19, %v2227_v18  ;;  %v2229_v22 = vld [vmem:[%s3593_s2 + $0xb4] sm:$0xf0]  ;;  %v2235_v23 = vld [vmem:[%s3593_s2 + $0xb0] sm:$0xf]  ;;  %v2566_v24 = vld [vmem:[%s3593_s2 + $0xb8] sm:$0xf0] }
   0xf   : > { %s3607_s20 = smov (!%p475_p6, %s2137_s20), 3  ;;  %v2232_v25 = vor.u32 %v2564_v20, %v2229_v22  ;;  %v2236_v26 = vor.u32 %v2566_v24, %v2235_v23  ;;  %v2215_v27 = vld [vmem:[%s3593_s2 + $0x90] sm:$0xf]  ;;  %v2562_v28 = vld [vmem:[%s3593_s2 + $0x98] sm:$0xf0]  ;;  %s2795_s23 = smov 96  }
  0x10   : > { %s2138_s21 = sshll.u32 %s3607_s20, 2  ;;  %720 = vmatpush.bf16.msra.mxu0 %v2228_v21  ;;  %v2561_v29 = vld [vmem:[%s3593_s2 + $0x94] sm:$0xf]  ;;  %v2216_v30 = vor.u32 %v2562_v28, %v2215_v27  ;;  %v2217_v31 = vld [vmem:[%s3593_s2 + $0x9c] sm:$0xf0]  ;;  %vm806_vm8 = vcmask 1043456  }
  0x11   : > { %s478_s24 = scalar_lea.vmem %s3591_s0, %s2138_s21  ;;  %734 = vmatpush.bf16.msra.mxu1 %v2232_v25  ;;  %748 = vmatpush.bf16.msra.mxu2 %v2236_v26  ;;  %v2223_v32 = vld [vmem:[%s3593_s2 + $0x98] sm:$0xf]  ;;  %v2563_v33 = vld [vmem:[%s3593_s2 + $0xa0] sm:$0xf0]  ;;  %v2220_v34 = vor.u32 %v2561_v29, %v2217_v31  ;;  %v2558_v38 = vld [vmem:[%s3593_s2 + $0x7c] sm:$0xf] }
  0x12   : > { %v2640_v0 = vld [vmem:[%s478_s24] sm:$0xff]   ;;  %v2224_v35 = vor.u32 %v2563_v33, %v2223_v32  ;;  %v2203_v36 = vld [vmem:[%s3593_s2 + $0x78] sm:$0xf]  ;;  %v2205_v40 = vld [vmem:[%s3593_s2 + $0x84] sm:$0xf0]  ;;  %s2796_s24 = smov 32  }
  0x13   : > { %v2892_v1 = vunpack.c.l.bf16 %v2640_v0  ;;  %v2895_v2 = vunpack.c.h.bf16 %v2640_v0  ;;  %v2694_v4 = vpop.eup %2693  ;;  %v2559_v37 = vld [vmem:[%s3593_s2 + $0x80] sm:$0xf0]  ;;  %v2211_v41 = vld [vmem:[%s3593_s2 + $0x80] sm:$0xf]  ;;  %v2560_v42 = vld [vmem:[%s3593_s2 + $0x88] sm:$0xf0]  ;;  %v2208_v43 = vor.u32 %v2558_v38, %v2205_v40 }
  0x14   : > { %v499_v5 = vmul.f32 128.0, %v2694_v4  ;;  %vm503_vm0 = vweird.f32 %v2694_v4  ;;  %721 = vmatpush.bf16.msra.mxu0 %v2216_v30  ;;  %v2204_v39 = vor.u32 %v2559_v37, %v2203_v36  ;;  %v2212_v44 = vor.u32 %v2560_v42, %v2211_v41  ;;  %v2191_v45 = vld [vmem:[%s3593_s2 + $0x60] sm:$0xf]  ;;  %v2556_v46 = vld [vmem:[%s3593_s2 + $0x68] sm:$0xf0]  ;;  %s2797_s25 = smov 64  }
  0x15   : > { %494 = vadd.xlane.f32.xlu0 %v2892_v1  ;;  %735 = vmatpush.bf16.msra.mxu1 %v2220_v34  ;;  %v2555_v47 = vld [vmem:[%s3593_s2 + $0x64] sm:$0xf]  ;;  %v2192_v48 = vor.u32 %v2556_v46, %v2191_v45  ;;  %v2193_v49 = vld [vmem:[%s3593_s2 + $0x6c] sm:$0xf0]  ;;  %v2199_v50 = vld [vmem:[%s3593_s2 + $0x68] sm:$0xf] }
  0x16   : > { %v500_v6 = vsub.f32 1.0, %v499_v5  ;;  %749 = vmatpush.bf16.msra.mxu2 %v2224_v35  ;;  %v2557_v51 = vld [vmem:[%s3593_s2 + $0x70] sm:$0xf0]  ;;  %v2196_v52 = vor.u32 %v2555_v47, %v2193_v49  ;;  %v2179_v54 = vld [vmem:[%s3593_s2 + $0x48] sm:$0xf]  ;;  %vm790_vm9 = vcmask 64512  }
  0x17   : > { %v2200_v53 = vor.u32 %v2557_v51, %v2199_v50  ;;  %v2553_v55 = vld [vmem:[%s3593_s2 + $0x50] sm:$0xf0]  ;;  %v2552_v56 = vld [vmem:[%s3593_s2 + $0x4c] sm:$0xf]  ;;  %v2181_v58 = vld [vmem:[%s3593_s2 + $0x54] sm:$0xf0] }
  0x18   : > { %v501_v7 = vmul.f32 %v2694_v4, %v500_v6  ;;  %722 = vmatpush.bf16.msra.mxu0 %v2204_v39  ;;  %v2180_v57 = vor.u32 %v2553_v55, %v2179_v54  ;;  %v2187_v59 = vld [vmem:[%s3593_s2 + $0x50] sm:$0xf]  ;;  %v2554_v60 = vld [vmem:[%s3593_s2 + $0x58] sm:$0xf0]  ;;  %v2184_v61 = vor.u32 %v2552_v56, %v2181_v58  ;;  %v2549_v3 = vld [vmem:[%s3593_s2 + $0x34] sm:$0xf] }
  0x19   : > { %736 = vmatpush.bf16.msra.mxu1 %v2208_v43  ;;  %v2188_v62 = vor.u32 %v2554_v60, %v2187_v59  ;;  %v2167_v63 = vld [vmem:[%s3593_s2 + $0x30] sm:$0xf]  ;;  %v2550_v0 = vld [vmem:[%s3593_s2 + $0x38] sm:$0xf0]  ;;  %v2169_v5 = vld [vmem:[%s3593_s2 + $0x3c] sm:$0xf0] }
  0x1a   : > { %v502_v8 = vadd.f32 %v2694_v4, %v501_v7  ;;  %750 = vmatpush.bf16.msra.mxu2 %v2212_v44  ;;  %v2175_v6 = vld [vmem:[%s3593_s2 + $0x38] sm:$0xf]  ;;  %v2551_v7 = vld [vmem:[%s3593_s2 + $0x40] sm:$0xf0]  ;;  %v2163_v18 = vld [vmem:[%s3593_s2 + $0x20] sm:$0xf] }
  0x1b   : > { %v2548_v19 = vld [vmem:[%s3593_s2 + $0x28] sm:$0xf0]  ;;  %v2143_v22 = vld [vmem:[%s3593_s2] sm:$0xf]  ;;  %v2543_v24 = vld [vmem:[%s3593_s2 + $0x4] sm:$0xf] }
  0x1c   : > { %v2898_v9 = vsel %vm503_vm0, %v2694_v4, %v502_v8  ;;  %723 = vmatpush.bf16.msra.mxu0 %v2192_v48  ;;  %v2168_v4 = vor.u32 %v2550_v0, %v2167_v63  ;;  %v2172_v8 = vor.u32 %v2549_v3, %v2169_v5  ;;  %v2164_v21 = vor.u32 %v2548_v19, %v2163_v18  ;;  %v2544_v23 = vld [vmem:[%s3593_s2 + $0x8] sm:$0xf0]  ;;  %v2145_v27 = vld [vmem:[%s3593_s2 + $0xc] sm:$0xf0]  ;;  %v2151_v28 = vld [vmem:[%s3593_s2 + $0x8] sm:$0xf] }
  0x1d   : > { %496 = vadd.xlane.f32.xlu0 %v2895_v2  ;;  %737 = vmatpush.bf16.msra.mxu1 %v2196_v52  ;;  %v2144_v26 = vor.u32 %v2544_v23, %v2143_v22  ;;  %v2545_v29 = vld [vmem:[%s3593_s2 + $0x10] sm:$0xf0]  ;;  %v2148_v31 = vor.u32 %v2543_v24, %v2145_v27  ;;  %v2686_v50 = vld [vmem:[%s3597_s6] ss:$0 sm:$0xff]  ;;  %vm1013_vm10 = vcmask 523264   ;;  %vm1015_vm11 = vcmask 785408  }
  0x1e   : > { %751 = vmatpush.bf16.msra.mxu2 %v2200_v53  ;;  %v2152_v32 = vor.u32 %v2545_v29, %v2151_v28  ;;  %v2687_v55 = vld [vmem:[%s3598_s7] ss:$0 sm:$0xff] }
  0x1f   : > { %v3102_v27 = vld [vmem:[%s3592_s1] ss:$0 sm:$0xff] }
  0x20   : > { %724 = vmatpush.bf16.msra.mxu0 %v2180_v57 }
  0x21   : > { %738 = vmatpush.bf16.msra.mxu1 %v2184_v61 }
  0x22   : > { %752 = vmatpush.bf16.msra.mxu2 %v2188_v62 }
  0x24   : > { %725 = vmatpush.bf16.msra.mxu0 %v2168_v4 }
  0x25   : > { %739 = vmatpush.bf16.msra.mxu1 %v2172_v8 }
  0x88   : > { %v495_v10 = vpop.xlane.xlu0 %494 }
  0x89   : > { %v505_v11 = vmul.f32 %v2898_v9, %v495_v10  ;;  %v2176_v10 = vor.u32 %v2551_v7, %v2175_v6 }
  0x8b   : > { %v2902_v12 = vsub.f32 %v2892_v1, %v505_v11  ;;  %753 = vmatpush.bf16.msra.mxu2 %v2176_v10  ;;  %v2155_v11 = vld [vmem:[%s3593_s2 + $0x18] sm:$0xf] }
  0x8d   : > { %v509_v13 = vmul.f32 %v2902_v12, %v2902_v12 }
  0x8f   : > { %511 = vadd.xlane.f32.xlu1 %v509_v13  ;;  %v2547_v13 = vld [vmem:[%s3593_s2 + $0x20] sm:$0xf0]  ;;  %754 = vmatpush.bf16.msra.mxu2 %v2164_v21 }
  0x90   : > { %v497_v14 = vpop.xlane.xlu0 %496 }
  0x91   : > { %v506_v15 = vmul.f32 %v2898_v9, %v497_v14  ;;  %v2546_v14 = vld [vmem:[%s3593_s2 + $0x1c] sm:$0xf] }
  0x93   : > { %v2908_v16 = vsub.f32 %v2895_v2, %v506_v15  ;;  %v2156_v15 = vor.u32 %v2547_v13, %v2155_v11  ;;  %755 = vmatpush.bf16.msra.mxu2 %v2152_v32 }
  0x95   : > { %v510_v17 = vmul.f32 %v2908_v16, %v2908_v16  ;;  %726 = vmatpush.bf16.msra.mxu0 %v2156_v15 }
  0x97   : > { %513 = vadd.xlane.f32.xlu1 %v510_v17  ;;  %v2157_v17 = vld [vmem:[%s3593_s2 + $0x24] sm:$0xf0] }
  0x98   : > { %v2160_v20 = vor.u32 %v2546_v14, %v2157_v17 }
  0x99   : > { %727 = vmatpush.bf16.msra.mxu0 %v2144_v26 }
  0x9a   : > { %740 = vmatpush.bf16.msra.mxu1 %v2160_v20 }
  0x9e   : > { %741 = vmatpush.bf16.msra.mxu1 %v2148_v31 }
 0x102   : > { %v512_v25 = vpop.xlane.xlu1 %511 }
 0x103   : > { %v515_v30 = vmul.f32 %v512_v25, %v2898_v9 }
 0x105   : > { %v517_v33 = vadd.f32 1e-06, %v515_v30 }
 0x107   : > { %2695 = vrsqrt.f32 %v517_v33  ;;  %vm525_vm2 = vweird.f32 %v517_v33 }
 0x10a   : > { %v514_v34 = vpop.xlane.xlu1 %513 }
 0x10b   : > { %v516_v35 = vmul.f32 %v514_v34, %v2898_v9 }
 0x10d   : > { %v2696_v36 = vpop.eup %2695  ;;  %v518_v37 = vadd.f32 1e-06, %v516_v35 }
 0x10e   : > { %v520_v38 = vmul.f32 %v2696_v36, %v517_v33  ;;  %vm526_vm1 = vweird.f32 %v2696_v36 }
 0x10f   : > { %2697 = vrsqrt.f32 %v518_v37  ;;  %vm527_vm3 = vmor %vm525_vm2, %vm526_vm1  ;;  %vm535_vm5 = vweird.f32 %v518_v37 }
 0x110   : > { %v521_v39 = vmul.f32 %v2696_v36, %v520_v38 }
 0x112   : > { %v522_v40 = vmul.f32 0.5, %v521_v39 }
 0x114   : > { %v523_v41 = vsub.f32 1.5, %v522_v40 }
 0x115   : > { %v2698_v42 = vpop.eup %2697 }
 0x116   : > { %v524_v43 = vmul.f32 %v2696_v36, %v523_v41  ;;  %v530_v44 = vmul.f32 %v2698_v42, %v518_v37  ;;  %vm536_vm4 = vweird.f32 %v2698_v42 }
 0x117   : > { %vm537_vm6 = vmor %vm535_vm5, %vm536_vm4 }
 0x118   : > { %v531_v45 = vmul.f32 %v2698_v42, %v530_v44  ;;  %v528_v46 = vsel %vm527_vm3, %v2696_v36, %v524_v43 }
 0x119   : > { %v539_v49 = vmul.f32 %v528_v46, %v2902_v12  ;;  %v3069_v12 = vld [vmem:[%s3594_s3] sm:$0x7] }
 0x11a   : > { %v532_v47 = vmul.f32 0.5, %v531_v45  ;;  %v586_v60 = vperm.slane %v3069_v12, 0  ;;  %v588_v5 = vperm.slane %v3069_v12, 2 }
 0x11b   : > { %v544_v54 = vmul.f32 %v2686_v50, %v539_v49 }
 0x11c   : > { %v533_v48 = vsub.f32 1.5, %v532_v47 }
 0x11d   : > { %v549_v57 = vadd.f32 %v2687_v55, %v544_v54 }
 0x11e   : > { %v534_v51 = vmul.f32 %v2698_v42, %v533_v48 }
 0x120   : > { %v538_v52 = vsel %vm537_vm6, %v2698_v42, %v534_v51 }
 0x121   : > { %v540_v53 = vmul.f32 %v538_v52, %v2908_v16  ;;  %v587_v16 = vperm.slane %v3069_v12, 1 }
 0x123   : > { %v545_v56 = vmul.f32 %v2686_v50, %v540_v53 }
 0x125   : > { %v550_v58 = vadd.f32 %v2687_v55, %v545_v56 }
 0x127   : > { %v583_v59 = vpack.c.bf16 %v550_v58, %v549_v57 }
 0x129   : > { %728 = vmatmul.bf16.vlgmr.msra.gmra.mxu0 %v583_v59  ;;  %742 = vmatmul.bf16.vlgmr.msra.gmra.mxu1 %v583_v59 }
 0x12a   : > { %756 = vmatmul.bf16.vlgmr.msra.gmra.mxu2 %v583_v59 }
 0x1a6   : > { %v729_v61 = vpop.f32.mrf.mxu0  ;;  %v743_v62 = vpop.f32.mrf.mxu1 }
 0x1a7   : > { %v730_v63 = vadd.f32 %v729_v61, %v586_v60  ;;  %v744_v0 = vadd.f32 %v743_v62, %v587_v16 }
 0x1a9   : > { %v3073_v3 = vpack.c.bf16 %v730_v63, %v730_v63  ;;  %v763_v4 = vpack.c.bf16 %v744_v0, %v744_v0 }
 0x1ab   : > { %827 = vrot.lane.b32.xlu0 %v763_v4, %s2795_s23  ;;  %824 = vrot.lane.b32.xlu1 %v3073_v3, %s2795_s23  ;;  %v770_v6 = vsel %vm765_vm7, %v763_v4, 0 }
 0x1ac   : > { %779 = vmatpush.bf16.xpose.msra.mxu3 %v770_v6 }
 0x1ad   : > { %v757_v7 = vpop.f32.mrf.mxu2 }
 0x1ae   : > { %v758_v8 = vadd.f32 %v757_v7, %v588_v5  ;;  %v745_v10 = vpop.f32.mrf.mxu1  ;;  %v731_v17 = vpop.f32.mrf.mxu0 }
 0x1af   : > { %v746_v11 = vadd.f32 %v745_v10, %v587_v16  ;;  %v732_v19 = vadd.f32 %v731_v17, %v586_v60 }
 0x1b0   : > { %v3082_v13 = vpack.c.bf16 %v758_v8, %v758_v8 }
 0x1b1   : > { %v1018_v14 = vpack.c.bf16 %v746_v11, %v746_v11  ;;  %v1017_v20 = vpack.c.bf16 %v732_v19, %v732_v19 }
 0x1b2   : > { %v808_v15 = vsel %vm806_vm8, %v3082_v13, 0 }
 0x1b3   : > { %944 = vrot.lane.b32.xlu0 %v763_v4, %s2796_s24  ;;  %v1024_v18 = vsel %vm765_vm7, %v1018_v14, 0  ;;  %942 = vrot.lane.b32.xlu1 %v3073_v3, %s2796_s24 }
 0x1b4   : > { %817 = vmatpush.bf16.msrb.mxu3 %v808_v15  ;;  %1033 = vmatpush.bf16.xpose.msrb.mxu1 %v1024_v18 }
 0x1b5   : > { %2237 = vmatmul.msk.bf16.vlgmr.msra.gmra.mxu3 %vm765_vm7, %v3073_v3  ;;  %v3128_v59 = vpop.f32.mrf.mxu2 }
 0x1bb   : > { %1076 = vrot.lane.b32.xlu0 %v1018_v14, %s2795_s23  ;;  %2245 = vmatmul.msk.bf16.vlgmr.msrb.gmra.mxu1 %vm765_vm7, %v1017_v20 }
 0x1bc   : > { %1135 = vrot.lane.b32.xlu1 %v1018_v14, %s2797_s25 }
 0x1c3   : > { %1193 = vrot.lane.b32.xlu0 %v1018_v14, %s2796_s24 }
 0x1c4   : > { %1191 = vrot.lane.b32.xlu1 %v1017_v20, %s2796_s24 }
 0x21d   : > { %v828_v21 = vpop.permute.xlu0 %827  ;;  %v825_v22 = vpop.permute.xlu1 %824 }
 0x21e   : > { %v833_v23 = vsel %vm765_vm7, %v828_v21, 0 }
 0x21f   : > { %842 = vmatpush.bf16.xpose.msra.mxu3 %v833_v23 }
 0x225   : > { %v943_v24 = vpop.permute.xlu1 %942  ;;  %v945_v49 = vpop.permute.xlu0 %944 }
 0x226   : > { %v950_v51 = vsel %vm765_vm7, %v945_v49, 0 }
 0x22d   : > { %v1077_v54 = vpop.permute.xlu0 %1076 }
 0x22e   : > { %v1136_v25 = vpop.permute.xlu1 %1135  ;;  %v1082_v55 = vsel %vm765_vm7, %v1077_v54, 0 }
 0x22f   : > { %v1141_v26 = vsel %vm765_vm7, %v1136_v25, 0 }
 0x230   : > { %1150 = vmatpush.bf16.xpose.msra.mxu1 %v1141_v26 }
 0x235   : > { %v1194_v56 = vpop.permute.xlu0 %1193 }
 0x236   : > { %v1199_v57 = vsel %vm765_vm7, %v1194_v56, 0  ;;  %v1192_v58 = vpop.permute.xlu1 %1191 }
 0x238   : > { %v781_v28 = vpop.f32.mrf.mxu3  ;;  %v1035_v30 = vpop.f32.mrf.mxu1 }
 0x239   : > { %v785_v29 = vmul.f32 0.17677669, %v781_v28  ;;  %v1039_v31 = vmul.f32 0.17677669, %v1035_v30 }
 0x23b   : > { %v789_v32 = vadd.f32 %v3102_v27, %v785_v29  ;;  %v3107_v34 = vadd.f32 %v3102_v27, %v1039_v31 }
 0x23d   : > { %v791_v33 = vsel %vm790_vm9, %v789_v32, -inf  ;;  %v1041_v35 = vsel %vm790_vm9, %v3107_v34, -inf }
 0x23e   : > { %792 = vmax.xlane.f32.xlu2 %v791_v33  ;;  %1042 = vmax.xlane.f32.xlu0 %v1041_v35 }
 0x240   : > { %v783_v36 = vpop.f32.mrf.mxu3  ;;  %v1037_v37 = vpop.f32.mrf.mxu1 }
 0x256   : > { %886 = vrot.lane.b32.xlu2 %v763_v4, %s2797_s25 }
 0x2b1   : > { %v793_v38 = vpop.xlane.xlu2 %792 }
 0x2b2   : > { %v794_v39 = vsub.f32 %v789_v32, %v793_v38  ;;  %v1043_v32 = vpop.xlane.xlu0 %1042 }
 0x2b3   : > { %v1044_v33 = vsub.f32 %v3107_v34, %v1043_v32 }
 0x2b4   : > { %v795_v40 = vmul.f32 1.442695, %v794_v39 }
 0x2b5   : > { %v1045_v35 = vmul.f32 1.442695, %v1044_v33 }
 0x2b6   : > { %2699 = vpow2.f32 %v795_v40 }
 0x2b9   : > { %v887_v41 = vpop.permute.xlu2 %886 }
 0x2ba   : > { %v892_v42 = vsel %vm765_vm7, %v887_v41, 0 }
 0x2bb   : > { %901 = vmatpush.bf16.xpose.msrb.mxu2 %v892_v42 }
 0x2bc   : > { %v2700_v43 = vpop.eup %2699 }
 0x2bd   : > { %v797_v44 = vsel %vm790_vm9, %v2700_v43, 0.0 }
 0x2be   : > { %798 = vadd.xlane.f32.xlu2 %v797_v44 }
 0x2d6   : > { %884 = vrot.lane.b32.xlu2 %v3073_v3, %s2797_s25 }
 0x2de   : > { %1073 = vrot.lane.b32.xlu2 %v1017_v20, %s2795_s23 }
 0x2e6   : > { %1133 = vrot.lane.b32.xlu2 %v1017_v20, %s2797_s25 }
 0x331   : > { %v799_v45 = vpop.xlane.xlu2 %798 }
 0x332   : > { %2701 = vrcp.f32 %v799_v45 }
 0x333   : > { %2703 = vpow2.f32 %v1045_v35 }
 0x338   : > { %v2702_v46 = vpop.eup %2701 }
 0x339   : > { %v801_v47 = vmul.f32 %v2702_v46, %v2700_v43  ;;  %v885_v48 = vpop.permute.xlu2 %884  ;;  %v3150_v36 = vpop.eup %2703 }
 0x33a   : > { %2241 = vmatmul.msk.bf16.vlgmr.msrb.gmra.mxu2 %vm765_vm7, %v885_v48  ;;  %v1047_v37 = vsel %vm790_vm9, %v3150_v36, 0.0 }
 0x33b   : > { %v802_v50 = vpack.c.bf16 %v801_v47, %v801_v47 }
 0x33d   : > { %2238 = vmatmul.msk.bf16.vlgmr.msrb.gmra.mxu3 %vm790_vm9, %v802_v50 }
 0x33e   : > { %959 = vmatpush.bf16.xpose.msrb.mxu3 %v950_v51 }
 0x341   : > { %v1074_v52 = vpop.permute.xlu2 %1073 }
 0x349   : > { %v1134_v53 = vpop.permute.xlu2 %1133 }
 0x34a   : > { %2249 = vmatmul.msk.bf16.vlgmr.msra.gmra.mxu1 %vm765_vm7, %v1134_v53 }
 0x34d   : > { %2239 = vmatmul.msk.bf16.vlgmr.msra.gmra.mxu3 %vm765_vm7, %v825_v22 }
 0x34e   : > { %1091 = vmatpush.bf16.xpose.msra.mxu3 %v1082_v55 }
 0x35d   : > { %2243 = vmatmul.msk.bf16.vlgmr.msrb.gmra.mxu3 %vm765_vm7, %v943_v24 }
 0x35e   : > { %1208 = vmatpush.bf16.xpose.msrb.mxu3 %v1199_v57 }
 0x36d   : > { %2247 = vmatmul.msk.bf16.vlgmr.msra.gmra.mxu3 %vm765_vm7, %v1074_v52 }
 0x37d   : > { %2251 = vmatmul.msk.bf16.vlgmr.msrb.gmra.mxu3 %vm765_vm7, %v1192_v58 }
 0x3bd   : > { %v903_v60 = vpop.f32.mrf.mxu2 }
 0x3be   : > { %v907_v16 = vmul.f32 0.17677669, %v903_v60 }
 0x3c0   : > { %v3130_v61 = vpop.f32.mrf.mxu3  ;;  %v908_v62 = vadd.f32 %v3102_v27, %v907_v16 }
 0x3c2   : > { %v909_v63 = vsel %vm790_vm9, %v908_v62, -inf }
 0x3c3   : > { %910 = vmax.xlane.f32.xlu2 %v909_v63 }
 0x3c5   : > { %v905_v0 = vpop.f32.mrf.mxu2 }
 0x3c7   : > { %v1152_v3 = vpop.f32.mrf.mxu1 }
 0x3c8   : > { %v1156_v4 = vmul.f32 0.17677669, %v1152_v3  ;;  %v821_v6 = vpop.f32.mrf.mxu3 }
 0x3ca   : > { %v3135_v7 = vadd.f32 %v3102_v27, %v1156_v4 }
 0x3cc   : > { %v1158_v8 = vsel %vm790_vm9, %v3135_v7, -inf }
 0x3cd   : > { %1159 = vmax.xlane.f32.xlu1 %v1158_v8 }
 0x3cf   : > { %v1154_v10 = vpop.f32.mrf.mxu1 }
 0x3d0   : > { %v844_v11 = vpop.f32.mrf.mxu3 }
 0x3d1   : > { %v848_v14 = vmul.f32 0.17677669, %v844_v11 }
 0x3d3   : > { %v849_v15 = vadd.f32 %v3102_v27, %v848_v14 }
 0x3d5   : > { %v850_v17 = vsel %vm790_vm9, %v849_v15, -inf }
 0x3d6   : > { %851 = vmax.xlane.f32.xlu0 %v850_v17 }
 0x3d8   : > { %v846_v18 = vpop.f32.mrf.mxu3 }
 0x3e0   : > { %v961_v19 = vpop.f32.mrf.mxu3 }
 0x3e1   : > { %v965_v20 = vmul.f32 0.17677669, %v961_v19 }
 0x3e3   : > { %v966_v21 = vadd.f32 %v3102_v27, %v965_v20 }
 0x3e5   : > { %v967_v22 = vsel %vm790_vm9, %v966_v21, -inf }
 0x3e6   : > { %968 = vmax.xlane.f32.xlu1 %v967_v22 }
 0x3e8   : > { %v963_v23 = vpop.f32.mrf.mxu3 }
 0x3f0   : > { %v1093_v24 = vpop.f32.mrf.mxu3 }
 0x3f1   : > { %v1097_v25 = vmul.f32 0.17677669, %v1093_v24 }
 0x3f3   : > { %v1098_v26 = vadd.f32 %v3102_v27, %v1097_v25 }
 0x3f5   : > { %v1099_v28 = vsel %vm790_vm9, %v1098_v26, -inf }
 0x3f6   : > { %1100 = vmax.xlane.f32.xlu2 %v1099_v28 }
 0x3f8   : > { %v1095_v29 = vpop.f32.mrf.mxu3 }
 0x3ff   : > { %863 = vrot.lane.b32.xlu1 %v3082_v13, %s2795_s23 }
 0x400   : > { %v1210_v30 = vpop.f32.mrf.mxu3 }
 0x401   : > { %v1214_v42 = vmul.f32 0.17677669, %v1210_v30 }
 0x403   : > { %v1215_v44 = vadd.f32 %v3102_v27, %v1214_v42 }
 0x405   : > { %v1216_v46 = vsel %vm790_vm9, %v1215_v44, -inf }
 0x408   : > { %v1212_v31 = vpop.f32.mrf.mxu3 }
 0x40e   : > { %979 = vrot.lane.b32.xlu2 %v3082_v13, %s2796_s24 }
 0x429   : > { %1048 = vadd.xlane.f32.xlu1 %v1047_v37 }
 0x436   : > { %v911_v38 = vpop.xlane.xlu2 %910 }
 0x437   : > { %v912_v39 = vsub.f32 %v908_v62, %v911_v38  ;;  %v760_v62 = vadd.f32 %v3128_v59, %v588_v5 }
 0x439   : > { %v913_v40 = vmul.f32 1.442695, %v912_v39 }
 0x43b   : > { %2705 = vpow2.f32 %v913_v40 }
 0x440   : > { %v1160_v48 = vpop.xlane.xlu1 %1159 }
 0x441   : > { %v2706_v41 = vpop.eup %2705  ;;  %v1161_v4 = vsub.f32 %v3135_v7, %v1160_v48 }
 0x442   : > { %v915_v43 = vsel %vm790_vm9, %v2706_v41, 0.0 }
 0x443   : > { %916 = vadd.xlane.f32.xlu0 %v915_v43  ;;  %v1162_v6 = vmul.f32 1.442695, %v1161_v4 }
 0x449   : > { %v852_v34 = vpop.xlane.xlu0 %851 }
 0x44a   : > { %v853_v45 = vsub.f32 %v849_v15, %v852_v34 }
 0x44b   : > { %1217 = vmax.xlane.f32.xlu0 %v1216_v46 }
 0x44c   : > { %v854_v47 = vmul.f32 1.442695, %v853_v45 }
 0x44e   : > { %2707 = vpow2.f32 %v854_v47 }
 0x454   : > { %v2708_v49 = vpop.eup %2707 }
 0x455   : > { %v856_v50 = vsel %vm790_vm9, %v2708_v49, 0.0 }
 0x456   : > { %857 = vadd.xlane.f32.xlu2 %v856_v50 }
 0x459   : > { %v969_v51 = vpop.xlane.xlu1 %968 }
 0x45a   : > { %v970_v52 = vsub.f32 %v966_v21, %v969_v51 }
 0x45c   : > { %v971_v53 = vmul.f32 1.442695, %v970_v52 }
 0x45e   : > { %2709 = vpow2.f32 %v971_v53 }
 0x45f   : > { %921 = vrot.lane.b32.xlu0 %v3082_v13, %s2797_s25  ;;  %v1019_v13 = vpack.c.bf16 %v760_v62, %v760_v62 }
 0x461   : > { %v1057_v23 = vsel %vm806_vm8, %v1019_v13, 0 }
 0x464   : > { %v2710_v27 = vpop.eup %2709 }
 0x465   : > { %v973_v54 = vsel %vm790_vm9, %v2710_v27, 0.0 }
 0x466   : > { %974 = vadd.xlane.f32.xlu2 %v973_v54 }
 0x469   : > { %v1101_v55 = vpop.xlane.xlu2 %1100 }
 0x46a   : > { %v1102_v16 = vsub.f32 %v1098_v26, %v1101_v55 }
 0x46c   : > { %v1103_v63 = vmul.f32 1.442695, %v1102_v16 }
 0x46e   : > { %2711 = vpow2.f32 %v1103_v63 }
 0x46f   : > { %2713 = vpow2.f32 %v1162_v6 }
 0x471   : > { %v864_v56 = vpop.permute.xlu1 %863  ;;  %v980_v57 = vpop.permute.xlu2 %979 }
 0x472   : > { %v985_v58 = vsel %vm806_vm8, %v980_v57, 0  ;;  %v869_v60 = vsel %vm806_vm8, %v864_v56, 0 }
 0x473   : > { %878 = vmatpush.bf16.msrb.mxu0 %v869_v60 }
 0x474   : > { %v2712_v0 = vpop.eup %2711 }
 0x475   : > { %v1105_v3 = vsel %vm790_vm9, %v2712_v0, 0.0  ;;  %v2714_v8 = vpop.eup %2713 }
 0x476   : > { %v1164_v12 = vsel %vm790_vm9, %v2714_v8, 0.0 }
 0x477   : > { %994 = vmatpush.bf16.msra.mxu0 %v985_v58 }
 0x47e   : > { %1112 = vrot.lane.b32.xlu2 %v1019_v13, %s2795_s23 }
 0x489   : > { %1106 = vadd.xlane.f32.xlu0 %v1105_v3 }
 0x49c   : > { %v1049_v25 = vpop.xlane.xlu1 %1048 }
 0x49d   : > { %1170 = vrot.lane.b32.xlu0 %v1019_v13, %s2797_s25 }
 0x4a7   : > { %1165 = vadd.xlane.f32.xlu2 %v1164_v12  ;;  %v2574_v12 = vld [vmem:[%s3595_s4 + $0x38] sm:$0xff] }
 0x4a8   : > { %1329 = vmatpush.bf16.msrb.mxu1 %v2574_v12  ;;  %v2367_v12 = vld [vmem:[%s3601_s10 + $0xa0] sm:$0xf] }
 0x4b6   : > { %v917_v5 = vpop.xlane.xlu0 %916 }
 0x4be   : > { %v1218_v59 = vpop.xlane.xlu0 %1217 }
 0x4bf   : > { %v1219_v10 = vsub.f32 %v1215_v44, %v1218_v59  ;;  %v2572_v59 = vld [vmem:[%s3595_s4 + $0x28] sm:$0xff] }
 0x4c1   : > { %v1220_v11 = vmul.f32 1.442695, %v1219_v10  ;;  %v2571_v10 = vld [vmem:[%s3595_s4 + $0x20] sm:$0xff] }
 0x4c3   : > { %2715 = vpow2.f32 %v1220_v11  ;;  %v2570_v11 = vld [vmem:[%s3595_s4 + $0x18] sm:$0xff] }
 0x4c4   : > { %2717 = vrcp.f32 %v917_v5  ;;  %v2573_v5 = vld [vmem:[%s3595_s4 + $0x30] sm:$0xff] }
 0x4c5   : > { %1330 = vmatpush.bf16.msrb.mxu1 %v2573_v5  ;;  %v2597_v5 = vld [vmem:[%s3601_s10 + $0xac] sm:$0xf0] }
 0x4c9   : > { %v2716_v14 = vpop.eup %2715  ;;  %v858_v15 = vpop.xlane.xlu2 %857  ;;  %1331 = vmatpush.bf16.msrb.mxu1 %v2572_v59  ;;  %v2595_v59 = vld [vmem:[%s3601_s10 + $0xa4] sm:$0xf] }
 0x4ca   : > { %2719 = vrcp.f32 %v858_v15  ;;  %v1222_v17 = vsel %vm790_vm9, %v2716_v14, 0.0  ;;  %v2718_v7 = vpop.eup %2717  ;;  %v2568_v15 = vld [vmem:[%s3595_s4 + $0x8] sm:$0xff] }
 0x4cb   : > { %1223 = vadd.xlane.f32.xlu1 %v1222_v17  ;;  %v919_v19 = vmul.f32 %v2718_v7, %v2706_v41  ;;  %2721 = vrcp.f32 %v1049_v25  ;;  %v2567_v17 = vld [vmem:[%s3595_s4] sm:$0xff] }
 0x4cd   : > { %v920_v26 = vpack.c.bf16 %v919_v19, %v919_v19  ;;  %1332 = vmatpush.bf16.msrb.mxu1 %v2571_v10  ;;  %v2368_v10 = vor.u32 %v2597_v5, %v2367_v12  ;;  %v2313_v12 = vld [vmem:[%s3601_s10 + $0x38] sm:$0xf0]  ;;  %v2287_v5 = vld [vmem:[%s3601_s10] sm:$0xf] }
 0x4d0   : > { %v2720_v18 = vpop.eup %2719 }
 0x4d1   : > { %v860_v20 = vmul.f32 %v2720_v18, %v2708_v49  ;;  %v922_v21 = vpop.permute.xlu0 %921  ;;  %v2722_v29 = vpop.eup %2721  ;;  %1333 = vmatpush.bf16.msrb.mxu1 %v2570_v11  ;;  %v2369_v11 = vld [vmem:[%s3601_s10 + $0xb0] sm:$0xf0] }
 0x4d2   : > { %v927_v22 = vsel %vm806_vm8, %v922_v21, 0  ;;  %v1051_v31 = vmul.f32 %v2722_v29, %v3150_v36 }
 0x4d3   : > { %936 = vmatpush.bf16.msra.mxu2 %v927_v22  ;;  %v861_v24 = vpack.c.bf16 %v860_v20, %v860_v20 }
 0x4d4   : > { %v1052_v38 = vpack.c.bf16 %v1051_v31, %v1051_v31 }
 0x4d5   : > { %2240 = vmatmul.msk.bf16.vlgmr.msrb.gmra.mxu0 %vm790_vm9, %v861_v24 }
 0x4d6   : > { %2242 = vmatmul.msk.bf16.vlgmr.msra.gmra.mxu2 %vm790_vm9, %v920_v26 }
 0x4d7   : > { %1066 = vmatpush.bf16.msrb.mxu2 %v1057_v23 }
 0x4d9   : > { %v975_v28 = vpop.xlane.xlu2 %974 }
 0x4da   : > { %2723 = vrcp.f32 %v975_v28 }
 0x4e0   : > { %v2724_v30 = vpop.eup %2723 }
 0x4e1   : > { %v977_v32 = vmul.f32 %v2724_v30, %v2710_v27  ;;  %v1113_v33 = vpop.permute.xlu2 %1112 }
 0x4e2   : > { %v1118_v35 = vsel %vm806_vm8, %v1113_v33, 0 }
 0x4e3   : > { %v978_v37 = vpack.c.bf16 %v977_v32, %v977_v32  ;;  %1127 = vmatpush.bf16.msrb.mxu0 %v1118_v35  ;;  %v2689_v35 = vld [vmem:[%s3596_s5] ss:$0 sm:$0xff] }
 0x4e4   : > { %1228 = vrot.lane.b32.xlu1 %v1019_v13, %s2796_s24 }
 0x4e5   : > { %2244 = vmatmul.msk.bf16.vlgmr.msra.gmra.mxu0 %vm790_vm9, %v978_v37 }
 0x4e6   : > { %2246 = vmatmul.msk.bf16.vlgmr.msrb.gmra.mxu2 %vm790_vm9, %v1052_v38 }
 0x4fc   : > { %v1107_v39 = vpop.xlane.xlu0 %1106 }
 0x4fd   : > { %2725 = vrcp.f32 %v1107_v39 }
 0x503   : > { %v2726_v40 = vpop.eup %2725 }
 0x504   : > { %v1109_v41 = vmul.f32 %v2726_v40, %v2712_v0 }
 0x506   : > { %v1110_v42 = vpack.c.bf16 %v1109_v41, %v1109_v41 }
 0x508   : > { %2248 = vmatmul.msk.bf16.vlgmr.msrb.gmra.mxu0 %vm790_vm9, %v1110_v42 }
 0x50f   : > { %v1171_v36 = vpop.permute.xlu0 %1170 }
 0x510   : > { %v1176_v43 = vsel %vm806_vm8, %v1171_v36, 0 }
 0x511   : > { %1185 = vmatpush.bf16.msra.mxu2 %v1176_v43 }
 0x51a   : > { %v1166_v44 = vpop.xlane.xlu2 %1165 }
 0x51b   : > { %2727 = vrcp.f32 %v1166_v44 }
 0x521   : > { %v2728_v34 = vpop.eup %2727 }
 0x522   : > { %v1168_v45 = vmul.f32 %v2728_v34, %v2714_v8 }
 0x524   : > { %v1169_v46 = vpack.c.bf16 %v1168_v45, %v1168_v45 }
 0x526   : > { %2250 = vmatmul.msk.bf16.vlgmr.msra.gmra.mxu2 %vm790_vm9, %v1169_v46  ;;  %v2399_v46 = vld [vmem:[%s3601_s10 + $0xe0] sm:$0xf] }
 0x53e   : > { %v1224_v47 = vpop.xlane.xlu1 %1223 }
 0x53f   : > { %2729 = vrcp.f32 %v1224_v47  ;;  %v2605_v47 = vld [vmem:[%s3601_s10 + $0xec] sm:$0xf0] }
 0x545   : > { %v2730_v48 = vpop.eup %2729 }
 0x546   : > { %v1226_v50 = vmul.f32 %v2730_v48, %v2716_v14  ;;  %v2569_v14 = vld [vmem:[%s3595_s4 + $0x10] sm:$0xff]  ;;  %v2603_v48 = vld [vmem:[%s3601_s10 + $0xe4] sm:$0xf] }
 0x547   : > { %1334 = vmatpush.bf16.msrb.mxu1 %v2569_v14  ;;  %v2375_v14 = vld [vmem:[%s3601_s10 + $0xa8] sm:$0xf] }
 0x548   : > { %v1227_v53 = vpack.c.bf16 %v1226_v50, %v1226_v50  ;;  %v2401_v50 = vld [vmem:[%s3601_s10 + $0xf0] sm:$0xf0] }
 0x54b   : > { %1335 = vmatpush.bf16.msrb.mxu1 %v2568_v15  ;;  %v2598_v15 = vld [vmem:[%s3601_s10 + $0xb4] sm:$0xf0] }
 0x54f   : > { %1336 = vmatpush.bf16.msrb.mxu1 %v2567_v17  ;;  %v2372_v17 = vor.u32 %v2595_v59, %v2369_v11  ;;  %v2577_v11 = vld [vmem:[%s3601_s10 + $0xc] sm:$0xf0] }
 0x552   : > { %v880_v49 = vpop.f32.mrf.mxu0 }
 0x556   : > { %v1229_v51 = vpop.permute.xlu1 %1228 }
 0x557   : > { %v1234_v52 = vsel %vm806_vm8, %v1229_v51, 0  ;;  %v2407_v51 = vld [vmem:[%s3601_s10 + $0xe8] sm:$0xf] }
 0x558   : > { %1243 = vmatpush.bf16.msra.mxu0 %v1234_v52  ;;  %v2606_v52 = vld [vmem:[%s3601_s10 + $0xf4] sm:$0xf0] }
 0x559   : > { %v938_v27 = vpop.f32.mrf.mxu2 }
 0x55a   : > { %v882_v54 = vpop.f32.mrf.mxu0 }
 0x55b   : > { %2252 = vmatmul.msk.bf16.vlgmr.msra.gmra.mxu0 %vm790_vm9, %v1227_v53  ;;  %v2404_v53 = vor.u32 %v2603_v48, %v2401_v50  ;;  %v2604_v54 = vld [vmem:[%s3601_s10 + $0xec] sm:$0xf]  ;;  %v2585_v48 = vld [vmem:[%s3601_s10 + $0x4c] sm:$0xf0] }
 0x55d   : > { %1620 = vmatpush.bf16.msra.mxu3 %v2404_v53  ;;  %v2586_v53 = vld [vmem:[%s3601_s10 + $0x54] sm:$0xf0] }
 0x561   : > { %v940_v55 = vpop.f32.mrf.mxu2 }
 0x562   : > { %v996_v56 = vpop.f32.mrf.mxu0  ;;  %v2409_v55 = vld [vmem:[%s3601_s10 + $0xf8] sm:$0xf0] }
 0x569   : > { %v1068_v57 = vpop.f32.mrf.mxu2 }
 0x56a   : > { %v998_v58 = vpop.f32.mrf.mxu0 }
 0x56b   : > { %v2601_v58 = vld [vmem:[%s3601_s10 + $0xcc] sm:$0xf0] }
 0x571   : > { %v1070_v60 = vpop.f32.mrf.mxu2 }
 0x572   : > { %v2599_v60 = vld [vmem:[%s3601_s10 + $0xc4] sm:$0xf] }
 0x585   : > { %v1129_v16 = vpop.f32.mrf.mxu0 }
 0x586   : > { %v2671_v62 = vpack.i.bf16 %v1129_v16, %v880_v49  ;;  %v2400_v49 = vor.u32 %v2605_v47, %v2399_v46  ;;  %v2319_v47 = vld [vmem:[%s3601_s10 + $0x40] sm:$0xf] }
 0x587   : > { %v2320_v50 = vor.u32 %v2585_v48, %v2319_v47  ;;  %v2691_v47 = vld [vmem:[%s3600_s9] ss:$0 sm:$0xff] }
 0x588   : > { %2672 = vrot.lane.b32.xlu2 %v2671_v62, %s2796_s24  ;;  %1606 = vmatpush.bf16.msrb.mxu2 %v2400_v49  ;;  %v2385_v62 = vld [vmem:[%s3601_s10 + $0xd0] sm:$0xf0]  ;;  %v2583_v49 = vld [vmem:[%s3601_s10 + $0x44] sm:$0xf] }
 0x58d   : > { %v1131_v63 = vpop.f32.mrf.mxu0 }
 0x58e   : > { %v2391_v63 = vld [vmem:[%s3601_s10 + $0xc8] sm:$0xf] }
 0x5a9   : > { %v1187_v13 = vpop.f32.mrf.mxu2 }
 0x5aa   : > { %v2676_v0 = vpack.i.bf16 %v1187_v13, %v938_v27  ;;  %v2408_v27 = vor.u32 %v2606_v52, %v2407_v51  ;;  %v2602_v13 = vld [vmem:[%s3601_s10 + $0xd4] sm:$0xf0]  ;;  %v2321_v51 = vld [vmem:[%s3601_s10 + $0x50] sm:$0xf0]  ;;  %v2327_v52 = vld [vmem:[%s3601_s10 + $0x48] sm:$0xf] }
 0x5ac   : > { %2677 = vrot.lane.b32.xlu0 %v2676_v0, %s2797_s25  ;;  %1634 = vmatpush.bf16.msrb.mxu0 %v2408_v27  ;;  %v2388_v0 = vor.u32 %v2599_v60, %v2385_v62  ;;  %v2324_v27 = vor.u32 %v2583_v49, %v2321_v51  ;;  %v2581_v60 = vld [vmem:[%s3601_s10 + $0x2c] sm:$0xf0]  ;;  %s484_s25 = scalar_lea.vmem %s3605_s14, %s2138_s21 }
 0x5ae   : > { %1621 = vmatpush.bf16.msra.mxu3 %v2388_v0  ;;  %v2582_v0 = vld [vmem:[%s3601_s10 + $0x34] sm:$0xf0] }
 0x5b1   : > { %v1189_v3 = vpop.f32.mrf.mxu2 }
 0x5b2   : > { %v2392_v3 = vor.u32 %v2602_v13, %v2391_v63  ;;  %1622 = vmatpush.bf16.msra.mxu3 %v2372_v17  ;;  %v2305_v63 = vld [vmem:[%s3601_s10 + $0x30] sm:$0xf0]  ;;  %v2311_v13 = vld [vmem:[%s3601_s10 + $0x28] sm:$0xf]  ;;  %v2288_v17 = vor.u32 %v2577_v11, %v2287_v5  ;;  %v2610_v5 = vld [vmem:[%s3603_s12 + $0x18] sm:$0xff] }
 0x5b3   : > { %v2632_v11 = vld [vmem:[%s3603_s12 + $0xc8] sm:$0xff] }
 0x5b4   : > { %1635 = vmatpush.bf16.msrb.mxu0 %v2392_v3 }
 0x5d8   : > { %v1245_v4 = vpop.f32.mrf.mxu0 }
 0x5d9   : > { %v2681_v6 = vpack.i.bf16 %v1245_v4, %v996_v56  ;;  %v2412_v56 = vor.u32 %v2604_v54, %v2409_v55  ;;  %v2600_v4 = vld [vmem:[%s3601_s10 + $0xcc] sm:$0xf]  ;;  %v2328_v54 = vor.u32 %v2586_v53, %v2327_v52  ;;  %v2629_v52 = vld [vmem:[%s3603_s12 + $0xb0] sm:$0xff] }
 0x5da   : > { %v2584_v55 = vld [vmem:[%s3601_s10 + $0x4c] sm:$0xf]  ;;  %v2637_v53 = vld [vmem:[%s3603_s12 + $0xf0] sm:$0xff] }
 0x5db   : > { %2682 = vrot.lane.b32.xlu1 %v2681_v6, %s2795_s23  ;;  %1648 = vmatpush.bf16.msra.mxu1 %v2412_v56  ;;  %v2393_v6 = vld [vmem:[%s3601_s10 + $0xd8] sm:$0xf0] }
 0x5dc   : > { %v2329_v56 = vld [vmem:[%s3601_s10 + $0x58] sm:$0xf0] }
 0x5e0   : > { %v1247_v8 = vpop.f32.mrf.mxu0 }
 0x5e1   : > { %v2396_v8 = vor.u32 %v2600_v4, %v2393_v6  ;;  %v2312_v6 = vor.u32 %v2582_v0, %v2311_v13  ;;  %v2626_v13 = vld [vmem:[%s3603_s12 + $0x98] sm:$0xff] }
 0x5e2   : > { %v2673_v7 = vpop.permute.xlu2 %2672  ;;  %v2634_v0 = vld [vmem:[%s3603_s12 + $0xd8] sm:$0xff] }
 0x5e3   : > { %v2675_v19 = vunpack.i.h.bf16 %v2673_v7  ;;  %v2674_v20 = vunpack.i.l.bf16 %v2673_v7  ;;  %1649 = vmatpush.bf16.msra.mxu1 %v2396_v8  ;;  %v2376_v7 = vor.u32 %v2598_v15, %v2375_v14  ;;  %v2580_v8 = vld [vmem:[%s3601_s10 + $0x2c] sm:$0xf]  ;;  %v2575_v14 = vld [vmem:[%s3601_s10 + $0x4] sm:$0xf]  ;;  %v2289_v15 = vld [vmem:[%s3601_s10 + $0x10] sm:$0xf0] }
 0x5e5   : > { %v1261_v24 = vsel %vm765_vm7, %v1068_v57, %v2675_v19  ;;  %v1012_v25 = vsel %vm765_vm7, %v3130_v61, %v2674_v20  ;;  %v2383_v57 = vld [vmem:[%s3601_s10 + $0xc0] sm:$0xf]  ;;  %v2377_v19 = vld [vmem:[%s3601_s10 + $0xb8] sm:$0xf0]  ;;  %1636 = vmatpush.bf16.msrb.mxu0 %v2376_v7  ;;  %v2292_v7 = vor.u32 %v2575_v14, %v2289_v15 }
 0x5e6   : > { %v2384_v16 = vor.u32 %v2601_v58, %v2383_v57  ;;  %v2332_v57 = vor.u32 %v2584_v55, %v2329_v56  ;;  %v2303_v58 = vld [vmem:[%s3601_s10 + $0x20] sm:$0xf]  ;;  %v2628_v55 = vld [vmem:[%s3603_s12 + $0xa8] sm:$0xff] }
 0x5e7   : > { %v2304_v62 = vor.u32 %v2581_v60, %v2303_v58  ;;  %v2636_v56 = vld [vmem:[%s3603_s12 + $0xe8] sm:$0xff]  ;;  %v2621_v58 = vld [vmem:[%s3603_s12 + $0x70] sm:$0xff]  ;;  %v2627_v60 = vld [vmem:[%s3603_s12 + $0xa0] sm:$0xff] }
 0x5e8   : > { %1607 = vmatpush.bf16.msrb.mxu2 %v2384_v16  ;;  %v2579_v16 = vld [vmem:[%s3601_s10 + $0x24] sm:$0xf] }
 0x5e9   : > { %v2308_v4 = vor.u32 %v2579_v16, %v2305_v63  ;;  %v2635_v16 = vld [vmem:[%s3603_s12 + $0xe0] sm:$0xff]  ;;  %v2620_v63 = vld [vmem:[%s3603_s12 + $0x68] sm:$0xff] }
 0x5ec   : > { %1608 = vmatpush.bf16.msrb.mxu2 %v2368_v10  ;;  %v2316_v10 = vor.u32 %v2580_v8, %v2313_v12  ;;  %v2633_v8 = vld [vmem:[%s3603_s12 + $0xd0] sm:$0xff]  ;;  %v3504_v12 = vld [vmem:[%s3602_s11] sm:$0xf] }
 0x5ed   : > { %v1440_v14 = vperm.slane %v3504_v12, 2  ;;  %v1441_v15 = vperm.slane %v3504_v12, 3 }
 0x61e   : > { %v2678_v18 = vpop.permute.xlu0 %2677 }
 0x61f   : > { %v2680_v21 = vunpack.i.h.bf16 %v2678_v18  ;;  %v2679_v22 = vunpack.i.l.bf16 %v2678_v18  ;;  %v2596_v18 = vld [vmem:[%s3601_s10 + $0xac] sm:$0xf] }
 0x620   : > { %v2380_v20 = vor.u32 %v2596_v18, %v2377_v19  ;;  %v2295_v18 = vld [vmem:[%s3601_s10 + $0x8] sm:$0xf]  ;;  %v2578_v19 = vld [vmem:[%s3601_s10 + $0x14] sm:$0xf0] }
 0x621   : > { %v1262_v29 = vsel %vm1013_vm10, %v1261_v24, %v2680_v21  ;;  %v1014_v30 = vsel %vm1013_vm10, %v1012_v25, %v2679_v22  ;;  %v2351_v21 = vld [vmem:[%s3601_s10 + $0x80] sm:$0xf]  ;;  %v2593_v22 = vld [vmem:[%s3601_s10 + $0x8c] sm:$0xf0]  ;;  %v2353_v25 = vld [vmem:[%s3601_s10 + $0x90] sm:$0xf0] }
 0x622   : > { %1650 = vmatpush.bf16.msra.mxu1 %v2380_v20  ;;  %v2352_v24 = vor.u32 %v2593_v22, %v2351_v21  ;;  %v2576_v20 = vld [vmem:[%s3601_s10 + $0xc] sm:$0xf]  ;;  %v2296_v22 = vor.u32 %v2578_v19, %v2295_v18 }
 0x624   : > { %1609 = vmatpush.bf16.msrb.mxu2 %v2352_v24 }
 0x64d   : > { %v2683_v23 = vpop.permute.xlu1 %2682 }
 0x64e   : > { %v2685_v26 = vunpack.i.h.bf16 %v2683_v23  ;;  %v2684_v28 = vunpack.i.l.bf16 %v2683_v23  ;;  %v2591_v23 = vld [vmem:[%s3601_s10 + $0x84] sm:$0xf] }
 0x650   : > { %v1016_v31 = vsel %vm1015_vm11, %v1014_v30, %v2684_v28  ;;  %v1263_v32 = vsel %vm1015_vm11, %v1262_v29, %v2685_v26  ;;  %v2359_v26 = vld [vmem:[%s3601_s10 + $0x88] sm:$0xf]  ;;  %v2594_v28 = vld [vmem:[%s3601_s10 + $0x94] sm:$0xf0]  ;;  %v2356_v29 = vor.u32 %v2591_v23, %v2353_v25  ;;  %v2297_v23 = vld [vmem:[%s3601_s10 + $0x18] sm:$0xf0] }
 0x651   : > { %v1280_v33 = vpack.c.bf16 %v1263_v32, %v1016_v31  ;;  %v2360_v30 = vor.u32 %v2594_v28, %v2359_v26  ;;  %v2592_v31 = vld [vmem:[%s3601_s10 + $0x8c] sm:$0xf]  ;;  %v2361_v32 = vld [vmem:[%s3601_s10 + $0x98] sm:$0xf0]  ;;  %v2300_v24 = vor.u32 %v2576_v20, %v2297_v23  ;;  %v2623_v20 = vld [vmem:[%s3603_s12 + $0x80] sm:$0xff] }
 0x652   : > { %1623 = vmatpush.bf16.msra.mxu3 %v2356_v29 }
 0x653   : > { %1337 = vmatmul.bf16.vlgmr.msrb.gmra.mxu1 %v1280_v33  ;;  %v2364_v33 = vor.u32 %v2592_v31, %v2361_v32  ;;  %1637 = vmatpush.bf16.msrb.mxu0 %v2360_v30 }
 0x655   : > { %1651 = vmatpush.bf16.msra.mxu1 %v2364_v33 }
 0x6d0   : > { %v1338_v37 = vpop.f32.mrf.mxu1 }
 0x6d1   : > { %v1343_v38 = vadd.f32 %v2892_v1, %v1338_v37  ;;  %v2589_v37 = vld [vmem:[%s3601_s10 + $0x6c] sm:$0xf0] }
 0x6d3   : > { %v3220_v39 = vadd.f32 %v2689_v35, %v1343_v38  ;;  %v2587_v38 = vld [vmem:[%s3601_s10 + $0x64] sm:$0xf] }
 0x6d5   : > { %1353 = vadd.xlane.f32.xlu0 %v3220_v39 }
 0x6d8   : > { %v1340_v61 = vpop.f32.mrf.mxu1 }
 0x6d9   : > { %v1344_v40 = vadd.f32 %v2895_v2, %v1340_v61 }
 0x6db   : > { %v3224_v41 = vadd.f32 %v2689_v35, %v1344_v40  ;;  %v2335_v35 = vld [vmem:[%s3601_s10 + $0x60] sm:$0xf]  ;;  %v2337_v40 = vld [vmem:[%s3601_s10 + $0x70] sm:$0xf0] }
 0x6dc   : > { %v2336_v61 = vor.u32 %v2589_v37, %v2335_v35 }
 0x6dd   : > { %1355 = vadd.xlane.f32.xlu1 %v3224_v41 }
 0x6de   : > { %1610 = vmatpush.bf16.msrb.mxu2 %v2336_v61 }
 0x6e2   : > { %1611 = vmatpush.bf16.msrb.mxu2 %v2320_v50 }
 0x6e6   : > { %1612 = vmatpush.bf16.msrb.mxu2 %v2304_v62  ;;  %v2612_v62 = vld [vmem:[%s3603_s12 + $0x28] sm:$0xff] }
 0x6ea   : > { %1613 = vmatpush.bf16.msrb.mxu2 %v2288_v17  ;;  %v2609_v17 = vld [vmem:[%s3603_s12 + $0x10] sm:$0xff] }
 0x748   : > { %v1354_v42 = vpop.xlane.xlu0 %1353 }
 0x749   : > { %v1357_v36 = vmul.f32 %v1354_v42, %v2898_v9  ;;  %v2343_v42 = vld [vmem:[%s3601_s10 + $0x68] sm:$0xf] }
 0x74b   : > { %v3229_v43 = vsub.f32 %v3220_v39, %v1357_v36  ;;  %v2590_v36 = vld [vmem:[%s3601_s10 + $0x74] sm:$0xf0] }
 0x74d   : > { %v1361_v1 = vmul.f32 %v3229_v43, %v3229_v43 }
 0x74f   : > { %1363 = vadd.xlane.f32.xlu2 %v1361_v1  ;;  %v2340_v1 = vor.u32 %v2587_v38, %v2337_v40 }
 0x750   : > { %v1356_v44 = vpop.xlane.xlu1 %1355 }
 0x751   : > { %v1358_v34 = vmul.f32 %v1356_v44, %v2898_v9  ;;  %v2344_v44 = vor.u32 %v2590_v36, %v2343_v42  ;;  %1624 = vmatpush.bf16.msra.mxu3 %v2340_v1  ;;  %v2690_v1 = vld [vmem:[%s3599_s8] ss:$0 sm:$0xff] }
 0x753   : > { %v3235_v45 = vsub.f32 %v3224_v41, %v1358_v34  ;;  %v2588_v34 = vld [vmem:[%s3601_s10 + $0x6c] sm:$0xf]  ;;  %1638 = vmatpush.bf16.msrb.mxu0 %v2344_v44 }
 0x755   : > { %v1362_v2 = vmul.f32 %v3235_v45, %v3235_v45  ;;  %1625 = vmatpush.bf16.msra.mxu3 %v2324_v27  ;;  %v2614_v27 = vld [vmem:[%s3603_s12 + $0x38] sm:$0xff] }
 0x756   : > { %1994 = vmatpush.bf16.msra.mxu2 %v2614_v27 }
 0x757   : > { %1365 = vadd.xlane.f32.xlu0 %v1362_v2  ;;  %v2345_v2 = vld [vmem:[%s3601_s10 + $0x78] sm:$0xf0]  ;;  %1639 = vmatpush.bf16.msrb.mxu0 %v2328_v54 }
 0x758   : > { %v2348_v46 = vor.u32 %v2588_v34, %v2345_v2  ;;  %v2622_v54 = vld [vmem:[%s3603_s12 + $0x78] sm:$0xff] }
 0x759   : > { %1626 = vmatpush.bf16.msra.mxu3 %v2308_v4  ;;  %v2619_v4 = vld [vmem:[%s3603_s12 + $0x60] sm:$0xff] }
 0x75a   : > { %1652 = vmatpush.bf16.msra.mxu1 %v2348_v46 }
 0x75b   : > { %1640 = vmatpush.bf16.msrb.mxu0 %v2312_v6  ;;  %v2625_v6 = vld [vmem:[%s3603_s12 + $0x90] sm:$0xff] }
 0x75d   : > { %1627 = vmatpush.bf16.msra.mxu3 %v2292_v7  ;;  %v2617_v7 = vld [vmem:[%s3603_s12 + $0x50] sm:$0xff] }
 0x75e   : > { %1653 = vmatpush.bf16.msra.mxu1 %v2332_v57  ;;  %v2613_v57 = vld [vmem:[%s3603_s12 + $0x30] sm:$0xff] }
 0x75f   : > { %1641 = vmatpush.bf16.msrb.mxu0 %v2296_v22  ;;  %1995 = vmatpush.bf16.msra.mxu2 %v2613_v57 }
 0x761   : > { %2008 = vmatpush.bf16.msrb.mxu3 %v2622_v54 }
 0x762   : > { %1654 = vmatpush.bf16.msra.mxu1 %v2316_v10  ;;  %v2624_v10 = vld [vmem:[%s3603_s12 + $0x88] sm:$0xff] }
 0x763   : > { %1996 = vmatpush.bf16.msra.mxu2 %v2612_v62 }
 0x765   : > { %2009 = vmatpush.bf16.msrb.mxu3 %v2621_v58 }
 0x766   : > { %1655 = vmatpush.bf16.msra.mxu1 %v2300_v24  ;;  %v1438_v24 = vperm.slane %v3504_v12, 0 }
 0x769   : > { %2010 = vmatpush.bf16.msrb.mxu3 %v2620_v63 }
 0x76d   : > { %2011 = vmatpush.bf16.msrb.mxu3 %v2619_v4 }
 0x7c2   : > { %v1364_v3 = vpop.xlane.xlu2 %1363 }
 0x7c3   : > { %v1367_v59 = vmul.f32 %v1364_v3, %v2898_v9  ;;  %v2611_v3 = vld [vmem:[%s3603_s12 + $0x20] sm:$0xff] }
 0x7c4   : > { %1997 = vmatpush.bf16.msra.mxu2 %v2611_v3 }
 0x7c5   : > { %v1369_v21 = vadd.f32 1e-06, %v1367_v59  ;;  %v2618_v59 = vld [vmem:[%s3603_s12 + $0x58] sm:$0xff] }
 0x7c6   : > { %2012 = vmatpush.bf16.msrb.mxu3 %v2618_v59 }
 0x7c7   : > { %2731 = vrsqrt.f32 %v1369_v21  ;;  %vm1377_vm13 = vweird.f32 %v1369_v21 }
 0x7c8   : > { %1998 = vmatpush.bf16.msra.mxu2 %v2610_v5 }
 0x7ca   : > { %v1366_v25 = vpop.xlane.xlu0 %1365  ;;  %2013 = vmatpush.bf16.msrb.mxu3 %v2617_v7 }
 0x7cb   : > { %v1368_v26 = vmul.f32 %v1366_v25, %v2898_v9  ;;  %v1439_v25 = vperm.slane %v3504_v12, 1 }
 0x7cc   : > { %1999 = vmatpush.bf16.msra.mxu2 %v2609_v17 }
 0x7cd   : > { %v2732_v28 = vpop.eup %2731  ;;  %v1370_v29 = vadd.f32 1e-06, %v1368_v26  ;;  %v2608_v26 = vld [vmem:[%s3603_s12 + $0x8] sm:$0xff] }
 0x7ce   : > { %v1372_v30 = vmul.f32 %v2732_v28, %v1369_v21  ;;  %vm1378_vm12 = vweird.f32 %v2732_v28  ;;  %v2631_v21 = vld [vmem:[%s3603_s12 + $0xc0] sm:$0xff] }
 0x7cf   : > { %2733 = vrsqrt.f32 %v1370_v29  ;;  %vm1379_vm14 = vmor %vm1377_vm13, %vm1378_vm12  ;;  %vm1387_vm0 = vweird.f32 %v1370_v29 }
 0x7d0   : > { %v1373_v31 = vmul.f32 %v2732_v28, %v1372_v30  ;;  %2000 = vmatpush.bf16.msra.mxu2 %v2608_v26 }
 0x7d2   : > { %v1374_v32 = vmul.f32 0.5, %v1373_v31 }
 0x7d4   : > { %v1375_v33 = vsub.f32 1.5, %v1374_v32 }
 0x7d5   : > { %v2734_v35 = vpop.eup %2733 }
 0x7d6   : > { %v1376_v37 = vmul.f32 %v2732_v28, %v1375_v33  ;;  %v1382_v38 = vmul.f32 %v2734_v35, %v1370_v29  ;;  %vm1388_vm15 = vweird.f32 %v2734_v35 }
 0x7d7   : > { %vm1389_vm1 = vmor %vm1387_vm0, %vm1388_vm15 }
 0x7d8   : > { %v1383_v61 = vmul.f32 %v2734_v35, %v1382_v38  ;;  %v1380_v40 = vsel %vm1379_vm14, %v2732_v28, %v1376_v37  ;;  %v2616_v28 = vld [vmem:[%s3603_s12 + $0x48] sm:$0xff] }
 0x7d9   : > { %v1391_v9 = vmul.f32 %v1380_v40, %v3229_v43  ;;  %v2630_v43 = vld [vmem:[%s3603_s12 + $0xb8] sm:$0xff]  ;;  %2014 = vmatpush.bf16.msrb.mxu3 %v2616_v28  ;;  %v2615_v40 = vld [vmem:[%s3603_s12 + $0x40] sm:$0xff] }
 0x7da   : > { %v1384_v42 = vmul.f32 0.5, %v1383_v61  ;;  %2022 = vmatpush.bf16.msra.mxu0 %v2630_v43  ;;  %v2607_v61 = vld [vmem:[%s3603_s12] sm:$0xff] }
 0x7db   : > { %v1396_v46 = vmul.f32 %v2690_v1, %v1391_v9  ;;  %2001 = vmatpush.bf16.msra.mxu2 %v2607_v61 }
 0x7dc   : > { %v1385_v36 = vsub.f32 1.5, %v1384_v42 }
 0x7dd   : > { %v1401_v49 = vadd.f32 %v2691_v47, %v1396_v46  ;;  %2015 = vmatpush.bf16.msrb.mxu3 %v2615_v40 }
 0x7de   : > { %v1386_v44 = vmul.f32 %v2734_v35, %v1385_v36  ;;  %2023 = vmatpush.bf16.msra.mxu0 %v2629_v52 }
 0x7e0   : > { %v1390_v34 = vsel %vm1389_vm1, %v2734_v35, %v1386_v44 }
 0x7e1   : > { %v1392_v2 = vmul.f32 %v1390_v34, %v3235_v45  ;;  %v2638_v45 = vld [vmem:[%s3603_s12 + $0xf8] sm:$0xff] }
 0x7e2   : > { %2036 = vmatpush.bf16.msrb.mxu1 %v2638_v45  ;;  %2024 = vmatpush.bf16.msra.mxu0 %v2628_v55 }
 0x7e3   : > { %v1397_v48 = vmul.f32 %v2690_v1, %v1392_v2 }
 0x7e5   : > { %v1402_v50 = vadd.f32 %v2691_v47, %v1397_v48 }
 0x7e6   : > { %2037 = vmatpush.bf16.msrb.mxu1 %v2637_v53  ;;  %2025 = vmatpush.bf16.msra.mxu0 %v2627_v60 }
 0x7e7   : > { %v1435_v51 = vpack.c.bf16 %v1402_v50, %v1401_v49 }
 0x7e9   : > { %1614 = vmatmul.bf16.vlgmr.msrb.gmra.mxu2 %v1435_v51  ;;  %1628 = vmatmul.bf16.vlgmr.msra.gmra.mxu3 %v1435_v51 }
 0x7ea   : > { %1642 = vmatmul.bf16.vlgmr.msrb.gmra.mxu0 %v1435_v51  ;;  %1656 = vmatmul.bf16.vlgmr.msra.gmra.mxu1 %v1435_v51 }
 0x7eb   : > { %2038 = vmatpush.bf16.msrb.mxu1 %v2636_v56  ;;  %2026 = vmatpush.bf16.msra.mxu0 %v2626_v13 }
 0x7ef   : > { %2039 = vmatpush.bf16.msrb.mxu1 %v2635_v16  ;;  %2027 = vmatpush.bf16.msra.mxu0 %v2625_v6 }
 0x7f3   : > { %2040 = vmatpush.bf16.msrb.mxu1 %v2634_v0  ;;  %2028 = vmatpush.bf16.msra.mxu0 %v2624_v10 }
 0x7f7   : > { %2041 = vmatpush.bf16.msrb.mxu1 %v2633_v8  ;;  %2029 = vmatpush.bf16.msra.mxu0 %v2623_v20 }
 0x7fb   : > { %2042 = vmatpush.bf16.msrb.mxu1 %v2632_v11 }
 0x7ff   : > { %2043 = vmatpush.bf16.msrb.mxu1 %v2631_v21 }
 0x867   : > { %v1643_v18 = vpop.f32.mrf.mxu0  ;;  %v1657_v19 = vpop.f32.mrf.mxu1 }
 0x868   : > { %v3532_v22 = vadd.f32 %v1643_v18, %v1440_v14  ;;  %v3534_v23 = vadd.f32 %v1657_v19, %v1441_v15 }
 0x86a   : > { %v1664_v29 = vmul.f32 %v3532_v22, %v3532_v22  ;;  %v1665_v30 = vmul.f32 %v3534_v23, %v3534_v23 }
 0x86c   : > { %v1672_v31 = vmul.f32 %v1664_v29, %v3532_v22  ;;  %v1673_v32 = vmul.f32 %v1665_v30, %v3534_v23  ;;  %v1615_v33 = vpop.f32.mrf.mxu2  ;;  %v1629_v35 = vpop.f32.mrf.mxu3 }
 0x86d   : > { %v3550_v37 = vadd.f32 %v1615_v33, %v1438_v24  ;;  %v3552_v38 = vadd.f32 %v1629_v35, %v1439_v25 }
 0x86e   : > { %v1680_v42 = vmul.f32 0.044715, %v1672_v31  ;;  %v1681_v36 = vmul.f32 0.044715, %v1673_v32 }
 0x86f   : > { %v1662_v9 = vmul.f32 %v3550_v37, %v3550_v37  ;;  %v1663_v1 = vmul.f32 %v3552_v38, %v3552_v38  ;;  %v1645_v44 = vpop.f32.mrf.mxu0  ;;  %v1659_v34 = vpop.f32.mrf.mxu1 }
 0x870   : > { %v1688_v2 = vadd.f32 %v1680_v42, %v3532_v22  ;;  %v1689_v46 = vadd.f32 %v1681_v36, %v3534_v23  ;;  %v1646_v47 = vadd.f32 %v1645_v44, %v1440_v14  ;;  %v3566_v48 = vadd.f32 %v1659_v34, %v1441_v15 }
 0x871   : > { %v1670_v49 = vmul.f32 %v1662_v9, %v3550_v37  ;;  %v1671_v50 = vmul.f32 %v1663_v1, %v3552_v38 }
 0x872   : > { %v1696_v51 = vmul.f32 0.7978846, %v1688_v2  ;;  %v1668_v43 = vmul.f32 %v1646_v47, %v1646_v47  ;;  %v1669_v45 = vmul.f32 %v3566_v48, %v3566_v48  ;;  %v1697_v52 = vmul.f32 0.7978846, %v1689_v46 }
 0x873   : > { %v1678_v53 = vmul.f32 0.044715, %v1670_v49  ;;  %v1679_v27 = vmul.f32 0.044715, %v1671_v50 }
 0x874   : > { %v1676_v54 = vmul.f32 %v1668_v43, %v1646_v47  ;;  %v1677_v55 = vmul.f32 %v1669_v45, %v3566_v48  ;;  %v1617_v56 = vpop.f32.mrf.mxu2  ;;  %v1631_v57 = vpop.f32.mrf.mxu3  ;;  %2735 = vtanh.f32 %v1696_v51 }
 0x875   : > { %v1686_v58 = vadd.f32 %v1678_v53, %v3550_v37  ;;  %v1687_v60 = vadd.f32 %v1679_v27, %v3552_v38  ;;  %v1618_v16 = vadd.f32 %v1617_v56, %v1438_v24  ;;  %v1632_v13 = vadd.f32 %v1631_v57, %v1439_v25 }
 0x876   : > { %v1684_v62 = vmul.f32 0.044715, %v1676_v54  ;;  %v1685_v63 = vmul.f32 0.044715, %v1677_v55  ;;  %2737 = vtanh.f32 %v1697_v52 }
 0x877   : > { %v1694_v0 = vmul.f32 0.7978846, %v1686_v58  ;;  %v1695_v3 = vmul.f32 0.7978846, %v1687_v60  ;;  %v1666_v4 = vmul.f32 %v1618_v16, %v1618_v16  ;;  %v1667_v12 = vmul.f32 %v1632_v13, %v1632_v13 }
 0x878   : > { %v1692_v6 = vadd.f32 %v1684_v62, %v1646_v47  ;;  %v1693_v8 = vadd.f32 %v1685_v63, %v3566_v48 }
 0x879   : > { %v1674_v5 = vmul.f32 %v1666_v4, %v1618_v16  ;;  %2739 = vtanh.f32 %v1694_v0  ;;  %v1675_v11 = vmul.f32 %v1667_v12, %v1632_v13 }
 0x87a   : > { %v1700_v59 = vmul.f32 0.7978846, %v1692_v6  ;;  %v1701_v10 = vmul.f32 0.7978846, %v1693_v8  ;;  %2741 = vtanh.f32 %v1695_v3  ;;  %v2736_v15 = vpop.eup %2735 }
 0x87b   : > { %v1682_v14 = vmul.f32 0.044715, %v1674_v5  ;;  %v1683_v17 = vmul.f32 0.044715, %v1675_v11  ;;  %v1712_v20 = vadd.f32 1.0, %v2736_v15 }
 0x87c   : > { %2743 = vtanh.f32 %v1700_v59  ;;  %v2738_v7 = vpop.eup %2737 }
 0x87d   : > { %2745 = vtanh.f32 %v1701_v10  ;;  %v1690_v18 = vadd.f32 %v1682_v14, %v1618_v16  ;;  %v1691_v19 = vadd.f32 %v1683_v17, %v1632_v13  ;;  %v1713_v25 = vadd.f32 1.0, %v2738_v7 }
 0x87e   : > { %v1720_v31 = vmul.f32 0.5, %v1712_v20 }
 0x87f   : > { %v1698_v21 = vmul.f32 0.7978846, %v1690_v18  ;;  %v2740_v24 = vpop.eup %2739  ;;  %v1699_v26 = vmul.f32 0.7978846, %v1691_v19  ;;  %v1721_v33 = vmul.f32 0.5, %v1713_v25 }
 0x880   : > { %v2742_v28 = vpop.eup %2741  ;;  %v1710_v35 = vadd.f32 1.0, %v2740_v24  ;;  %v1728_v1 = vmul.f32 %v1720_v31, %v3532_v22 }
 0x881   : > { %2747 = vtanh.f32 %v1698_v21  ;;  %v1711_v40 = vadd.f32 1.0, %v2742_v28  ;;  %v1729_v2 = vmul.f32 %v1721_v33, %v3534_v23 }
 0x882   : > { %v2744_v29 = vpop.eup %2743  ;;  %2749 = vtanh.f32 %v1699_v26  ;;  %v1718_v46 = vmul.f32 0.5, %v1710_v35 }
 0x883   : > { %v2746_v30 = vpop.eup %2745  ;;  %v1716_v32 = vadd.f32 1.0, %v2744_v29  ;;  %v1719_v51 = vmul.f32 0.5, %v1711_v40 }
 0x884   : > { %v1717_v61 = vadd.f32 1.0, %v2746_v30  ;;  %v1726_v54 = vmul.f32 %v1718_v46, %v3550_v37 }
 0x885   : > { %v1724_v42 = vmul.f32 0.5, %v1716_v32  ;;  %v1727_v22 = vmul.f32 %v1719_v51, %v3552_v38 }
 0x886   : > { %v1725_v36 = vmul.f32 0.5, %v1717_v61 }
 0x887   : > { %v2748_v9 = vpop.eup %2747  ;;  %v1732_v44 = vmul.f32 %v1724_v42, %v1646_v47 }
 0x888   : > { %v2750_v34 = vpop.eup %2749  ;;  %v1733_v49 = vmul.f32 %v1725_v36, %v3566_v48  ;;  %v1714_v50 = vadd.f32 1.0, %v2748_v9 }
 0x889   : > { %v1715_v43 = vadd.f32 1.0, %v2750_v34  ;;  %v1800_v45 = vpack.c.bf16 %v1732_v44, %v1728_v1 }
 0x88a   : > { %v1722_v52 = vmul.f32 0.5, %v1714_v50  ;;  %v1801_v53 = vpack.c.bf16 %v1733_v49, %v1729_v2 }
 0x88b   : > { %v1723_v27 = vmul.f32 0.5, %v1715_v43  ;;  %2030 = vmatmul.bf16.vlgmr.msra.gmra.mxu0 %v1800_v45 }
 0x88c   : > { %v1730_v55 = vmul.f32 %v1722_v52, %v1618_v16  ;;  %2044 = vmatmul.bf16.vlgmr.msrb.gmra.mxu1 %v1801_v53 }
 0x88d   : > { %v1731_v47 = vmul.f32 %v1723_v27, %v1632_v13  ;;  %v2692_v13 = vld [vmem:[#allocation2] ss:$0 sm:$0xff] }
 0x88e   : > { %v1798_v56 = vpack.c.bf16 %v1730_v55, %v1726_v54 }
 0x88f   : > { %v1799_v23 = vpack.c.bf16 %v1731_v47, %v1727_v22 }
 0x890   : > { %2002 = vmatmul.bf16.vlgmr.msra.gmra.mxu2 %v1798_v56 }
 0x891   : > { %2016 = vmatmul.bf16.vlgmr.msrb.gmra.mxu3 %v1799_v23 }
 0x908   : > { %v2031_v57 = vpop.f32.mrf.mxu0 }
 0x909   : > { %v2045_v62 = vpop.f32.mrf.mxu1 }
 0x910   : > { %v2033_v16 = vpop.f32.mrf.mxu0 }
 0x911   : > { %v2047_v8 = vpop.f32.mrf.mxu1 }
 0x913   : > { %v2003_v48 = vpop.f32.mrf.mxu2 }
 0x914   : > { %v2017_v58 = vpop.f32.mrf.mxu3 }
 0x915   : > { %v2018_v60 = vadd.f32 %v2017_v58, %v2003_v48 }
 0x917   : > { %v2032_v63 = vadd.f32 %v2031_v57, %v2018_v60 }
 0x919   : > { %v2046_v4 = vadd.f32 %v2045_v62, %v2032_v63 }
 0x91b   : > { %v2005_v0 = vpop.f32.mrf.mxu2  ;;  %v2050_v38 = vadd.f32 %v2046_v4, %v3220_v39 }
 0x91c   : > { %v2019_v3 = vpop.f32.mrf.mxu3 }
 0x91d   : > { %v2020_v37 = vadd.f32 %v2019_v3, %v2005_v0  ;;  %v2056_v59 = vadd.f32 %v2692_v13, %v2050_v38 }
 0x91f   : > { %v2034_v6 = vadd.f32 %v2033_v16, %v2020_v37 }
 0x921   : > { %v2048_v12 = vadd.f32 %v2047_v8, %v2034_v6 }
 0x923   : > { %v2051_v5 = vadd.f32 %v2048_v12, %v3224_v41 }
 0x925   : > { %v2057_v10 = vadd.f32 %v2692_v13, %v2051_v5 }
 0x927   : > { %v2646_v11 = vpack.c.bf16 %v2057_v10, %v2056_v59 }
 0x929   : > { %2647 = vst [vmem:[%s484_s25] sm:$0xff] %v2646_v11  }
 0x92a PF: > { %s25_s29 = sadd.s32 1, %s2791_s29  }
 0x92b   : > { %p22_p7 = scmp.ge.s32.totalorder %s25_s29, 4  }
 0x92d   :  { %24 = sbr.rel (!%p22_p7) target bundleno = 1 (0x1), region = 111 }
 0x932   :  { %2084 = vsyncpa [#allocation3], 1 }
 0x933   :  { %2086 = vsyncpa [#allocation3 + $0x1], 1 }

// kernel: blip_forward.9
= control target key start
LH: loop header
LB: loop body
LE: loop exit
PB: predicated region body
PF: predicated region fallthrough
CT: control target
= control target key end

     0   :  { %s4131_s0 = inlined_call_operand.vmem [shape: bf16[4,8,128], index: 0, kind: input, shape index: {}]   ;;  %s4132_s1 = inlined_call_operand.vmem [shape: f32[1,8], index: 1, kind: input, shape index: {}]   ;;  %s4133_s2 = inlined_call_operand.hbm [shape: bf16[128,384], index: 2, kind: input, shape index: {}]   ;;  %s4134_s3 = inlined_call_operand.hbm [shape: f32[1,384], index: 3, kind: input, shape index: {}]   ;;  %s4135_s4 = inlined_call_operand.hbm [shape: bf16[128,128], index: 4, kind: input, shape index: {}]   ;;  %s4136_s5 = inlined_call_operand.hbm [shape: f32[1,128], index: 5, kind: input, shape index: {}]   ;;  %s4137_s6 = inlined_call_operand.hbm [shape: f32[1,128], index: 6, kind: input, shape index: {}]   ;;  %s4138_s7 = inlined_call_operand.hbm [shape: f32[1,128], index: 7, kind: input, shape index: {}]   ;;  %s4139_s8 = inlined_call_operand.hbm [shape: f32[1,128], index: 8, kind: input, shape index: {}]   ;;  %s4140_s9 = inlined_call_operand.hbm [shape: f32[1,128], index: 9, kind: input, shape index: {}]   ;;  %s4141_s10 = inlined_call_operand.vmem [shape: bf16[128,512], index: 10, kind: input, shape index: {}]   ;;  %s4142_s11 = inlined_call_operand.hbm [shape: f32[1,512], index: 11, kind: input, shape index: {}]   ;;  %s4143_s12 = inlined_call_operand.vmem [shape: bf16[512,128], index: 12, kind: input, shape index: {}]   ;;  %s4144_s13 = inlined_call_operand.hbm [shape: f32[1,128], index: 13, kind: input, shape index: {}]   ;;  %s4145_s14 = inlined_call_operand.vmem [shape: bf16[4,8,128], index: 14, kind: output, shape index: {}]  }
   0x1   :  { %4147 = sst [smem:[#allocation24_spill]] %s4134_s3 }
   0x2   :  { %4148 = sst [smem:[#allocation25_spill]] %s4136_s5 }
   0x3   :  { %4149 = sst [smem:[#allocation26_spill]] %s4138_s7 }
   0x4   :  { %19 = vsyncpa [#allocation3], 0 }
   0x5   :  { %20 = vsyncpa [#allocation5], 0 }
   0x6   :  { %21 = vsyncpa [#allocation8], 0 }
   0x7   :  { %22 = vsyncpa [#allocation11], 0 }
   0x8   :  { %23 = vsyncpa [#allocation14], 0 }
   0x9   :  { %24 = vsyncpa [#allocation17], 0  ;;  %s3509_s29 = smov 0  }
   0xa LB: > { %s4150_s3 = sld [smem:[#allocation24_spill]]  ;;  %s4146_s17 = sadd.s32 4294967295, %s3414_s29   ;;  %s3414_s29 = sphi %s3509_s29, %s30_s29  }
   0xb   : > { %p2353_p0 = scmp.ge.s32.totalorder %s3414_s29, 1  ;;  %p360_p1 = scmp.lt.s32.totalorder %s3414_s29, 3 }
   0xc   : > { %p3522_p2 = scmp.eq.s32.totalorder %s4146_s17, 0  ;;  %s3416_s20 = smov [#allocation4]  }
   0xd   : > { %p3526_p3 = pnand %p2353_p0, %p360_p1  ;;  %s391_s21 = sshll.u32 %s3416_s20, 4  ;;  %s392_s21 = int_to_ptr.vmem [resolvable:$true] %s391_s21 }
   0xe   : > { %s4153_s5 = sld [smem:[#allocation25_spill]]  ;;  %s3417_s30 = smov [#allocation7]  }
   0xf   : > { %p2927_p4 = pneg %p3526_p3  ;;  %s4154_s7 = sld [smem:[#allocation26_spill]] }
  0x10   : > { %s389_s16 = sshll.u32 %s4150_s3, 4  ;;  %s417_s15 = sshll.u32 %s3417_s30, 4  ;;  %s390_s16 = int_to_ptr.hbm [resolvable:$true] %s389_s16  ;;  %s418_s15 = int_to_ptr.vmem [resolvable:$true] %s417_s15 }
  0x11   : > { %p3540_p5 = pnand %p3522_p2, %p2927_p4  ;;  %s3418_s20 = smov [#allocation10]  }
  0x12   : > { %s441_s22 = sshll.u32 %s3418_s20, 4  ;;  %s463_s26 = sshll.u32 %s4140_s9, 4  ;;  %s442_s22 = int_to_ptr.vmem [resolvable:$true] %s441_s22  ;;  %s464_s26 = int_to_ptr.hbm [resolvable:$true] %s463_s26 }
  0x13   : > { %2933 = dma.hbm_to_vmem [thread:$0]  (!%p3540_p5), %s390_s16, 48, %s392_s21, [#allocation5]  }
  0x14   : > { %s415_s24 = sshll.u32 %s4153_s5, 4  ;;  %s374_s3 = sshll.u32 %s4133_s2, 4  ;;  %s416_s24 = int_to_ptr.hbm [resolvable:$true] %s415_s24  ;;  %s375_s3 = int_to_ptr.hbm [resolvable:$true] %s374_s3 }
  0x15   : > { %s439_s27 = sshll.u32 %s4154_s7, 4  ;;  %s3419_s5 = smov [#allocation13]   ;;  %s440_s27 = int_to_ptr.hbm [resolvable:$true] %s439_s27 }
  0x16   : > { %2939 = dma.hbm_to_vmem [thread:$0]  (!%p3540_p5), %s416_s24, 16, %s418_s15, [#allocation8]  }
  0x17   : > { %2945 = dma.hbm_to_vmem [thread:$0]  (!%p3540_p5), %s440_s27, 16, %s442_s22, [#allocation11]  }
  0x18   : > { %s465_s7 = sshll.u32 %s3419_s5, 4  ;;  %s3420_s16 = smov [#allocation2]   ;;  %s466_s7 = int_to_ptr.vmem [resolvable:$true] %s465_s7 }
  0x19   : > { %2951 = dma.hbm_to_vmem [thread:$0]  (!%p3540_p5), %s464_s26, 16, %s466_s7, [#allocation14]  }
  0x1a   : > { %s376_s21 = sshll.u32 %s3420_s16, 4  ;;  %s3421_s24 = smov 192   ;;  %s377_s21 = int_to_ptr.vmem [resolvable:$true] %s376_s21 }
  0x1b   : > { %s3422_s15 = smov 12   ;;  %s400_s17 = sshll.u32 %s4135_s4, 4  ;;  %s401_s17 = int_to_ptr.hbm [resolvable:$true] %s400_s17 }
  0x1c   : > { %2930 = dma.hbm_to_vmem [thread:$0]  (!%p3540_p5), %s375_s3, 3072, %s377_s21, [#allocation3], %s3421_s24, %s3421_s24, %s3422_s15  }
  0x1d   : > { %s3423_s22 = smov [#allocation6]   ;;  %s427_s7 = sshll.u32 %s4137_s6, 4  ;;  %s428_s7 = int_to_ptr.hbm [resolvable:$true] %s427_s7 }
  0x1e   : > { %s402_s5 = sshll.u32 %s3423_s22, 4  ;;  %s3424_s26 = smov 64   ;;  %s403_s5 = int_to_ptr.vmem [resolvable:$true] %s402_s5 }
  0x1f   : > { %s3425_s30 = smov 4   ;;  %s3426_s3 = smov [#allocation9]  }
  0x20   : > { %2936 = dma.hbm_to_vmem [thread:$0]  (!%p3540_p5), %s401_s17, 1024, %s403_s5, [#allocation5], %s3424_s26, %s3424_s26, %s3425_s30  }
  0x21   : > { %s429_s16 = sshll.u32 %s3426_s3, 4  ;;  %s451_s15 = sshll.u32 %s4139_s8, 4  ;;  %s430_s16 = int_to_ptr.vmem [resolvable:$true] %s429_s16  ;;  %s452_s15 = int_to_ptr.hbm [resolvable:$true] %s451_s15 }
  0x22   : > { %2942 = dma.hbm_to_vmem [thread:$0]  (!%p3540_p5), %s428_s7, 16, %s430_s16, [#allocation8]  }
  0x23   : > { %s478_s22 = sshll.u32 %s4142_s11, 4  ;;  %s3427_s23 = smov [#allocation12]   ;;  %s479_s22 = int_to_ptr.hbm [resolvable:$true] %s478_s22 }
  0x24   : > { %s453_s25 = sshll.u32 %s3427_s23, 4  ;;  %s3428_s17 = smov [#allocation15]   ;;  %s454_s25 = int_to_ptr.vmem [resolvable:$true] %s453_s25 }
  0x25   : > { %2948 = dma.hbm_to_vmem [thread:$0]  (!%p3540_p5), %s452_s15, 16, %s454_s25, [#allocation11]  }
  0x26   : > { %s480_s5 = sshll.u32 %s3428_s17, 4  ;;  %s493_s3 = sshll.u32 %s4144_s13, 4  ;;  %s481_s5 = int_to_ptr.vmem [resolvable:$true] %s480_s5  ;;  %s494_s3 = int_to_ptr.hbm [resolvable:$true] %s493_s3 }
  0x27   : > { %2954 = dma.hbm_to_vmem [thread:$0]  (!%p3540_p5), %s479_s22, 64, %s481_s5, [#allocation14]  }
  0x28   : > { %s3429_s7 = smov [#allocation16]   ;;  %517 = sbr.rel (%p3526_p3) target bundleno = 2391 (0x957), region = 76 }
  0x29   : > { %s495_s16 = sshll.u32 %s3429_s7, 4  ;;  %s496_s16 = int_to_ptr.vmem [resolvable:$true] %s495_s16 }
  0x2a   : > { %2957 = dma.hbm_to_vmem [thread:$0]  (!%p3540_p5), %s494_s3, 16, %s496_s16, [#allocation17]  }
  0x2d   : > { %3389 = dma.done.wait (%p3522_p2), [#allocation3], 3072  }
  0x2e   : > { %3391 = vsyncadd (%p3522_p2), [#allocation3], 4294964224 }
  0x2f   : > { %3393 = dma.done.wait (%p3522_p2), [#allocation5], 1072  }
  0x30   : > { %3395 = vsyncadd (%p3522_p2), [#allocation5], 4294966224 }
  0x31   : > { %3397 = dma.done.wait (%p3522_p2), [#allocation8], 32  }
  0x32   : > { %3399 = vsyncadd (%p3522_p2), [#allocation8], 4294967264 }
  0x33   : > { %3401 = dma.done.wait (%p3522_p2), [#allocation11], 32  }
  0x34   : > { %3403 = vsyncadd (%p3522_p2), [#allocation11], 4294967264 }
  0x35   : > { %3405 = dma.done.wait (%p3522_p2), [#allocation14], 80  }
  0x36   : > { %3407 = vsyncadd (%p3522_p2), [#allocation14], 4294967216 }
  0x37   : > { %3409 = dma.done.wait (%p3522_p2), [#allocation17], 16  }
  0x38   : > { %3411 = vsyncadd (%p3522_p2), [#allocation17], 4294967280  ;;  %s4156_s19 = sadd.s32 4294967295, %s3414_s29   ;;  %v3430_v3 = vmov 128.0   ;;  %v2466_v18 = vld [vmem:[#allocation2 + $0xa8] sm:$0xf] }
  0x39   : > { %s2376_s28 = sshll.u32 %s4156_s19, 1  ;;  %3026 = vrcp.f32 %v3430_v3  ;;  %v2804_v19 = vld [vmem:[#allocation2 + $0xb0] sm:$0xf0]  ;;  %v2803_v20 = vld [vmem:[#allocation2 + $0xac] sm:$0xf]  ;;  %vm900_vm7 = vcmask 261120  }
  0x3a   : > { %p610_p6 = scmp.lt.s32.totalorder %s2376_s28, 3  ;;  %v2467_v21 = vor.u32 %v2804_v19, %v2466_v18  ;;  %v2468_v22 = vld [vmem:[#allocation2 + $0xb4] sm:$0xf0]  ;;  %v2474_v23 = vld [vmem:[#allocation2 + $0xb0] sm:$0xf]  ;;  %s3431_s18 = smov 96  }
  0x3b   : > { %v2805_v24 = vld [vmem:[#allocation2 + $0xb8] sm:$0xf0]  ;;  %v2471_v25 = vor.u32 %v2803_v20, %v2468_v22  ;;  %v2454_v27 = vld [vmem:[#allocation2 + $0x90] sm:$0xf]  ;;  %v2800_v29 = vld [vmem:[#allocation2 + $0x94] sm:$0xf] }
  0x3c   : > { %s4158_s28 = smov (!%p610_p6, %s2376_s28), 3  ;;  %v2475_v26 = vor.u32 %v2805_v24, %v2474_v23  ;;  %855 = vmatpush.bf16.msra.mxu0 %v2467_v21  ;;  %v2801_v28 = vld [vmem:[#allocation2 + $0x98] sm:$0xf0]  ;;  %v2456_v31 = vld [vmem:[#allocation2 + $0x9c] sm:$0xf0]  ;;  %vm941_vm8 = vcmask 1043456  }
  0x3d   : > { %s2377_s21 = sshll.u32 %s4158_s28, 2  ;;  %869 = vmatpush.bf16.msra.mxu1 %v2471_v25  ;;  %v2455_v30 = vor.u32 %v2801_v28, %v2454_v27  ;;  %v2462_v32 = vld [vmem:[#allocation2 + $0x98] sm:$0xf]  ;;  %v2802_v33 = vld [vmem:[#allocation2 + $0xa0] sm:$0xf0]  ;;  %v2459_v34 = vor.u32 %v2800_v29, %v2456_v31  ;;  %s3432_s27 = smov 32  }
  0x3e   : > { %s613_s20 = scalar_lea.vmem %s4131_s0, %s2377_s21  ;;  %883 = vmatpush.bf16.msra.mxu2 %v2475_v26  ;;  %v2463_v35 = vor.u32 %v2802_v33, %v2462_v32  ;;  %v2442_v36 = vld [vmem:[#allocation2 + $0x78] sm:$0xf]  ;;  %v2798_v37 = vld [vmem:[#allocation2 + $0x80] sm:$0xf0]  ;;  %v2797_v38 = vld [vmem:[#allocation2 + $0x7c] sm:$0xf]  ;;  %s619_s26 = scalar_lea.vmem %s4145_s14, %s2377_s21 }
  0x3f   : > { %v2879_v0 = vld [vmem:[%s613_s20] sm:$0xff]   ;;  %v3027_v4 = vpop.eup %3026  ;;  %v2443_v39 = vor.u32 %v2798_v37, %v2442_v36  ;;  %v2444_v40 = vld [vmem:[#allocation2 + $0x84] sm:$0xf0]  ;;  %v2799_v42 = vld [vmem:[#allocation2 + $0x88] sm:$0xf0]  ;;  %s3433_s22 = smov 64  }
  0x40   : > { %v3621_v1 = vunpack.c.l.bf16 %v2879_v0  ;;  %v3624_v2 = vunpack.c.h.bf16 %v2879_v0  ;;  %v634_v5 = vmul.f32 128.0, %v3027_v4  ;;  %vm638_vm0 = vweird.f32 %v3027_v4  ;;  %856 = vmatpush.bf16.msra.mxu0 %v2455_v30  ;;  %v2450_v41 = vld [vmem:[#allocation2 + $0x80] sm:$0xf]  ;;  %v2795_v46 = vld [vmem:[#allocation2 + $0x68] sm:$0xf0] }
  0x41   : > { %870 = vmatpush.bf16.msra.mxu1 %v2459_v34  ;;  %v2447_v43 = vor.u32 %v2797_v38, %v2444_v40  ;;  %v2451_v44 = vor.u32 %v2799_v42, %v2450_v41  ;;  %v2430_v45 = vld [vmem:[#allocation2 + $0x60] sm:$0xf]  ;;  %v2794_v47 = vld [vmem:[#allocation2 + $0x64] sm:$0xf]  ;;  %v2432_v49 = vld [vmem:[#allocation2 + $0x6c] sm:$0xf0] }
  0x42   : > { %629 = vadd.xlane.f32.xlu0 %v3621_v1  ;;  %v635_v6 = vsub.f32 1.0, %v634_v5  ;;  %884 = vmatpush.bf16.msra.mxu2 %v2463_v35  ;;  %v2431_v48 = vor.u32 %v2795_v46, %v2430_v45  ;;  %v2438_v50 = vld [vmem:[#allocation2 + $0x68] sm:$0xf]  ;;  %v2796_v51 = vld [vmem:[#allocation2 + $0x70] sm:$0xf0]  ;;  %v2435_v52 = vor.u32 %v2794_v47, %v2432_v49  ;;  %vm925_vm9 = vcmask 64512  }
  0x43   : > { %v2439_v53 = vor.u32 %v2796_v51, %v2438_v50  ;;  %v2418_v54 = vld [vmem:[#allocation2 + $0x48] sm:$0xf]  ;;  %v2792_v55 = vld [vmem:[#allocation2 + $0x50] sm:$0xf0]  ;;  %v2791_v56 = vld [vmem:[#allocation2 + $0x4c] sm:$0xf] }
  0x44   : > { %v636_v7 = vmul.f32 %v3027_v4, %v635_v6  ;;  %857 = vmatpush.bf16.msra.mxu0 %v2443_v39  ;;  %v2419_v57 = vor.u32 %v2792_v55, %v2418_v54  ;;  %v2420_v58 = vld [vmem:[#allocation2 + $0x54] sm:$0xf0]  ;;  %v2426_v59 = vld [vmem:[#allocation2 + $0x50] sm:$0xf]  ;;  %v2793_v60 = vld [vmem:[#allocation2 + $0x58] sm:$0xf0] }
  0x45   : > { %871 = vmatpush.bf16.msra.mxu1 %v2447_v43  ;;  %v2423_v61 = vor.u32 %v2791_v56, %v2420_v58  ;;  %v2427_v62 = vor.u32 %v2793_v60, %v2426_v59  ;;  %v2406_v63 = vld [vmem:[#allocation2 + $0x30] sm:$0xf]  ;;  %v2789_v0 = vld [vmem:[#allocation2 + $0x38] sm:$0xf0]  ;;  %v2788_v3 = vld [vmem:[#allocation2 + $0x34] sm:$0xf] }
  0x46   : > { %v637_v8 = vadd.f32 %v3027_v4, %v636_v7  ;;  %885 = vmatpush.bf16.msra.mxu2 %v2451_v44  ;;  %v2408_v5 = vld [vmem:[#allocation2 + $0x3c] sm:$0xf0]  ;;  %v2414_v6 = vld [vmem:[#allocation2 + $0x38] sm:$0xf]  ;;  %v2790_v7 = vld [vmem:[#allocation2 + $0x40] sm:$0xf0] }
  0x47   : > { %v2402_v18 = vld [vmem:[#allocation2 + $0x20] sm:$0xf]  ;;  %v2787_v19 = vld [vmem:[#allocation2 + $0x28] sm:$0xf0]  ;;  %v2782_v24 = vld [vmem:[#allocation2 + $0x4] sm:$0xf] }
  0x48   : > { %v3627_v9 = vsel %vm638_vm0, %v3027_v4, %v637_v8  ;;  %858 = vmatpush.bf16.msra.mxu0 %v2431_v48  ;;  %v2407_v4 = vor.u32 %v2789_v0, %v2406_v63  ;;  %v2411_v8 = vor.u32 %v2788_v3, %v2408_v5  ;;  %v2403_v21 = vor.u32 %v2787_v19, %v2402_v18  ;;  %v2382_v22 = vld [vmem:[#allocation2] sm:$0xf]  ;;  %v2783_v23 = vld [vmem:[#allocation2 + $0x8] sm:$0xf0]  ;;  %v2384_v27 = vld [vmem:[#allocation2 + $0xc] sm:$0xf0] }
  0x49   : > { %872 = vmatpush.bf16.msra.mxu1 %v2435_v52  ;;  %v2383_v26 = vor.u32 %v2783_v23, %v2382_v22  ;;  %v2390_v28 = vld [vmem:[#allocation2 + $0x8] sm:$0xf]  ;;  %v2784_v29 = vld [vmem:[#allocation2 + $0x10] sm:$0xf0]  ;;  %v2387_v31 = vor.u32 %v2782_v24, %v2384_v27  ;;  %v3019_v50 = vld [vmem:[#allocation9] ss:$0 sm:$0xff] }
  0x4a   : > { %631 = vadd.xlane.f32.xlu0 %v3624_v2  ;;  %886 = vmatpush.bf16.msra.mxu2 %v2439_v53  ;;  %v2391_v32 = vor.u32 %v2784_v29, %v2390_v28  ;;  %v3020_v55 = vld [vmem:[#allocation10] ss:$0 sm:$0xff]  ;;  %v3645_v60 = vld [vmem:[#allocation4] sm:$0x7]  ;;  %vm1148_vm10 = vcmask 523264   ;;  %vm1150_vm11 = vcmask 785408  }
  0x4b   : > { %v723_v5 = vperm.slane %v3645_v60, 2  ;;  %v3678_v27 = vld [vmem:[%s4132_s1] ss:$0 sm:$0xff] }
  0x4c   : > { %859 = vmatpush.bf16.msra.mxu0 %v2419_v57 }
  0x4d   : > { %873 = vmatpush.bf16.msra.mxu1 %v2423_v61  ;;  %v722_v61 = vperm.slane %v3645_v60, 1 }
  0x4e   : > { %887 = vmatpush.bf16.msra.mxu2 %v2427_v62 }
  0x50   : > { %860 = vmatpush.bf16.msra.mxu0 %v2407_v4 }
  0x51   : > { %874 = vmatpush.bf16.msra.mxu1 %v2411_v8 }
  0xb5   : > { %v630_v10 = vpop.xlane.xlu0 %629 }
  0xb6   : > { %v640_v11 = vmul.f32 %v3627_v9, %v630_v10  ;;  %v2415_v10 = vor.u32 %v2790_v7, %v2414_v6 }
  0xb8   : > { %v3631_v12 = vsub.f32 %v3621_v1, %v640_v11  ;;  %888 = vmatpush.bf16.msra.mxu2 %v2415_v10  ;;  %v2394_v11 = vld [vmem:[#allocation2 + $0x18] sm:$0xf] }
  0xba   : > { %v644_v13 = vmul.f32 %v3631_v12, %v3631_v12 }
  0xbc   : > { %646 = vadd.xlane.f32.xlu1 %v644_v13  ;;  %v2786_v13 = vld [vmem:[#allocation2 + $0x20] sm:$0xf0]  ;;  %889 = vmatpush.bf16.msra.mxu2 %v2403_v21 }
  0xbd   : > { %v632_v14 = vpop.xlane.xlu0 %631 }
  0xbe   : > { %v641_v15 = vmul.f32 %v3627_v9, %v632_v14  ;;  %v2785_v14 = vld [vmem:[#allocation2 + $0x1c] sm:$0xf] }
  0xc0   : > { %v3637_v16 = vsub.f32 %v3624_v2, %v641_v15  ;;  %v2395_v15 = vor.u32 %v2786_v13, %v2394_v11  ;;  %890 = vmatpush.bf16.msra.mxu2 %v2391_v32 }
  0xc2   : > { %v645_v17 = vmul.f32 %v3637_v16, %v3637_v16  ;;  %861 = vmatpush.bf16.msra.mxu0 %v2395_v15 }
  0xc4   : > { %648 = vadd.xlane.f32.xlu1 %v645_v17  ;;  %v2396_v17 = vld [vmem:[#allocation2 + $0x24] sm:$0xf0] }
  0xc5   : > { %v2399_v20 = vor.u32 %v2785_v14, %v2396_v17 }
  0xc6   : > { %862 = vmatpush.bf16.msra.mxu0 %v2383_v26 }
  0xc7   : > { %875 = vmatpush.bf16.msra.mxu1 %v2399_v20 }
  0xcb   : > { %876 = vmatpush.bf16.msra.mxu1 %v2387_v31 }
 0x12f   : > { %v647_v25 = vpop.xlane.xlu1 %646 }
 0x130   : > { %v650_v30 = vmul.f32 %v647_v25, %v3627_v9 }
 0x132   : > { %v652_v33 = vadd.f32 1e-06, %v650_v30 }
 0x134   : > { %3028 = vrsqrt.f32 %v652_v33  ;;  %vm660_vm2 = vweird.f32 %v652_v33 }
 0x137   : > { %v649_v34 = vpop.xlane.xlu1 %648 }
 0x138   : > { %v651_v35 = vmul.f32 %v649_v34, %v3627_v9 }
 0x13a   : > { %v3029_v36 = vpop.eup %3028  ;;  %v653_v37 = vadd.f32 1e-06, %v651_v35 }
 0x13b   : > { %v655_v38 = vmul.f32 %v3029_v36, %v652_v33  ;;  %vm661_vm1 = vweird.f32 %v3029_v36 }
 0x13c   : > { %3030 = vrsqrt.f32 %v653_v37  ;;  %vm662_vm3 = vmor %vm660_vm2, %vm661_vm1  ;;  %vm670_vm5 = vweird.f32 %v653_v37 }
 0x13d   : > { %v656_v39 = vmul.f32 %v3029_v36, %v655_v38 }
 0x13f   : > { %v657_v40 = vmul.f32 0.5, %v656_v39 }
 0x141   : > { %v658_v41 = vsub.f32 1.5, %v657_v40 }
 0x142   : > { %v3031_v42 = vpop.eup %3030 }
 0x143   : > { %v659_v43 = vmul.f32 %v3029_v36, %v658_v41  ;;  %v665_v44 = vmul.f32 %v3031_v42, %v653_v37  ;;  %vm671_vm4 = vweird.f32 %v3031_v42 }
 0x144   : > { %vm672_vm6 = vmor %vm670_vm5, %vm671_vm4 }
 0x145   : > { %v666_v45 = vmul.f32 %v3031_v42, %v665_v44  ;;  %v663_v46 = vsel %vm662_vm3, %v3029_v36, %v659_v43 }
 0x146   : > { %v674_v49 = vmul.f32 %v663_v46, %v3631_v12  ;;  %v721_v12 = vperm.slane %v3645_v60, 0 }
 0x147   : > { %v667_v47 = vmul.f32 0.5, %v666_v45 }
 0x148   : > { %v679_v54 = vmul.f32 %v3019_v50, %v674_v49 }
 0x149   : > { %v668_v48 = vsub.f32 1.5, %v667_v47 }
 0x14a   : > { %v684_v57 = vadd.f32 %v3020_v55, %v679_v54 }
 0x14b   : > { %v669_v51 = vmul.f32 %v3031_v42, %v668_v48 }
 0x14d   : > { %v673_v52 = vsel %vm672_vm6, %v3031_v42, %v669_v51 }
 0x14e   : > { %v675_v53 = vmul.f32 %v673_v52, %v3637_v16 }
 0x150   : > { %v680_v56 = vmul.f32 %v3019_v50, %v675_v53 }
 0x152   : > { %v685_v58 = vadd.f32 %v3020_v55, %v680_v56 }
 0x154   : > { %v718_v59 = vpack.c.bf16 %v685_v58, %v684_v57 }
 0x156   : > { %863 = vmatmul.bf16.vlgmr.msra.gmra.mxu0 %v718_v59  ;;  %877 = vmatmul.bf16.vlgmr.msra.gmra.mxu1 %v718_v59 }
 0x157   : > { %891 = vmatmul.bf16.vlgmr.msra.gmra.mxu2 %v718_v59 }
 0x1d3   : > { %v864_v62 = vpop.f32.mrf.mxu0  ;;  %v878_v63 = vpop.f32.mrf.mxu1 }
 0x1d4   : > { %v865_v0 = vadd.f32 %v864_v62, %v721_v12  ;;  %v879_v3 = vadd.f32 %v878_v63, %v722_v61 }
 0x1d6   : > { %v3649_v16 = vpack.c.bf16 %v865_v0, %v865_v0  ;;  %v898_v4 = vpack.c.bf16 %v879_v3, %v879_v3 }
 0x1d8   : > { %962 = vrot.lane.b32.xlu0 %v898_v4, %s3431_s18  ;;  %959 = vrot.lane.b32.xlu1 %v3649_v16, %s3431_s18  ;;  %v905_v6 = vsel %vm900_vm7, %v898_v4, 0 }
 0x1d9   : > { %914 = vmatpush.bf16.xpose.msra.mxu3 %v905_v6 }
 0x1da   : > { %v892_v7 = vpop.f32.mrf.mxu2 }
 0x1db   : > { %v893_v8 = vadd.f32 %v892_v7, %v723_v5  ;;  %v880_v10 = vpop.f32.mrf.mxu1  ;;  %v866_v17 = vpop.f32.mrf.mxu0 }
 0x1dc   : > { %v881_v11 = vadd.f32 %v880_v10, %v722_v61  ;;  %v867_v19 = vadd.f32 %v866_v17, %v721_v12 }
 0x1dd   : > { %v3658_v13 = vpack.c.bf16 %v893_v8, %v893_v8 }
 0x1de   : > { %v1153_v14 = vpack.c.bf16 %v881_v11, %v881_v11  ;;  %v1152_v20 = vpack.c.bf16 %v867_v19, %v867_v19 }
 0x1df   : > { %v943_v15 = vsel %vm941_vm8, %v3658_v13, 0 }
 0x1e0   : > { %1079 = vrot.lane.b32.xlu0 %v898_v4, %s3432_s27  ;;  %v1159_v18 = vsel %vm900_vm7, %v1153_v14, 0  ;;  %1077 = vrot.lane.b32.xlu1 %v3649_v16, %s3432_s27 }
 0x1e1   : > { %952 = vmatpush.bf16.msrb.mxu3 %v943_v15  ;;  %1168 = vmatpush.bf16.xpose.msrb.mxu1 %v1159_v18 }
 0x1e2   : > { %2476 = vmatmul.msk.bf16.vlgmr.msra.gmra.mxu3 %vm900_vm7, %v3649_v16  ;;  %v3704_v59 = vpop.f32.mrf.mxu2 }
 0x1e8   : > { %1211 = vrot.lane.b32.xlu0 %v1153_v14, %s3431_s18  ;;  %2484 = vmatmul.msk.bf16.vlgmr.msrb.gmra.mxu1 %vm900_vm7, %v1152_v20 }
 0x1e9   : > { %1270 = vrot.lane.b32.xlu1 %v1153_v14, %s3433_s22 }
 0x1f0   : > { %1328 = vrot.lane.b32.xlu0 %v1153_v14, %s3432_s27 }
 0x1f1   : > { %1326 = vrot.lane.b32.xlu1 %v1152_v20, %s3432_s27 }
 0x24a   : > { %v963_v21 = vpop.permute.xlu0 %962  ;;  %v960_v22 = vpop.permute.xlu1 %959 }
 0x24b   : > { %v968_v23 = vsel %vm900_vm7, %v963_v21, 0 }
 0x24c   : > { %977 = vmatpush.bf16.xpose.msra.mxu3 %v968_v23 }
 0x252   : > { %v1078_v24 = vpop.permute.xlu1 %1077  ;;  %v1080_v49 = vpop.permute.xlu0 %1079 }
 0x253   : > { %v1085_v51 = vsel %vm900_vm7, %v1080_v49, 0 }
 0x25a   : > { %v1212_v54 = vpop.permute.xlu0 %1211 }
 0x25b   : > { %v1271_v25 = vpop.permute.xlu1 %1270  ;;  %v1217_v55 = vsel %vm900_vm7, %v1212_v54, 0 }
 0x25c   : > { %v1276_v26 = vsel %vm900_vm7, %v1271_v25, 0 }
 0x25d   : > { %1285 = vmatpush.bf16.xpose.msra.mxu1 %v1276_v26 }
 0x262   : > { %v1329_v56 = vpop.permute.xlu0 %1328 }
 0x263   : > { %v1334_v57 = vsel %vm900_vm7, %v1329_v56, 0  ;;  %v1327_v58 = vpop.permute.xlu1 %1326 }
 0x265   : > { %v916_v28 = vpop.f32.mrf.mxu3  ;;  %v1170_v30 = vpop.f32.mrf.mxu1 }
 0x266   : > { %v920_v29 = vmul.f32 0.17677669, %v916_v28  ;;  %v1174_v31 = vmul.f32 0.17677669, %v1170_v30 }
 0x268   : > { %v924_v32 = vadd.f32 %v3678_v27, %v920_v29  ;;  %v3683_v34 = vadd.f32 %v3678_v27, %v1174_v31 }
 0x26a   : > { %v926_v33 = vsel %vm925_vm9, %v924_v32, -inf  ;;  %v1176_v35 = vsel %vm925_vm9, %v3683_v34, -inf }
 0x26b   : > { %927 = vmax.xlane.f32.xlu2 %v926_v33  ;;  %1177 = vmax.xlane.f32.xlu0 %v1176_v35 }
 0x26d   : > { %v918_v36 = vpop.f32.mrf.mxu3  ;;  %v1172_v37 = vpop.f32.mrf.mxu1 }
 0x283   : > { %1021 = vrot.lane.b32.xlu2 %v898_v4, %s3433_s22 }
 0x2de   : > { %v928_v38 = vpop.xlane.xlu2 %927 }
 0x2df   : > { %v929_v39 = vsub.f32 %v924_v32, %v928_v38  ;;  %v1178_v32 = vpop.xlane.xlu0 %1177 }
 0x2e0   : > { %v1179_v33 = vsub.f32 %v3683_v34, %v1178_v32 }
 0x2e1   : > { %v930_v40 = vmul.f32 1.442695, %v929_v39 }
 0x2e2   : > { %v1180_v35 = vmul.f32 1.442695, %v1179_v33 }
 0x2e3   : > { %3032 = vpow2.f32 %v930_v40 }
 0x2e6   : > { %v1022_v41 = vpop.permute.xlu2 %1021 }
 0x2e7   : > { %v1027_v42 = vsel %vm900_vm7, %v1022_v41, 0 }
 0x2e8   : > { %1036 = vmatpush.bf16.xpose.msrb.mxu2 %v1027_v42 }
 0x2e9   : > { %v3033_v43 = vpop.eup %3032 }
 0x2ea   : > { %v932_v44 = vsel %vm925_vm9, %v3033_v43, 0.0 }
 0x2eb   : > { %933 = vadd.xlane.f32.xlu2 %v932_v44 }
 0x303   : > { %1019 = vrot.lane.b32.xlu2 %v3649_v16, %s3433_s22 }
 0x30b   : > { %1208 = vrot.lane.b32.xlu2 %v1152_v20, %s3431_s18 }
 0x313   : > { %1268 = vrot.lane.b32.xlu2 %v1152_v20, %s3433_s22 }
 0x35e   : > { %v934_v45 = vpop.xlane.xlu2 %933 }
 0x35f   : > { %3034 = vrcp.f32 %v934_v45 }
 0x360   : > { %3036 = vpow2.f32 %v1180_v35 }
 0x365   : > { %v3035_v46 = vpop.eup %3034 }
 0x366   : > { %v936_v47 = vmul.f32 %v3035_v46, %v3033_v43  ;;  %v1020_v48 = vpop.permute.xlu2 %1019  ;;  %v3726_v36 = vpop.eup %3036 }
 0x367   : > { %2480 = vmatmul.msk.bf16.vlgmr.msrb.gmra.mxu2 %vm900_vm7, %v1020_v48  ;;  %v1182_v37 = vsel %vm925_vm9, %v3726_v36, 0.0 }
 0x368   : > { %v937_v50 = vpack.c.bf16 %v936_v47, %v936_v47 }
 0x36a   : > { %2477 = vmatmul.msk.bf16.vlgmr.msrb.gmra.mxu3 %vm925_vm9, %v937_v50 }
 0x36b   : > { %1094 = vmatpush.bf16.xpose.msrb.mxu3 %v1085_v51 }
 0x36e   : > { %v1209_v52 = vpop.permute.xlu2 %1208 }
 0x376   : > { %v1269_v53 = vpop.permute.xlu2 %1268 }
 0x377   : > { %2488 = vmatmul.msk.bf16.vlgmr.msra.gmra.mxu1 %vm900_vm7, %v1269_v53 }
 0x37a   : > { %2478 = vmatmul.msk.bf16.vlgmr.msra.gmra.mxu3 %vm900_vm7, %v960_v22 }
 0x37b   : > { %1226 = vmatpush.bf16.xpose.msra.mxu3 %v1217_v55 }
 0x38a   : > { %2482 = vmatmul.msk.bf16.vlgmr.msrb.gmra.mxu3 %vm900_vm7, %v1078_v24 }
 0x38b   : > { %1343 = vmatpush.bf16.xpose.msrb.mxu3 %v1334_v57 }
 0x39a   : > { %2486 = vmatmul.msk.bf16.vlgmr.msra.gmra.mxu3 %vm900_vm7, %v1209_v52 }
 0x3aa   : > { %2490 = vmatmul.msk.bf16.vlgmr.msrb.gmra.mxu3 %vm900_vm7, %v1327_v58 }
 0x3ea   : > { %v1038_v12 = vpop.f32.mrf.mxu2 }
 0x3eb   : > { %v1042_v61 = vmul.f32 0.17677669, %v1038_v12 }
 0x3ed   : > { %v3706_v62 = vpop.f32.mrf.mxu3  ;;  %v1043_v63 = vadd.f32 %v3678_v27, %v1042_v61 }
 0x3ef   : > { %v1044_v0 = vsel %vm925_vm9, %v1043_v63, -inf }
 0x3f0   : > { %1045 = vmax.xlane.f32.xlu2 %v1044_v0 }
 0x3f2   : > { %v1040_v3 = vpop.f32.mrf.mxu2 }
 0x3f4   : > { %v1287_v16 = vpop.f32.mrf.mxu1 }
 0x3f5   : > { %v1291_v4 = vmul.f32 0.17677669, %v1287_v16  ;;  %v956_v6 = vpop.f32.mrf.mxu3 }
 0x3f7   : > { %v3711_v7 = vadd.f32 %v3678_v27, %v1291_v4 }
 0x3f9   : > { %v1293_v8 = vsel %vm925_vm9, %v3711_v7, -inf }
 0x3fa   : > { %1294 = vmax.xlane.f32.xlu1 %v1293_v8 }
 0x3fc   : > { %v1289_v10 = vpop.f32.mrf.mxu1 }
 0x3fd   : > { %v979_v11 = vpop.f32.mrf.mxu3 }
 0x3fe   : > { %v983_v14 = vmul.f32 0.17677669, %v979_v11 }
 0x400   : > { %v984_v15 = vadd.f32 %v3678_v27, %v983_v14 }
 0x402   : > { %v985_v17 = vsel %vm925_vm9, %v984_v15, -inf }
 0x403   : > { %986 = vmax.xlane.f32.xlu0 %v985_v17 }
 0x405   : > { %v981_v18 = vpop.f32.mrf.mxu3 }
 0x40d   : > { %v1096_v19 = vpop.f32.mrf.mxu3 }
 0x40e   : > { %v1100_v20 = vmul.f32 0.17677669, %v1096_v19 }
 0x410   : > { %v1101_v21 = vadd.f32 %v3678_v27, %v1100_v20 }
 0x412   : > { %v1102_v22 = vsel %vm925_vm9, %v1101_v21, -inf }
 0x413   : > { %1103 = vmax.xlane.f32.xlu1 %v1102_v22 }
 0x415   : > { %v1098_v23 = vpop.f32.mrf.mxu3 }
 0x41d   : > { %v1228_v24 = vpop.f32.mrf.mxu3 }
 0x41e   : > { %v1232_v25 = vmul.f32 0.17677669, %v1228_v24 }
 0x420   : > { %v1233_v26 = vadd.f32 %v3678_v27, %v1232_v25 }
 0x422   : > { %v1234_v28 = vsel %vm925_vm9, %v1233_v26, -inf }
 0x423   : > { %1235 = vmax.xlane.f32.xlu2 %v1234_v28 }
 0x425   : > { %v1230_v29 = vpop.f32.mrf.mxu3 }
 0x42c   : > { %998 = vrot.lane.b32.xlu1 %v3658_v13, %s3431_s18 }
 0x42d   : > { %v1345_v30 = vpop.f32.mrf.mxu3 }
 0x42e   : > { %v1349_v42 = vmul.f32 0.17677669, %v1345_v30 }
 0x430   : > { %v1350_v44 = vadd.f32 %v3678_v27, %v1349_v42 }
 0x432   : > { %v1351_v46 = vsel %vm925_vm9, %v1350_v44, -inf }
 0x435   : > { %v1347_v31 = vpop.f32.mrf.mxu3 }
 0x43b   : > { %1114 = vrot.lane.b32.xlu2 %v3658_v13, %s3432_s27 }
 0x456   : > { %1183 = vadd.xlane.f32.xlu1 %v1182_v37 }
 0x463   : > { %v1046_v38 = vpop.xlane.xlu2 %1045 }
 0x464   : > { %v1047_v39 = vsub.f32 %v1043_v63, %v1046_v38  ;;  %v895_v63 = vadd.f32 %v3704_v59, %v723_v5 }
 0x466   : > { %v1048_v40 = vmul.f32 1.442695, %v1047_v39 }
 0x468   : > { %3038 = vpow2.f32 %v1048_v40 }
 0x46d   : > { %v1295_v48 = vpop.xlane.xlu1 %1294 }
 0x46e   : > { %v3039_v41 = vpop.eup %3038  ;;  %v1296_v4 = vsub.f32 %v3711_v7, %v1295_v48 }
 0x46f   : > { %v1050_v43 = vsel %vm925_vm9, %v3039_v41, 0.0 }
 0x470   : > { %1051 = vadd.xlane.f32.xlu0 %v1050_v43  ;;  %v1297_v6 = vmul.f32 1.442695, %v1296_v4 }
 0x476   : > { %v987_v34 = vpop.xlane.xlu0 %986 }
 0x477   : > { %v988_v45 = vsub.f32 %v984_v15, %v987_v34 }
 0x478   : > { %1352 = vmax.xlane.f32.xlu0 %v1351_v46 }
 0x479   : > { %v989_v47 = vmul.f32 1.442695, %v988_v45 }
 0x47b   : > { %3040 = vpow2.f32 %v989_v47 }
 0x481   : > { %v3041_v49 = vpop.eup %3040 }
 0x482   : > { %v991_v50 = vsel %vm925_vm9, %v3041_v49, 0.0 }
 0x483   : > { %992 = vadd.xlane.f32.xlu2 %v991_v50 }
 0x486   : > { %v1104_v51 = vpop.xlane.xlu1 %1103 }
 0x487   : > { %v1105_v52 = vsub.f32 %v1101_v21, %v1104_v51 }
 0x489   : > { %v1106_v53 = vmul.f32 1.442695, %v1105_v52 }
 0x48b   : > { %3042 = vpow2.f32 %v1106_v53 }
 0x48c   : > { %1056 = vrot.lane.b32.xlu0 %v3658_v13, %s3433_s22  ;;  %v1154_v13 = vpack.c.bf16 %v895_v63, %v895_v63 }
 0x48e   : > { %v1192_v23 = vsel %vm941_vm8, %v1154_v13, 0 }
 0x491   : > { %v3043_v27 = vpop.eup %3042 }
 0x492   : > { %v1108_v54 = vsel %vm925_vm9, %v3043_v27, 0.0 }
 0x493   : > { %1109 = vadd.xlane.f32.xlu2 %v1108_v54 }
 0x496   : > { %v1236_v55 = vpop.xlane.xlu2 %1235 }
 0x497   : > { %v1237_v61 = vsub.f32 %v1233_v26, %v1236_v55 }
 0x499   : > { %v1238_v0 = vmul.f32 1.442695, %v1237_v61 }
 0x49b   : > { %3044 = vpow2.f32 %v1238_v0 }
 0x49c   : > { %3046 = vpow2.f32 %v1297_v6 }
 0x49e   : > { %v999_v56 = vpop.permute.xlu1 %998  ;;  %v1115_v57 = vpop.permute.xlu2 %1114 }
 0x49f   : > { %v1120_v58 = vsel %vm941_vm8, %v1115_v57, 0  ;;  %v1004_v12 = vsel %vm941_vm8, %v999_v56, 0 }
 0x4a0   : > { %1013 = vmatpush.bf16.msrb.mxu0 %v1004_v12 }
 0x4a1   : > { %v3045_v3 = vpop.eup %3044 }
 0x4a2   : > { %v1240_v16 = vsel %vm925_vm9, %v3045_v3, 0.0  ;;  %v3047_v8 = vpop.eup %3046 }
 0x4a3   : > { %v1299_v60 = vsel %vm925_vm9, %v3047_v8, 0.0 }
 0x4a4   : > { %1129 = vmatpush.bf16.msra.mxu0 %v1120_v58 }
 0x4ab   : > { %1247 = vrot.lane.b32.xlu2 %v1154_v13, %s3431_s18 }
 0x4b6   : > { %1241 = vadd.xlane.f32.xlu0 %v1240_v16 }
 0x4c9   : > { %v1184_v25 = vpop.xlane.xlu1 %1183 }
 0x4ca   : > { %1305 = vrot.lane.b32.xlu0 %v1154_v13, %s3433_s22 }
 0x4d4   : > { %1300 = vadd.xlane.f32.xlu2 %v1299_v60  ;;  %v2813_v60 = vld [vmem:[#allocation6 + $0x38] sm:$0xff] }
 0x4d5   : > { %1464 = vmatpush.bf16.msrb.mxu1 %v2813_v60  ;;  %v2606_v60 = vld [vmem:[%s4141_s10 + $0xa0] sm:$0xf] }
 0x4e3   : > { %v1052_v5 = vpop.xlane.xlu0 %1051 }
 0x4eb   : > { %v1353_v59 = vpop.xlane.xlu0 %1352 }
 0x4ec   : > { %v1354_v10 = vsub.f32 %v1350_v44, %v1353_v59  ;;  %v2811_v59 = vld [vmem:[#allocation6 + $0x28] sm:$0xff] }
 0x4ee   : > { %v1355_v11 = vmul.f32 1.442695, %v1354_v10  ;;  %v2810_v10 = vld [vmem:[#allocation6 + $0x20] sm:$0xff] }
 0x4f0   : > { %3048 = vpow2.f32 %v1355_v11  ;;  %v2809_v11 = vld [vmem:[#allocation6 + $0x18] sm:$0xff] }
 0x4f1   : > { %3050 = vrcp.f32 %v1052_v5  ;;  %v2812_v5 = vld [vmem:[#allocation6 + $0x30] sm:$0xff] }
 0x4f2   : > { %1465 = vmatpush.bf16.msrb.mxu1 %v2812_v5  ;;  %v2836_v5 = vld [vmem:[%s4141_s10 + $0xac] sm:$0xf0] }
 0x4f6   : > { %v3049_v14 = vpop.eup %3048  ;;  %v993_v15 = vpop.xlane.xlu2 %992  ;;  %1466 = vmatpush.bf16.msrb.mxu1 %v2811_v59  ;;  %v2834_v59 = vld [vmem:[%s4141_s10 + $0xa4] sm:$0xf] }
 0x4f7   : > { %3052 = vrcp.f32 %v993_v15  ;;  %v1357_v17 = vsel %vm925_vm9, %v3049_v14, 0.0  ;;  %v3051_v7 = vpop.eup %3050  ;;  %v2807_v15 = vld [vmem:[#allocation6 + $0x8] sm:$0xff] }
 0x4f8   : > { %1358 = vadd.xlane.f32.xlu1 %v1357_v17  ;;  %v1054_v19 = vmul.f32 %v3051_v7, %v3039_v41  ;;  %3054 = vrcp.f32 %v1184_v25  ;;  %v2806_v17 = vld [vmem:[#allocation6] sm:$0xff] }
 0x4fa   : > { %v1055_v26 = vpack.c.bf16 %v1054_v19, %v1054_v19  ;;  %1467 = vmatpush.bf16.msrb.mxu1 %v2810_v10  ;;  %v2607_v10 = vor.u32 %v2836_v5, %v2606_v60  ;;  %v2552_v60 = vld [vmem:[%s4141_s10 + $0x38] sm:$0xf0]  ;;  %v2526_v5 = vld [vmem:[%s4141_s10] sm:$0xf] }
 0x4fd   : > { %v3053_v18 = vpop.eup %3052 }
 0x4fe   : > { %v995_v20 = vmul.f32 %v3053_v18, %v3041_v49  ;;  %v1057_v21 = vpop.permute.xlu0 %1056  ;;  %v3055_v29 = vpop.eup %3054  ;;  %1468 = vmatpush.bf16.msrb.mxu1 %v2809_v11  ;;  %v2608_v11 = vld [vmem:[%s4141_s10 + $0xb0] sm:$0xf0] }
 0x4ff   : > { %v1062_v22 = vsel %vm941_vm8, %v1057_v21, 0  ;;  %v1186_v31 = vmul.f32 %v3055_v29, %v3726_v36 }
 0x500   : > { %1071 = vmatpush.bf16.msra.mxu2 %v1062_v22  ;;  %v996_v24 = vpack.c.bf16 %v995_v20, %v995_v20 }
 0x501   : > { %v1187_v38 = vpack.c.bf16 %v1186_v31, %v1186_v31 }
 0x502   : > { %2479 = vmatmul.msk.bf16.vlgmr.msrb.gmra.mxu0 %vm925_vm9, %v996_v24 }
 0x503   : > { %2481 = vmatmul.msk.bf16.vlgmr.msra.gmra.mxu2 %vm925_vm9, %v1055_v26 }
 0x504   : > { %1201 = vmatpush.bf16.msrb.mxu2 %v1192_v23 }
 0x506   : > { %v1110_v28 = vpop.xlane.xlu2 %1109 }
 0x507   : > { %3056 = vrcp.f32 %v1110_v28 }
 0x50d   : > { %v3057_v30 = vpop.eup %3056 }
 0x50e   : > { %v1112_v32 = vmul.f32 %v3057_v30, %v3043_v27  ;;  %v1248_v33 = vpop.permute.xlu2 %1247 }
 0x50f   : > { %v1253_v35 = vsel %vm941_vm8, %v1248_v33, 0 }
 0x510   : > { %v1113_v37 = vpack.c.bf16 %v1112_v32, %v1112_v32  ;;  %1262 = vmatpush.bf16.msrb.mxu0 %v1253_v35  ;;  %v3022_v35 = vld [vmem:[#allocation7] ss:$0 sm:$0xff] }
 0x511   : > { %1363 = vrot.lane.b32.xlu1 %v1154_v13, %s3432_s27 }
 0x512   : > { %2483 = vmatmul.msk.bf16.vlgmr.msra.gmra.mxu0 %vm925_vm9, %v1113_v37 }
 0x513   : > { %2485 = vmatmul.msk.bf16.vlgmr.msrb.gmra.mxu2 %vm925_vm9, %v1187_v38 }
 0x529   : > { %v1242_v39 = vpop.xlane.xlu0 %1241 }
 0x52a   : > { %3058 = vrcp.f32 %v1242_v39 }
 0x530   : > { %v3059_v40 = vpop.eup %3058 }
 0x531   : > { %v1244_v41 = vmul.f32 %v3059_v40, %v3045_v3 }
 0x533   : > { %v1245_v42 = vpack.c.bf16 %v1244_v41, %v1244_v41 }
 0x535   : > { %2487 = vmatmul.msk.bf16.vlgmr.msrb.gmra.mxu0 %vm925_vm9, %v1245_v42 }
 0x53c   : > { %v1306_v36 = vpop.permute.xlu0 %1305 }
 0x53d   : > { %v1311_v43 = vsel %vm941_vm8, %v1306_v36, 0 }
 0x53e   : > { %1320 = vmatpush.bf16.msra.mxu2 %v1311_v43 }
 0x547   : > { %v1301_v44 = vpop.xlane.xlu2 %1300 }
 0x548   : > { %3060 = vrcp.f32 %v1301_v44 }
 0x54e   : > { %v3061_v34 = vpop.eup %3060 }
 0x54f   : > { %v1303_v45 = vmul.f32 %v3061_v34, %v3047_v8 }
 0x551   : > { %v1304_v46 = vpack.c.bf16 %v1303_v45, %v1303_v45 }
 0x553   : > { %2489 = vmatmul.msk.bf16.vlgmr.msra.gmra.mxu2 %vm925_vm9, %v1304_v46  ;;  %v2638_v46 = vld [vmem:[%s4141_s10 + $0xe0] sm:$0xf] }
 0x56b   : > { %v1359_v47 = vpop.xlane.xlu1 %1358 }
 0x56c   : > { %3062 = vrcp.f32 %v1359_v47  ;;  %v2844_v47 = vld [vmem:[%s4141_s10 + $0xec] sm:$0xf0] }
 0x572   : > { %v3063_v48 = vpop.eup %3062 }
 0x573   : > { %v1361_v50 = vmul.f32 %v3063_v48, %v3049_v14  ;;  %v2808_v14 = vld [vmem:[#allocation6 + $0x10] sm:$0xff]  ;;  %v2842_v48 = vld [vmem:[%s4141_s10 + $0xe4] sm:$0xf] }
 0x574   : > { %1469 = vmatpush.bf16.msrb.mxu1 %v2808_v14  ;;  %v2614_v14 = vld [vmem:[%s4141_s10 + $0xa8] sm:$0xf] }
 0x575   : > { %v1362_v53 = vpack.c.bf16 %v1361_v50, %v1361_v50  ;;  %v2640_v50 = vld [vmem:[%s4141_s10 + $0xf0] sm:$0xf0] }
 0x578   : > { %1470 = vmatpush.bf16.msrb.mxu1 %v2807_v15  ;;  %v2837_v15 = vld [vmem:[%s4141_s10 + $0xb4] sm:$0xf0] }
 0x57c   : > { %1471 = vmatpush.bf16.msrb.mxu1 %v2806_v17  ;;  %v2611_v17 = vor.u32 %v2834_v59, %v2608_v11  ;;  %v2816_v11 = vld [vmem:[%s4141_s10 + $0xc] sm:$0xf0] }
 0x57f   : > { %v1015_v49 = vpop.f32.mrf.mxu0 }
 0x583   : > { %v1364_v51 = vpop.permute.xlu1 %1363 }
 0x584   : > { %v1369_v52 = vsel %vm941_vm8, %v1364_v51, 0  ;;  %v2646_v51 = vld [vmem:[%s4141_s10 + $0xe8] sm:$0xf] }
 0x585   : > { %1378 = vmatpush.bf16.msra.mxu0 %v1369_v52  ;;  %v2845_v52 = vld [vmem:[%s4141_s10 + $0xf4] sm:$0xf0] }
 0x586   : > { %v1073_v27 = vpop.f32.mrf.mxu2 }
 0x587   : > { %v1017_v54 = vpop.f32.mrf.mxu0 }
 0x588   : > { %2491 = vmatmul.msk.bf16.vlgmr.msra.gmra.mxu0 %vm925_vm9, %v1362_v53  ;;  %v2643_v53 = vor.u32 %v2842_v48, %v2640_v50  ;;  %v2843_v54 = vld [vmem:[%s4141_s10 + $0xec] sm:$0xf]  ;;  %v2824_v48 = vld [vmem:[%s4141_s10 + $0x4c] sm:$0xf0] }
 0x58a   : > { %1755 = vmatpush.bf16.msra.mxu3 %v2643_v53  ;;  %v2825_v53 = vld [vmem:[%s4141_s10 + $0x54] sm:$0xf0] }
 0x58e   : > { %v1075_v55 = vpop.f32.mrf.mxu2 }
 0x58f   : > { %v1131_v56 = vpop.f32.mrf.mxu0  ;;  %v2648_v55 = vld [vmem:[%s4141_s10 + $0xf8] sm:$0xf0] }
 0x596   : > { %v1203_v57 = vpop.f32.mrf.mxu2 }
 0x597   : > { %v1133_v58 = vpop.f32.mrf.mxu0 }
 0x598   : > { %v2840_v58 = vld [vmem:[%s4141_s10 + $0xcc] sm:$0xf0] }
 0x59e   : > { %v1205_v12 = vpop.f32.mrf.mxu2 }
 0x59f   : > { %v2838_v12 = vld [vmem:[%s4141_s10 + $0xc4] sm:$0xf] }
 0x5b2   : > { %v1264_v61 = vpop.f32.mrf.mxu0 }
 0x5b3   : > { %v3004_v63 = vpack.i.bf16 %v1264_v61, %v1015_v49  ;;  %v2639_v49 = vor.u32 %v2844_v47, %v2638_v46  ;;  %v2558_v47 = vld [vmem:[%s4141_s10 + $0x40] sm:$0xf] }
 0x5b4   : > { %v2559_v50 = vor.u32 %v2824_v48, %v2558_v47  ;;  %v3024_v47 = vld [vmem:[#allocation13] ss:$0 sm:$0xff] }
 0x5b5   : > { %3005 = vrot.lane.b32.xlu2 %v3004_v63, %s3432_s27  ;;  %1741 = vmatpush.bf16.msrb.mxu2 %v2639_v49  ;;  %v2624_v63 = vld [vmem:[%s4141_s10 + $0xd0] sm:$0xf0]  ;;  %v2822_v49 = vld [vmem:[%s4141_s10 + $0x44] sm:$0xf] }
 0x5ba   : > { %v1266_v0 = vpop.f32.mrf.mxu0 }
 0x5bb   : > { %v2630_v0 = vld [vmem:[%s4141_s10 + $0xc8] sm:$0xf] }
 0x5d6   : > { %v1322_v13 = vpop.f32.mrf.mxu2 }
 0x5d7   : > { %v3009_v3 = vpack.i.bf16 %v1322_v13, %v1073_v27  ;;  %v2647_v27 = vor.u32 %v2845_v52, %v2646_v51  ;;  %v2841_v13 = vld [vmem:[%s4141_s10 + $0xd4] sm:$0xf0]  ;;  %v2560_v51 = vld [vmem:[%s4141_s10 + $0x50] sm:$0xf0]  ;;  %v2566_v52 = vld [vmem:[%s4141_s10 + $0x48] sm:$0xf] }
 0x5d9   : > { %3010 = vrot.lane.b32.xlu0 %v3009_v3, %s3433_s22  ;;  %1769 = vmatpush.bf16.msrb.mxu0 %v2647_v27  ;;  %v2627_v3 = vor.u32 %v2838_v12, %v2624_v63  ;;  %v2563_v27 = vor.u32 %v2822_v49, %v2560_v51  ;;  %v2820_v12 = vld [vmem:[%s4141_s10 + $0x2c] sm:$0xf0] }
 0x5db   : > { %1756 = vmatpush.bf16.msra.mxu3 %v2627_v3  ;;  %v2821_v3 = vld [vmem:[%s4141_s10 + $0x34] sm:$0xf0] }
 0x5de   : > { %v1324_v16 = vpop.f32.mrf.mxu2 }
 0x5df   : > { %v2631_v16 = vor.u32 %v2841_v13, %v2630_v0  ;;  %1757 = vmatpush.bf16.msra.mxu3 %v2611_v17  ;;  %v2544_v0 = vld [vmem:[%s4141_s10 + $0x30] sm:$0xf0]  ;;  %v2550_v13 = vld [vmem:[%s4141_s10 + $0x28] sm:$0xf]  ;;  %v2527_v17 = vor.u32 %v2816_v11, %v2526_v5  ;;  %v2849_v5 = vld [vmem:[%s4143_s12 + $0x18] sm:$0xff] }
 0x5e0   : > { %v2871_v11 = vld [vmem:[%s4143_s12 + $0xc8] sm:$0xff] }
 0x5e1   : > { %1770 = vmatpush.bf16.msrb.mxu0 %v2631_v16 }
 0x605   : > { %v1380_v4 = vpop.f32.mrf.mxu0 }
 0x606   : > { %v3014_v6 = vpack.i.bf16 %v1380_v4, %v1131_v56  ;;  %v2651_v56 = vor.u32 %v2843_v54, %v2648_v55  ;;  %v2839_v4 = vld [vmem:[%s4141_s10 + $0xcc] sm:$0xf]  ;;  %v2567_v54 = vor.u32 %v2825_v53, %v2566_v52  ;;  %v2877_v52 = vld [vmem:[%s4143_s12 + $0xf8] sm:$0xff]  ;;  %v2876_v53 = vld [vmem:[%s4143_s12 + $0xf0] sm:$0xff] }
 0x607   : > { %v2823_v55 = vld [vmem:[%s4141_s10 + $0x4c] sm:$0xf] }
 0x608   : > { %3015 = vrot.lane.b32.xlu1 %v3014_v6, %s3431_s18  ;;  %1783 = vmatpush.bf16.msra.mxu1 %v2651_v56  ;;  %v2632_v6 = vld [vmem:[%s4141_s10 + $0xd8] sm:$0xf0] }
 0x609   : > { %v2568_v56 = vld [vmem:[%s4141_s10 + $0x58] sm:$0xf0] }
 0x60d   : > { %v1382_v8 = vpop.f32.mrf.mxu0 }
 0x60e   : > { %v2635_v8 = vor.u32 %v2839_v4, %v2632_v6  ;;  %v2551_v6 = vor.u32 %v2821_v3, %v2550_v13  ;;  %v2865_v13 = vld [vmem:[%s4143_s12 + $0x98] sm:$0xff] }
 0x60f   : > { %v3006_v7 = vpop.permute.xlu2 %3005  ;;  %v2873_v3 = vld [vmem:[%s4143_s12 + $0xd8] sm:$0xff] }
 0x610   : > { %v3008_v19 = vunpack.i.h.bf16 %v3006_v7  ;;  %v3007_v20 = vunpack.i.l.bf16 %v3006_v7  ;;  %1784 = vmatpush.bf16.msra.mxu1 %v2635_v8  ;;  %v2615_v7 = vor.u32 %v2837_v15, %v2614_v14  ;;  %v2819_v8 = vld [vmem:[%s4141_s10 + $0x2c] sm:$0xf]  ;;  %v2814_v14 = vld [vmem:[%s4141_s10 + $0x4] sm:$0xf]  ;;  %v2528_v15 = vld [vmem:[%s4141_s10 + $0x10] sm:$0xf0] }
 0x612   : > { %v1396_v24 = vsel %vm900_vm7, %v1203_v57, %v3008_v19  ;;  %v1147_v25 = vsel %vm900_vm7, %v3706_v62, %v3007_v20  ;;  %v2622_v57 = vld [vmem:[%s4141_s10 + $0xc0] sm:$0xf]  ;;  %v2616_v19 = vld [vmem:[%s4141_s10 + $0xb8] sm:$0xf0]  ;;  %1771 = vmatpush.bf16.msrb.mxu0 %v2615_v7  ;;  %v2531_v7 = vor.u32 %v2814_v14, %v2528_v15 }
 0x613   : > { %v2623_v61 = vor.u32 %v2840_v58, %v2622_v57  ;;  %v2571_v57 = vor.u32 %v2823_v55, %v2568_v56  ;;  %v2542_v58 = vld [vmem:[%s4141_s10 + $0x20] sm:$0xf]  ;;  %v2867_v55 = vld [vmem:[%s4143_s12 + $0xa8] sm:$0xff] }
 0x614   : > { %v2543_v63 = vor.u32 %v2820_v12, %v2542_v58  ;;  %v2875_v56 = vld [vmem:[%s4143_s12 + $0xe8] sm:$0xff]  ;;  %v2860_v58 = vld [vmem:[%s4143_s12 + $0x70] sm:$0xff]  ;;  %v2866_v12 = vld [vmem:[%s4143_s12 + $0xa0] sm:$0xff] }
 0x615   : > { %1742 = vmatpush.bf16.msrb.mxu2 %v2623_v61  ;;  %v2818_v61 = vld [vmem:[%s4141_s10 + $0x24] sm:$0xf] }
 0x616   : > { %v2547_v4 = vor.u32 %v2818_v61, %v2544_v0  ;;  %v2874_v61 = vld [vmem:[%s4143_s12 + $0xe0] sm:$0xff]  ;;  %v2859_v0 = vld [vmem:[%s4143_s12 + $0x68] sm:$0xff] }
 0x619   : > { %1743 = vmatpush.bf16.msrb.mxu2 %v2607_v10  ;;  %v2555_v10 = vor.u32 %v2819_v8, %v2552_v60  ;;  %v2872_v8 = vld [vmem:[%s4143_s12 + $0xd0] sm:$0xff] }
 0x61a   : > { %v4044_v60 = vld [vmem:[#allocation15] sm:$0xf] }
 0x61b   : > { %v1575_v14 = vperm.slane %v4044_v60, 2  ;;  %v1576_v15 = vperm.slane %v4044_v60, 3 }
 0x64b   : > { %v3011_v18 = vpop.permute.xlu0 %3010 }
 0x64c   : > { %v3013_v21 = vunpack.i.h.bf16 %v3011_v18  ;;  %v3012_v22 = vunpack.i.l.bf16 %v3011_v18  ;;  %v2835_v18 = vld [vmem:[%s4141_s10 + $0xac] sm:$0xf] }
 0x64d   : > { %v2619_v20 = vor.u32 %v2835_v18, %v2616_v19  ;;  %v2534_v18 = vld [vmem:[%s4141_s10 + $0x8] sm:$0xf]  ;;  %v2817_v19 = vld [vmem:[%s4141_s10 + $0x14] sm:$0xf0] }
 0x64e   : > { %v1397_v29 = vsel %vm1148_vm10, %v1396_v24, %v3013_v21  ;;  %v1149_v30 = vsel %vm1148_vm10, %v1147_v25, %v3012_v22  ;;  %v2590_v21 = vld [vmem:[%s4141_s10 + $0x80] sm:$0xf]  ;;  %v2832_v22 = vld [vmem:[%s4141_s10 + $0x8c] sm:$0xf0]  ;;  %v2592_v25 = vld [vmem:[%s4141_s10 + $0x90] sm:$0xf0] }
 0x64f   : > { %1785 = vmatpush.bf16.msra.mxu1 %v2619_v20  ;;  %v2591_v24 = vor.u32 %v2832_v22, %v2590_v21  ;;  %v2815_v20 = vld [vmem:[%s4141_s10 + $0xc] sm:$0xf]  ;;  %v2535_v22 = vor.u32 %v2817_v19, %v2534_v18 }
 0x651   : > { %1744 = vmatpush.bf16.msrb.mxu2 %v2591_v24 }
 0x67a   : > { %v3016_v23 = vpop.permute.xlu1 %3015 }
 0x67b   : > { %v3018_v26 = vunpack.i.h.bf16 %v3016_v23  ;;  %v3017_v28 = vunpack.i.l.bf16 %v3016_v23  ;;  %v2830_v23 = vld [vmem:[%s4141_s10 + $0x84] sm:$0xf] }
 0x67d   : > { %v1151_v31 = vsel %vm1150_vm11, %v1149_v30, %v3017_v28  ;;  %v1398_v32 = vsel %vm1150_vm11, %v1397_v29, %v3018_v26  ;;  %v2598_v26 = vld [vmem:[%s4141_s10 + $0x88] sm:$0xf]  ;;  %v2833_v28 = vld [vmem:[%s4141_s10 + $0x94] sm:$0xf0]  ;;  %v2595_v29 = vor.u32 %v2830_v23, %v2592_v25  ;;  %v2536_v23 = vld [vmem:[%s4141_s10 + $0x18] sm:$0xf0] }
 0x67e   : > { %v1415_v33 = vpack.c.bf16 %v1398_v32, %v1151_v31  ;;  %v2599_v30 = vor.u32 %v2833_v28, %v2598_v26  ;;  %v2831_v31 = vld [vmem:[%s4141_s10 + $0x8c] sm:$0xf]  ;;  %v2600_v32 = vld [vmem:[%s4141_s10 + $0x98] sm:$0xf0]  ;;  %v2539_v24 = vor.u32 %v2815_v20, %v2536_v23  ;;  %v2862_v20 = vld [vmem:[%s4143_s12 + $0x80] sm:$0xff] }
 0x67f   : > { %1758 = vmatpush.bf16.msra.mxu3 %v2595_v29 }
 0x680   : > { %1472 = vmatmul.bf16.vlgmr.msrb.gmra.mxu1 %v1415_v33  ;;  %v2603_v33 = vor.u32 %v2831_v31, %v2600_v32  ;;  %1772 = vmatpush.bf16.msrb.mxu0 %v2599_v30 }
 0x682   : > { %1786 = vmatpush.bf16.msra.mxu1 %v2603_v33 }
 0x6fd   : > { %v1473_v37 = vpop.f32.mrf.mxu1 }
 0x6fe   : > { %v1478_v38 = vadd.f32 %v3621_v1, %v1473_v37  ;;  %v2828_v37 = vld [vmem:[%s4141_s10 + $0x6c] sm:$0xf0] }
 0x700   : > { %v3769_v39 = vadd.f32 %v3022_v35, %v1478_v38  ;;  %v2826_v38 = vld [vmem:[%s4141_s10 + $0x64] sm:$0xf] }
 0x702   : > { %1488 = vadd.xlane.f32.xlu0 %v3769_v39 }
 0x705   : > { %v1475_v40 = vpop.f32.mrf.mxu1 }
 0x706   : > { %v1479_v41 = vadd.f32 %v3624_v2, %v1475_v40 }
 0x708   : > { %v3773_v62 = vadd.f32 %v3022_v35, %v1479_v41  ;;  %v2574_v35 = vld [vmem:[%s4141_s10 + $0x60] sm:$0xf]  ;;  %v2576_v41 = vld [vmem:[%s4141_s10 + $0x70] sm:$0xf0] }
 0x709   : > { %v2575_v40 = vor.u32 %v2828_v37, %v2574_v35 }
 0x70a   : > { %1490 = vadd.xlane.f32.xlu1 %v3773_v62 }
 0x70b   : > { %1745 = vmatpush.bf16.msrb.mxu2 %v2575_v40 }
 0x70f   : > { %1746 = vmatpush.bf16.msrb.mxu2 %v2559_v50 }
 0x713   : > { %1747 = vmatpush.bf16.msrb.mxu2 %v2543_v63  ;;  %v2851_v63 = vld [vmem:[%s4143_s12 + $0x28] sm:$0xff] }
 0x717   : > { %1748 = vmatpush.bf16.msrb.mxu2 %v2527_v17  ;;  %v2848_v17 = vld [vmem:[%s4143_s12 + $0x10] sm:$0xff] }
 0x775   : > { %v1489_v42 = vpop.xlane.xlu0 %1488 }
 0x776   : > { %v1492_v36 = vmul.f32 %v1489_v42, %v3627_v9  ;;  %v2582_v42 = vld [vmem:[%s4141_s10 + $0x68] sm:$0xf] }
 0x778   : > { %v3778_v43 = vsub.f32 %v3769_v39, %v1492_v36  ;;  %v2829_v36 = vld [vmem:[%s4141_s10 + $0x74] sm:$0xf0] }
 0x77a   : > { %v1496_v1 = vmul.f32 %v3778_v43, %v3778_v43 }
 0x77c   : > { %1498 = vadd.xlane.f32.xlu2 %v1496_v1  ;;  %v2579_v1 = vor.u32 %v2826_v38, %v2576_v41 }
 0x77d   : > { %v1491_v44 = vpop.xlane.xlu1 %1490 }
 0x77e   : > { %v1493_v34 = vmul.f32 %v1491_v44, %v3627_v9  ;;  %v2583_v44 = vor.u32 %v2829_v36, %v2582_v42  ;;  %1759 = vmatpush.bf16.msra.mxu3 %v2579_v1  ;;  %v3023_v1 = vld [vmem:[#allocation12] ss:$0 sm:$0xff] }
 0x780   : > { %v3784_v45 = vsub.f32 %v3773_v62, %v1493_v34  ;;  %v2827_v34 = vld [vmem:[%s4141_s10 + $0x6c] sm:$0xf]  ;;  %1773 = vmatpush.bf16.msrb.mxu0 %v2583_v44 }
 0x782   : > { %v1497_v2 = vmul.f32 %v3784_v45, %v3784_v45  ;;  %1760 = vmatpush.bf16.msra.mxu3 %v2563_v27  ;;  %v2853_v27 = vld [vmem:[%s4143_s12 + $0x38] sm:$0xff] }
 0x783   : > { %2129 = vmatpush.bf16.msra.mxu2 %v2853_v27 }
 0x784   : > { %1500 = vadd.xlane.f32.xlu0 %v1497_v2  ;;  %v2584_v2 = vld [vmem:[%s4141_s10 + $0x78] sm:$0xf0]  ;;  %1774 = vmatpush.bf16.msrb.mxu0 %v2567_v54 }
 0x785   : > { %v2587_v46 = vor.u32 %v2827_v34, %v2584_v2  ;;  %v2861_v54 = vld [vmem:[%s4143_s12 + $0x78] sm:$0xff] }
 0x786   : > { %1761 = vmatpush.bf16.msra.mxu3 %v2547_v4  ;;  %v2858_v4 = vld [vmem:[%s4143_s12 + $0x60] sm:$0xff] }
 0x787   : > { %1787 = vmatpush.bf16.msra.mxu1 %v2587_v46 }
 0x788   : > { %1775 = vmatpush.bf16.msrb.mxu0 %v2551_v6  ;;  %v2864_v6 = vld [vmem:[%s4143_s12 + $0x90] sm:$0xff] }
 0x78a   : > { %1762 = vmatpush.bf16.msra.mxu3 %v2531_v7  ;;  %v2856_v7 = vld [vmem:[%s4143_s12 + $0x50] sm:$0xff] }
 0x78b   : > { %1788 = vmatpush.bf16.msra.mxu1 %v2571_v57  ;;  %v2852_v57 = vld [vmem:[%s4143_s12 + $0x30] sm:$0xff] }
 0x78c   : > { %1776 = vmatpush.bf16.msrb.mxu0 %v2535_v22  ;;  %2130 = vmatpush.bf16.msra.mxu2 %v2852_v57 }
 0x78e   : > { %2143 = vmatpush.bf16.msrb.mxu3 %v2861_v54 }
 0x78f   : > { %1789 = vmatpush.bf16.msra.mxu1 %v2555_v10  ;;  %v2863_v10 = vld [vmem:[%s4143_s12 + $0x88] sm:$0xff] }
 0x790   : > { %2131 = vmatpush.bf16.msra.mxu2 %v2851_v63 }
 0x792   : > { %2144 = vmatpush.bf16.msrb.mxu3 %v2860_v58 }
 0x793   : > { %1790 = vmatpush.bf16.msra.mxu1 %v2539_v24  ;;  %v1573_v24 = vperm.slane %v4044_v60, 0 }
 0x796   : > { %2145 = vmatpush.bf16.msrb.mxu3 %v2859_v0 }
 0x797   : > { %2171 = vmatpush.bf16.msrb.mxu1 %v2877_v52 }
 0x79a   : > { %2146 = vmatpush.bf16.msrb.mxu3 %v2858_v4 }
 0x79b   : > { %2172 = vmatpush.bf16.msrb.mxu1 %v2876_v53 }
 0x79f   : > { %2173 = vmatpush.bf16.msrb.mxu1 %v2875_v56 }
 0x7a3   : > { %2174 = vmatpush.bf16.msrb.mxu1 %v2874_v61 }
 0x7a7   : > { %2175 = vmatpush.bf16.msrb.mxu1 %v2873_v3 }
 0x7ab   : > { %2176 = vmatpush.bf16.msrb.mxu1 %v2872_v8 }
 0x7af   : > { %2177 = vmatpush.bf16.msrb.mxu1 %v2871_v11 }
 0x7ef   : > { %v1499_v16 = vpop.xlane.xlu2 %1498 }
 0x7f0   : > { %v1502_v59 = vmul.f32 %v1499_v16, %v3627_v9  ;;  %v2850_v16 = vld [vmem:[%s4143_s12 + $0x20] sm:$0xff] }
 0x7f1   : > { %2132 = vmatpush.bf16.msra.mxu2 %v2850_v16 }
 0x7f2   : > { %v1504_v21 = vadd.f32 1e-06, %v1502_v59  ;;  %v2857_v59 = vld [vmem:[%s4143_s12 + $0x58] sm:$0xff] }
 0x7f3   : > { %2147 = vmatpush.bf16.msrb.mxu3 %v2857_v59 }
 0x7f4   : > { %3064 = vrsqrt.f32 %v1504_v21  ;;  %vm1512_vm13 = vweird.f32 %v1504_v21 }
 0x7f5   : > { %2133 = vmatpush.bf16.msra.mxu2 %v2849_v5 }
 0x7f7   : > { %v1501_v25 = vpop.xlane.xlu0 %1500  ;;  %2148 = vmatpush.bf16.msrb.mxu3 %v2856_v7 }
 0x7f8   : > { %v1503_v26 = vmul.f32 %v1501_v25, %v3627_v9  ;;  %v1574_v25 = vperm.slane %v4044_v60, 1 }
 0x7f9   : > { %2134 = vmatpush.bf16.msra.mxu2 %v2848_v17 }
 0x7fa   : > { %v3065_v28 = vpop.eup %3064  ;;  %v1505_v29 = vadd.f32 1e-06, %v1503_v26  ;;  %v2847_v26 = vld [vmem:[%s4143_s12 + $0x8] sm:$0xff] }
 0x7fb   : > { %v1507_v30 = vmul.f32 %v3065_v28, %v1504_v21  ;;  %vm1513_vm12 = vweird.f32 %v3065_v28  ;;  %v2870_v21 = vld [vmem:[%s4143_s12 + $0xc0] sm:$0xff] }
 0x7fc   : > { %3066 = vrsqrt.f32 %v1505_v29  ;;  %vm1514_vm14 = vmor %vm1512_vm13, %vm1513_vm12  ;;  %vm1522_vm0 = vweird.f32 %v1505_v29  ;;  %2178 = vmatpush.bf16.msrb.mxu1 %v2870_v21 }
 0x7fd   : > { %v1508_v31 = vmul.f32 %v3065_v28, %v1507_v30  ;;  %2135 = vmatpush.bf16.msra.mxu2 %v2847_v26 }
 0x7ff   : > { %v1509_v32 = vmul.f32 0.5, %v1508_v31 }
 0x801   : > { %v1510_v33 = vsub.f32 1.5, %v1509_v32 }
 0x802   : > { %v3067_v35 = vpop.eup %3066 }
 0x803   : > { %v1511_v37 = vmul.f32 %v3065_v28, %v1510_v33  ;;  %v1517_v38 = vmul.f32 %v3067_v35, %v1505_v29  ;;  %vm1523_vm15 = vweird.f32 %v3067_v35 }
 0x804   : > { %vm1524_vm1 = vmor %vm1522_vm0, %vm1523_vm15 }
 0x805   : > { %v1518_v40 = vmul.f32 %v3067_v35, %v1517_v38  ;;  %v1515_v41 = vsel %vm1514_vm14, %v3065_v28, %v1511_v37  ;;  %v2855_v28 = vld [vmem:[%s4143_s12 + $0x48] sm:$0xff] }
 0x806   : > { %v1526_v9 = vmul.f32 %v1515_v41, %v3778_v43  ;;  %v2869_v43 = vld [vmem:[%s4143_s12 + $0xb8] sm:$0xff]  ;;  %2149 = vmatpush.bf16.msrb.mxu3 %v2855_v28  ;;  %v2854_v41 = vld [vmem:[%s4143_s12 + $0x40] sm:$0xff] }
 0x807   : > { %v1519_v42 = vmul.f32 0.5, %v1518_v40  ;;  %2157 = vmatpush.bf16.msra.mxu0 %v2869_v43  ;;  %v2846_v40 = vld [vmem:[%s4143_s12] sm:$0xff] }
 0x808   : > { %v1531_v46 = vmul.f32 %v3023_v1, %v1526_v9  ;;  %2136 = vmatpush.bf16.msra.mxu2 %v2846_v40 }
 0x809   : > { %v1520_v36 = vsub.f32 1.5, %v1519_v42 }
 0x80a   : > { %v1536_v49 = vadd.f32 %v3024_v47, %v1531_v46  ;;  %2150 = vmatpush.bf16.msrb.mxu3 %v2854_v41 }
 0x80b   : > { %v1521_v44 = vmul.f32 %v3067_v35, %v1520_v36 }
 0x80d   : > { %v1525_v34 = vsel %vm1524_vm1, %v3067_v35, %v1521_v44 }
 0x80e   : > { %v1527_v2 = vmul.f32 %v1525_v34, %v3784_v45  ;;  %v2868_v45 = vld [vmem:[%s4143_s12 + $0xb0] sm:$0xff] }
 0x80f   : > { %2158 = vmatpush.bf16.msra.mxu0 %v2868_v45 }
 0x810   : > { %v1532_v48 = vmul.f32 %v3023_v1, %v1527_v2 }
 0x812   : > { %v1537_v50 = vadd.f32 %v3024_v47, %v1532_v48 }
 0x813   : > { %2159 = vmatpush.bf16.msra.mxu0 %v2867_v55 }
 0x814   : > { %v1570_v51 = vpack.c.bf16 %v1537_v50, %v1536_v49 }
 0x816   : > { %1749 = vmatmul.bf16.vlgmr.msrb.gmra.mxu2 %v1570_v51  ;;  %1763 = vmatmul.bf16.vlgmr.msra.gmra.mxu3 %v1570_v51 }
 0x817   : > { %1777 = vmatmul.bf16.vlgmr.msrb.gmra.mxu0 %v1570_v51  ;;  %1791 = vmatmul.bf16.vlgmr.msra.gmra.mxu1 %v1570_v51 }
 0x818   : > { %2160 = vmatpush.bf16.msra.mxu0 %v2866_v12 }
 0x81c   : > { %2161 = vmatpush.bf16.msra.mxu0 %v2865_v13 }
 0x820   : > { %2162 = vmatpush.bf16.msra.mxu0 %v2864_v6 }
 0x824   : > { %2163 = vmatpush.bf16.msra.mxu0 %v2863_v10 }
 0x828   : > { %2164 = vmatpush.bf16.msra.mxu0 %v2862_v20 }
 0x894   : > { %v1778_v18 = vpop.f32.mrf.mxu0  ;;  %v1792_v19 = vpop.f32.mrf.mxu1 }
 0x895   : > { %v4072_v22 = vadd.f32 %v1778_v18, %v1575_v14  ;;  %v4074_v23 = vadd.f32 %v1792_v19, %v1576_v15 }
 0x897   : > { %v1799_v29 = vmul.f32 %v4072_v22, %v4072_v22  ;;  %v1800_v30 = vmul.f32 %v4074_v23, %v4074_v23 }
 0x899   : > { %v1807_v31 = vmul.f32 %v1799_v29, %v4072_v22  ;;  %v1808_v32 = vmul.f32 %v1800_v30, %v4074_v23  ;;  %v1750_v33 = vpop.f32.mrf.mxu2  ;;  %v1764_v35 = vpop.f32.mrf.mxu3 }
 0x89a   : > { %v4090_v37 = vadd.f32 %v1750_v33, %v1573_v24  ;;  %v4092_v38 = vadd.f32 %v1764_v35, %v1574_v25 }
 0x89b   : > { %v1815_v42 = vmul.f32 0.044715, %v1807_v31  ;;  %v1816_v36 = vmul.f32 0.044715, %v1808_v32 }
 0x89c   : > { %v1797_v9 = vmul.f32 %v4090_v37, %v4090_v37  ;;  %v1798_v1 = vmul.f32 %v4092_v38, %v4092_v38  ;;  %v1780_v44 = vpop.f32.mrf.mxu0  ;;  %v1794_v34 = vpop.f32.mrf.mxu1 }
 0x89d   : > { %v1823_v2 = vadd.f32 %v1815_v42, %v4072_v22  ;;  %v1824_v46 = vadd.f32 %v1816_v36, %v4074_v23  ;;  %v1781_v47 = vadd.f32 %v1780_v44, %v1575_v14  ;;  %v4106_v48 = vadd.f32 %v1794_v34, %v1576_v15 }
 0x89e   : > { %v1805_v49 = vmul.f32 %v1797_v9, %v4090_v37  ;;  %v1806_v50 = vmul.f32 %v1798_v1, %v4092_v38 }
 0x89f   : > { %v1831_v51 = vmul.f32 0.7978846, %v1823_v2  ;;  %v1803_v43 = vmul.f32 %v1781_v47, %v1781_v47  ;;  %v1804_v52 = vmul.f32 %v4106_v48, %v4106_v48  ;;  %v1832_v45 = vmul.f32 0.7978846, %v1824_v46 }
 0x8a0   : > { %v1813_v53 = vmul.f32 0.044715, %v1805_v49  ;;  %v1814_v27 = vmul.f32 0.044715, %v1806_v50 }
 0x8a1   : > { %v1811_v54 = vmul.f32 %v1803_v43, %v1781_v47  ;;  %v1812_v55 = vmul.f32 %v1804_v52, %v4106_v48  ;;  %v1752_v56 = vpop.f32.mrf.mxu2  ;;  %v1766_v57 = vpop.f32.mrf.mxu3  ;;  %3068 = vtanh.f32 %v1831_v51 }
 0x8a2   : > { %v1821_v58 = vadd.f32 %v1813_v53, %v4090_v37  ;;  %v1822_v12 = vadd.f32 %v1814_v27, %v4092_v38  ;;  %v1753_v61 = vadd.f32 %v1752_v56, %v1573_v24  ;;  %v1767_v13 = vadd.f32 %v1766_v57, %v1574_v25 }
 0x8a3   : > { %v1819_v63 = vmul.f32 0.044715, %v1811_v54  ;;  %v1820_v0 = vmul.f32 0.044715, %v1812_v55  ;;  %3070 = vtanh.f32 %v1832_v45 }
 0x8a4   : > { %v1829_v3 = vmul.f32 0.7978846, %v1821_v58  ;;  %v1830_v16 = vmul.f32 0.7978846, %v1822_v12  ;;  %v1801_v4 = vmul.f32 %v1753_v61, %v1753_v61  ;;  %v1802_v60 = vmul.f32 %v1767_v13, %v1767_v13 }
 0x8a5   : > { %v1827_v6 = vadd.f32 %v1819_v63, %v1781_v47  ;;  %v1828_v8 = vadd.f32 %v1820_v0, %v4106_v48 }
 0x8a6   : > { %v1809_v5 = vmul.f32 %v1801_v4, %v1753_v61  ;;  %3072 = vtanh.f32 %v1829_v3  ;;  %v1810_v11 = vmul.f32 %v1802_v60, %v1767_v13 }
 0x8a7   : > { %v1835_v59 = vmul.f32 0.7978846, %v1827_v6  ;;  %v1836_v10 = vmul.f32 0.7978846, %v1828_v8  ;;  %3074 = vtanh.f32 %v1830_v16  ;;  %v3069_v15 = vpop.eup %3068 }
 0x8a8   : > { %v1817_v14 = vmul.f32 0.044715, %v1809_v5  ;;  %v1818_v17 = vmul.f32 0.044715, %v1810_v11  ;;  %v1847_v20 = vadd.f32 1.0, %v3069_v15 }
 0x8a9   : > { %3076 = vtanh.f32 %v1835_v59  ;;  %v3071_v7 = vpop.eup %3070 }
 0x8aa   : > { %3078 = vtanh.f32 %v1836_v10  ;;  %v1825_v18 = vadd.f32 %v1817_v14, %v1753_v61  ;;  %v1826_v19 = vadd.f32 %v1818_v17, %v1767_v13  ;;  %v1848_v25 = vadd.f32 1.0, %v3071_v7 }
 0x8ab   : > { %v1855_v31 = vmul.f32 0.5, %v1847_v20 }
 0x8ac   : > { %v1833_v21 = vmul.f32 0.7978846, %v1825_v18  ;;  %v3073_v24 = vpop.eup %3072  ;;  %v1834_v26 = vmul.f32 0.7978846, %v1826_v19  ;;  %v1856_v33 = vmul.f32 0.5, %v1848_v25 }
 0x8ad   : > { %v3075_v28 = vpop.eup %3074  ;;  %v1845_v35 = vadd.f32 1.0, %v3073_v24  ;;  %v1863_v1 = vmul.f32 %v1855_v31, %v4072_v22 }
 0x8ae   : > { %3080 = vtanh.f32 %v1833_v21  ;;  %v1846_v41 = vadd.f32 1.0, %v3075_v28  ;;  %v1864_v2 = vmul.f32 %v1856_v33, %v4074_v23 }
 0x8af   : > { %v3077_v29 = vpop.eup %3076  ;;  %3082 = vtanh.f32 %v1834_v26  ;;  %v1853_v46 = vmul.f32 0.5, %v1845_v35 }
 0x8b0   : > { %v3079_v30 = vpop.eup %3078  ;;  %v1851_v32 = vadd.f32 1.0, %v3077_v29  ;;  %v1854_v51 = vmul.f32 0.5, %v1846_v41 }
 0x8b1   : > { %v1852_v40 = vadd.f32 1.0, %v3079_v30  ;;  %v1861_v54 = vmul.f32 %v1853_v46, %v4090_v37 }
 0x8b2   : > { %v1859_v42 = vmul.f32 0.5, %v1851_v32  ;;  %v1862_v22 = vmul.f32 %v1854_v51, %v4092_v38 }
 0x8b3   : > { %v1860_v36 = vmul.f32 0.5, %v1852_v40 }
 0x8b4   : > { %v3081_v9 = vpop.eup %3080  ;;  %v1867_v44 = vmul.f32 %v1859_v42, %v1781_v47 }
 0x8b5   : > { %v3083_v34 = vpop.eup %3082  ;;  %v1868_v49 = vmul.f32 %v1860_v36, %v4106_v48  ;;  %v1849_v50 = vadd.f32 1.0, %v3081_v9 }
 0x8b6   : > { %v1850_v43 = vadd.f32 1.0, %v3083_v34  ;;  %v1935_v52 = vpack.c.bf16 %v1867_v44, %v1863_v1 }
 0x8b7   : > { %v1857_v45 = vmul.f32 0.5, %v1849_v50  ;;  %v1936_v53 = vpack.c.bf16 %v1868_v49, %v1864_v2 }
 0x8b8   : > { %v1858_v27 = vmul.f32 0.5, %v1850_v43  ;;  %2165 = vmatmul.bf16.vlgmr.msra.gmra.mxu0 %v1935_v52 }
 0x8b9   : > { %v1865_v55 = vmul.f32 %v1857_v45, %v1753_v61  ;;  %2179 = vmatmul.bf16.vlgmr.msrb.gmra.mxu1 %v1936_v53 }
 0x8ba   : > { %v1866_v47 = vmul.f32 %v1858_v27, %v1767_v13  ;;  %v3025_v13 = vld [vmem:[#allocation16] ss:$0 sm:$0xff] }
 0x8bb   : > { %v1933_v56 = vpack.c.bf16 %v1865_v55, %v1861_v54 }
 0x8bc   : > { %v1934_v23 = vpack.c.bf16 %v1866_v47, %v1862_v22 }
 0x8bd   : > { %2137 = vmatmul.bf16.vlgmr.msra.gmra.mxu2 %v1933_v56 }
 0x8be   : > { %2151 = vmatmul.bf16.vlgmr.msrb.gmra.mxu3 %v1934_v23 }
 0x935   : > { %v2166_v57 = vpop.f32.mrf.mxu0 }
 0x936   : > { %v2180_v63 = vpop.f32.mrf.mxu1 }
 0x93d   : > { %v2168_v61 = vpop.f32.mrf.mxu0 }
 0x93e   : > { %v2182_v8 = vpop.f32.mrf.mxu1 }
 0x940   : > { %v2138_v48 = vpop.f32.mrf.mxu2 }
 0x941   : > { %v2152_v58 = vpop.f32.mrf.mxu3 }
 0x942   : > { %v2153_v12 = vadd.f32 %v2152_v58, %v2138_v48 }
 0x944   : > { %v2167_v0 = vadd.f32 %v2166_v57, %v2153_v12 }
 0x946   : > { %v2181_v4 = vadd.f32 %v2180_v63, %v2167_v0 }
 0x948   : > { %v2140_v3 = vpop.f32.mrf.mxu2  ;;  %v2185_v38 = vadd.f32 %v2181_v4, %v3769_v39 }
 0x949   : > { %v2154_v16 = vpop.f32.mrf.mxu3 }
 0x94a   : > { %v2155_v37 = vadd.f32 %v2154_v16, %v2140_v3  ;;  %v2191_v59 = vadd.f32 %v3025_v13, %v2185_v38 }
 0x94c   : > { %v2169_v6 = vadd.f32 %v2168_v61, %v2155_v37 }
 0x94e   : > { %v2183_v60 = vadd.f32 %v2182_v8, %v2169_v6 }
 0x950   : > { %v2186_v5 = vadd.f32 %v2183_v60, %v3773_v62 }
 0x952   : > { %v2192_v10 = vadd.f32 %v3025_v13, %v2186_v5 }
 0x954   : > { %v2885_v11 = vpack.c.bf16 %v2192_v10, %v2191_v59 }
 0x956   : > { %2886 = vst [vmem:[%s619_s26] sm:$0xff] %v2885_v11  }
 0x957 PF: > { %s30_s29 = sadd.s32 1, %s3414_s29  }
 0x958   : > { %p27_p7 = scmp.ge.s32.totalorder %s30_s29, 4  }
 0x95a   :  { %29 = sbr.rel (!%p27_p7) target bundleno = 10 (0xa), region = 147 }
 0x95f   :  { %2219 = vsyncpa [#allocation3], 1 }
 0x960   :  { %2221 = vsyncpa [#allocation3 + $0x1], 1 }
 0x961   :  { %2222 = vsyncpa [#allocation5], 1 }
 0x962   :  { %2223 = vsyncpa [#allocation8], 1 }
 0x963   :  { %2224 = vsyncpa [#allocation11], 1 }
 0x964   :  { %2225 = vsyncpa [#allocation14], 1 }
 0x965   :  { %2226 = vsyncpa [#allocation17], 1 }

// kernel: blip_forward.13
= control target key start
LH: loop header
LB: loop body
LE: loop exit
PB: predicated region body
PF: predicated region fallthrough
CT: control target
= control target key end

     0   :  { %s877_s0 = inlined_call_operand.vmem [shape: bf16[2,2,128], index: 0, kind: input, shape index: {}]   ;;  %s878_s1 = inlined_call_operand.vmem [shape: bf16[2,128], index: 1, kind: input, shape index: {}]   ;;  %s879_s2 = inlined_call_operand.vmem [shape: f32[1,128], index: 2, kind: input, shape index: {}]   ;;  %s880_s3 = inlined_call_operand.vmem [shape: f32[1,128], index: 3, kind: input, shape index: {}]   ;;  %s881_s4 = inlined_call_operand.hbm [shape: bf16[128,128], index: 4, kind: input, shape index: {}]   ;;  %s882_s5 = inlined_call_operand.vmem [shape: f32[1,128], index: 5, kind: input, shape index: {}]   ;;  %s883_s6 = inlined_call_operand.hbm [shape: bf16[128,128], index: 6, kind: input, shape index: {}]   ;;  %s884_s7 = inlined_call_operand.hbm [shape: f32[1,128], index: 7, kind: input, shape index: {}]   ;;  %s885_s8 = inlined_call_operand.hbm [shape: f32[1,128], index: 8, kind: input, shape index: {}]   ;;  %s886_s9 = inlined_call_operand.hbm [shape: f32[1,128], index: 9, kind: input, shape index: {}]   ;;  %s887_s10 = inlined_call_operand.<no memory space> [shape: f32[1,1], index: 10, kind: input, shape index: {}]   ;;  %s888_s11 = inlined_call_operand.vmem [shape: f32[2,1], index: 11, kind: input, shape index: {}]   ;;  %s889_s12 = inlined_call_operand.vmem [shape: f32[2,1], index: 12, kind: output, shape index: {0}]   ;;  %s890_s13 = inlined_call_operand.hbm [shape: f32[1,1], index: 13, kind: output, shape index: {1}]  }
   0x1   :  { %v19_v0 = vstv %s887_s10 }
   0x2   :  { %20 = vst [vmem:[#allocation2] sm:$0x1] %v19_v0 }
   0x3   :  { %21 = vsyncpa [#allocation4], 0 }
   0x4   :  { %22 = vsyncpa [#allocation7], 0 }
   0x5   :  { %23 = vsyncpa [#allocation10], 0 }
   0x6   :  { %24 = vsyncpa [#allocation5], 0  ;;  %s52_s29 = sshll.u32 %s883_s6, 4  ;;  %s729_s30 = smov [#allocation6]   ;;  %s53_s29 = int_to_ptr.hbm [resolvable:$true] %s52_s29 }
   0x7   :  { %s54_s14 = sshll.u32 %s729_s30, 4  ;;  %s77_s17 = sshll.u32 %s885_s8, 4  ;;  %s55_s14 = int_to_ptr.vmem [resolvable:$true] %s54_s14  ;;  %s78_s17 = int_to_ptr.hbm [resolvable:$true] %s77_s17 }
   0x8   :  { %s730_s18 = smov 64   ;;  %s731_s19 = smov 4  }
   0x9   :  { %60 = dma.hbm_to_vmem [thread:$0]  %s53_s29, 1024, %s55_s14, [#allocation7], %s730_s18, %s730_s18, %s731_s19  }
   0xa   :  { %s732_s10 = smov [#allocation9]   ;;  %s37_s23 = sshll.u32 %s881_s4, 4  ;;  %s38_s23 = int_to_ptr.hbm [resolvable:$true] %s37_s23 }
   0xb   :  { %s79_s20 = sshll.u32 %s732_s10, 4  ;;  %s66_s25 = sshll.u32 %s884_s7, 4  ;;  %s80_s20 = int_to_ptr.vmem [resolvable:$true] %s79_s20  ;;  %s67_s25 = int_to_ptr.hbm [resolvable:$true] %s66_s25 }
   0xc   :  { %82 = dma.hbm_to_vmem [thread:$0]  %s78_s17, 16, %s80_s20, [#allocation10]  }
   0xd   :  { %s733_s26 = smov [#allocation3]   ;;  %s734_s8 = smov [#allocation8]  }
   0xe   :  { %s39_s27 = sshll.u32 %s733_s26, 4  ;;  %s68_s28 = sshll.u32 %s734_s8, 4  ;;  %s40_s27 = int_to_ptr.vmem [resolvable:$true] %s39_s27  ;;  %s69_s28 = int_to_ptr.vmem [resolvable:$true] %s68_s28 }
   0xf   :  { %45 = dma.hbm_to_vmem [thread:$0]  %s38_s23, 1024, %s40_s27, [#allocation4], %s730_s18, %s730_s18, %s731_s19  }
  0x10   :  { %s88_s14 = sshll.u32 %s886_s9, 4  ;;  %s735_s4 = smov [#allocation11]   ;;  %s89_s14 = int_to_ptr.hbm [resolvable:$true] %s88_s14 }
  0x11   :  { %71 = dma.hbm_to_vmem [thread:$0]  %s67_s25, 16, %s69_s28, [#allocation7]  }
  0x12   :  { %s90_s15 = sshll.u32 %s735_s4, 4  ;;  %s91_s15 = int_to_ptr.vmem [resolvable:$true] %s90_s15 }
  0x13   :  { %93 = dma.hbm_to_vmem [thread:$0]  %s89_s14, 16, %s91_s15, [#allocation10]  }
  0x14   :  { %721 = dma.done.wait [#allocation4], 1024  }
  0x15   :  { %722 = vsyncadd [#allocation4], 4294966272 }
  0x16   :  { %723 = dma.done.wait [#allocation7], 1040  }
  0x17   :  { %724 = vsyncadd [#allocation7], 4294966256 }
  0x18   :  { %725 = dma.done.wait [#allocation10], 32  }
  0x19   :  { %726 = vsyncadd [#allocation10], 4294967264  ;;  %v118_v1 = vld [vmem:[%s877_s0] sm:$0x1]  ;;  %vm122_vm0 = vcmask 1041408   ;;  %v736_v7 = vmov 128.0  }
  0x1a   :  { %v120_v2 = vunpack.c.l.bf16 %v118_v1  ;;  %v119_v3 = vld [vmem:[%s877_s0 + $0x1] sm:$0x1]  ;;  %565 = vrcp.f32 %v736_v7  ;;  %v537_v24 = vld [vmem:[#allocation3 + $0x38] sm:$0xff]  ;;  %v536_v26 = vld [vmem:[#allocation3 + $0x30] sm:$0xff]  ;;  %v737_v49 = vmov 2.0   ;;  %vm236_vm9 = vcmask 1041409  }
  0x1b   :  { %v121_v5 = vunpack.c.l.bf16 %v119_v3  ;;  %v545_v25 = vld [vmem:[#allocation6 + $0x38] sm:$0xff]  ;;  %288 = vmatpush.bf16.msra.mxu0 %v537_v24  ;;  %v544_v27 = vld [vmem:[#allocation6 + $0x30] sm:$0xff]  ;;  %v535_v30 = vld [vmem:[#allocation3 + $0x28] sm:$0xff]  ;;  %vm423_vm13 = vcmask 1024   ;;  %s451_s26 = sshll.u32 %s890_s13, 4  ;;  %vm440_vm15 = vcmask 0   ;;  %s452_s26 = int_to_ptr.hbm [resolvable:$true] %s451_s26 }
  0x1c   :  { %v123_v4 = vsel %vm122_vm0, %v120_v2, 0.0  ;;  %369 = vmatpush.bf16.msra.mxu1 %v545_v25  ;;  %v543_v31 = vld [vmem:[#allocation6 + $0x28] sm:$0xff]  ;;  %v534_v33 = vld [vmem:[#allocation3 + $0x20] sm:$0xff]  ;;  %v533_v36 = vld [vmem:[#allocation3 + $0x18] sm:$0xff] }
  0x1d   :  { %124 = vadd.xlane.f32.xlu0 %v123_v4  ;;  %v126_v6 = vsel %vm122_vm0, %v121_v5, 0.0  ;;  %v542_v34 = vld [vmem:[#allocation6 + $0x20] sm:$0xff]  ;;  %v541_v37 = vld [vmem:[#allocation6 + $0x18] sm:$0xff]  ;;  %v532_v42 = vld [vmem:[#allocation3 + $0x10] sm:$0xff] }
  0x1e   :  { %v540_v43 = vld [vmem:[#allocation6 + $0x10] sm:$0xff]  ;;  %v531_v46 = vld [vmem:[#allocation3 + $0x8] sm:$0xff]  ;;  %v530_v53 = vld [vmem:[#allocation3] sm:$0xff] }
  0x1f   :  { %289 = vmatpush.bf16.msra.mxu0 %v536_v26  ;;  %v539_v47 = vld [vmem:[#allocation6 + $0x8] sm:$0xff]  ;;  %v538_v54 = vld [vmem:[#allocation6] sm:$0xff]  ;;  %v558_v55 = vld [vmem:[%s879_s2] ss:$0 sm:$0xff] }
  0x20   :  { %v566_v8 = vpop.eup %565  ;;  %370 = vmatpush.bf16.msra.mxu1 %v544_v27  ;;  %v559_v58 = vld [vmem:[%s880_s3] ss:$0 sm:$0xff] }
  0x21   :  { %v130_v9 = vmul.f32 128.0, %v566_v8  ;;  %vm134_vm1 = vweird.f32 %v566_v8  ;;  %v209_v0 = vld [vmem:[%s878_s1] sm:$0x1] }
  0x23   :  { %v131_v10 = vsub.f32 1.0, %v130_v9  ;;  %290 = vmatpush.bf16.msra.mxu0 %v535_v30 }
  0x24   :  { %371 = vmatpush.bf16.msra.mxu1 %v543_v31 }
  0x25   :  { %127 = vadd.xlane.f32.xlu0 %v126_v6  ;;  %v132_v11 = vmul.f32 %v566_v8, %v131_v10 }
  0x27   :  { %v133_v12 = vadd.f32 %v566_v8, %v132_v11  ;;  %291 = vmatpush.bf16.msra.mxu0 %v534_v33 }
  0x28   :  { %372 = vmatpush.bf16.msra.mxu1 %v542_v34 }
  0x29   :  { %v135_v13 = vsel %vm134_vm1, %v566_v8, %v133_v12 }
  0x2b   :  { %292 = vmatpush.bf16.msra.mxu0 %v533_v36  ;;  %v560_v36 = vld [vmem:[%s882_s5] ss:$0 sm:$0xff] }
  0x2c   :  { %373 = vmatpush.bf16.msra.mxu1 %v541_v37  ;;  %v561_v37 = vld [vmem:[#allocation8] ss:$0 sm:$0xff] }
  0x2f   :  { %293 = vmatpush.bf16.msra.mxu0 %v532_v42 }
  0x30   :  { %374 = vmatpush.bf16.msra.mxu1 %v540_v43  ;;  %v563_v43 = vld [vmem:[#allocation11] ss:$0 sm:$0xff] }
  0x33   :  { %294 = vmatpush.bf16.msra.mxu0 %v531_v46 }
  0x34   :  { %375 = vmatpush.bf16.msra.mxu1 %v539_v47 }
  0x37   :  { %295 = vmatpush.bf16.msra.mxu0 %v530_v53 }
  0x38   :  { %376 = vmatpush.bf16.msra.mxu1 %v538_v54 }
  0x3b   :  { %377 = vmatmul.bf16.vlgmr.msra.gmra.mxu1 %v209_v0  ;;  %v425_v0 = vld [vmem:[%s888_s11] sm:$0x3]  ;;  %s738_s11 = smov [#allocation12]  }
  0x3c   :  { %s449_s6 = sshll.u32 %s738_s11, 4  ;;  %s450_s6 = int_to_ptr.vmem [resolvable:$true] %s449_s6 }
  0x90   :  { %v125_v14 = vpop.xlane.xlu0 %124 }
  0x91   :  { %v136_v15 = vmul.f32 %v135_v13, %v125_v14 }
  0x93   :  { %v835_v16 = vsub.f32 %v120_v2, %v136_v15 }
  0x95   :  { %v140_v17 = vmul.f32 %v835_v16, %v835_v16 }
  0x97   :  { %v142_v18 = vsel %vm122_vm0, %v140_v17, 0.0 }
  0x98   :  { %143 = vadd.xlane.f32.xlu1 %v142_v18  ;;  %v128_v19 = vpop.xlane.xlu0 %127 }
  0x99   :  { %v137_v20 = vmul.f32 %v135_v13, %v128_v19 }
  0x9b   :  { %v840_v21 = vsub.f32 %v121_v5, %v137_v20 }
  0x9d   :  { %v141_v22 = vmul.f32 %v840_v21, %v840_v21 }
  0x9f   :  { %v145_v23 = vsel %vm122_vm0, %v141_v22, 0.0 }
  0xa0   :  { %146 = vadd.xlane.f32.xlu1 %v145_v23 }
  0xb8   :  { %v378_v34 = vpop.f32.mrf.mxu1 }
 0x10b   :  { %v144_v28 = vpop.xlane.xlu1 %143 }
 0x10c   :  { %v148_v29 = vmul.f32 %v144_v28, %v135_v13 }
 0x10e   :  { %v150_v32 = vadd.f32 1e-06, %v148_v29 }
 0x110   :  { %567 = vrsqrt.f32 %v150_v32  ;;  %vm158_vm3 = vweird.f32 %v150_v32 }
 0x113   :  { %v147_v35 = vpop.xlane.xlu1 %146 }
 0x114   :  { %v149_v38 = vmul.f32 %v147_v35, %v135_v13  ;;  %v380_v35 = vpop.f32.mrf.mxu1 }
 0x116   :  { %v568_v39 = vpop.eup %567  ;;  %v151_v40 = vadd.f32 1e-06, %v149_v38  ;;  %v562_v38 = vld [vmem:[#allocation9] ss:$0 sm:$0xff] }
 0x117   :  { %v153_v41 = vmul.f32 %v568_v39, %v150_v32  ;;  %vm159_vm2 = vweird.f32 %v568_v39 }
 0x118   :  { %569 = vrsqrt.f32 %v151_v40  ;;  %vm160_vm4 = vmor %vm158_vm3, %vm159_vm2  ;;  %vm168_vm6 = vweird.f32 %v151_v40 }
 0x119   :  { %v154_v44 = vmul.f32 %v568_v39, %v153_v41  ;;  %571 = vrcp.f32 %v737_v49  ;;  %v379_v41 = vadd.f32 %v561_v37, %v378_v34  ;;  %v564_v49 = vld [vmem:[#allocation2] ss:$0 sm:$0xff] }
 0x11b   :  { %v155_v45 = vmul.f32 0.5, %v154_v44 }
 0x11d   :  { %v156_v48 = vsub.f32 1.5, %v155_v45  ;;  %v394_v45 = vmul.f32 %v563_v43, %v379_v41 }
 0x11e   :  { %v570_v50 = vpop.eup %569 }
 0x11f   :  { %v157_v51 = vmul.f32 %v568_v39, %v156_v48  ;;  %v163_v52 = vmul.f32 %v570_v50, %v151_v40  ;;  %v572_v60 = vpop.eup %571  ;;  %vm169_vm5 = vweird.f32 %v570_v50  ;;  %v395_v47 = vsel %vm122_vm0, %v394_v45, 0.0 }
 0x120   :  { %v201_v2 = vmul.f32 2.0, %v572_v60  ;;  %vm170_vm7 = vmor %vm168_vm6, %vm169_vm5  ;;  %vm205_vm8 = vweird.f32 %v572_v60 }
 0x121   :  { %v161_v56 = vsel %vm160_vm4, %v568_v39, %v157_v51  ;;  %v164_v57 = vmul.f32 %v570_v50, %v163_v52 }
 0x122   :  { %v172_v59 = vmul.f32 %v161_v56, %v835_v16  ;;  %v202_v8 = vsub.f32 1.0, %v201_v2 }
 0x123   :  { %v165_v61 = vmul.f32 0.5, %v164_v57 }
 0x124   :  { %v178_v62 = vmul.f32 %v558_v55, %v172_v59  ;;  %v203_v13 = vmul.f32 %v572_v60, %v202_v8 }
 0x125   :  { %v166_v63 = vsub.f32 1.5, %v165_v61 }
 0x126   :  { %v184_v1 = vadd.f32 %v559_v58, %v178_v62  ;;  %v204_v18 = vadd.f32 %v572_v60, %v203_v13 }
 0x127   :  { %v167_v3 = vmul.f32 %v570_v50, %v166_v63 }
 0x128   :  { %v186_v4 = vsel %vm122_vm0, %v184_v1, 0.0  ;;  %v858_v23 = vsel %vm205_vm8, %v572_v60, %v204_v18 }
 0x129   :  { %v171_v5 = vsel %vm170_vm7, %v570_v50, %v167_v3  ;;  %v187_v6 = vrot.slane %v186_v4, 4 }
 0x12a   :  { %v173_v7 = vmul.f32 %v171_v5, %v840_v21 }
 0x12b   :  { %v188_v9 = vadd.f32 %v187_v6, %v186_v4 }
 0x12c   :  { %v179_v10 = vmul.f32 %v558_v55, %v173_v7 }
 0x12d   :  { %v189_v11 = vrot.slane %v188_v9, 2 }
 0x12e   :  { %v185_v12 = vadd.f32 %v559_v58, %v179_v10 }
 0x12f   :  { %v190_v14 = vadd.f32 %v189_v11, %v188_v9 }
 0x130   :  { %v193_v15 = vsel %vm122_vm0, %v185_v12, 0.0 }
 0x131   :  { %v191_v16 = vrot.slane %v190_v14, 1  ;;  %v194_v17 = vrot.slane %v193_v15, 4 }
 0x133   :  { %v195_v19 = vadd.f32 %v194_v17, %v193_v15  ;;  %v192_v20 = vadd.f32 %v191_v16, %v190_v14 }
 0x135   :  { %v196_v22 = vrot.slane %v195_v19, 2  ;;  %v207_v25 = vmul.f32 %v858_v23, %v192_v20 }
 0x137   :  { %v197_v24 = vadd.f32 %v196_v22, %v195_v19  ;;  %v226_v28 = vpack.c.bf16 %v207_v25, %v207_v25 }
 0x139   :  { %v198_v21 = vrot.slane %v197_v24, 1  ;;  %v234_v30 = vunpack.c.l.b16 %v226_v28 }
 0x13b   :  { %v199_v26 = vadd.f32 %v198_v21, %v197_v24 }
 0x13d   :  { %v208_v27 = vmul.f32 %v858_v23, %v199_v26 }
 0x13f   :  { %v227_v29 = vpack.c.bf16 %v208_v27, %v208_v27 }
 0x141   :  { %v235_v31 = vunpack.c.l.b16 %v227_v29 }
 0x143   :  { %v237_v32 = vsel %vm236_vm9, %v235_v31, %v234_v30 }
 0x144   :  { %v238_v33 = vpack.c.b16 %v237_v32, %v237_v32 }
 0x146   :  { %296 = vmatmul.bf16.vlgmr.msra.gmra.mxu0 %v238_v33 }
 0x1c3   :  { %v297_v39 = vpop.f32.mrf.mxu0 }
 0x1c4   :  { %v298_v40 = vadd.f32 %v560_v36, %v297_v39 }
 0x1c6   :  { %v386_v42 = vmul.f32 %v562_v38, %v298_v40 }
 0x1c8   :  { %v387_v44 = vsel %vm122_vm0, %v386_v42, 0.0 }
 0x1c9   :  { %388 = vadd.xlane.f32.xlu2 %v387_v44 }
 0x1cb   :  { %v299_v46 = vpop.f32.mrf.mxu0 }
 0x1d1   :  { %396 = vadd.xlane.f32.xlu2 %v395_v47 }
 0x23c   :  { %v389_v48 = vpop.xlane.xlu2 %388 }
 0x244   :  { %v397_v50 = vpop.xlane.xlu2 %396 }
 0x245   :  { %v398_v51 = vadd.f32 %v397_v50, %v389_v48 }
 0x247   :  { %v403_v52 = vadd.f32 %v564_v49, %v398_v51 }
 0x249   :  { %v529_v53 = vmul.f32 -1.442695, %v403_v52 }
 0x24b   :  { %573 = vpow2.f32 %v529_v53 }
 0x251   :  { %v574_v54 = vpop.eup %573 }
 0x252   :  { %v407_v55 = vadd.f32 1.0, %v574_v54 }
 0x254   :  { %575 = vrcp.f32 %v407_v55  ;;  %v419_v59 = vand.u32 2147483648, %v407_v55  ;;  %v417_v61 = vand.u32 2147483647, %v407_v55  ;;  %vm413_vm11 = vweird.f32 %v407_v55 }
 0x256   :  { %v420_v63 = vor.u32 1.1754944e-38, %v419_v59  ;;  %vm418_vm14 = vcmp.eq.f32.partialorder %v417_v61, 8.507059e+37 }
 0x25a   :  { %v576_v56 = vpop.eup %575 }
 0x25b   :  { %v409_v57 = vmul.f32 %v576_v56, %v407_v55  ;;  %vm414_vm10 = vweird.f32 %v576_v56 }
 0x25c   :  { %vm415_vm12 = vmor %vm413_vm11, %vm414_vm10 }
 0x25d   :  { %v410_v58 = vsub.f32 1.0, %v409_v57 }
 0x25f   :  { %v411_v60 = vmul.f32 %v576_v56, %v410_v58 }
 0x261   :  { %v412_v62 = vadd.f32 %v576_v56, %v411_v60 }
 0x263   :  { %v416_v1 = vsel %vm415_vm12, %v576_v56, %v412_v62 }
 0x264   :  { %v421_v2 = vsel %vm418_vm14, %v420_v63, %v416_v1 }
 0x265   :  { %v426_v3 = vsub.f32 %v425_v0, %v421_v2  ;;  %424 = vst.msk [vmem:[%s889_s12] sm:$0x3] %vm423_vm13, %v421_v2 }
 0x267   :  { %v427_v4 = vand.u32 2147483647, %v426_v3 }
 0x269   :  { %v428_v5 = vsel %vm423_vm13, %v427_v4, 0.0 }
 0x26a   :  { %429 = vadd.xlane.f32.xlu0 %v428_v5 }
 0x2dd   :  { %v430_v6 = vpop.xlane.xlu0 %429 }
 0x2de   :  { %v431_v7 = vrot.slane %v430_v6, 4 }
 0x2e0   :  { %v432_v8 = vadd.f32 %v431_v7, %v430_v6 }
 0x2e2   :  { %v433_v9 = vrot.slane %v432_v8, 2 }
 0x2e4   :  { %v434_v10 = vadd.f32 %v433_v9, %v432_v8 }
 0x2e6   :  { %v435_v11 = vrot.slane %v434_v10, 1 }
 0x2e8   :  { %v436_v12 = vadd.f32 %v435_v11, %v434_v10 }
 0x2ea   :  { %546 = vpush %v436_v12 }
 0x31b   :  { %s547_s27 = spop %546 }
 0x31c   :  { %v438_v13 = vstv %s547_s27 }
 0x31d   :  { %v439_v14 = vmul.f32 %v438_v13, %v858_v23 }
 0x31f   :  { %441 = vst.msk [vmem:[#allocation12] sm:$0x1] %vm440_vm15, %v439_v14 }
 0x320   :  { %454 = dma.vmem_to_hbm [thread:$0]  %s450_s6, 16, %s452_s26, [#allocation5]  }
 0x321   :  { %727 = dma.done.wait [#allocation5], 16  }
 0x322   :  { %728 = vsyncadd [#allocation5], 4294967280 }
 0x323   :  { %461 = vsyncpa [#allocation4], 1 }
 0x324   :  { %462 = vsyncpa [#allocation7], 1 }
 0x325   :  { %463 = vsyncpa [#allocation10], 1 }
 0x326   :  { %464 = vsyncpa [#allocation5], 1 }

// kernel: blip_forward.11
= control target key start
LH: loop header
LB: loop body
LE: loop exit
PB: predicated region body
PF: predicated region fallthrough
CT: control target
= control target key end

     0   :  { %19 = vsyncpa [#allocation3], 0  ;;  %s3176_s0 = inlined_call_operand.vmem [shape: bf16[2,8,128], index: 0, kind: input, shape index: {}]   ;;  %s3177_s1 = inlined_call_operand.vmem [shape: f32[2,1,8], index: 1, kind: input, shape index: {}]   ;;  %s3178_s2 = inlined_call_operand.vmem [shape: bf16[128,384], index: 2, kind: input, shape index: {}]   ;;  %s3179_s3 = inlined_call_operand.vmem [shape: f32[1,384], index: 3, kind: input, shape index: {}]   ;;  %s3180_s4 = inlined_call_operand.hbm [shape: bf16[128,128], index: 4, kind: input, shape index: {}]   ;;  %s3181_s5 = inlined_call_operand.vmem [shape: f32[1,128], index: 5, kind: input, shape index: {}]   ;;  %s3182_s6 = inlined_call_operand.vmem [shape: f32[1,128], index: 6, kind: input, shape index: {}]   ;;  %s3183_s7 = inlined_call_operand.hbm [shape: f32[1,128], index: 7, kind: input, shape index: {}]   ;;  %s3184_s8 = inlined_call_operand.vmem [shape: bf16[128,512], index: 8, kind: input, shape index: {}]   ;;  %s3185_s9 = inlined_call_operand.vmem [shape: f32[1,512], index: 9, kind: input, shape index: {}]   ;;  %s3186_s10 = inlined_call_operand.vmem [shape: bf16[512,128], index: 10, kind: input, shape index: {}]   ;;  %s3187_s11 = inlined_call_operand.hbm [shape: f32[1,128], index: 11, kind: input, shape index: {}]   ;;  %s3188_s12 = inlined_call_operand.hbm [shape: f32[1,128], index: 12, kind: input, shape index: {}]   ;;  %s3189_s13 = inlined_call_operand.hbm [shape: f32[1,128], index: 13, kind: input, shape index: {}]   ;;  %s3190_s14 = inlined_call_operand.vmem [shape: bf16[2,8,128], index: 14, kind: output, shape index: {}]  }
   0x1   :  { %20 = vsyncpa [#allocation5], 0  ;;  %s52_s15 = sshll.u32 %s3183_s7, 4  ;;  %s53_s15 = int_to_ptr.hbm [resolvable:$true] %s52_s15 }
   0x2   :  { %21 = vsyncpa [#allocation8], 0  ;;  %s2426_s16 = smov [#allocation4]   ;;  %s80_s20 = sshll.u32 %s3188_s12, 4  ;;  %s81_s20 = int_to_ptr.hbm [resolvable:$true] %s80_s20 }
   0x3   :  { %s54_s17 = sshll.u32 %s2426_s16, 4  ;;  %s2427_s21 = smov [#allocation7]   ;;  %s55_s17 = int_to_ptr.vmem [resolvable:$true] %s54_s17 }
   0x4   :  { %57 = dma.hbm_to_vmem [thread:$0]  %s53_s15, 16, %s55_s17, [#allocation5]  }
   0x5   :  { %s82_s22 = sshll.u32 %s2427_s21, 4  ;;  %s34_s25 = sshll.u32 %s3180_s4, 4  ;;  %s83_s22 = int_to_ptr.vmem [resolvable:$true] %s82_s22  ;;  %s35_s25 = int_to_ptr.hbm [resolvable:$true] %s34_s25 }
   0x6   :  { %85 = dma.hbm_to_vmem [thread:$0]  %s81_s20, 16, %s83_s22, [#allocation8]  }
   0x7   :  { %s2428_s7 = smov [#allocation2]   ;;  %s69_s29 = sshll.u32 %s3187_s11, 4  ;;  %s70_s29 = int_to_ptr.hbm [resolvable:$true] %s69_s29 }
   0x8   :  { %s36_s26 = sshll.u32 %s2428_s7, 4  ;;  %s2429_s30 = smov 64   ;;  %s37_s26 = int_to_ptr.vmem [resolvable:$true] %s36_s26 }
   0x9   :  { %s2430_s12 = smov 4   ;;  %s2431_s15 = smov [#allocation6]  }
   0xa   :  { %42 = dma.hbm_to_vmem [thread:$0]  %s35_s25, 1024, %s37_s26, [#allocation3], %s2429_s30, %s2429_s30, %s2430_s12  }
   0xb   :  { %s71_s16 = sshll.u32 %s2431_s15, 4  ;;  %s91_s18 = sshll.u32 %s3189_s13, 4  ;;  %s72_s16 = int_to_ptr.vmem [resolvable:$true] %s71_s16  ;;  %s92_s18 = int_to_ptr.hbm [resolvable:$true] %s91_s18 }
   0xc   :  { %74 = dma.hbm_to_vmem [thread:$0]  %s70_s29, 16, %s72_s16, [#allocation5]  }
   0xd   :  { %s2432_s19 = smov [#allocation9]  }
   0xe   :  { %s93_s20 = sshll.u32 %s2432_s19, 4  ;;  %s94_s20 = int_to_ptr.vmem [resolvable:$true] %s93_s20 }
   0xf   :  { %96 = dma.hbm_to_vmem [thread:$0]  %s92_s18, 16, %s94_s20, [#allocation8]  }
  0x10   :  { %2420 = dma.done.wait [#allocation3], 1024  }
  0x11   :  { %2421 = vsyncadd [#allocation3], 4294966272 }
  0x12   :  { %2422 = dma.done.wait [#allocation5], 32  }
  0x13   :  { %2423 = vsyncadd [#allocation5], 4294967264 }
  0x14   :  { %2424 = dma.done.wait [#allocation8], 32  }
  0x15   :  { %2425 = vsyncadd [#allocation8], 4294967264  ;;  %v1790_v0 = vld [vmem:[%s3178_s2 + $0xa8] sm:$0xf]  ;;  %v2126_v1 = vld [vmem:[%s3178_s2 + $0xb0] sm:$0xf0] }
  0x16   :  { %v2125_v2 = vld [vmem:[%s3178_s2 + $0xac] sm:$0xf]  ;;  %v1791_v3 = vor.u32 %v2126_v1, %v1790_v0  ;;  %v1792_v4 = vld [vmem:[%s3178_s2 + $0xb4] sm:$0xf0]  ;;  %v1778_v5 = vld [vmem:[%s3178_s2 + $0x90] sm:$0xf] }
  0x17   :  { %v2123_v6 = vld [vmem:[%s3178_s2 + $0x98] sm:$0xf0]  ;;  %v1795_v7 = vor.u32 %v2125_v2, %v1792_v4  ;;  %v2122_v8 = vld [vmem:[%s3178_s2 + $0x94] sm:$0xf]  ;;  %v1780_v9 = vld [vmem:[%s3178_s2 + $0x9c] sm:$0xf0] }
  0x18   :  { %293 = vmatpush.bf16.msra.mxu0 %v1791_v3  ;;  %v1779_v10 = vor.u32 %v2123_v6, %v1778_v5  ;;  %v1783_v11 = vor.u32 %v2122_v8, %v1780_v9  ;;  %v1766_v12 = vld [vmem:[%s3178_s2 + $0x78] sm:$0xf]  ;;  %v2120_v13 = vld [vmem:[%s3178_s2 + $0x80] sm:$0xf0]  ;;  %v2119_v14 = vld [vmem:[%s3178_s2 + $0x7c] sm:$0xf] }
  0x19   :  { %307 = vmatpush.bf16.msra.mxu1 %v1795_v7  ;;  %v1768_v15 = vld [vmem:[%s3178_s2 + $0x84] sm:$0xf0]  ;;  %v1767_v16 = vor.u32 %v2120_v13, %v1766_v12  ;;  %v1754_v18 = vld [vmem:[%s3178_s2 + $0x60] sm:$0xf]  ;;  %v2117_v19 = vld [vmem:[%s3178_s2 + $0x68] sm:$0xf0] }
  0x1a   :  { %v1771_v17 = vor.u32 %v2119_v14, %v1768_v15  ;;  %v2116_v20 = vld [vmem:[%s3178_s2 + $0x64] sm:$0xf]  ;;  %v1756_v21 = vld [vmem:[%s3178_s2 + $0x6c] sm:$0xf0]  ;;  %v1755_v22 = vor.u32 %v2117_v19, %v1754_v18  ;;  %v2127_v24 = vld [vmem:[%s3178_s2 + $0xb8] sm:$0xf0] }
  0x1b   :  { %v1798_v23 = vld [vmem:[%s3178_s2 + $0xb0] sm:$0xf]  ;;  %v1786_v25 = vld [vmem:[%s3178_s2 + $0x98] sm:$0xf]  ;;  %v1759_v26 = vor.u32 %v2116_v20, %v1756_v21  ;;  %v1742_v27 = vld [vmem:[%s3178_s2 + $0x48] sm:$0xf] }
  0x1c   :  { %294 = vmatpush.bf16.msra.mxu0 %v1779_v10  ;;  %v2114_v28 = vld [vmem:[%s3178_s2 + $0x50] sm:$0xf0]  ;;  %v1799_v29 = vor.u32 %v2127_v24, %v1798_v23  ;;  %v2124_v30 = vld [vmem:[%s3178_s2 + $0xa0] sm:$0xf0]  ;;  %v2113_v31 = vld [vmem:[%s3178_s2 + $0x4c] sm:$0xf] }
  0x1d   :  { %308 = vmatpush.bf16.msra.mxu1 %v1783_v11  ;;  %v1744_v32 = vld [vmem:[%s3178_s2 + $0x54] sm:$0xf0]  ;;  %v1730_v33 = vld [vmem:[%s3178_s2 + $0x30] sm:$0xf]  ;;  %v1787_v34 = vor.u32 %v2124_v30, %v1786_v25  ;;  %v1743_v35 = vor.u32 %v2114_v28, %v1742_v27  ;;  %v2111_v36 = vld [vmem:[%s3178_s2 + $0x38] sm:$0xf0] }
  0x1e   :  { %321 = vmatpush.bf16.msra.mxu2 %v1799_v29  ;;  %v1774_v37 = vld [vmem:[%s3178_s2 + $0x80] sm:$0xf]  ;;  %v2121_v38 = vld [vmem:[%s3178_s2 + $0x88] sm:$0xf0]  ;;  %v1747_v39 = vor.u32 %v2113_v31, %v1744_v32  ;;  %v2110_v40 = vld [vmem:[%s3178_s2 + $0x34] sm:$0xf]  ;;  %v1731_v44 = vor.u32 %v2111_v36, %v1730_v33 }
  0x1f   :  { %v1732_v41 = vld [vmem:[%s3178_s2 + $0x3c] sm:$0xf0]  ;;  %v1762_v42 = vld [vmem:[%s3178_s2 + $0x68] sm:$0xf]  ;;  %v1775_v43 = vor.u32 %v2121_v38, %v1774_v37  ;;  %v2118_v45 = vld [vmem:[%s3178_s2 + $0x70] sm:$0xf0] }
  0x20   :  { %295 = vmatpush.bf16.msra.mxu0 %v1767_v16  ;;  %v1735_v46 = vor.u32 %v2110_v40, %v1732_v41  ;;  %v1718_v47 = vld [vmem:[%s3178_s2 + $0x18] sm:$0xf]  ;;  %v2108_v48 = vld [vmem:[%s3178_s2 + $0x20] sm:$0xf0]  ;;  %v2107_v49 = vld [vmem:[%s3178_s2 + $0x1c] sm:$0xf]  ;;  %v1763_v51 = vor.u32 %v2118_v45, %v1762_v42 }
  0x21   :  { %309 = vmatpush.bf16.msra.mxu1 %v1771_v17  ;;  %v1720_v50 = vld [vmem:[%s3178_s2 + $0x24] sm:$0xf0]  ;;  %v1719_v52 = vor.u32 %v2108_v48, %v1718_v47  ;;  %v1750_v53 = vld [vmem:[%s3178_s2 + $0x50] sm:$0xf]  ;;  %v2115_v54 = vld [vmem:[%s3178_s2 + $0x58] sm:$0xf0] }
  0x22   :  { %322 = vmatpush.bf16.msra.mxu2 %v1787_v34  ;;  %v1723_v55 = vor.u32 %v2107_v49, %v1720_v50  ;;  %v1706_v56 = vld [vmem:[%s3178_s2] sm:$0xf]  ;;  %v2105_v57 = vld [vmem:[%s3178_s2 + $0x8] sm:$0xf0]  ;;  %v2104_v58 = vld [vmem:[%s3178_s2 + $0x4] sm:$0xf]  ;;  %v1751_v60 = vor.u32 %v2115_v54, %v1750_v53 }
  0x23   :  { %v1708_v59 = vld [vmem:[%s3178_s2 + $0xc] sm:$0xf0]  ;;  %v1707_v61 = vor.u32 %v2105_v57, %v1706_v56  ;;  %v1738_v62 = vld [vmem:[%s3178_s2 + $0x38] sm:$0xf]  ;;  %v2112_v63 = vld [vmem:[%s3178_s2 + $0x40] sm:$0xf0] }
  0x24   :  { %296 = vmatpush.bf16.msra.mxu0 %v1755_v22  ;;  %v1711_v0 = vor.u32 %v2104_v58, %v1708_v59  ;;  %v1739_v1 = vor.u32 %v2112_v63, %v1738_v62  ;;  %v2663_v2 = vld [vmem:[%s3176_s0] sm:$0xff]   ;;  %v2109_v4 = vld [vmem:[%s3178_s2 + $0x28] sm:$0xf0]  ;;  %v1714_v6 = vld [vmem:[%s3178_s2 + $0x8] sm:$0xf]  ;;  %vm338_vm0 = vcmask 261120  }
  0x25   :  { %310 = vmatpush.bf16.msra.mxu1 %v1759_v26  ;;  %v1726_v3 = vld [vmem:[%s3178_s2 + $0x20] sm:$0xf]  ;;  %v2106_v7 = vld [vmem:[%s3178_s2 + $0x10] sm:$0xf0]  ;;  %s2433_s2 = smov 96   ;;  %vm379_vm1 = vcmask 1043456  }
  0x26   :  { %323 = vmatpush.bf16.msra.mxu2 %v1775_v43  ;;  %v1727_v5 = vor.u32 %v2109_v4, %v1726_v3  ;;  %v1715_v8 = vor.u32 %v2106_v7, %v1714_v6  ;;  %v2683_v9 = vld [vmem:[%s3179_s3] sm:$0x7]  ;;  %s2434_s3 = smov 32   ;;  %vm363_vm2 = vcmask 64512   ;;  %vm586_vm3 = vcmask 523264  }
  0x27   :  { %v160_v10 = vperm.slane %v2683_v9, 1  ;;  %v159_v12 = vperm.slane %v2683_v9, 0  ;;  %v161_v26 = vperm.slane %v2683_v9, 2  ;;  %v2715_v40 = vld [vmem:[%s3177_s1] ss:$0 sm:$0xff]  ;;  %vm588_vm4 = vcmask 785408  }
  0x28   :  { %297 = vmatpush.bf16.msra.mxu0 %v1743_v35  ;;  %v2725_v56 = vld [vmem:[%s3177_s1 + $0x1] ss:$0 sm:$0xff] }
  0x29   :  { %311 = vmatpush.bf16.msra.mxu1 %v1747_v39 }
  0x2a   :  { %324 = vmatpush.bf16.msra.mxu2 %v1763_v51 }
  0x2c   :  { %298 = vmatpush.bf16.msra.mxu0 %v1731_v44 }
  0x2d   :  { %312 = vmatpush.bf16.msra.mxu1 %v1735_v46 }
  0x2e   :  { %325 = vmatpush.bf16.msra.mxu2 %v1751_v60 }
  0x30   :  { %299 = vmatpush.bf16.msra.mxu0 %v1719_v52 }
  0x31   :  { %313 = vmatpush.bf16.msra.mxu1 %v1723_v55 }
  0x32   :  { %326 = vmatpush.bf16.msra.mxu2 %v1739_v1 }
  0x34   :  { %300 = vmatpush.bf16.msra.mxu0 %v1707_v61 }
  0x35   :  { %314 = vmatpush.bf16.msra.mxu1 %v1711_v0 }
  0x36   :  { %327 = vmatpush.bf16.msra.mxu2 %v1727_v5 }
  0x37   :  { %301 = vmatmul.bf16.vlgmr.msra.gmra.mxu0 %v2663_v2 }
  0x38   :  { %315 = vmatmul.bf16.vlgmr.msra.gmra.mxu1 %v2663_v2 }
  0x3a   :  { %328 = vmatpush.bf16.msra.mxu2 %v1715_v8 }
  0x3d   :  { %329 = vmatmul.bf16.vlgmr.msra.gmra.mxu2 %v2663_v2 }
  0xb4   :  { %v302_v14 = vpop.f32.mrf.mxu0 }
  0xb5   :  { %v316_v11 = vpop.f32.mrf.mxu1  ;;  %v303_v16 = vadd.f32 %v302_v14, %v159_v12 }
  0xb6   :  { %v317_v13 = vadd.f32 %v316_v11, %v160_v10 }
  0xb7   :  { %v335_v19 = vpack.c.bf16 %v303_v16, %v303_v16 }
  0xb8   :  { %v336_v15 = vpack.c.bf16 %v317_v13, %v317_v13 }
  0xba   :  { %459 = vrot.lane.b32.xlu2 %v336_v15, %s2429_s30  ;;  %400 = vrot.lane.b32.xlu1 %v336_v15, %s2433_s2  ;;  %v343_v17 = vsel %vm338_vm0, %v336_v15, 0 }
  0xbb   :  { %352 = vmatpush.bf16.xpose.msra.mxu3 %v343_v17 }
  0xbc   :  { %v304_v22 = vpop.f32.mrf.mxu0 }
  0xbd   :  { %v318_v18 = vpop.f32.mrf.mxu1  ;;  %v305_v24 = vadd.f32 %v304_v22, %v159_v12 }
  0xbe   :  { %v319_v20 = vadd.f32 %v318_v18, %v160_v10 }
  0xbf   :  { %v590_v25 = vpack.c.bf16 %v305_v24, %v305_v24 }
  0xc0   :  { %v591_v21 = vpack.c.bf16 %v319_v20, %v319_v20  ;;  %v330_v27 = vpop.f32.mrf.mxu2 }
  0xc1   :  { %v331_v28 = vadd.f32 %v330_v27, %v161_v26 }
  0xc2   :  { %517 = vrot.lane.b32.xlu2 %v336_v15, %s2434_s3  ;;  %397 = vrot.lane.b32.xlu1 %v335_v19, %s2433_s2  ;;  %v597_v23 = vsel %vm338_vm0, %v591_v21, 0 }
  0xc3   :  { %1800 = vmatmul.msk.bf16.vlgmr.msra.gmra.mxu3 %vm338_vm0, %v335_v19  ;;  %606 = vmatpush.bf16.xpose.msrb.mxu1 %v597_v23  ;;  %v2704_v29 = vpack.c.bf16 %v331_v28, %v331_v28 }
  0xc5   :  { %v381_v30 = vsel %vm379_vm1, %v2704_v29, 0 }
  0xc6   :  { %390 = vmatpush.bf16.msrb.mxu3 %v381_v30 }
  0xc8   :  { %v2741_v10 = vpop.f32.mrf.mxu2 }
  0xca   :  { %652 = vrot.lane.b32.xlu2 %v591_v21, %s2433_s2  ;;  %1808 = vmatmul.msk.bf16.vlgmr.msrb.gmra.mxu1 %vm338_vm0, %v590_v25 }
  0xcb   :  { %515 = vrot.lane.b32.xlu1 %v335_v19, %s2434_s3 }
  0xd2   :  { %711 = vrot.lane.b32.xlu2 %v591_v21, %s2429_s30 }
  0xd3   :  { %649 = vrot.lane.b32.xlu1 %v590_v25, %s2433_s2 }
  0xda   :  { %709 = vrot.lane.b32.xlu2 %v590_v25, %s2429_s30 }
  0xdb   :  { %769 = vrot.lane.b32.xlu1 %v591_v21, %s2434_s3 }
 0x114   :  { %v460_v31 = vpop.permute.xlu2 %459 }
 0x115   :  { %v465_v32 = vsel %vm338_vm0, %v460_v31, 0 }
 0x116   :  { %474 = vmatpush.bf16.xpose.msrb.mxu2 %v465_v32 }
 0x11c   :  { %v518_v33 = vpop.permute.xlu2 %517 }
 0x11d   :  { %v523_v0 = vsel %vm338_vm0, %v518_v33, 0 }
 0x124   :  { %v653_v34 = vpop.permute.xlu2 %652 }
 0x125   :  { %v658_v4 = vsel %vm338_vm0, %v653_v34, 0 }
 0x12c   :  { %v712_v35 = vpop.permute.xlu2 %711  ;;  %v401_v36 = vpop.permute.xlu1 %400 }
 0x12d   :  { %v717_v37 = vsel %vm338_vm0, %v712_v35, 0  ;;  %v406_v38 = vsel %vm338_vm0, %v401_v36, 0 }
 0x12e   :  { %415 = vmatpush.bf16.xpose.msra.mxu3 %v406_v38  ;;  %726 = vmatpush.bf16.xpose.msra.mxu1 %v717_v37 }
 0x134   :  { %v710_v39 = vpop.permute.xlu2 %709  ;;  %v398_v63 = vpop.permute.xlu1 %397 }
 0x135   :  { %1812 = vmatmul.msk.bf16.vlgmr.msra.gmra.mxu1 %vm338_vm0, %v710_v39 }
 0x13d   :  { %v516_v3 = vpop.permute.xlu1 %515 }
 0x145   :  { %v650_v5 = vpop.permute.xlu1 %649 }
 0x146   :  { %v354_v41 = vpop.f32.mrf.mxu3 }
 0x147   :  { %v358_v42 = vmul.f32 0.17677669, %v354_v41  ;;  %v608_v43 = vpop.f32.mrf.mxu1 }
 0x148   :  { %v612_v16 = vmul.f32 0.17677669, %v608_v43 }
 0x149   :  { %v362_v44 = vadd.f32 %v2715_v40, %v358_v42 }
 0x14a   :  { %v616_v21 = vadd.f32 %v2725_v56, %v612_v16 }
 0x14b   :  { %v364_v45 = vsel %vm363_vm2, %v362_v44, -inf }
 0x14c   :  { %365 = vmax.xlane.f32.xlu0 %v364_v45  ;;  %v617_v23 = vsel %vm363_vm2, %v616_v21, -inf }
 0x14d   :  { %v770_v6 = vpop.permute.xlu1 %769 }
 0x14e   :  { %v356_v46 = vpop.f32.mrf.mxu3  ;;  %v775_v7 = vsel %vm338_vm0, %v770_v6, 0 }
 0x14f   :  { %v610_v47 = vpop.f32.mrf.mxu1 }
 0x1b2   :  { %v728_v48 = vpop.f32.mrf.mxu1 }
 0x1b3   :  { %v732_v55 = vmul.f32 0.17677669, %v728_v48 }
 0x1b5   :  { %v2728_v57 = vadd.f32 %v2725_v56, %v732_v55 }
 0x1b7   :  { %v734_v58 = vsel %vm363_vm2, %v2728_v57, -inf }
 0x1ba   :  { %v730_v49 = vpop.f32.mrf.mxu1 }
 0x1bf   :  { %v366_v50 = vpop.xlane.xlu0 %365 }
 0x1c0   :  { %v367_v51 = vsub.f32 %v362_v44, %v366_v50 }
 0x1c2   :  { %v368_v52 = vmul.f32 1.442695, %v367_v51 }
 0x1c4   :  { %2242 = vpow2.f32 %v368_v52 }
 0x1ca   :  { %v2243_v53 = vpop.eup %2242 }
 0x1cb   :  { %v370_v54 = vsel %vm363_vm2, %v2243_v53, 0.0 }
 0x1cc   :  { %371 = vadd.xlane.f32.xlu0 %v370_v54 }
 0x1e0   :  { %457 = vrot.lane.b32.xlu0 %v335_v19, %s2429_s30 }
 0x1e8   :  { %767 = vrot.lane.b32.xlu0 %v590_v25, %s2434_s3 }
 0x212   :  { %735 = vmax.xlane.f32.xlu0 %v734_v58 }
 0x23f   :  { %v372_v59 = vpop.xlane.xlu0 %371 }
 0x240   :  { %2244 = vrcp.f32 %v372_v59 }
 0x246   :  { %v2245_v60 = vpop.eup %2244 }
 0x247   :  { %v374_v61 = vmul.f32 %v2245_v60, %v2243_v53 }
 0x249   :  { %v375_v62 = vpack.c.bf16 %v374_v61, %v374_v61 }
 0x24b   :  { %1801 = vmatmul.msk.bf16.vlgmr.msrb.gmra.mxu3 %vm363_vm2, %v375_v62 }
 0x24c   :  { %532 = vmatpush.bf16.xpose.msrb.mxu3 %v523_v0 }
 0x252   :  { %v458_v1 = vpop.permute.xlu0 %457 }
 0x253   :  { %1804 = vmatmul.msk.bf16.vlgmr.msrb.gmra.mxu2 %vm338_vm0, %v458_v1 }
 0x25a   :  { %v768_v8 = vpop.permute.xlu0 %767 }
 0x25b   :  { %1802 = vmatmul.msk.bf16.vlgmr.msra.gmra.mxu3 %vm338_vm0, %v398_v63 }
 0x25c   :  { %667 = vmatpush.bf16.xpose.msra.mxu3 %v658_v4  ;;  %v333_v4 = vadd.f32 %v2741_v10, %v161_v26 }
 0x25e   :  { %v592_v6 = vpack.c.bf16 %v333_v4, %v333_v4 }
 0x26b   :  { %1806 = vmatmul.msk.bf16.vlgmr.msrb.gmra.mxu3 %vm338_vm0, %v516_v3 }
 0x26c   :  { %784 = vmatpush.bf16.xpose.msrb.mxu3 %v775_v7 }
 0x27b   :  { %1810 = vmatmul.msk.bf16.vlgmr.msra.gmra.mxu3 %vm338_vm0, %v650_v5 }
 0x285   :  { %v736_v52 = vpop.xlane.xlu0 %735 }
 0x28b   :  { %1814 = vmatmul.msk.bf16.vlgmr.msrb.gmra.mxu3 %vm338_vm0, %v768_v8 }
 0x2ce   :  { %v2743_v11 = vpop.f32.mrf.mxu3 }
 0x2d6   :  { %v394_v12 = vpop.f32.mrf.mxu3  ;;  %v476_v13 = vpop.f32.mrf.mxu2 }
 0x2d7   :  { %v480_v14 = vmul.f32 0.17677669, %v476_v13 }
 0x2d9   :  { %v481_v15 = vadd.f32 %v2715_v40, %v480_v14 }
 0x2db   :  { %v482_v17 = vsel %vm363_vm2, %v481_v15, -inf }
 0x2dc   :  { %483 = vmax.xlane.f32.xlu2 %v482_v17 }
 0x2de   :  { %v417_v18 = vpop.f32.mrf.mxu3  ;;  %v478_v19 = vpop.f32.mrf.mxu2 }
 0x2df   :  { %v421_v20 = vmul.f32 0.17677669, %v417_v18 }
 0x2e1   :  { %v422_v22 = vadd.f32 %v2715_v40, %v421_v20 }
 0x2e3   :  { %v423_v24 = vsel %vm363_vm2, %v422_v22, -inf }
 0x2e4   :  { %618 = vmax.xlane.f32.xlu2 %v617_v23  ;;  %424 = vmax.xlane.f32.xlu1 %v423_v24 }
 0x2e6   :  { %v419_v25 = vpop.f32.mrf.mxu3 }
 0x2ee   :  { %v534_v27 = vpop.f32.mrf.mxu3 }
 0x2ef   :  { %v538_v28 = vmul.f32 0.17677669, %v534_v27  ;;  %v633_v27 = vsel %vm379_vm1, %v592_v6, 0 }
 0x2f1   :  { %v539_v30 = vadd.f32 %v2715_v40, %v538_v28 }
 0x2f3   :  { %v540_v31 = vsel %vm363_vm2, %v539_v30, -inf }
 0x2f4   :  { %541 = vmax.xlane.f32.xlu0 %v540_v31 }
 0x2f6   :  { %v536_v32 = vpop.f32.mrf.mxu3 }
 0x2fe   :  { %v669_v33 = vpop.f32.mrf.mxu3 }
 0x2ff   :  { %v673_v34 = vmul.f32 0.17677669, %v669_v33 }
 0x301   :  { %v674_v35 = vadd.f32 %v2725_v56, %v673_v34 }
 0x303   :  { %v675_v36 = vsel %vm363_vm2, %v674_v35, -inf }
 0x304   :  { %676 = vmax.xlane.f32.xlu1 %v675_v36 }
 0x306   :  { %v671_v37 = vpop.f32.mrf.mxu3 }
 0x308   :  { %436 = vrot.lane.b32.xlu0 %v2704_v29, %s2433_s2 }
 0x30e   :  { %v786_v38 = vpop.f32.mrf.mxu3 }
 0x30f   :  { %v790_v50 = vmul.f32 0.17677669, %v786_v38 }
 0x311   :  { %v791_v53 = vadd.f32 %v2725_v56, %v790_v50 }
 0x313   :  { %v792_v59 = vsel %vm363_vm2, %v791_v53, -inf }
 0x316   :  { %v788_v39 = vpop.f32.mrf.mxu3 }
 0x31d   :  { %552 = vrot.lane.b32.xlu1 %v2704_v29, %s2434_s3 }
 0x34f   :  { %v484_v40 = vpop.xlane.xlu2 %483 }
 0x350   :  { %v485_v41 = vsub.f32 %v481_v15, %v484_v40 }
 0x352   :  { %v486_v42 = vmul.f32 1.442695, %v485_v41 }
 0x354   :  { %2246 = vpow2.f32 %v486_v42 }
 0x357   :  { %v619_v43 = vpop.xlane.xlu2 %618  ;;  %v425_v44 = vpop.xlane.xlu1 %424 }
 0x358   :  { %v620_v45 = vsub.f32 %v616_v21, %v619_v43  ;;  %v426_v46 = vsub.f32 %v422_v22, %v425_v44 }
 0x35a   :  { %v2247_v47 = vpop.eup %2246  ;;  %v621_v48 = vmul.f32 1.442695, %v620_v45  ;;  %v427_v49 = vmul.f32 1.442695, %v426_v46 }
 0x35b   :  { %v488_v51 = vsel %vm363_vm2, %v2247_v47, 0.0 }
 0x35c   :  { %2248 = vpow2.f32 %v621_v48  ;;  %489 = vadd.xlane.f32.xlu2 %v488_v51 }
 0x35d   :  { %2250 = vpow2.f32 %v427_v49 }
 0x362   :  { %v2761_v54 = vpop.eup %2248 }
 0x363   :  { %v2251_v55 = vpop.eup %2250  ;;  %v623_v58 = vsel %vm363_vm2, %v2761_v54, 0.0 }
 0x364   :  { %624 = vadd.xlane.f32.xlu0 %v623_v58  ;;  %v429_v60 = vsel %vm363_vm2, %v2251_v55, 0.0  ;;  %793 = vmax.xlane.f32.xlu2 %v792_v59 }
 0x365   :  { %430 = vadd.xlane.f32.xlu1 %v429_v60 }
 0x367   :  { %v542_v61 = vpop.xlane.xlu0 %541 }
 0x368   :  { %v543_v62 = vsub.f32 %v539_v30, %v542_v61 }
 0x36a   :  { %v544_v63 = vmul.f32 1.442695, %v543_v62 }
 0x36c   :  { %2252 = vpow2.f32 %v544_v63 }
 0x372   :  { %v2253_v0 = vpop.eup %2252 }
 0x373   :  { %v546_v56 = vsel %vm363_vm2, %v2253_v0, 0.0 }
 0x374   :  { %547 = vadd.xlane.f32.xlu1 %v546_v56 }
 0x377   :  { %v677_v5 = vpop.xlane.xlu1 %676 }
 0x378   :  { %v678_v12 = vsub.f32 %v674_v35, %v677_v5 }
 0x37a   :  { %v437_v1 = vpop.permute.xlu0 %436  ;;  %v679_v13 = vmul.f32 1.442695, %v678_v12 }
 0x37b   :  { %v442_v3 = vsel %vm379_vm1, %v437_v1, 0 }
 0x37c   :  { %451 = vmatpush.bf16.msrb.mxu0 %v442_v3  ;;  %494 = vrot.lane.b32.xlu2 %v2704_v29, %s2429_s30  ;;  %2254 = vpow2.f32 %v679_v13  ;;  %v737_v29 = vsub.f32 %v2728_v57, %v736_v52 }
 0x37e   :  { %v738_v9 = vmul.f32 1.442695, %v737_v29 }
 0x380   :  { %2256 = vpow2.f32 %v738_v9 }
 0x382   :  { %v2255_v14 = vpop.eup %2254 }
 0x383   :  { %v681_v15 = vsel %vm363_vm2, %v2255_v14, 0.0 }
 0x386   :  { %v2778_v26 = vpop.eup %2256 }
 0x387   :  { %v740_v10 = vsel %vm363_vm2, %v2778_v26, 0.0 }
 0x38d   :  { %688 = vrot.lane.b32.xlu1 %v592_v6, %s2433_s2 }
 0x38f   :  { %v553_v7 = vpop.permute.xlu1 %552 }
 0x390   :  { %v558_v8 = vsel %vm379_vm1, %v553_v7, 0 }
 0x391   :  { %567 = vmatpush.bf16.msra.mxu0 %v558_v8 }
 0x3a5   :  { %682 = vadd.xlane.f32.xlu2 %v681_v15  ;;  %v2135_v15 = vld [vmem:[#allocation2 + $0x38] sm:$0xff] }
 0x3a6   :  { %905 = vmatpush.bf16.msrb.mxu1 %v2135_v15  ;;  %v2160_v15 = vld [vmem:[%s3184_s8 + $0xc4] sm:$0xf] }
 0x3b7   :  { %741 = vadd.xlane.f32.xlu1 %v740_v10  ;;  %v2133_v10 = vld [vmem:[#allocation2 + $0x28] sm:$0xff] }
 0x3bd   :  { %804 = vrot.lane.b32.xlu2 %v592_v6, %s2434_s3 }
 0x3cf   :  { %v490_v16 = vpop.xlane.xlu2 %489 }
 0x3d0   :  { %2258 = vrcp.f32 %v490_v16  ;;  %v2132_v16 = vld [vmem:[#allocation2 + $0x20] sm:$0xff] }
 0x3d6   :  { %v2259_v21 = vpop.eup %2258 }
 0x3d7   :  { %v794_v17 = vpop.xlane.xlu2 %793  ;;  %v492_v22 = vmul.f32 %v2259_v21, %v2247_v47  ;;  %v625_v32 = vpop.xlane.xlu0 %624 }
 0x3d8   :  { %v431_v18 = vpop.xlane.xlu1 %430  ;;  %v795_v19 = vsub.f32 %v791_v53, %v794_v17  ;;  %v2131_v17 = vld [vmem:[#allocation2 + $0x18] sm:$0xff] }
 0x3d9   :  { %2260 = vrcp.f32 %v431_v18  ;;  %v493_v31 = vpack.c.bf16 %v492_v22, %v492_v22  ;;  %v2130_v18 = vld [vmem:[#allocation2 + $0x10] sm:$0xff] }
 0x3da   :  { %v796_v20 = vmul.f32 1.442695, %v795_v19  ;;  %v2129_v19 = vld [vmem:[#allocation2 + $0x8] sm:$0xff] }
 0x3dc   :  { %2262 = vpow2.f32 %v796_v20  ;;  %v2128_v20 = vld [vmem:[#allocation2] sm:$0xff] }
 0x3dd   :  { %2264 = vrcp.f32 %v625_v32 }
 0x3df   :  { %v2261_v57 = vpop.eup %2260  ;;  %v495_v23 = vpop.permute.xlu2 %494 }
 0x3e0   :  { %v433_v24 = vmul.f32 %v2261_v57, %v2251_v55  ;;  %v500_v25 = vsel %vm379_vm1, %v495_v23, 0 }
 0x3e1   :  { %509 = vmatpush.bf16.msra.mxu2 %v500_v25 }
 0x3e2   :  { %v2263_v28 = vpop.eup %2262  ;;  %v434_v30 = vpack.c.bf16 %v433_v24, %v433_v24 }
 0x3e3   :  { %v798_v33 = vsel %vm363_vm2, %v2263_v28, 0.0  ;;  %v2265_v35 = vpop.eup %2264 }
 0x3e4   :  { %1803 = vmatmul.msk.bf16.vlgmr.msrb.gmra.mxu0 %vm363_vm2, %v434_v30  ;;  %799 = vadd.xlane.f32.xlu0 %v798_v33  ;;  %v627_v37 = vmul.f32 %v2265_v35, %v2761_v54 }
 0x3e5   :  { %642 = vmatpush.bf16.msrb.mxu2 %v633_v27 }
 0x3e6   :  { %1805 = vmatmul.msk.bf16.vlgmr.msra.gmra.mxu2 %vm363_vm2, %v493_v31  ;;  %v628_v40 = vpack.c.bf16 %v627_v37, %v627_v37 }
 0x3e7   :  { %v548_v34 = vpop.xlane.xlu1 %547 }
 0x3e8   :  { %2266 = vrcp.f32 %v548_v34 }
 0x3ee   :  { %v2267_v36 = vpop.eup %2266 }
 0x3ef   :  { %v550_v38 = vmul.f32 %v2267_v36, %v2253_v0 }
 0x3f1   :  { %v551_v39 = vpack.c.bf16 %v550_v38, %v550_v38  ;;  %v2202_v38 = vunpack.c.l.bf16 %v2663_v2 }
 0x3f4   :  { %1807 = vmatmul.msk.bf16.vlgmr.msra.gmra.mxu0 %vm363_vm2, %v551_v39  ;;  %v2236_v39 = vld [vmem:[%s3181_s5] ss:$0 sm:$0xff] }
 0x3f6   :  { %1809 = vmatmul.msk.bf16.vlgmr.msrb.gmra.mxu2 %vm363_vm2, %v628_v40 }
 0x3f8   :  { %746 = vrot.lane.b32.xlu0 %v592_v6, %s2429_s30 }
 0x3ff   :  { %v689_v41 = vpop.permute.xlu1 %688 }
 0x400   :  { %v694_v42 = vsel %vm379_vm1, %v689_v41, 0 }
 0x401   :  { %703 = vmatpush.bf16.msrb.mxu0 %v694_v42 }
 0x418   :  { %v683_v43 = vpop.xlane.xlu2 %682 }
 0x419   :  { %2268 = vrcp.f32 %v683_v43 }
 0x41f   :  { %v2269_v44 = vpop.eup %2268 }
 0x420   :  { %v685_v45 = vmul.f32 %v2269_v44, %v2255_v14  ;;  %v805_v46 = vpop.permute.xlu2 %804 }
 0x421   :  { %v810_v47 = vsel %vm379_vm1, %v805_v46, 0  ;;  %v2435_v46 = vmov 128.0  }
 0x422   :  { %v686_v48 = vpack.c.bf16 %v685_v45, %v685_v45  ;;  %819 = vmatpush.bf16.msra.mxu0 %v810_v47 }
 0x424   :  { %1811 = vmatmul.msk.bf16.vlgmr.msrb.gmra.mxu0 %vm363_vm2, %v686_v48 }
 0x42a   :  { %v742_v50 = vpop.xlane.xlu1 %741 }
 0x457   :  { %v800_v49 = vpop.xlane.xlu0 %799 }
 0x458   :  { %2270 = vrcp.f32 %v800_v49 }
 0x459   :  { %2272 = vrcp.f32 %v742_v50 }
 0x45a   :  { %2274 = vrcp.f32 %v2435_v46  ;;  %v2150_v46 = vld [vmem:[%s3184_s8 + $0x6c] sm:$0xf0] }
 0x45e   :  { %v2271_v51 = vpop.eup %2270 }
 0x45f   :  { %v802_v52 = vmul.f32 %v2271_v51, %v2263_v28  ;;  %v2273_v55 = vpop.eup %2272 }
 0x460   :  { %v744_v59 = vmul.f32 %v2273_v55, %v2778_v26  ;;  %v2134_v26 = vld [vmem:[#allocation2 + $0x30] sm:$0xff]  ;;  %v2275_v47 = vpop.eup %2274 }
 0x461   :  { %v803_v53 = vpack.c.bf16 %v802_v52, %v802_v52  ;;  %v453_v54 = vpop.f32.mrf.mxu0  ;;  %906 = vmatpush.bf16.msrb.mxu1 %v2134_v26  ;;  %v934_v48 = vmul.f32 128.0, %v2275_v47  ;;  %vm938_vm5 = vweird.f32 %v2275_v47  ;;  %v1954_v26 = vld [vmem:[%s3184_s8 + $0xc8] sm:$0xf] }
 0x462   :  { %v745_v63 = vpack.c.bf16 %v744_v59, %v744_v59 }
 0x463   :  { %1815 = vmatmul.msk.bf16.vlgmr.msra.gmra.mxu0 %vm363_vm2, %v803_v53  ;;  %v935_v49 = vsub.f32 1.0, %v934_v48 }
 0x465   :  { %907 = vmatpush.bf16.msrb.mxu1 %v2133_v10  ;;  %v936_v50 = vmul.f32 %v2275_v47, %v935_v49  ;;  %v2163_v10 = vld [vmem:[%s3184_s8 + $0xd4] sm:$0xf0]  ;;  %v1900_v49 = vld [vmem:[%s3184_s8 + $0x70] sm:$0xf0] }
 0x467   :  { %v937_v51 = vadd.f32 %v2275_v47, %v936_v50  ;;  %v1906_v50 = vld [vmem:[%s3184_s8 + $0x68] sm:$0xf] }
 0x469   :  { %v511_v58 = vpop.f32.mrf.mxu2  ;;  %v455_v60 = vpop.f32.mrf.mxu0  ;;  %908 = vmatpush.bf16.msrb.mxu1 %v2132_v16  ;;  %v2810_v52 = vsel %vm938_vm5, %v2275_v47, %v937_v51  ;;  %v2148_v47 = vld [vmem:[%s3184_s8 + $0x64] sm:$0xf]  ;;  %v2151_v51 = vld [vmem:[%s3184_s8 + $0x74] sm:$0xf0] }
 0x46a   :  { %v747_v61 = vpop.permute.xlu0 %746 }
 0x46b   :  { %v752_v62 = vsel %vm379_vm1, %v747_v61, 0 }
 0x46c   :  { %761 = vmatpush.bf16.msra.mxu2 %v752_v62  ;;  %v1962_v62 = vld [vmem:[%s3184_s8 + $0xe0] sm:$0xf] }
 0x46d   :  { %909 = vmatpush.bf16.msrb.mxu1 %v2131_v17  ;;  %v1955_v17 = vor.u32 %v2163_v10, %v1954_v26  ;;  %v2143_v26 = vld [vmem:[%s3184_s8 + $0x34] sm:$0xf0] }
 0x46f   :  { %1813 = vmatmul.msk.bf16.vlgmr.msra.gmra.mxu2 %vm363_vm2, %v745_v63  ;;  %v2166_v63 = vld [vmem:[%s3184_s8 + $0xec] sm:$0xf0] }
 0x471   :  { %v513_v0 = vpop.f32.mrf.mxu2  ;;  %v569_v56 = vpop.f32.mrf.mxu0  ;;  %910 = vmatpush.bf16.msrb.mxu1 %v2130_v18  ;;  %v2161_v18 = vld [vmem:[%s3184_s8 + $0xcc] sm:$0xf] }
 0x472   :  { %v2164_v0 = vld [vmem:[%s3184_s8 + $0xe4] sm:$0xf] }
 0x475   :  { %911 = vmatpush.bf16.msrb.mxu1 %v2129_v19  ;;  %v1956_v19 = vld [vmem:[%s3184_s8 + $0xd8] sm:$0xf0] }
 0x479   :  { %v644_v1 = vpop.f32.mrf.mxu2  ;;  %v571_v3 = vpop.f32.mrf.mxu0  ;;  %912 = vmatpush.bf16.msrb.mxu1 %v2128_v20  ;;  %v1959_v20 = vor.u32 %v2161_v18, %v1956_v19  ;;  %v2141_v18 = vld [vmem:[%s3184_s8 + $0x2c] sm:$0xf]  ;;  %v1876_v19 = vld [vmem:[%s3184_s8 + $0x38] sm:$0xf0] }
 0x47a   :  { %v1970_v3 = vld [vmem:[%s3184_s8 + $0xe8] sm:$0xf] }
 0x481   :  { %v646_v4 = vpop.f32.mrf.mxu2 }
 0x482   :  { %v2167_v4 = vld [vmem:[%s3184_s8 + $0xf4] sm:$0xf0] }
 0x4a1   :  { %v705_v5 = vpop.f32.mrf.mxu0 }
 0x4a2   :  { %v2219_v6 = vpack.i.bf16 %v705_v5, %v453_v54 }
 0x4a4   :  { %2220 = vrot.lane.b32.xlu1 %v2219_v6, %s2434_s3  ;;  %v1971_v6 = vor.u32 %v2167_v4, %v1970_v3  ;;  %v2147_v3 = vld [vmem:[%s3184_s8 + $0x54] sm:$0xf0] }
 0x4a6   :  { %1217 = vmatpush.bf16.msrb.mxu0 %v1971_v6  ;;  %v2145_v6 = vld [vmem:[%s3184_s8 + $0x4c] sm:$0xf] }
 0x4a9   :  { %v707_v7 = vpop.f32.mrf.mxu0 }
 0x4aa   :  { %v2165_v7 = vld [vmem:[%s3184_s8 + $0xec] sm:$0xf]  ;;  %1218 = vmatpush.bf16.msrb.mxu0 %v1955_v17 }
 0x4e0   :  { %v821_v8 = vpop.f32.mrf.mxu0 }
 0x4e1   :  { %v2229_v9 = vpack.i.bf16 %v821_v8, %v569_v56  ;;  %v1963_v56 = vor.u32 %v2166_v63, %v1962_v62  ;;  %v1972_v8 = vld [vmem:[%s3184_s8 + $0xf8] sm:$0xf0]  ;;  %v2146_v62 = vld [vmem:[%s3184_s8 + $0x4c] sm:$0xf0]  ;;  %v2144_v63 = vld [vmem:[%s3184_s8 + $0x44] sm:$0xf] }
 0x4e3   :  { %1189 = vmatpush.bf16.msrb.mxu2 %v1963_v56  ;;  %v1884_v56 = vld [vmem:[%s3184_s8 + $0x50] sm:$0xf0] }
 0x4e4   :  { %v1887_v4 = vor.u32 %v2144_v63, %v1884_v56  ;;  %v2190_v56 = vld [vmem:[%s3186_s10 + $0xb0] sm:$0xff] }
 0x4e8   :  { %v823_v12 = vpop.f32.mrf.mxu0 }
 0x4e9   :  { %v1975_v12 = vor.u32 %v2165_v7, %v1972_v8  ;;  %v1892_v7 = vld [vmem:[%s3184_s8 + $0x58] sm:$0xf0] }
 0x4ea   :  { %v1895_v8 = vor.u32 %v2145_v6, %v1892_v7  ;;  %v2197_v6 = vld [vmem:[%s3186_s10 + $0xe8] sm:$0xff]  ;;  %v2174_v7 = vld [vmem:[%s3186_s10 + $0x30] sm:$0xff] }
 0x4eb   :  { %1231 = vmatpush.bf16.msra.mxu1 %v1975_v12  ;;  %v1866_v12 = vld [vmem:[%s3184_s8 + $0x20] sm:$0xf] }
 0x4ef   :  { %1232 = vmatpush.bf16.msra.mxu1 %v1959_v20  ;;  %v1850_v20 = vld [vmem:[%s3184_s8] sm:$0xf] }
 0x4f2   :  { %v763_v13 = vpop.f32.mrf.mxu2 }
 0x4f3   :  { %v2224_v14 = vpack.i.bf16 %v763_v13, %v511_v58  ;;  %v1946_v13 = vld [vmem:[%s3184_s8 + $0xc0] sm:$0xf] }
 0x4f5   :  { %2225 = vrot.lane.b32.xlu0 %v2224_v14, %s2429_s30  ;;  %v2162_v14 = vld [vmem:[%s3184_s8 + $0xcc] sm:$0xf0] }
 0x4fa   :  { %v765_v29 = vpop.f32.mrf.mxu2 }
 0x4fb   :  { %v1947_v29 = vor.u32 %v2162_v14, %v1946_v13  ;;  %v2142_v13 = vld [vmem:[%s3184_s8 + $0x2c] sm:$0xf0]  ;;  %v2140_v14 = vld [vmem:[%s3184_s8 + $0x24] sm:$0xf] }
 0x4fd   :  { %2230 = vrot.lane.b32.xlu0 %v2229_v9, %s2433_s2  ;;  %v1948_v9 = vld [vmem:[%s3184_s8 + $0xd0] sm:$0xf0]  ;;  %1190 = vmatpush.bf16.msrb.mxu2 %v1947_v29 }
 0x4fe   :  { %v1951_v16 = vor.u32 %v2160_v15, %v1948_v9  ;;  %v1867_v15 = vor.u32 %v2142_v13, %v1866_v12  ;;  %v1868_v29 = vld [vmem:[%s3184_s8 + $0x30] sm:$0xf0]  ;;  %v1874_v9 = vld [vmem:[%s3184_s8 + $0x28] sm:$0xf]  ;;  %v2188_v12 = vld [vmem:[%s3186_s10 + $0xa0] sm:$0xff] }
 0x4ff   :  { %v1875_v17 = vor.u32 %v2143_v26, %v1874_v9  ;;  %v2196_v13 = vld [vmem:[%s3186_s10 + $0xe0] sm:$0xff]  ;;  %v2195_v9 = vld [vmem:[%s3186_s10 + $0xd8] sm:$0xff] }
 0x500   :  { %v2172_v26 = vld [vmem:[%s3186_s10 + $0x20] sm:$0xff] }
 0x516   :  { %v2221_v57 = vpop.permute.xlu1 %2220 }
 0x517   :  { %v2223_v22 = vunpack.i.h.bf16 %v2221_v57  ;;  %v2222_v23 = vunpack.i.l.bf16 %v2221_v57  ;;  %v2158_v57 = vld [vmem:[%s3184_s8 + $0xac] sm:$0xf0] }
 0x519   :  { %v837_v28 = vsel %vm338_vm0, %v644_v1, %v2223_v22  ;;  %v585_v30 = vsel %vm338_vm0, %v2743_v11, %v2222_v23  ;;  %v2203_v11 = vunpack.c.h.bf16 %v2663_v2  ;;  %v1964_v1 = vld [vmem:[%s3184_s8 + $0xf0] sm:$0xf0]  ;;  %v2156_v22 = vld [vmem:[%s3184_s8 + $0xa4] sm:$0xf] }
 0x51a   :  { %v1967_v5 = vor.u32 %v2164_v0, %v1964_v1  ;;  %v1890_v1 = vld [vmem:[%s3184_s8 + $0x48] sm:$0xf] }
 0x51c   :  { %1203 = vmatpush.bf16.msra.mxu3 %v1967_v5  ;;  %v1891_v5 = vor.u32 %v2147_v3, %v1890_v1  ;;  %v2198_v1 = vld [vmem:[%s3186_s10 + $0xf0] sm:$0xff]  ;;  %v2175_v3 = vld [vmem:[%s3186_s10 + $0x38] sm:$0xff] }
 0x520   :  { %1204 = vmatpush.bf16.msra.mxu3 %v1951_v16  ;;  %v1871_v16 = vor.u32 %v2140_v14, %v1868_v29  ;;  %v2173_v14 = vld [vmem:[%s3186_s10 + $0x28] sm:$0xff]  ;;  %v2187_v29 = vld [vmem:[%s3186_s10 + $0x98] sm:$0xff] }
 0x567   :  { %v2226_v21 = vpop.permute.xlu0 %2225 }
 0x568   :  { %v2228_v24 = vunpack.i.h.bf16 %v2226_v21  ;;  %v2227_v25 = vunpack.i.l.bf16 %v2226_v21  ;;  %v1930_v21 = vld [vmem:[%s3184_s8 + $0xa0] sm:$0xf] }
 0x569   :  { %v1931_v23 = vor.u32 %v2158_v57, %v1930_v21  ;;  %v1879_v57 = vor.u32 %v2141_v18, %v1876_v19  ;;  %v3090_v18 = vld [vmem:[%s3185_s9] sm:$0xf]  ;;  %v2171_v19 = vld [vmem:[%s3186_s10 + $0x18] sm:$0xff] }
 0x56a   :  { %v587_v33 = vsel %vm586_vm3, %v585_v30, %v2227_v25  ;;  %v838_v34 = vsel %vm586_vm3, %v837_v28, %v2228_v24  ;;  %v1932_v24 = vld [vmem:[%s3184_s8 + $0xb0] sm:$0xf0]  ;;  %v1938_v25 = vld [vmem:[%s3184_s8 + $0xa8] sm:$0xf] }
 0x56b   :  { %v1935_v28 = vor.u32 %v2156_v22, %v1932_v24  ;;  %1191 = vmatpush.bf16.msrb.mxu2 %v1931_v23  ;;  %v2138_v22 = vld [vmem:[%s3184_s8 + $0xc] sm:$0xf0]  ;;  %v2136_v23 = vld [vmem:[%s3184_s8 + $0x4] sm:$0xf]  ;;  %v1852_v24 = vld [vmem:[%s3184_s8 + $0x10] sm:$0xf0] }
 0x56d   :  { %1205 = vmatpush.bf16.msra.mxu3 %v1935_v28  ;;  %v1858_v28 = vld [vmem:[%s3184_s8 + $0x8] sm:$0xf] }
 0x56f   :  { %v2231_v27 = vpop.permute.xlu0 %2230 }
 0x570   :  { %v2233_v31 = vunpack.i.h.bf16 %v2231_v27  ;;  %v2232_v32 = vunpack.i.l.bf16 %v2231_v27  ;;  %v2159_v27 = vld [vmem:[%s3184_s8 + $0xb4] sm:$0xf0] }
 0x571   :  { %v1939_v30 = vor.u32 %v2159_v27, %v1938_v25  ;;  %v1851_v25 = vor.u32 %v2138_v22, %v1850_v20  ;;  %v1855_v27 = vor.u32 %v2136_v23, %v1852_v24  ;;  %v2179_v20 = vld [vmem:[%s3186_s10 + $0x58] sm:$0xff]  ;;  %v1023_v22 = vperm.slane %v3090_v18, 2  ;;  %v2170_v24 = vld [vmem:[%s3186_s10 + $0x10] sm:$0xff] }
 0x572   :  { %v839_v35 = vsel %vm588_vm4, %v838_v34, %v2233_v31  ;;  %v589_v36 = vsel %vm588_vm4, %v587_v33, %v2232_v32  ;;  %v2157_v31 = vld [vmem:[%s3184_s8 + $0xac] sm:$0xf]  ;;  %v1940_v32 = vld [vmem:[%s3184_s8 + $0xb8] sm:$0xf0]  ;;  %v1914_v34 = vld [vmem:[%s3184_s8 + $0x80] sm:$0xf] }
 0x573   :  { %v856_v37 = vpack.c.bf16 %v839_v35, %v589_v36  ;;  %v1943_v33 = vor.u32 %v2157_v31, %v1940_v32  ;;  %1219 = vmatpush.bf16.msrb.mxu0 %v1939_v30  ;;  %v2154_v35 = vld [vmem:[%s3184_s8 + $0x8c] sm:$0xf0]  ;;  %v2152_v36 = vld [vmem:[%s3184_s8 + $0x84] sm:$0xf]  ;;  %v2139_v30 = vld [vmem:[%s3184_s8 + $0x14] sm:$0xf0] }
 0x574   :  { %v2137_v31 = vld [vmem:[%s3184_s8 + $0xc] sm:$0xf]  ;;  %v1024_v23 = vperm.slane %v3090_v18, 3 }
 0x575   :  { %913 = vmatmul.bf16.vlgmr.msrb.gmra.mxu1 %v856_v37  ;;  %v1915_v37 = vor.u32 %v2154_v35, %v1914_v34  ;;  %v1860_v34 = vld [vmem:[%s3184_s8 + $0x18] sm:$0xf0] }
 0x576   :  { %1233 = vmatpush.bf16.msra.mxu1 %v1943_v33  ;;  %v1859_v33 = vor.u32 %v2139_v30, %v1858_v28  ;;  %v1863_v35 = vor.u32 %v2137_v31, %v1860_v34  ;;  %v2184_v30 = vld [vmem:[%s3186_s10 + $0x80] sm:$0xff]  ;;  %v1021_v34 = vperm.slane %v3090_v18, 0 }
 0x577   :  { %1192 = vmatpush.bf16.msrb.mxu2 %v1915_v37  ;;  %v2192_v31 = vld [vmem:[%s3186_s10 + $0xc0] sm:$0xff] }
 0x5f2   :  { %v914_v40 = vpop.f32.mrf.mxu1 }
 0x5f3   :  { %v919_v41 = vadd.f32 %v2202_v38, %v914_v40  ;;  %v1916_v38 = vld [vmem:[%s3184_s8 + $0x90] sm:$0xf0]  ;;  %v2155_v40 = vld [vmem:[%s3184_s8 + $0x94] sm:$0xf0] }
 0x5f5   :  { %v925_v42 = vadd.f32 %v2236_v39, %v919_v41  ;;  %v1919_v41 = vor.u32 %v2152_v36, %v1916_v38 }
 0x5f7   :  { %929 = vadd.xlane.f32.xlu2 %v925_v42  ;;  %1206 = vmatpush.bf16.msra.mxu3 %v1919_v41 }
 0x5fa   :  { %v916_v43 = vpop.f32.mrf.mxu1 }
 0x5fb   :  { %v920_v44 = vadd.f32 %v2203_v11, %v916_v43  ;;  %v2153_v11 = vld [vmem:[%s3184_s8 + $0x8c] sm:$0xf]  ;;  %v1924_v43 = vld [vmem:[%s3184_s8 + $0x98] sm:$0xf0] }
 0x5fd   :  { %v926_v45 = vadd.f32 %v2236_v39, %v920_v44  ;;  %v1922_v39 = vld [vmem:[%s3184_s8 + $0x88] sm:$0xf]  ;;  %v1927_v44 = vor.u32 %v2153_v11, %v1924_v43 }
 0x5ff   :  { %931 = vadd.xlane.f32.xlu0 %v926_v45  ;;  %1234 = vmatpush.bf16.msra.mxu1 %v1927_v44 }
 0x66a   :  { %v930_v53 = vpop.xlane.xlu2 %929 }
 0x66b   :  { %v940_v54 = vmul.f32 %v2810_v52, %v930_v53  ;;  %v1903_v53 = vor.u32 %v2148_v47, %v1900_v49 }
 0x66d   :  { %v2813_v55 = vsub.f32 %v925_v42, %v940_v54  ;;  %v1923_v42 = vor.u32 %v2155_v40, %v1922_v39  ;;  %v1907_v54 = vor.u32 %v2151_v51, %v1906_v50  ;;  %1207 = vmatpush.bf16.msra.mxu3 %v1903_v53  ;;  %v2237_v51 = vld [vmem:[%s3182_s6] ss:$0 sm:$0xff] }
 0x66f   :  { %v944_v2 = vmul.f32 %v2813_v55, %v2813_v55  ;;  %1220 = vmatpush.bf16.msrb.mxu0 %v1923_v42 }
 0x671   :  { %946 = vadd.xlane.f32.xlu1 %v944_v2  ;;  %v2149_v2 = vld [vmem:[%s3184_s8 + $0x6c] sm:$0xf]  ;;  %1208 = vmatpush.bf16.msra.mxu3 %v1887_v4  ;;  %v2183_v4 = vld [vmem:[%s3186_s10 + $0x78] sm:$0xff] }
 0x672   :  { %v932_v58 = vpop.xlane.xlu0 %931 }
 0x673   :  { %v941_v59 = vmul.f32 %v2810_v52, %v932_v58  ;;  %v1908_v58 = vld [vmem:[%s3184_s8 + $0x78] sm:$0xf0]  ;;  %1221 = vmatpush.bf16.msrb.mxu0 %v1907_v54 }
 0x675   :  { %v2818_v60 = vsub.f32 %v926_v45, %v941_v59  ;;  %v1898_v45 = vld [vmem:[%s3184_s8 + $0x60] sm:$0xf]  ;;  %v1911_v59 = vor.u32 %v2149_v2, %v1908_v58  ;;  %1209 = vmatpush.bf16.msra.mxu3 %v1871_v16  ;;  %v2186_v16 = vld [vmem:[%s3186_s10 + $0x90] sm:$0xff] }
 0x676   :  { %v1899_v48 = vor.u32 %v2150_v46, %v1898_v45 }
 0x677   :  { %v945_v61 = vmul.f32 %v2818_v60, %v2818_v60  ;;  %1235 = vmatpush.bf16.msra.mxu1 %v1911_v59  ;;  %1222 = vmatpush.bf16.msrb.mxu0 %v1891_v5  ;;  %v2238_v59 = vld [vmem:[#allocation4] ss:$0 sm:$0xff]  ;;  %v2189_v5 = vld [vmem:[%s3186_s10 + $0xa8] sm:$0xff] }
 0x678   :  { %1193 = vmatpush.bf16.msrb.mxu2 %v1899_v48 }
 0x679   :  { %948 = vadd.xlane.f32.xlu2 %v945_v61  ;;  %v1882_v61 = vld [vmem:[%s3184_s8 + $0x40] sm:$0xf]  ;;  %1210 = vmatpush.bf16.msra.mxu3 %v1855_v27 }
 0x67a   :  { %v1883_v0 = vor.u32 %v2146_v62, %v1882_v61 }
 0x67b   :  { %1236 = vmatpush.bf16.msra.mxu1 %v1895_v8  ;;  %1223 = vmatpush.bf16.msrb.mxu0 %v1875_v17  ;;  %v2182_v8 = vld [vmem:[%s3186_s10 + $0x70] sm:$0xff] }
 0x67c   :  { %1194 = vmatpush.bf16.msrb.mxu2 %v1883_v0  ;;  %v2191_v0 = vld [vmem:[%s3186_s10 + $0xb8] sm:$0xff]  ;;  %v2194_v17 = vld [vmem:[%s3186_s10 + $0xd0] sm:$0xff] }
 0x67d   :  { %1591 = vmatpush.bf16.msrb.mxu3 %v2183_v4 }
 0x67f   :  { %1237 = vmatpush.bf16.msra.mxu1 %v1879_v57  ;;  %1224 = vmatpush.bf16.msrb.mxu0 %v1859_v33  ;;  %v2193_v57 = vld [vmem:[%s3186_s10 + $0xc8] sm:$0xff] }
 0x680   :  { %1195 = vmatpush.bf16.msrb.mxu2 %v1867_v15  ;;  %v2181_v15 = vld [vmem:[%s3186_s10 + $0x68] sm:$0xff] }
 0x681   :  { %1592 = vmatpush.bf16.msrb.mxu3 %v2182_v8 }
 0x683   :  { %1238 = vmatpush.bf16.msra.mxu1 %v1863_v35  ;;  %1605 = vmatpush.bf16.msra.mxu0 %v2191_v0  ;;  %v1022_v35 = vperm.slane %v3090_v18, 1 }
 0x684   :  { %1196 = vmatpush.bf16.msrb.mxu2 %v1851_v25  ;;  %v2178_v25 = vld [vmem:[%s3186_s10 + $0x50] sm:$0xff] }
 0x685   :  { %1593 = vmatpush.bf16.msrb.mxu3 %v2181_v15 }
 0x687   :  { %1606 = vmatpush.bf16.msra.mxu0 %v2190_v56 }
 0x688   :  { %1577 = vmatpush.bf16.msra.mxu2 %v2175_v3 }
 0x68b   :  { %1607 = vmatpush.bf16.msra.mxu0 %v2189_v5 }
 0x68c   :  { %1578 = vmatpush.bf16.msra.mxu2 %v2174_v7 }
 0x68f   :  { %1608 = vmatpush.bf16.msra.mxu0 %v2188_v12 }
 0x690   :  { %1579 = vmatpush.bf16.msra.mxu2 %v2173_v14 }
 0x693   :  { %1609 = vmatpush.bf16.msra.mxu0 %v2187_v29 }
 0x694   :  { %1580 = vmatpush.bf16.msra.mxu2 %v2172_v26 }
 0x697   :  { %1610 = vmatpush.bf16.msra.mxu0 %v2186_v16 }
 0x698   :  { %1581 = vmatpush.bf16.msra.mxu2 %v2171_v19 }
 0x69c   :  { %1582 = vmatpush.bf16.msra.mxu2 %v2170_v24 }
 0x6e4   :  { %v947_v10 = vpop.xlane.xlu1 %946 }
 0x6e5   :  { %v950_v21 = vmul.f32 %v947_v10, %v2810_v52  ;;  %v2180_v10 = vld [vmem:[%s3186_s10 + $0x60] sm:$0xff] }
 0x6e6   :  { %1594 = vmatpush.bf16.msrb.mxu3 %v2180_v10 }
 0x6e7   :  { %v952_v32 = vadd.f32 1e-12, %v950_v21  ;;  %v2185_v21 = vld [vmem:[%s3186_s10 + $0x88] sm:$0xff] }
 0x6e8   :  { %1611 = vmatpush.bf16.msra.mxu0 %v2185_v21 }
 0x6e9   :  { %2276 = vrsqrt.f32 %v952_v32  ;;  %vm960_vm7 = vweird.f32 %v952_v32 }
 0x6ea   :  { %1595 = vmatpush.bf16.msrb.mxu3 %v2179_v20 }
 0x6ec   :  { %v949_v36 = vpop.xlane.xlu2 %948  ;;  %1612 = vmatpush.bf16.msra.mxu0 %v2184_v30 }
 0x6ed   :  { %v951_v37 = vmul.f32 %v949_v36, %v2810_v52  ;;  %v2169_v36 = vld [vmem:[%s3186_s10 + $0x8] sm:$0xff] }
 0x6ee   :  { %1596 = vmatpush.bf16.msrb.mxu3 %v2178_v25  ;;  %1583 = vmatpush.bf16.msra.mxu2 %v2169_v36 }
 0x6ef   :  { %v2277_v38 = vpop.eup %2276  ;;  %v953_v39 = vadd.f32 1e-12, %v951_v37  ;;  %v2177_v37 = vld [vmem:[%s3186_s10 + $0x48] sm:$0xff] }
 0x6f0   :  { %v955_v40 = vmul.f32 %v2277_v38, %v952_v32  ;;  %vm961_vm6 = vweird.f32 %v2277_v38 }
 0x6f1   :  { %2278 = vrsqrt.f32 %v953_v39  ;;  %vm962_vm8 = vmor %vm960_vm7, %vm961_vm6  ;;  %vm970_vm10 = vweird.f32 %v953_v39 }
 0x6f2   :  { %v956_v41 = vmul.f32 %v2277_v38, %v955_v40  ;;  %1597 = vmatpush.bf16.msrb.mxu3 %v2177_v37 }
 0x6f4   :  { %v957_v42 = vmul.f32 0.5, %v956_v41 }
 0x6f6   :  { %v958_v11 = vsub.f32 1.5, %v957_v42 }
 0x6f7   :  { %v2279_v43 = vpop.eup %2278 }
 0x6f8   :  { %v959_v44 = vmul.f32 %v2277_v38, %v958_v11  ;;  %v965_v45 = vmul.f32 %v2279_v43, %v953_v39  ;;  %vm971_vm9 = vweird.f32 %v2279_v43 }
 0x6f9   :  { %vm972_vm11 = vmor %vm970_vm10, %vm971_vm9 }
 0x6fa   :  { %v966_v46 = vmul.f32 %v2279_v43, %v965_v45  ;;  %v963_v47 = vsel %vm962_vm8, %v2277_v38, %v959_v44  ;;  %v2168_v45 = vld [vmem:[%s3186_s10] sm:$0xff] }
 0x6fb   :  { %v974_v50 = vmul.f32 %v963_v47, %v2813_v55  ;;  %1584 = vmatpush.bf16.msra.mxu2 %v2168_v45 }
 0x6fc   :  { %v967_v48 = vmul.f32 0.5, %v966_v46  ;;  %v2176_v46 = vld [vmem:[%s3186_s10 + $0x40] sm:$0xff] }
 0x6fd   :  { %v979_v58 = vmul.f32 %v2237_v51, %v974_v50  ;;  %1598 = vmatpush.bf16.msrb.mxu3 %v2176_v46 }
 0x6fe   :  { %v968_v49 = vsub.f32 1.5, %v967_v48 }
 0x6ff   :  { %v3021_v62 = vadd.f32 %v2238_v59, %v979_v58 }
 0x700   :  { %v969_v53 = vmul.f32 %v2279_v43, %v968_v49 }
 0x702   :  { %v973_v54 = vsel %vm972_vm11, %v2279_v43, %v969_v53 }
 0x703   :  { %v975_v2 = vmul.f32 %v973_v54, %v2818_v60  ;;  %v2199_v60 = vld [vmem:[%s3186_s10 + $0xf8] sm:$0xff] }
 0x704   :  { %1619 = vmatpush.bf16.msrb.mxu1 %v2199_v60 }
 0x705   :  { %v980_v61 = vmul.f32 %v2237_v51, %v975_v2 }
 0x707   :  { %v3023_v63 = vadd.f32 %v2238_v59, %v980_v61 }
 0x708   :  { %1620 = vmatpush.bf16.msrb.mxu1 %v2198_v1 }
 0x709   :  { %v1018_v55 = vpack.c.bf16 %v3023_v63, %v3021_v62 }
 0x70b   :  { %1197 = vmatmul.bf16.vlgmr.msrb.gmra.mxu2 %v1018_v55  ;;  %1211 = vmatmul.bf16.vlgmr.msra.gmra.mxu3 %v1018_v55 }
 0x70c   :  { %1225 = vmatmul.bf16.vlgmr.msrb.gmra.mxu0 %v1018_v55  ;;  %1239 = vmatmul.bf16.vlgmr.msra.gmra.mxu1 %v1018_v55 }
 0x70d   :  { %1621 = vmatpush.bf16.msrb.mxu1 %v2197_v6 }
 0x711   :  { %1622 = vmatpush.bf16.msrb.mxu1 %v2196_v13 }
 0x715   :  { %1623 = vmatpush.bf16.msrb.mxu1 %v2195_v9 }
 0x719   :  { %1624 = vmatpush.bf16.msrb.mxu1 %v2194_v17 }
 0x71d   :  { %1625 = vmatpush.bf16.msrb.mxu1 %v2193_v57 }
 0x721   :  { %1626 = vmatpush.bf16.msrb.mxu1 %v2192_v31 }
 0x789   :  { %v1226_v27 = vpop.f32.mrf.mxu0  ;;  %v1240_v28 = vpop.f32.mrf.mxu1 }
 0x78a   :  { %v3118_v32 = vadd.f32 %v1226_v27, %v1023_v22  ;;  %v3120_v33 = vadd.f32 %v1240_v28, %v1024_v23 }
 0x78c   :  { %v1247_v38 = vmul.f32 %v3118_v32, %v3118_v32  ;;  %v1248_v39 = vmul.f32 %v3120_v33, %v3120_v33 }
 0x78e   :  { %v1255_v40 = vmul.f32 %v1247_v38, %v3118_v32  ;;  %v1256_v41 = vmul.f32 %v1248_v39, %v3120_v33  ;;  %v1198_v42 = vpop.f32.mrf.mxu2  ;;  %v1212_v11 = vpop.f32.mrf.mxu3 }
 0x78f   :  { %v3136_v43 = vadd.f32 %v1198_v42, %v1021_v34  ;;  %v3138_v44 = vadd.f32 %v1212_v11, %v1022_v35 }
 0x790   :  { %v1263_v47 = vmul.f32 0.044715, %v1255_v40  ;;  %v1264_v48 = vmul.f32 0.044715, %v1256_v41 }
 0x791   :  { %v1245_v49 = vmul.f32 %v3136_v43, %v3136_v43  ;;  %v1246_v50 = vmul.f32 %v3138_v44, %v3138_v44  ;;  %v1228_v51 = vpop.f32.mrf.mxu0  ;;  %v1242_v53 = vpop.f32.mrf.mxu1 }
 0x792   :  { %v1271_v54 = vadd.f32 %v1263_v47, %v3118_v32  ;;  %v1272_v2 = vadd.f32 %v1264_v48, %v3120_v33  ;;  %v1229_v58 = vadd.f32 %v1228_v51, %v1023_v22  ;;  %v3152_v59 = vadd.f32 %v1242_v53, %v1024_v23 }
 0x793   :  { %v1253_v61 = vmul.f32 %v1245_v49, %v3136_v43  ;;  %v1254_v55 = vmul.f32 %v1246_v50, %v3138_v44 }
 0x794   :  { %v1279_v0 = vmul.f32 0.7978846, %v1271_v54  ;;  %v1251_v60 = vmul.f32 %v1229_v58, %v1229_v58  ;;  %v1252_v56 = vmul.f32 %v3152_v59, %v3152_v59  ;;  %v1280_v1 = vmul.f32 0.7978846, %v1272_v2 }
 0x795   :  { %v1261_v3 = vmul.f32 0.044715, %v1253_v61  ;;  %v1262_v4 = vmul.f32 0.044715, %v1254_v55 }
 0x796   :  { %v1259_v5 = vmul.f32 %v1251_v60, %v1229_v58  ;;  %v1260_v6 = vmul.f32 %v1252_v56, %v3152_v59  ;;  %v1200_v7 = vpop.f32.mrf.mxu2  ;;  %v1214_v8 = vpop.f32.mrf.mxu3  ;;  %2280 = vtanh.f32 %v1279_v0 }
 0x797   :  { %v1269_v12 = vadd.f32 %v1261_v3, %v3136_v43  ;;  %v1270_v13 = vadd.f32 %v1262_v4, %v3138_v44  ;;  %v1201_v14 = vadd.f32 %v1200_v7, %v1021_v34  ;;  %v1215_v9 = vadd.f32 %v1214_v8, %v1022_v35 }
 0x798   :  { %v1267_v15 = vmul.f32 0.044715, %v1259_v5  ;;  %v1268_v29 = vmul.f32 0.044715, %v1260_v6  ;;  %2282 = vtanh.f32 %v1280_v1 }
 0x799   :  { %v1277_v26 = vmul.f32 0.7978846, %v1269_v12  ;;  %v1278_v10 = vmul.f32 0.7978846, %v1270_v13  ;;  %v1249_v16 = vmul.f32 %v1201_v14, %v1201_v14  ;;  %v1250_v19 = vmul.f32 %v1215_v9, %v1215_v9 }
 0x79a   :  { %v1275_v17 = vadd.f32 %v1267_v15, %v1229_v58  ;;  %v1276_v18 = vadd.f32 %v1268_v29, %v3152_v59 }
 0x79b   :  { %v1257_v20 = vmul.f32 %v1249_v16, %v1201_v14  ;;  %2284 = vtanh.f32 %v1277_v26  ;;  %v1258_v22 = vmul.f32 %v1250_v19, %v1215_v9  ;;  %v2239_v16 = vld [vmem:[#allocation6] ss:$0 sm:$0xff] }
 0x79c   :  { %v1283_v21 = vmul.f32 0.7978846, %v1275_v17  ;;  %v1284_v57 = vmul.f32 0.7978846, %v1276_v18  ;;  %2286 = vtanh.f32 %v1278_v10  ;;  %v2281_v24 = vpop.eup %2280 }
 0x79d   :  { %v1265_v23 = vmul.f32 0.044715, %v1257_v20  ;;  %v1266_v25 = vmul.f32 0.044715, %v1258_v22  ;;  %v1295_v31 = vadd.f32 1.0, %v2281_v24 }
 0x79e   :  { %2288 = vtanh.f32 %v1283_v21  ;;  %v2283_v27 = vpop.eup %2282 }
 0x79f   :  { %2290 = vtanh.f32 %v1284_v57  ;;  %v1273_v28 = vadd.f32 %v1265_v23, %v1201_v14  ;;  %v1274_v30 = vadd.f32 %v1266_v25, %v1215_v9  ;;  %v1296_v36 = vadd.f32 1.0, %v2283_v27 }
 0x7a0   :  { %v1303_v41 = vmul.f32 0.5, %v1295_v31 }
 0x7a1   :  { %v1281_v34 = vmul.f32 0.7978846, %v1273_v28  ;;  %v2285_v35 = vpop.eup %2284  ;;  %v1282_v37 = vmul.f32 0.7978846, %v1274_v30  ;;  %v1304_v11 = vmul.f32 0.5, %v1296_v36 }
 0x7a2   :  { %v2287_v38 = vpop.eup %2286  ;;  %v1293_v45 = vadd.f32 1.0, %v2285_v35  ;;  %v1311_v51 = vmul.f32 %v1303_v41, %v3118_v32 }
 0x7a3   :  { %2292 = vtanh.f32 %v1281_v34  ;;  %v1294_v47 = vadd.f32 1.0, %v2287_v38  ;;  %v1312_v2 = vmul.f32 %v1304_v11, %v3120_v33 }
 0x7a4   :  { %v2289_v39 = vpop.eup %2288  ;;  %2294 = vtanh.f32 %v1282_v37  ;;  %v1301_v61 = vmul.f32 0.5, %v1293_v45 }
 0x7a5   :  { %v2291_v40 = vpop.eup %2290  ;;  %v1299_v42 = vadd.f32 1.0, %v2289_v39  ;;  %v1302_v60 = vmul.f32 0.5, %v1294_v47 }
 0x7a6   :  { %v1300_v46 = vadd.f32 1.0, %v2291_v40  ;;  %v1309_v6 = vmul.f32 %v1301_v61, %v3136_v43  ;;  %v2241_v61 = vld [vmem:[#allocation9] ss:$0 sm:$0xff] }
 0x7a7   :  { %v1307_v48 = vmul.f32 0.5, %v1299_v42  ;;  %v1310_v32 = vmul.f32 %v1302_v60, %v3138_v44 }
 0x7a8   :  { %v1308_v49 = vmul.f32 0.5, %v1300_v46 }
 0x7a9   :  { %v2293_v50 = vpop.eup %2292  ;;  %v1315_v53 = vmul.f32 %v1307_v48, %v1229_v58 }
 0x7aa   :  { %v2295_v54 = vpop.eup %2294  ;;  %v1316_v55 = vmul.f32 %v1308_v49, %v3152_v59  ;;  %v1297_v0 = vadd.f32 1.0, %v2293_v50 }
 0x7ab   :  { %v1298_v56 = vadd.f32 1.0, %v2295_v54  ;;  %v1383_v1 = vpack.c.bf16 %v1315_v53, %v1311_v51  ;;  %v2240_v53 = vld [vmem:[#allocation7] ss:$0 sm:$0xff] }
 0x7ac   :  { %v1305_v3 = vmul.f32 0.5, %v1297_v0  ;;  %v1384_v4 = vpack.c.bf16 %v1316_v55, %v1312_v2 }
 0x7ad   :  { %v1306_v5 = vmul.f32 0.5, %v1298_v56  ;;  %1613 = vmatmul.bf16.vlgmr.msra.gmra.mxu0 %v1383_v1 }
 0x7ae   :  { %v1313_v7 = vmul.f32 %v1305_v3, %v1201_v14  ;;  %1627 = vmatmul.bf16.vlgmr.msrb.gmra.mxu1 %v1384_v4 }
 0x7af   :  { %v1314_v58 = vmul.f32 %v1306_v5, %v1215_v9 }
 0x7b0   :  { %v1381_v8 = vpack.c.bf16 %v1313_v7, %v1309_v6 }
 0x7b1   :  { %v1382_v33 = vpack.c.bf16 %v1314_v58, %v1310_v32 }
 0x7b2   :  { %1585 = vmatmul.bf16.vlgmr.msra.gmra.mxu2 %v1381_v8 }
 0x7b3   :  { %1599 = vmatmul.bf16.vlgmr.msrb.gmra.mxu3 %v1382_v33 }
 0x82a   :  { %v1614_v12 = vpop.f32.mrf.mxu0 }
 0x82b   :  { %v1628_v29 = vpop.f32.mrf.mxu1 }
 0x832   :  { %v1616_v44 = vpop.f32.mrf.mxu0 }
 0x833   :  { %v1630_v20 = vpop.f32.mrf.mxu1 }
 0x835   :  { %v1586_v59 = vpop.f32.mrf.mxu2 }
 0x836   :  { %v1600_v13 = vpop.f32.mrf.mxu3 }
 0x837   :  { %v1601_v15 = vadd.f32 %v1600_v13, %v1586_v59 }
 0x839   :  { %v1615_v26 = vadd.f32 %v1614_v12, %v1601_v15 }
 0x83b   :  { %v1629_v10 = vadd.f32 %v1628_v29, %v1615_v26 }
 0x83d   :  { %v1588_v17 = vpop.f32.mrf.mxu2  ;;  %v1633_v43 = vadd.f32 %v1629_v10, %v3021_v62 }
 0x83e   :  { %v1602_v14 = vpop.f32.mrf.mxu3 }
 0x83f   :  { %v1603_v18 = vadd.f32 %v1602_v14, %v1588_v17  ;;  %v1639_v19 = vadd.f32 %v2239_v16, %v1633_v43 }
 0x841   :  { %v1617_v9 = vadd.f32 %v1616_v44, %v1603_v18  ;;  %1643 = vadd.xlane.f32.xlu0 %v1639_v19 }
 0x843   :  { %v1631_v21 = vadd.f32 %v1630_v20, %v1617_v9 }
 0x845   :  { %v1634_v57 = vadd.f32 %v1631_v21, %v3023_v63 }
 0x847   :  { %v1640_v22 = vadd.f32 %v2239_v16, %v1634_v57 }
 0x849   :  { %1645 = vadd.xlane.f32.xlu2 %v1640_v22 }
 0x8b4   :  { %v1644_v23 = vpop.xlane.xlu0 %1643 }
 0x8b5   :  { %v1647_v24 = vmul.f32 %v1644_v23, %v2810_v52 }
 0x8b7   :  { %v1649_v25 = vsub.f32 %v1639_v19, %v1647_v24 }
 0x8b9   :  { %v1651_v27 = vmul.f32 %v1649_v25, %v1649_v25 }
 0x8bb   :  { %1653 = vadd.xlane.f32.xlu1 %v1651_v27 }
 0x8bc   :  { %v1646_v28 = vpop.xlane.xlu2 %1645 }
 0x8bd   :  { %v1648_v62 = vmul.f32 %v1646_v28, %v2810_v52 }
 0x8bf   :  { %v1650_v30 = vsub.f32 %v1640_v22, %v1648_v62 }
 0x8c1   :  { %v1652_v31 = vmul.f32 %v1650_v30, %v1650_v30 }
 0x8c3   :  { %1655 = vadd.xlane.f32.xlu0 %v1652_v31 }
 0x92e   :  { %v1654_v34 = vpop.xlane.xlu1 %1653 }
 0x92f   :  { %v1657_v35 = vmul.f32 %v1654_v34, %v2810_v52 }
 0x931   :  { %v1659_v36 = vadd.f32 1e-12, %v1657_v35 }
 0x933   :  { %2296 = vrsqrt.f32 %v1659_v36  ;;  %vm1667_vm13 = vweird.f32 %v1659_v36 }
 0x936   :  { %v1656_v63 = vpop.xlane.xlu0 %1655 }
 0x937   :  { %v1658_v37 = vmul.f32 %v1656_v63, %v2810_v52 }
 0x939   :  { %v2297_v38 = vpop.eup %2296  ;;  %v1660_v39 = vadd.f32 1e-12, %v1658_v37 }
 0x93a   :  { %v1662_v40 = vmul.f32 %v2297_v38, %v1659_v36  ;;  %vm1668_vm12 = vweird.f32 %v2297_v38 }
 0x93b   :  { %2298 = vrsqrt.f32 %v1660_v39  ;;  %vm1669_vm14 = vmor %vm1667_vm13, %vm1668_vm12  ;;  %vm1677_vm0 = vweird.f32 %v1660_v39 }
 0x93c   :  { %v1663_v41 = vmul.f32 %v2297_v38, %v1662_v40 }
 0x93e   :  { %v1664_v42 = vmul.f32 0.5, %v1663_v41 }
 0x940   :  { %v1665_v11 = vsub.f32 1.5, %v1664_v42 }
 0x941   :  { %v2299_v45 = vpop.eup %2298 }
 0x942   :  { %v1666_v46 = vmul.f32 %v2297_v38, %v1665_v11  ;;  %v1672_v47 = vmul.f32 %v2299_v45, %v1660_v39  ;;  %vm1678_vm15 = vweird.f32 %v2299_v45 }
 0x943   :  { %vm1679_vm1 = vmor %vm1677_vm0, %vm1678_vm15 }
 0x944   :  { %v1673_v48 = vmul.f32 %v2299_v45, %v1672_v47  ;;  %v1670_v49 = vsel %vm1669_vm14, %v2297_v38, %v1666_v46 }
 0x945   :  { %v1681_v52 = vmul.f32 %v1670_v49, %v1649_v25 }
 0x946   :  { %v1674_v50 = vmul.f32 0.5, %v1673_v48 }
 0x947   :  { %v1686_v55 = vmul.f32 %v2240_v53, %v1681_v52 }
 0x948   :  { %v1675_v51 = vsub.f32 1.5, %v1674_v50 }
 0x949   :  { %v1691_v56 = vadd.f32 %v2241_v61, %v1686_v55 }
 0x94a   :  { %v1676_v54 = vmul.f32 %v2299_v45, %v1675_v51 }
 0x94c   :  { %v1680_v2 = vsel %vm1679_vm1, %v2299_v45, %v1676_v54 }
 0x94d   :  { %v1682_v0 = vmul.f32 %v1680_v2, %v1650_v30 }
 0x94f   :  { %v1687_v60 = vmul.f32 %v2240_v53, %v1682_v0 }
 0x951   :  { %v1692_v1 = vadd.f32 %v2241_v61, %v1687_v60 }
 0x953   :  { %v2207_v3 = vpack.c.bf16 %v1692_v1, %v1691_v56 }
 0x955   :  { %2208 = vst [vmem:[%s3190_s14] sm:$0xff] %v2207_v3  }
 0x956   :  { %1701 = vsyncpa [#allocation3], 1 }
 0x957   :  { %1702 = vsyncpa [#allocation5], 1 }
 0x958   :  { %1703 = vsyncpa [#allocation8], 1 }

// kernel: blip_forward.12
= control target key start
LH: loop header
LB: loop body
LE: loop exit
PB: predicated region body
PF: predicated region fallthrough
CT: control target
= control target key end

     0   :  { %19 = vsyncpa [#allocation3], 0  ;;  %s2933_s0 = inlined_call_operand.vmem [shape: bf16[2,8,128], index: 0, kind: input, shape index: {}]   ;;  %s2934_s1 = inlined_call_operand.vmem [shape: f32[2,1,8], index: 1, kind: input, shape index: {}]   ;;  %s2935_s2 = inlined_call_operand.hbm [shape: bf16[128,384], index: 2, kind: input, shape index: {}]   ;;  %s2936_s3 = inlined_call_operand.vmem [shape: f32[1,384], index: 3, kind: input, shape index: {}]   ;;  %s2937_s4 = inlined_call_operand.hbm [shape: bf16[128,128], index: 4, kind: input, shape index: {}]   ;;  %s2938_s5 = inlined_call_operand.vmem [shape: f32[1,128], index: 5, kind: input, shape index: {}]   ;;  %s2939_s6 = inlined_call_operand.hbm [shape: f32[1,128], index: 6, kind: input, shape index: {}]   ;;  %s2940_s7 = inlined_call_operand.hbm [shape: f32[1,128], index: 7, kind: input, shape index: {}]   ;;  %s2941_s8 = inlined_call_operand.hbm [shape: bf16[128,512], index: 8, kind: input, shape index: {}]   ;;  %s2942_s9 = inlined_call_operand.vmem [shape: f32[1,512], index: 9, kind: input, shape index: {}]   ;;  %s2943_s10 = inlined_call_operand.hbm [shape: bf16[512,128], index: 10, kind: input, shape index: {}]   ;;  %s2944_s11 = inlined_call_operand.hbm [shape: f32[1,128], index: 11, kind: input, shape index: {}]   ;;  %s2945_s12 = inlined_call_operand.hbm [shape: f32[1,128], index: 12, kind: input, shape index: {}]   ;;  %s2946_s13 = inlined_call_operand.hbm [shape: f32[1,128], index: 13, kind: input, shape index: {}]   ;;  %s2947_s14 = inlined_call_operand.vmem [shape: bf16[2,8,128], index: 14, kind: output, shape index: {}]  }
   0x1   :  { %20 = vsyncpa [#allocation5], 0 }
   0x2   :  { %21 = vsyncpa [#allocation8], 0 }
   0x3   :  { %22 = vsyncpa [#allocation11], 0  ;;  %s47_s15 = sshll.u32 %s2937_s4, 4  ;;  %s48_s15 = int_to_ptr.hbm [resolvable:$true] %s47_s15 }
   0x4   :  { %23 = vsyncpa [#allocation14], 0  ;;  %s2596_s16 = smov [#allocation4]   ;;  %s74_s20 = sshll.u32 %s2940_s7, 4  ;;  %s75_s20 = int_to_ptr.hbm [resolvable:$true] %s74_s20 }
   0x5   :  { %s49_s17 = sshll.u32 %s2596_s16, 4  ;;  %s2597_s21 = smov 64   ;;  %s50_s17 = int_to_ptr.vmem [resolvable:$true] %s49_s17 }
   0x6   :  { %s2598_s22 = smov 4   ;;  %s2599_s23 = smov [#allocation7]  }
   0x7   :  { %55 = dma.hbm_to_vmem [thread:$0]  %s48_s15, 1024, %s50_s17, [#allocation5], %s2597_s21, %s2597_s21, %s2598_s22  }
   0x8   :  { %s76_s24 = sshll.u32 %s2599_s23, 4  ;;  %s99_s4 = sshll.u32 %s2943_s10, 4  ;;  %s77_s24 = int_to_ptr.vmem [resolvable:$true] %s76_s24  ;;  %s100_s4 = int_to_ptr.hbm [resolvable:$true] %s99_s4 }
   0x9   :  { %79 = dma.hbm_to_vmem [thread:$0]  %s75_s20, 16, %s77_s24, [#allocation8]  }
   0xa   :  { %s124_s29 = sshll.u32 %s2945_s12, 4  ;;  %s2600_s7 = smov [#allocation10]   ;;  %s125_s29 = int_to_ptr.hbm [resolvable:$true] %s124_s29 }
   0xb   :  { %s101_s30 = sshll.u32 %s2600_s7, 4  ;;  %s2601_s15 = smov [#allocation13]   ;;  %s102_s30 = int_to_ptr.vmem [resolvable:$true] %s101_s30 }
   0xc   :  { %107 = dma.hbm_to_vmem [thread:$0]  %s100_s4, 4096, %s102_s30, [#allocation11], %s2597_s21, %s2597_s21, %s2598_s22  }
   0xd   :  { %s126_s16 = sshll.u32 %s2601_s15, 4  ;;  %s32_s10 = sshll.u32 %s2935_s2, 4  ;;  %s127_s16 = int_to_ptr.vmem [resolvable:$true] %s126_s16  ;;  %s33_s10 = int_to_ptr.hbm [resolvable:$true] %s32_s10 }
   0xe   :  { %129 = dma.hbm_to_vmem [thread:$0]  %s125_s29, 16, %s127_s16, [#allocation14]  }
   0xf   :  { %s2602_s19 = smov [#allocation2]   ;;  %s63_s24 = sshll.u32 %s2939_s6, 4  ;;  %s64_s24 = int_to_ptr.hbm [resolvable:$true] %s63_s24 }
  0x10   :  { %s34_s20 = sshll.u32 %s2602_s19, 4  ;;  %s2603_s25 = smov 192   ;;  %s35_s20 = int_to_ptr.vmem [resolvable:$true] %s34_s20 }
  0x11   :  { %s2604_s26 = smov 12   ;;  %s2605_s22 = smov [#allocation6]  }
  0x12   :  { %40 = dma.hbm_to_vmem [thread:$0]  %s33_s10, 3072, %s35_s20, [#allocation3], %s2603_s25, %s2603_s25, %s2604_s26  }
  0x13   :  { %s65_s4 = sshll.u32 %s2605_s22, 4  ;;  %s84_s2 = sshll.u32 %s2941_s8, 4  ;;  %s66_s4 = int_to_ptr.vmem [resolvable:$true] %s65_s4  ;;  %s85_s2 = int_to_ptr.hbm [resolvable:$true] %s84_s2 }
  0x14   :  { %68 = dma.hbm_to_vmem [thread:$0]  %s64_s24, 16, %s66_s4, [#allocation5]  }
  0x15   :  { %s2606_s29 = smov [#allocation9]   ;;  %s113_s6 = sshll.u32 %s2944_s11, 4  ;;  %s114_s6 = int_to_ptr.hbm [resolvable:$true] %s113_s6 }
  0x16   :  { %s86_s7 = sshll.u32 %s2606_s29, 4  ;;  %s2607_s16 = smov 256   ;;  %s87_s7 = int_to_ptr.vmem [resolvable:$true] %s86_s7 }
  0x17   :  { %s2608_s17 = smov 16   ;;  %s2609_s18 = smov [#allocation12]  }
  0x18   :  { %92 = dma.hbm_to_vmem [thread:$0]  %s85_s2, 4096, %s87_s7, [#allocation8], %s2607_s16, %s2607_s16, %s2608_s17  }
  0x19   :  { %s115_s10 = sshll.u32 %s2609_s18, 4  ;;  %s135_s8 = sshll.u32 %s2946_s13, 4  ;;  %s116_s10 = int_to_ptr.vmem [resolvable:$true] %s115_s10  ;;  %s136_s8 = int_to_ptr.hbm [resolvable:$true] %s135_s8 }
  0x1a   :  { %118 = dma.hbm_to_vmem [thread:$0]  %s114_s6, 16, %s116_s10, [#allocation11]  }
  0x1b   :  { %s2610_s12 = smov [#allocation15]  }
  0x1c   :  { %s137_s23 = sshll.u32 %s2610_s12, 4  ;;  %s138_s23 = int_to_ptr.vmem [resolvable:$true] %s137_s23 }
  0x1d   :  { %140 = dma.hbm_to_vmem [thread:$0]  %s136_s8, 16, %s138_s23, [#allocation14]  }
  0x1e   :  { %2586 = dma.done.wait [#allocation3], 3072  }
  0x1f   :  { %2587 = vsyncadd [#allocation3], 4294964224 }
  0x20   :  { %2588 = dma.done.wait [#allocation5], 1040  }
  0x21   :  { %2589 = vsyncadd [#allocation5], 4294966256 }
  0x22   :  { %2590 = dma.done.wait [#allocation8], 4112  }
  0x23   :  { %2591 = vsyncadd [#allocation8], 4294963184 }
  0x24   :  { %2592 = dma.done.wait [#allocation11], 4112  }
  0x25   :  { %2593 = vsyncadd [#allocation11], 4294963184 }
  0x26   :  { %2594 = dma.done.wait [#allocation14], 32  }
  0x27   :  { %2595 = vsyncadd [#allocation14], 4294967264  ;;  %v1852_v0 = vld [vmem:[#allocation2 + $0xa8] sm:$0xf]  ;;  %v2188_v1 = vld [vmem:[#allocation2 + $0xb0] sm:$0xf0] }
  0x28   :  { %v2187_v2 = vld [vmem:[#allocation2 + $0xac] sm:$0xf]  ;;  %v1853_v3 = vor.u32 %v2188_v1, %v1852_v0  ;;  %v1854_v4 = vld [vmem:[#allocation2 + $0xb4] sm:$0xf0]  ;;  %v1840_v5 = vld [vmem:[#allocation2 + $0x90] sm:$0xf] }
  0x29   :  { %v2185_v6 = vld [vmem:[#allocation2 + $0x98] sm:$0xf0]  ;;  %v1857_v7 = vor.u32 %v2187_v2, %v1854_v4  ;;  %v2184_v8 = vld [vmem:[#allocation2 + $0x94] sm:$0xf]  ;;  %v1842_v9 = vld [vmem:[#allocation2 + $0x9c] sm:$0xf0] }
  0x2a   :  { %353 = vmatpush.bf16.msra.mxu0 %v1853_v3  ;;  %v1841_v10 = vor.u32 %v2185_v6, %v1840_v5  ;;  %v1845_v11 = vor.u32 %v2184_v8, %v1842_v9  ;;  %v1828_v12 = vld [vmem:[#allocation2 + $0x78] sm:$0xf]  ;;  %v2182_v13 = vld [vmem:[#allocation2 + $0x80] sm:$0xf0]  ;;  %v2181_v14 = vld [vmem:[#allocation2 + $0x7c] sm:$0xf] }
  0x2b   :  { %367 = vmatpush.bf16.msra.mxu1 %v1857_v7  ;;  %v1830_v15 = vld [vmem:[#allocation2 + $0x84] sm:$0xf0]  ;;  %v1829_v16 = vor.u32 %v2182_v13, %v1828_v12  ;;  %v1816_v18 = vld [vmem:[#allocation2 + $0x60] sm:$0xf]  ;;  %v2179_v19 = vld [vmem:[#allocation2 + $0x68] sm:$0xf0] }
  0x2c   :  { %v1833_v17 = vor.u32 %v2181_v14, %v1830_v15  ;;  %v2178_v20 = vld [vmem:[#allocation2 + $0x64] sm:$0xf]  ;;  %v1818_v21 = vld [vmem:[#allocation2 + $0x6c] sm:$0xf0]  ;;  %v1817_v22 = vor.u32 %v2179_v19, %v1816_v18  ;;  %v2189_v24 = vld [vmem:[#allocation2 + $0xb8] sm:$0xf0] }
  0x2d   :  { %v1860_v23 = vld [vmem:[#allocation2 + $0xb0] sm:$0xf]  ;;  %v1848_v25 = vld [vmem:[#allocation2 + $0x98] sm:$0xf]  ;;  %v1821_v26 = vor.u32 %v2178_v20, %v1818_v21  ;;  %v1804_v27 = vld [vmem:[#allocation2 + $0x48] sm:$0xf] }
  0x2e   :  { %354 = vmatpush.bf16.msra.mxu0 %v1841_v10  ;;  %v2176_v28 = vld [vmem:[#allocation2 + $0x50] sm:$0xf0]  ;;  %v1861_v29 = vor.u32 %v2189_v24, %v1860_v23  ;;  %v2186_v30 = vld [vmem:[#allocation2 + $0xa0] sm:$0xf0]  ;;  %v2175_v31 = vld [vmem:[#allocation2 + $0x4c] sm:$0xf] }
  0x2f   :  { %368 = vmatpush.bf16.msra.mxu1 %v1845_v11  ;;  %v1806_v32 = vld [vmem:[#allocation2 + $0x54] sm:$0xf0]  ;;  %v1792_v33 = vld [vmem:[#allocation2 + $0x30] sm:$0xf]  ;;  %v1849_v34 = vor.u32 %v2186_v30, %v1848_v25  ;;  %v1805_v35 = vor.u32 %v2176_v28, %v1804_v27  ;;  %v2173_v36 = vld [vmem:[#allocation2 + $0x38] sm:$0xf0] }
  0x30   :  { %381 = vmatpush.bf16.msra.mxu2 %v1861_v29  ;;  %v1836_v37 = vld [vmem:[#allocation2 + $0x80] sm:$0xf]  ;;  %v2183_v38 = vld [vmem:[#allocation2 + $0x88] sm:$0xf0]  ;;  %v1809_v39 = vor.u32 %v2175_v31, %v1806_v32  ;;  %v2172_v40 = vld [vmem:[#allocation2 + $0x34] sm:$0xf]  ;;  %v1793_v44 = vor.u32 %v2173_v36, %v1792_v33 }
  0x31   :  { %v1794_v41 = vld [vmem:[#allocation2 + $0x3c] sm:$0xf0]  ;;  %v1824_v42 = vld [vmem:[#allocation2 + $0x68] sm:$0xf]  ;;  %v1837_v43 = vor.u32 %v2183_v38, %v1836_v37  ;;  %v2180_v45 = vld [vmem:[#allocation2 + $0x70] sm:$0xf0] }
  0x32   :  { %355 = vmatpush.bf16.msra.mxu0 %v1829_v16  ;;  %v1797_v46 = vor.u32 %v2172_v40, %v1794_v41  ;;  %v1780_v47 = vld [vmem:[#allocation2 + $0x18] sm:$0xf]  ;;  %v2170_v48 = vld [vmem:[#allocation2 + $0x20] sm:$0xf0]  ;;  %v2169_v49 = vld [vmem:[#allocation2 + $0x1c] sm:$0xf]  ;;  %v1825_v51 = vor.u32 %v2180_v45, %v1824_v42 }
  0x33   :  { %369 = vmatpush.bf16.msra.mxu1 %v1833_v17  ;;  %v1782_v50 = vld [vmem:[#allocation2 + $0x24] sm:$0xf0]  ;;  %v1781_v52 = vor.u32 %v2170_v48, %v1780_v47  ;;  %v1812_v53 = vld [vmem:[#allocation2 + $0x50] sm:$0xf]  ;;  %v2177_v54 = vld [vmem:[#allocation2 + $0x58] sm:$0xf0] }
  0x34   :  { %382 = vmatpush.bf16.msra.mxu2 %v1849_v34  ;;  %v1785_v55 = vor.u32 %v2169_v49, %v1782_v50  ;;  %v1768_v56 = vld [vmem:[#allocation2] sm:$0xf]  ;;  %v2167_v57 = vld [vmem:[#allocation2 + $0x8] sm:$0xf0]  ;;  %v2166_v58 = vld [vmem:[#allocation2 + $0x4] sm:$0xf]  ;;  %v1813_v60 = vor.u32 %v2177_v54, %v1812_v53 }
  0x35   :  { %v1770_v59 = vld [vmem:[#allocation2 + $0xc] sm:$0xf0]  ;;  %v1769_v61 = vor.u32 %v2167_v57, %v1768_v56  ;;  %v1800_v62 = vld [vmem:[#allocation2 + $0x38] sm:$0xf]  ;;  %v2174_v63 = vld [vmem:[#allocation2 + $0x40] sm:$0xf0] }
  0x36   :  { %356 = vmatpush.bf16.msra.mxu0 %v1817_v22  ;;  %v1773_v0 = vor.u32 %v2166_v58, %v1770_v59  ;;  %v1801_v1 = vor.u32 %v2174_v63, %v1800_v62  ;;  %v2723_v2 = vld [vmem:[%s2933_s0] sm:$0xff]   ;;  %v2171_v4 = vld [vmem:[#allocation2 + $0x28] sm:$0xf0]  ;;  %v1776_v6 = vld [vmem:[#allocation2 + $0x8] sm:$0xf]  ;;  %vm398_vm0 = vcmask 261120  }
  0x37   :  { %370 = vmatpush.bf16.msra.mxu1 %v1821_v26  ;;  %v1788_v3 = vld [vmem:[#allocation2 + $0x20] sm:$0xf]  ;;  %v2168_v7 = vld [vmem:[#allocation2 + $0x10] sm:$0xf0]  ;;  %s2611_s0 = smov 96   ;;  %vm439_vm1 = vcmask 1043456  }
  0x38   :  { %383 = vmatpush.bf16.msra.mxu2 %v1837_v43  ;;  %v1789_v5 = vor.u32 %v2171_v4, %v1788_v3  ;;  %v1777_v8 = vor.u32 %v2168_v7, %v1776_v6  ;;  %v2731_v9 = vld [vmem:[%s2936_s3] sm:$0x7]  ;;  %s2612_s3 = smov 32   ;;  %vm423_vm2 = vcmask 64512   ;;  %vm646_vm3 = vcmask 523264  }
  0x39   :  { %v220_v10 = vperm.slane %v2731_v9, 1  ;;  %v219_v12 = vperm.slane %v2731_v9, 0  ;;  %v221_v26 = vperm.slane %v2731_v9, 2  ;;  %v2763_v40 = vld [vmem:[%s2934_s1] ss:$0 sm:$0xff]  ;;  %vm648_vm4 = vcmask 785408  }
  0x3a   :  { %357 = vmatpush.bf16.msra.mxu0 %v1805_v35  ;;  %v2773_v56 = vld [vmem:[%s2934_s1 + $0x1] ss:$0 sm:$0xff] }
  0x3b   :  { %371 = vmatpush.bf16.msra.mxu1 %v1809_v39 }
  0x3c   :  { %384 = vmatpush.bf16.msra.mxu2 %v1825_v51 }
  0x3e   :  { %358 = vmatpush.bf16.msra.mxu0 %v1793_v44 }
  0x3f   :  { %372 = vmatpush.bf16.msra.mxu1 %v1797_v46 }
  0x40   :  { %385 = vmatpush.bf16.msra.mxu2 %v1813_v60 }
  0x42   :  { %359 = vmatpush.bf16.msra.mxu0 %v1781_v52 }
  0x43   :  { %373 = vmatpush.bf16.msra.mxu1 %v1785_v55 }
  0x44   :  { %386 = vmatpush.bf16.msra.mxu2 %v1801_v1 }
  0x46   :  { %360 = vmatpush.bf16.msra.mxu0 %v1769_v61 }
  0x47   :  { %374 = vmatpush.bf16.msra.mxu1 %v1773_v0 }
  0x48   :  { %387 = vmatpush.bf16.msra.mxu2 %v1789_v5 }
  0x49   :  { %361 = vmatmul.bf16.vlgmr.msra.gmra.mxu0 %v2723_v2 }
  0x4a   :  { %375 = vmatmul.bf16.vlgmr.msra.gmra.mxu1 %v2723_v2 }
  0x4c   :  { %388 = vmatpush.bf16.msra.mxu2 %v1777_v8 }
  0x4f   :  { %389 = vmatmul.bf16.vlgmr.msra.gmra.mxu2 %v2723_v2 }
  0xc6   :  { %v362_v14 = vpop.f32.mrf.mxu0 }
  0xc7   :  { %v376_v11 = vpop.f32.mrf.mxu1  ;;  %v363_v16 = vadd.f32 %v362_v14, %v219_v12 }
  0xc8   :  { %v377_v13 = vadd.f32 %v376_v11, %v220_v10 }
  0xc9   :  { %v395_v19 = vpack.c.bf16 %v363_v16, %v363_v16 }
  0xca   :  { %v396_v15 = vpack.c.bf16 %v377_v13, %v377_v13 }
  0xcc   :  { %519 = vrot.lane.b32.xlu2 %v396_v15, %s2597_s21  ;;  %460 = vrot.lane.b32.xlu1 %v396_v15, %s2611_s0  ;;  %v403_v17 = vsel %vm398_vm0, %v396_v15, 0 }
  0xcd   :  { %412 = vmatpush.bf16.xpose.msra.mxu3 %v403_v17 }
  0xce   :  { %v364_v22 = vpop.f32.mrf.mxu0 }
  0xcf   :  { %v378_v18 = vpop.f32.mrf.mxu1  ;;  %v365_v24 = vadd.f32 %v364_v22, %v219_v12 }
  0xd0   :  { %v379_v20 = vadd.f32 %v378_v18, %v220_v10 }
  0xd1   :  { %v650_v25 = vpack.c.bf16 %v365_v24, %v365_v24 }
  0xd2   :  { %v651_v21 = vpack.c.bf16 %v379_v20, %v379_v20  ;;  %v390_v27 = vpop.f32.mrf.mxu2 }
  0xd3   :  { %v391_v28 = vadd.f32 %v390_v27, %v221_v26 }
  0xd4   :  { %577 = vrot.lane.b32.xlu2 %v396_v15, %s2612_s3  ;;  %457 = vrot.lane.b32.xlu1 %v395_v19, %s2611_s0  ;;  %v657_v23 = vsel %vm398_vm0, %v651_v21, 0 }
  0xd5   :  { %1862 = vmatmul.msk.bf16.vlgmr.msra.gmra.mxu3 %vm398_vm0, %v395_v19  ;;  %666 = vmatpush.bf16.xpose.msrb.mxu1 %v657_v23  ;;  %v2752_v29 = vpack.c.bf16 %v391_v28, %v391_v28 }
  0xd7   :  { %v441_v30 = vsel %vm439_vm1, %v2752_v29, 0 }
  0xd8   :  { %450 = vmatpush.bf16.msrb.mxu3 %v441_v30 }
  0xda   :  { %v2789_v10 = vpop.f32.mrf.mxu2 }
  0xdc   :  { %712 = vrot.lane.b32.xlu2 %v651_v21, %s2611_s0  ;;  %1870 = vmatmul.msk.bf16.vlgmr.msrb.gmra.mxu1 %vm398_vm0, %v650_v25 }
  0xdd   :  { %575 = vrot.lane.b32.xlu1 %v395_v19, %s2612_s3 }
  0xe4   :  { %771 = vrot.lane.b32.xlu2 %v651_v21, %s2597_s21 }
  0xe5   :  { %709 = vrot.lane.b32.xlu1 %v650_v25, %s2611_s0 }
  0xec   :  { %769 = vrot.lane.b32.xlu2 %v650_v25, %s2597_s21 }
  0xed   :  { %829 = vrot.lane.b32.xlu1 %v651_v21, %s2612_s3 }
 0x126   :  { %v520_v31 = vpop.permute.xlu2 %519 }
 0x127   :  { %v525_v32 = vsel %vm398_vm0, %v520_v31, 0 }
 0x128   :  { %534 = vmatpush.bf16.xpose.msrb.mxu2 %v525_v32 }
 0x12e   :  { %v578_v33 = vpop.permute.xlu2 %577 }
 0x12f   :  { %v583_v0 = vsel %vm398_vm0, %v578_v33, 0 }
 0x136   :  { %v713_v34 = vpop.permute.xlu2 %712 }
 0x137   :  { %v718_v4 = vsel %vm398_vm0, %v713_v34, 0 }
 0x13e   :  { %v772_v35 = vpop.permute.xlu2 %771  ;;  %v461_v36 = vpop.permute.xlu1 %460 }
 0x13f   :  { %v777_v37 = vsel %vm398_vm0, %v772_v35, 0  ;;  %v466_v38 = vsel %vm398_vm0, %v461_v36, 0 }
 0x140   :  { %475 = vmatpush.bf16.xpose.msra.mxu3 %v466_v38  ;;  %786 = vmatpush.bf16.xpose.msra.mxu1 %v777_v37 }
 0x146   :  { %v770_v39 = vpop.permute.xlu2 %769  ;;  %v458_v63 = vpop.permute.xlu1 %457 }
 0x147   :  { %1874 = vmatmul.msk.bf16.vlgmr.msra.gmra.mxu1 %vm398_vm0, %v770_v39 }
 0x14f   :  { %v576_v3 = vpop.permute.xlu1 %575 }
 0x157   :  { %v710_v5 = vpop.permute.xlu1 %709 }
 0x158   :  { %v414_v41 = vpop.f32.mrf.mxu3 }
 0x159   :  { %v418_v42 = vmul.f32 0.17677669, %v414_v41  ;;  %v668_v43 = vpop.f32.mrf.mxu1 }
 0x15a   :  { %v672_v16 = vmul.f32 0.17677669, %v668_v43 }
 0x15b   :  { %v422_v44 = vadd.f32 %v2763_v40, %v418_v42 }
 0x15c   :  { %v676_v21 = vadd.f32 %v2773_v56, %v672_v16 }
 0x15d   :  { %v424_v45 = vsel %vm423_vm2, %v422_v44, -inf }
 0x15e   :  { %425 = vmax.xlane.f32.xlu0 %v424_v45  ;;  %v677_v23 = vsel %vm423_vm2, %v676_v21, -inf }
 0x15f   :  { %v830_v6 = vpop.permute.xlu1 %829 }
 0x160   :  { %v416_v46 = vpop.f32.mrf.mxu3  ;;  %v835_v7 = vsel %vm398_vm0, %v830_v6, 0 }
 0x161   :  { %v670_v47 = vpop.f32.mrf.mxu1 }
 0x1c4   :  { %v788_v48 = vpop.f32.mrf.mxu1 }
 0x1c5   :  { %v792_v55 = vmul.f32 0.17677669, %v788_v48 }
 0x1c7   :  { %v2776_v57 = vadd.f32 %v2773_v56, %v792_v55 }
 0x1c9   :  { %v794_v58 = vsel %vm423_vm2, %v2776_v57, -inf }
 0x1cc   :  { %v790_v49 = vpop.f32.mrf.mxu1 }
 0x1d1   :  { %v426_v50 = vpop.xlane.xlu0 %425 }
 0x1d2   :  { %v427_v51 = vsub.f32 %v422_v44, %v426_v50 }
 0x1d4   :  { %v428_v52 = vmul.f32 1.442695, %v427_v51 }
 0x1d6   :  { %2312 = vpow2.f32 %v428_v52 }
 0x1dc   :  { %v2313_v53 = vpop.eup %2312 }
 0x1dd   :  { %v430_v54 = vsel %vm423_vm2, %v2313_v53, 0.0 }
 0x1de   :  { %431 = vadd.xlane.f32.xlu0 %v430_v54 }
 0x1f2   :  { %517 = vrot.lane.b32.xlu0 %v395_v19, %s2597_s21 }
 0x1fa   :  { %827 = vrot.lane.b32.xlu0 %v650_v25, %s2612_s3 }
 0x224   :  { %795 = vmax.xlane.f32.xlu0 %v794_v58 }
 0x251   :  { %v432_v59 = vpop.xlane.xlu0 %431 }
 0x252   :  { %2314 = vrcp.f32 %v432_v59 }
 0x258   :  { %v2315_v60 = vpop.eup %2314 }
 0x259   :  { %v434_v61 = vmul.f32 %v2315_v60, %v2313_v53 }
 0x25b   :  { %v435_v62 = vpack.c.bf16 %v434_v61, %v434_v61 }
 0x25d   :  { %1863 = vmatmul.msk.bf16.vlgmr.msrb.gmra.mxu3 %vm423_vm2, %v435_v62 }
 0x25e   :  { %592 = vmatpush.bf16.xpose.msrb.mxu3 %v583_v0 }
 0x264   :  { %v518_v1 = vpop.permute.xlu0 %517 }
 0x265   :  { %1866 = vmatmul.msk.bf16.vlgmr.msrb.gmra.mxu2 %vm398_vm0, %v518_v1 }
 0x26c   :  { %v828_v8 = vpop.permute.xlu0 %827 }
 0x26d   :  { %1864 = vmatmul.msk.bf16.vlgmr.msra.gmra.mxu3 %vm398_vm0, %v458_v63 }
 0x26e   :  { %727 = vmatpush.bf16.xpose.msra.mxu3 %v718_v4  ;;  %v393_v4 = vadd.f32 %v2789_v10, %v221_v26 }
 0x270   :  { %v652_v6 = vpack.c.bf16 %v393_v4, %v393_v4 }
 0x27d   :  { %1868 = vmatmul.msk.bf16.vlgmr.msrb.gmra.mxu3 %vm398_vm0, %v576_v3 }
 0x27e   :  { %844 = vmatpush.bf16.xpose.msrb.mxu3 %v835_v7 }
 0x28d   :  { %1872 = vmatmul.msk.bf16.vlgmr.msra.gmra.mxu3 %vm398_vm0, %v710_v5 }
 0x297   :  { %v796_v52 = vpop.xlane.xlu0 %795 }
 0x29d   :  { %1876 = vmatmul.msk.bf16.vlgmr.msrb.gmra.mxu3 %vm398_vm0, %v828_v8 }
 0x2e0   :  { %v2791_v11 = vpop.f32.mrf.mxu3 }
 0x2e8   :  { %v454_v12 = vpop.f32.mrf.mxu3  ;;  %v536_v13 = vpop.f32.mrf.mxu2 }
 0x2e9   :  { %v540_v14 = vmul.f32 0.17677669, %v536_v13 }
 0x2eb   :  { %v541_v15 = vadd.f32 %v2763_v40, %v540_v14 }
 0x2ed   :  { %v542_v17 = vsel %vm423_vm2, %v541_v15, -inf }
 0x2ee   :  { %543 = vmax.xlane.f32.xlu2 %v542_v17 }
 0x2f0   :  { %v477_v18 = vpop.f32.mrf.mxu3  ;;  %v538_v19 = vpop.f32.mrf.mxu2 }
 0x2f1   :  { %v481_v20 = vmul.f32 0.17677669, %v477_v18 }
 0x2f3   :  { %v482_v22 = vadd.f32 %v2763_v40, %v481_v20 }
 0x2f5   :  { %v483_v24 = vsel %vm423_vm2, %v482_v22, -inf }
 0x2f6   :  { %678 = vmax.xlane.f32.xlu2 %v677_v23  ;;  %484 = vmax.xlane.f32.xlu1 %v483_v24 }
 0x2f8   :  { %v479_v25 = vpop.f32.mrf.mxu3 }
 0x300   :  { %v594_v27 = vpop.f32.mrf.mxu3 }
 0x301   :  { %v598_v28 = vmul.f32 0.17677669, %v594_v27  ;;  %v693_v27 = vsel %vm439_vm1, %v652_v6, 0 }
 0x303   :  { %v599_v30 = vadd.f32 %v2763_v40, %v598_v28 }
 0x305   :  { %v600_v31 = vsel %vm423_vm2, %v599_v30, -inf }
 0x306   :  { %601 = vmax.xlane.f32.xlu0 %v600_v31 }
 0x308   :  { %v596_v32 = vpop.f32.mrf.mxu3 }
 0x310   :  { %v729_v33 = vpop.f32.mrf.mxu3 }
 0x311   :  { %v733_v34 = vmul.f32 0.17677669, %v729_v33 }
 0x313   :  { %v734_v35 = vadd.f32 %v2773_v56, %v733_v34 }
 0x315   :  { %v735_v36 = vsel %vm423_vm2, %v734_v35, -inf }
 0x316   :  { %736 = vmax.xlane.f32.xlu1 %v735_v36 }
 0x318   :  { %v731_v37 = vpop.f32.mrf.mxu3 }
 0x31a   :  { %496 = vrot.lane.b32.xlu0 %v2752_v29, %s2611_s0 }
 0x320   :  { %v846_v38 = vpop.f32.mrf.mxu3 }
 0x321   :  { %v850_v50 = vmul.f32 0.17677669, %v846_v38 }
 0x323   :  { %v851_v53 = vadd.f32 %v2773_v56, %v850_v50 }
 0x325   :  { %v852_v59 = vsel %vm423_vm2, %v851_v53, -inf }
 0x328   :  { %v848_v39 = vpop.f32.mrf.mxu3 }
 0x32f   :  { %612 = vrot.lane.b32.xlu1 %v2752_v29, %s2612_s3 }
 0x361   :  { %v544_v40 = vpop.xlane.xlu2 %543 }
 0x362   :  { %v545_v41 = vsub.f32 %v541_v15, %v544_v40 }
 0x364   :  { %v546_v42 = vmul.f32 1.442695, %v545_v41 }
 0x366   :  { %2316 = vpow2.f32 %v546_v42 }
 0x369   :  { %v679_v43 = vpop.xlane.xlu2 %678  ;;  %v485_v44 = vpop.xlane.xlu1 %484 }
 0x36a   :  { %v680_v45 = vsub.f32 %v676_v21, %v679_v43  ;;  %v486_v46 = vsub.f32 %v482_v22, %v485_v44 }
 0x36c   :  { %v2317_v47 = vpop.eup %2316  ;;  %v681_v48 = vmul.f32 1.442695, %v680_v45  ;;  %v487_v49 = vmul.f32 1.442695, %v486_v46 }
 0x36d   :  { %v548_v51 = vsel %vm423_vm2, %v2317_v47, 0.0 }
 0x36e   :  { %2318 = vpow2.f32 %v681_v48  ;;  %549 = vadd.xlane.f32.xlu2 %v548_v51 }
 0x36f   :  { %2320 = vpow2.f32 %v487_v49 }
 0x374   :  { %v2809_v54 = vpop.eup %2318 }
 0x375   :  { %v2321_v55 = vpop.eup %2320  ;;  %v683_v58 = vsel %vm423_vm2, %v2809_v54, 0.0 }
 0x376   :  { %684 = vadd.xlane.f32.xlu0 %v683_v58  ;;  %v489_v60 = vsel %vm423_vm2, %v2321_v55, 0.0  ;;  %853 = vmax.xlane.f32.xlu2 %v852_v59 }
 0x377   :  { %490 = vadd.xlane.f32.xlu1 %v489_v60 }
 0x379   :  { %v602_v61 = vpop.xlane.xlu0 %601 }
 0x37a   :  { %v603_v62 = vsub.f32 %v599_v30, %v602_v61 }
 0x37c   :  { %v604_v63 = vmul.f32 1.442695, %v603_v62 }
 0x37e   :  { %2322 = vpow2.f32 %v604_v63 }
 0x384   :  { %v2323_v0 = vpop.eup %2322 }
 0x385   :  { %v606_v56 = vsel %vm423_vm2, %v2323_v0, 0.0 }
 0x386   :  { %607 = vadd.xlane.f32.xlu1 %v606_v56 }
 0x389   :  { %v737_v5 = vpop.xlane.xlu1 %736 }
 0x38a   :  { %v738_v12 = vsub.f32 %v734_v35, %v737_v5 }
 0x38c   :  { %v497_v1 = vpop.permute.xlu0 %496  ;;  %v739_v13 = vmul.f32 1.442695, %v738_v12 }
 0x38d   :  { %v502_v3 = vsel %vm439_vm1, %v497_v1, 0 }
 0x38e   :  { %511 = vmatpush.bf16.msrb.mxu0 %v502_v3  ;;  %554 = vrot.lane.b32.xlu2 %v2752_v29, %s2597_s21  ;;  %2324 = vpow2.f32 %v739_v13  ;;  %v797_v29 = vsub.f32 %v2776_v57, %v796_v52 }
 0x390   :  { %v798_v9 = vmul.f32 1.442695, %v797_v29 }
 0x392   :  { %2326 = vpow2.f32 %v798_v9 }
 0x394   :  { %v2325_v14 = vpop.eup %2324 }
 0x395   :  { %v741_v15 = vsel %vm423_vm2, %v2325_v14, 0.0 }
 0x398   :  { %v2826_v26 = vpop.eup %2326 }
 0x399   :  { %v800_v10 = vsel %vm423_vm2, %v2826_v26, 0.0 }
 0x39f   :  { %748 = vrot.lane.b32.xlu1 %v652_v6, %s2611_s0 }
 0x3a1   :  { %v613_v7 = vpop.permute.xlu1 %612 }
 0x3a2   :  { %v618_v8 = vsel %vm439_vm1, %v613_v7, 0 }
 0x3a3   :  { %627 = vmatpush.bf16.msra.mxu0 %v618_v8 }
 0x3b7   :  { %742 = vadd.xlane.f32.xlu2 %v741_v15  ;;  %v2197_v15 = vld [vmem:[#allocation4 + $0x38] sm:$0xff] }
 0x3b8   :  { %965 = vmatpush.bf16.msrb.mxu1 %v2197_v15  ;;  %v2222_v15 = vld [vmem:[#allocation9 + $0xc4] sm:$0xf] }
 0x3c9   :  { %801 = vadd.xlane.f32.xlu1 %v800_v10  ;;  %v2195_v10 = vld [vmem:[#allocation4 + $0x28] sm:$0xff] }
 0x3cf   :  { %864 = vrot.lane.b32.xlu2 %v652_v6, %s2612_s3 }
 0x3e1   :  { %v550_v16 = vpop.xlane.xlu2 %549 }
 0x3e2   :  { %2328 = vrcp.f32 %v550_v16  ;;  %v2194_v16 = vld [vmem:[#allocation4 + $0x20] sm:$0xff] }
 0x3e8   :  { %v2329_v21 = vpop.eup %2328 }
 0x3e9   :  { %v854_v17 = vpop.xlane.xlu2 %853  ;;  %v552_v22 = vmul.f32 %v2329_v21, %v2317_v47  ;;  %v685_v32 = vpop.xlane.xlu0 %684 }
 0x3ea   :  { %v491_v18 = vpop.xlane.xlu1 %490  ;;  %v855_v19 = vsub.f32 %v851_v53, %v854_v17  ;;  %v2193_v17 = vld [vmem:[#allocation4 + $0x18] sm:$0xff] }
 0x3eb   :  { %2330 = vrcp.f32 %v491_v18  ;;  %v553_v31 = vpack.c.bf16 %v552_v22, %v552_v22  ;;  %v2192_v18 = vld [vmem:[#allocation4 + $0x10] sm:$0xff] }
 0x3ec   :  { %v856_v20 = vmul.f32 1.442695, %v855_v19  ;;  %v2191_v19 = vld [vmem:[#allocation4 + $0x8] sm:$0xff] }
 0x3ee   :  { %2332 = vpow2.f32 %v856_v20  ;;  %v2190_v20 = vld [vmem:[#allocation4] sm:$0xff] }
 0x3ef   :  { %2334 = vrcp.f32 %v685_v32 }
 0x3f1   :  { %v2331_v57 = vpop.eup %2330  ;;  %v555_v23 = vpop.permute.xlu2 %554 }
 0x3f2   :  { %v493_v24 = vmul.f32 %v2331_v57, %v2321_v55  ;;  %v560_v25 = vsel %vm439_vm1, %v555_v23, 0 }
 0x3f3   :  { %569 = vmatpush.bf16.msra.mxu2 %v560_v25 }
 0x3f4   :  { %v2333_v28 = vpop.eup %2332  ;;  %v494_v30 = vpack.c.bf16 %v493_v24, %v493_v24 }
 0x3f5   :  { %v858_v33 = vsel %vm423_vm2, %v2333_v28, 0.0  ;;  %v2335_v35 = vpop.eup %2334 }
 0x3f6   :  { %1865 = vmatmul.msk.bf16.vlgmr.msrb.gmra.mxu0 %vm423_vm2, %v494_v30  ;;  %859 = vadd.xlane.f32.xlu0 %v858_v33  ;;  %v687_v37 = vmul.f32 %v2335_v35, %v2809_v54 }
 0x3f7   :  { %702 = vmatpush.bf16.msrb.mxu2 %v693_v27 }
 0x3f8   :  { %1867 = vmatmul.msk.bf16.vlgmr.msra.gmra.mxu2 %vm423_vm2, %v553_v31  ;;  %v688_v40 = vpack.c.bf16 %v687_v37, %v687_v37 }
 0x3f9   :  { %v608_v34 = vpop.xlane.xlu1 %607 }
 0x3fa   :  { %2336 = vrcp.f32 %v608_v34 }
 0x400   :  { %v2337_v36 = vpop.eup %2336 }
 0x401   :  { %v610_v38 = vmul.f32 %v2337_v36, %v2323_v0 }
 0x403   :  { %v611_v39 = vpack.c.bf16 %v610_v38, %v610_v38  ;;  %v2264_v38 = vunpack.c.l.bf16 %v2723_v2 }
 0x406   :  { %1869 = vmatmul.msk.bf16.vlgmr.msra.gmra.mxu0 %vm423_vm2, %v611_v39  ;;  %v2306_v39 = vld [vmem:[%s2938_s5] ss:$0 sm:$0xff] }
 0x408   :  { %1871 = vmatmul.msk.bf16.vlgmr.msrb.gmra.mxu2 %vm423_vm2, %v688_v40 }
 0x40a   :  { %806 = vrot.lane.b32.xlu0 %v652_v6, %s2597_s21 }
 0x411   :  { %v749_v41 = vpop.permute.xlu1 %748 }
 0x412   :  { %v754_v42 = vsel %vm439_vm1, %v749_v41, 0 }
 0x413   :  { %763 = vmatpush.bf16.msrb.mxu0 %v754_v42 }
 0x42a   :  { %v743_v43 = vpop.xlane.xlu2 %742 }
 0x42b   :  { %2338 = vrcp.f32 %v743_v43 }
 0x431   :  { %v2339_v44 = vpop.eup %2338 }
 0x432   :  { %v745_v45 = vmul.f32 %v2339_v44, %v2325_v14  ;;  %v865_v46 = vpop.permute.xlu2 %864 }
 0x433   :  { %v870_v47 = vsel %vm439_vm1, %v865_v46, 0  ;;  %v2613_v46 = vmov 128.0  }
 0x434   :  { %v746_v48 = vpack.c.bf16 %v745_v45, %v745_v45  ;;  %879 = vmatpush.bf16.msra.mxu0 %v870_v47 }
 0x436   :  { %1873 = vmatmul.msk.bf16.vlgmr.msrb.gmra.mxu0 %vm423_vm2, %v746_v48 }
 0x43c   :  { %v802_v50 = vpop.xlane.xlu1 %801 }
 0x469   :  { %v860_v49 = vpop.xlane.xlu0 %859 }
 0x46a   :  { %2340 = vrcp.f32 %v860_v49 }
 0x46b   :  { %2342 = vrcp.f32 %v802_v50 }
 0x46c   :  { %2344 = vrcp.f32 %v2613_v46  ;;  %v2212_v46 = vld [vmem:[#allocation9 + $0x6c] sm:$0xf0] }
 0x470   :  { %v2341_v51 = vpop.eup %2340 }
 0x471   :  { %v862_v52 = vmul.f32 %v2341_v51, %v2333_v28  ;;  %v2343_v55 = vpop.eup %2342 }
 0x472   :  { %v804_v59 = vmul.f32 %v2343_v55, %v2826_v26  ;;  %v2196_v26 = vld [vmem:[#allocation4 + $0x30] sm:$0xff]  ;;  %v2345_v47 = vpop.eup %2344 }
 0x473   :  { %v863_v53 = vpack.c.bf16 %v862_v52, %v862_v52  ;;  %v513_v54 = vpop.f32.mrf.mxu0  ;;  %966 = vmatpush.bf16.msrb.mxu1 %v2196_v26  ;;  %v994_v48 = vmul.f32 128.0, %v2345_v47  ;;  %vm998_vm5 = vweird.f32 %v2345_v47  ;;  %v2016_v26 = vld [vmem:[#allocation9 + $0xc8] sm:$0xf] }
 0x474   :  { %v805_v63 = vpack.c.bf16 %v804_v59, %v804_v59 }
 0x475   :  { %1877 = vmatmul.msk.bf16.vlgmr.msra.gmra.mxu0 %vm423_vm2, %v863_v53  ;;  %v995_v49 = vsub.f32 1.0, %v994_v48 }
 0x477   :  { %967 = vmatpush.bf16.msrb.mxu1 %v2195_v10  ;;  %v996_v50 = vmul.f32 %v2345_v47, %v995_v49  ;;  %v2225_v10 = vld [vmem:[#allocation9 + $0xd4] sm:$0xf0]  ;;  %v1962_v49 = vld [vmem:[#allocation9 + $0x70] sm:$0xf0] }
 0x479   :  { %v997_v51 = vadd.f32 %v2345_v47, %v996_v50  ;;  %v1968_v50 = vld [vmem:[#allocation9 + $0x68] sm:$0xf] }
 0x47b   :  { %v571_v58 = vpop.f32.mrf.mxu2  ;;  %v515_v60 = vpop.f32.mrf.mxu0  ;;  %968 = vmatpush.bf16.msrb.mxu1 %v2194_v16  ;;  %v2858_v52 = vsel %vm998_vm5, %v2345_v47, %v997_v51  ;;  %v2210_v47 = vld [vmem:[#allocation9 + $0x64] sm:$0xf]  ;;  %v2213_v51 = vld [vmem:[#allocation9 + $0x74] sm:$0xf0] }
 0x47c   :  { %v807_v61 = vpop.permute.xlu0 %806 }
 0x47d   :  { %v812_v62 = vsel %vm439_vm1, %v807_v61, 0 }
 0x47e   :  { %821 = vmatpush.bf16.msra.mxu2 %v812_v62  ;;  %v2024_v62 = vld [vmem:[#allocation9 + $0xe0] sm:$0xf] }
 0x47f   :  { %969 = vmatpush.bf16.msrb.mxu1 %v2193_v17  ;;  %v2017_v17 = vor.u32 %v2225_v10, %v2016_v26  ;;  %v2205_v26 = vld [vmem:[#allocation9 + $0x34] sm:$0xf0] }
 0x481   :  { %1875 = vmatmul.msk.bf16.vlgmr.msra.gmra.mxu2 %vm423_vm2, %v805_v63  ;;  %v2228_v63 = vld [vmem:[#allocation9 + $0xec] sm:$0xf0] }
 0x483   :  { %v573_v0 = vpop.f32.mrf.mxu2  ;;  %v629_v56 = vpop.f32.mrf.mxu0  ;;  %970 = vmatpush.bf16.msrb.mxu1 %v2192_v18  ;;  %v2223_v18 = vld [vmem:[#allocation9 + $0xcc] sm:$0xf] }
 0x484   :  { %v2226_v0 = vld [vmem:[#allocation9 + $0xe4] sm:$0xf] }
 0x487   :  { %971 = vmatpush.bf16.msrb.mxu1 %v2191_v19  ;;  %v2018_v19 = vld [vmem:[#allocation9 + $0xd8] sm:$0xf0] }
 0x48b   :  { %v704_v1 = vpop.f32.mrf.mxu2  ;;  %v631_v3 = vpop.f32.mrf.mxu0  ;;  %972 = vmatpush.bf16.msrb.mxu1 %v2190_v20  ;;  %v2021_v20 = vor.u32 %v2223_v18, %v2018_v19  ;;  %v2203_v18 = vld [vmem:[#allocation9 + $0x2c] sm:$0xf]  ;;  %v1938_v19 = vld [vmem:[#allocation9 + $0x38] sm:$0xf0] }
 0x48c   :  { %v2032_v3 = vld [vmem:[#allocation9 + $0xe8] sm:$0xf] }
 0x493   :  { %v706_v4 = vpop.f32.mrf.mxu2 }
 0x494   :  { %v2229_v4 = vld [vmem:[#allocation9 + $0xf4] sm:$0xf0] }
 0x4b3   :  { %v765_v5 = vpop.f32.mrf.mxu0 }
 0x4b4   :  { %v2289_v6 = vpack.i.bf16 %v765_v5, %v513_v54 }
 0x4b6   :  { %2290 = vrot.lane.b32.xlu1 %v2289_v6, %s2612_s3  ;;  %v2033_v6 = vor.u32 %v2229_v4, %v2032_v3  ;;  %v2209_v3 = vld [vmem:[#allocation9 + $0x54] sm:$0xf0] }
 0x4b8   :  { %1277 = vmatpush.bf16.msrb.mxu0 %v2033_v6  ;;  %v2207_v6 = vld [vmem:[#allocation9 + $0x4c] sm:$0xf] }
 0x4bb   :  { %v767_v7 = vpop.f32.mrf.mxu0 }
 0x4bc   :  { %v2227_v7 = vld [vmem:[#allocation9 + $0xec] sm:$0xf]  ;;  %1278 = vmatpush.bf16.msrb.mxu0 %v2017_v17 }
 0x4f2   :  { %v881_v8 = vpop.f32.mrf.mxu0 }
 0x4f3   :  { %v2299_v9 = vpack.i.bf16 %v881_v8, %v629_v56  ;;  %v2025_v56 = vor.u32 %v2228_v63, %v2024_v62  ;;  %v2034_v8 = vld [vmem:[#allocation9 + $0xf8] sm:$0xf0]  ;;  %v2208_v62 = vld [vmem:[#allocation9 + $0x4c] sm:$0xf0]  ;;  %v2206_v63 = vld [vmem:[#allocation9 + $0x44] sm:$0xf] }
 0x4f5   :  { %1249 = vmatpush.bf16.msrb.mxu2 %v2025_v56  ;;  %v1946_v56 = vld [vmem:[#allocation9 + $0x50] sm:$0xf0] }
 0x4f6   :  { %v1949_v4 = vor.u32 %v2206_v63, %v1946_v56  ;;  %v2261_v56 = vld [vmem:[#allocation10 + $0xf8] sm:$0xff] }
 0x4fa   :  { %v883_v12 = vpop.f32.mrf.mxu0 }
 0x4fb   :  { %v2037_v12 = vor.u32 %v2227_v7, %v2034_v8  ;;  %v1954_v7 = vld [vmem:[#allocation9 + $0x58] sm:$0xf0] }
 0x4fc   :  { %v1957_v8 = vor.u32 %v2207_v6, %v1954_v7  ;;  %v2259_v6 = vld [vmem:[#allocation10 + $0xe8] sm:$0xff]  ;;  %v2236_v7 = vld [vmem:[#allocation10 + $0x30] sm:$0xff] }
 0x4fd   :  { %1291 = vmatpush.bf16.msra.mxu1 %v2037_v12  ;;  %v1928_v12 = vld [vmem:[#allocation9 + $0x20] sm:$0xf] }
 0x501   :  { %1292 = vmatpush.bf16.msra.mxu1 %v2021_v20  ;;  %v1912_v20 = vld [vmem:[#allocation9] sm:$0xf] }
 0x504   :  { %v823_v13 = vpop.f32.mrf.mxu2 }
 0x505   :  { %v2294_v14 = vpack.i.bf16 %v823_v13, %v571_v58  ;;  %v2008_v13 = vld [vmem:[#allocation9 + $0xc0] sm:$0xf] }
 0x507   :  { %2295 = vrot.lane.b32.xlu0 %v2294_v14, %s2597_s21  ;;  %v2224_v14 = vld [vmem:[#allocation9 + $0xcc] sm:$0xf0] }
 0x50c   :  { %v825_v29 = vpop.f32.mrf.mxu2 }
 0x50d   :  { %v2009_v29 = vor.u32 %v2224_v14, %v2008_v13  ;;  %v2204_v13 = vld [vmem:[#allocation9 + $0x2c] sm:$0xf0]  ;;  %v2202_v14 = vld [vmem:[#allocation9 + $0x24] sm:$0xf] }
 0x50f   :  { %2300 = vrot.lane.b32.xlu0 %v2299_v9, %s2611_s0  ;;  %v2010_v9 = vld [vmem:[#allocation9 + $0xd0] sm:$0xf0]  ;;  %1250 = vmatpush.bf16.msrb.mxu2 %v2009_v29 }
 0x510   :  { %v2013_v16 = vor.u32 %v2222_v15, %v2010_v9  ;;  %v1929_v15 = vor.u32 %v2204_v13, %v1928_v12  ;;  %v1930_v29 = vld [vmem:[#allocation9 + $0x30] sm:$0xf0]  ;;  %v1936_v9 = vld [vmem:[#allocation9 + $0x28] sm:$0xf]  ;;  %v2250_v12 = vld [vmem:[#allocation10 + $0xa0] sm:$0xff] }
 0x511   :  { %v1937_v17 = vor.u32 %v2205_v26, %v1936_v9  ;;  %v2258_v13 = vld [vmem:[#allocation10 + $0xe0] sm:$0xff]  ;;  %v2257_v9 = vld [vmem:[#allocation10 + $0xd8] sm:$0xff] }
 0x512   :  { %v2234_v26 = vld [vmem:[#allocation10 + $0x20] sm:$0xff] }
 0x528   :  { %v2291_v57 = vpop.permute.xlu1 %2290 }
 0x529   :  { %v2293_v22 = vunpack.i.h.bf16 %v2291_v57  ;;  %v2292_v23 = vunpack.i.l.bf16 %v2291_v57  ;;  %v2220_v57 = vld [vmem:[#allocation9 + $0xac] sm:$0xf0] }
 0x52b   :  { %v897_v28 = vsel %vm398_vm0, %v704_v1, %v2293_v22  ;;  %v645_v30 = vsel %vm398_vm0, %v2791_v11, %v2292_v23  ;;  %v2265_v11 = vunpack.c.h.bf16 %v2723_v2  ;;  %v2026_v1 = vld [vmem:[#allocation9 + $0xf0] sm:$0xf0]  ;;  %v2218_v22 = vld [vmem:[#allocation9 + $0xa4] sm:$0xf] }
 0x52c   :  { %v2029_v5 = vor.u32 %v2226_v0, %v2026_v1  ;;  %v1952_v1 = vld [vmem:[#allocation9 + $0x48] sm:$0xf] }
 0x52e   :  { %1263 = vmatpush.bf16.msra.mxu3 %v2029_v5  ;;  %v1953_v5 = vor.u32 %v2209_v3, %v1952_v1  ;;  %v2252_v1 = vld [vmem:[#allocation10 + $0xb0] sm:$0xff]  ;;  %v2237_v3 = vld [vmem:[#allocation10 + $0x38] sm:$0xff] }
 0x532   :  { %1264 = vmatpush.bf16.msra.mxu3 %v2013_v16  ;;  %v1933_v16 = vor.u32 %v2202_v14, %v1930_v29  ;;  %v2235_v14 = vld [vmem:[#allocation10 + $0x28] sm:$0xff]  ;;  %v2249_v29 = vld [vmem:[#allocation10 + $0x98] sm:$0xff] }
 0x579   :  { %v2296_v21 = vpop.permute.xlu0 %2295 }
 0x57a   :  { %v2298_v24 = vunpack.i.h.bf16 %v2296_v21  ;;  %v2297_v25 = vunpack.i.l.bf16 %v2296_v21  ;;  %v1992_v21 = vld [vmem:[#allocation9 + $0xa0] sm:$0xf] }
 0x57b   :  { %v1993_v23 = vor.u32 %v2220_v57, %v1992_v21  ;;  %v1941_v57 = vor.u32 %v2203_v18, %v1938_v19  ;;  %v2883_v18 = vld [vmem:[%s2942_s9] sm:$0xf] }
 0x57c   :  { %v647_v33 = vsel %vm646_vm3, %v645_v30, %v2297_v25  ;;  %v898_v34 = vsel %vm646_vm3, %v897_v28, %v2298_v24  ;;  %v1994_v24 = vld [vmem:[#allocation9 + $0xb0] sm:$0xf0]  ;;  %v2000_v25 = vld [vmem:[#allocation9 + $0xa8] sm:$0xf]  ;;  %v2233_v19 = vld [vmem:[#allocation10 + $0x18] sm:$0xff] }
 0x57d   :  { %v1997_v28 = vor.u32 %v2218_v22, %v1994_v24  ;;  %1251 = vmatpush.bf16.msrb.mxu2 %v1993_v23  ;;  %v2200_v22 = vld [vmem:[#allocation9 + $0xc] sm:$0xf0]  ;;  %v2198_v23 = vld [vmem:[#allocation9 + $0x4] sm:$0xf]  ;;  %v1914_v24 = vld [vmem:[#allocation9 + $0x10] sm:$0xf0] }
 0x57f   :  { %1265 = vmatpush.bf16.msra.mxu3 %v1997_v28  ;;  %v1920_v28 = vld [vmem:[#allocation9 + $0x8] sm:$0xf] }
 0x581   :  { %v2301_v27 = vpop.permute.xlu0 %2300 }
 0x582   :  { %v2303_v31 = vunpack.i.h.bf16 %v2301_v27  ;;  %v2302_v32 = vunpack.i.l.bf16 %v2301_v27  ;;  %v2221_v27 = vld [vmem:[#allocation9 + $0xb4] sm:$0xf0] }
 0x583   :  { %v2001_v30 = vor.u32 %v2221_v27, %v2000_v25  ;;  %v1913_v25 = vor.u32 %v2200_v22, %v1912_v20  ;;  %v1917_v27 = vor.u32 %v2198_v23, %v1914_v24  ;;  %v2241_v20 = vld [vmem:[#allocation10 + $0x58] sm:$0xff]  ;;  %v1083_v22 = vperm.slane %v2883_v18, 2  ;;  %v2232_v24 = vld [vmem:[#allocation10 + $0x10] sm:$0xff] }
 0x584   :  { %v899_v35 = vsel %vm648_vm4, %v898_v34, %v2303_v31  ;;  %v649_v36 = vsel %vm648_vm4, %v647_v33, %v2302_v32  ;;  %v2219_v31 = vld [vmem:[#allocation9 + $0xac] sm:$0xf]  ;;  %v2002_v32 = vld [vmem:[#allocation9 + $0xb8] sm:$0xf0]  ;;  %v1976_v34 = vld [vmem:[#allocation9 + $0x80] sm:$0xf] }
 0x585   :  { %v916_v37 = vpack.c.bf16 %v899_v35, %v649_v36  ;;  %v2005_v33 = vor.u32 %v2219_v31, %v2002_v32  ;;  %1279 = vmatpush.bf16.msrb.mxu0 %v2001_v30  ;;  %v2216_v35 = vld [vmem:[#allocation9 + $0x8c] sm:$0xf0]  ;;  %v2214_v36 = vld [vmem:[#allocation9 + $0x84] sm:$0xf]  ;;  %v2201_v30 = vld [vmem:[#allocation9 + $0x14] sm:$0xf0] }
 0x586   :  { %v2199_v31 = vld [vmem:[#allocation9 + $0xc] sm:$0xf]  ;;  %v1084_v23 = vperm.slane %v2883_v18, 3 }
 0x587   :  { %973 = vmatmul.bf16.vlgmr.msrb.gmra.mxu1 %v916_v37  ;;  %v1977_v37 = vor.u32 %v2216_v35, %v1976_v34  ;;  %v1922_v34 = vld [vmem:[#allocation9 + $0x18] sm:$0xf0] }
 0x588   :  { %1293 = vmatpush.bf16.msra.mxu1 %v2005_v33  ;;  %v1921_v33 = vor.u32 %v2201_v30, %v1920_v28  ;;  %v1925_v35 = vor.u32 %v2199_v31, %v1922_v34  ;;  %v2246_v30 = vld [vmem:[#allocation10 + $0x80] sm:$0xff]  ;;  %v1081_v34 = vperm.slane %v2883_v18, 0 }
 0x589   :  { %1252 = vmatpush.bf16.msrb.mxu2 %v1977_v37  ;;  %v2254_v31 = vld [vmem:[#allocation10 + $0xc0] sm:$0xff] }
 0x604   :  { %v974_v40 = vpop.f32.mrf.mxu1 }
 0x605   :  { %v979_v41 = vadd.f32 %v2264_v38, %v974_v40  ;;  %v1978_v38 = vld [vmem:[#allocation9 + $0x90] sm:$0xf0]  ;;  %v2217_v40 = vld [vmem:[#allocation9 + $0x94] sm:$0xf0] }
 0x607   :  { %v985_v42 = vadd.f32 %v2306_v39, %v979_v41  ;;  %v1981_v41 = vor.u32 %v2214_v36, %v1978_v38 }
 0x609   :  { %989 = vadd.xlane.f32.xlu2 %v985_v42  ;;  %1266 = vmatpush.bf16.msra.mxu3 %v1981_v41 }
 0x60c   :  { %v976_v43 = vpop.f32.mrf.mxu1 }
 0x60d   :  { %v980_v44 = vadd.f32 %v2265_v11, %v976_v43  ;;  %v2215_v11 = vld [vmem:[#allocation9 + $0x8c] sm:$0xf]  ;;  %v1986_v43 = vld [vmem:[#allocation9 + $0x98] sm:$0xf0] }
 0x60f   :  { %v986_v45 = vadd.f32 %v2306_v39, %v980_v44  ;;  %v1984_v39 = vld [vmem:[#allocation9 + $0x88] sm:$0xf]  ;;  %v1989_v44 = vor.u32 %v2215_v11, %v1986_v43 }
 0x611   :  { %991 = vadd.xlane.f32.xlu0 %v986_v45  ;;  %1294 = vmatpush.bf16.msra.mxu1 %v1989_v44 }
 0x67c   :  { %v990_v53 = vpop.xlane.xlu2 %989 }
 0x67d   :  { %v1000_v54 = vmul.f32 %v2858_v52, %v990_v53  ;;  %v1965_v53 = vor.u32 %v2210_v47, %v1962_v49 }
 0x67f   :  { %v2861_v55 = vsub.f32 %v985_v42, %v1000_v54  ;;  %v1985_v42 = vor.u32 %v2217_v40, %v1984_v39  ;;  %v1969_v54 = vor.u32 %v2213_v51, %v1968_v50  ;;  %1267 = vmatpush.bf16.msra.mxu3 %v1965_v53  ;;  %v2307_v51 = vld [vmem:[#allocation6] ss:$0 sm:$0xff] }
 0x681   :  { %v1004_v2 = vmul.f32 %v2861_v55, %v2861_v55  ;;  %1280 = vmatpush.bf16.msrb.mxu0 %v1985_v42 }
 0x683   :  { %1006 = vadd.xlane.f32.xlu1 %v1004_v2  ;;  %v2211_v2 = vld [vmem:[#allocation9 + $0x6c] sm:$0xf]  ;;  %1268 = vmatpush.bf16.msra.mxu3 %v1949_v4  ;;  %v2245_v4 = vld [vmem:[#allocation10 + $0x78] sm:$0xff] }
 0x684   :  { %v992_v58 = vpop.xlane.xlu0 %991 }
 0x685   :  { %v1001_v59 = vmul.f32 %v2858_v52, %v992_v58  ;;  %v1970_v58 = vld [vmem:[#allocation9 + $0x78] sm:$0xf0]  ;;  %1281 = vmatpush.bf16.msrb.mxu0 %v1969_v54 }
 0x687   :  { %v2866_v60 = vsub.f32 %v986_v45, %v1001_v59  ;;  %v1960_v45 = vld [vmem:[#allocation9 + $0x60] sm:$0xf]  ;;  %v1973_v59 = vor.u32 %v2211_v2, %v1970_v58  ;;  %1269 = vmatpush.bf16.msra.mxu3 %v1933_v16  ;;  %v2248_v16 = vld [vmem:[#allocation10 + $0x90] sm:$0xff] }
 0x688   :  { %v1961_v48 = vor.u32 %v2212_v46, %v1960_v45 }
 0x689   :  { %v1005_v61 = vmul.f32 %v2866_v60, %v2866_v60  ;;  %1295 = vmatpush.bf16.msra.mxu1 %v1973_v59  ;;  %1282 = vmatpush.bf16.msrb.mxu0 %v1953_v5  ;;  %v2308_v59 = vld [vmem:[#allocation7] ss:$0 sm:$0xff]  ;;  %v2251_v5 = vld [vmem:[#allocation10 + $0xa8] sm:$0xff] }
 0x68a   :  { %1253 = vmatpush.bf16.msrb.mxu2 %v1961_v48 }
 0x68b   :  { %1008 = vadd.xlane.f32.xlu2 %v1005_v61  ;;  %v1944_v61 = vld [vmem:[#allocation9 + $0x40] sm:$0xf]  ;;  %1270 = vmatpush.bf16.msra.mxu3 %v1917_v27 }
 0x68c   :  { %v1945_v0 = vor.u32 %v2208_v62, %v1944_v61 }
 0x68d   :  { %1296 = vmatpush.bf16.msra.mxu1 %v1957_v8  ;;  %1283 = vmatpush.bf16.msrb.mxu0 %v1937_v17  ;;  %v2244_v8 = vld [vmem:[#allocation10 + $0x70] sm:$0xff] }
 0x68e   :  { %1254 = vmatpush.bf16.msrb.mxu2 %v1945_v0  ;;  %v2256_v17 = vld [vmem:[#allocation10 + $0xd0] sm:$0xff] }
 0x68f   :  { %1651 = vmatpush.bf16.msrb.mxu3 %v2245_v4 }
 0x691   :  { %1297 = vmatpush.bf16.msra.mxu1 %v1941_v57  ;;  %1284 = vmatpush.bf16.msrb.mxu0 %v1921_v33  ;;  %v2255_v57 = vld [vmem:[#allocation10 + $0xc8] sm:$0xff] }
 0x692   :  { %1255 = vmatpush.bf16.msrb.mxu2 %v1929_v15  ;;  %v2243_v15 = vld [vmem:[#allocation10 + $0x68] sm:$0xff] }
 0x693   :  { %1652 = vmatpush.bf16.msrb.mxu3 %v2244_v8 }
 0x695   :  { %1298 = vmatpush.bf16.msra.mxu1 %v1925_v35  ;;  %v1082_v35 = vperm.slane %v2883_v18, 1 }
 0x696   :  { %1256 = vmatpush.bf16.msrb.mxu2 %v1913_v25  ;;  %v2240_v25 = vld [vmem:[#allocation10 + $0x50] sm:$0xff] }
 0x697   :  { %1653 = vmatpush.bf16.msrb.mxu3 %v2243_v15 }
 0x699   :  { %1679 = vmatpush.bf16.msrb.mxu1 %v2261_v56 }
 0x69a   :  { %1637 = vmatpush.bf16.msra.mxu2 %v2237_v3 }
 0x69e   :  { %1638 = vmatpush.bf16.msra.mxu2 %v2236_v7 }
 0x6a2   :  { %1639 = vmatpush.bf16.msra.mxu2 %v2235_v14 }
 0x6a6   :  { %1640 = vmatpush.bf16.msra.mxu2 %v2234_v26 }
 0x6aa   :  { %1641 = vmatpush.bf16.msra.mxu2 %v2233_v19 }
 0x6ae   :  { %1642 = vmatpush.bf16.msra.mxu2 %v2232_v24 }
 0x6f6   :  { %v1007_v10 = vpop.xlane.xlu1 %1006 }
 0x6f7   :  { %v1010_v21 = vmul.f32 %v1007_v10, %v2858_v52  ;;  %v2242_v10 = vld [vmem:[#allocation10 + $0x60] sm:$0xff] }
 0x6f8   :  { %1654 = vmatpush.bf16.msrb.mxu3 %v2242_v10 }
 0x6f9   :  { %v1012_v32 = vadd.f32 1e-12, %v1010_v21  ;;  %v2247_v21 = vld [vmem:[#allocation10 + $0x88] sm:$0xff] }
 0x6fb   :  { %2346 = vrsqrt.f32 %v1012_v32  ;;  %vm1020_vm7 = vweird.f32 %v1012_v32 }
 0x6fc   :  { %1655 = vmatpush.bf16.msrb.mxu3 %v2241_v20 }
 0x6fe   :  { %v1009_v36 = vpop.xlane.xlu2 %1008 }
 0x6ff   :  { %v1011_v37 = vmul.f32 %v1009_v36, %v2858_v52  ;;  %v2231_v36 = vld [vmem:[#allocation10 + $0x8] sm:$0xff] }
 0x700   :  { %1656 = vmatpush.bf16.msrb.mxu3 %v2240_v25  ;;  %1643 = vmatpush.bf16.msra.mxu2 %v2231_v36 }
 0x701   :  { %v2347_v38 = vpop.eup %2346  ;;  %v1013_v39 = vadd.f32 1e-12, %v1011_v37  ;;  %v2239_v37 = vld [vmem:[#allocation10 + $0x48] sm:$0xff] }
 0x702   :  { %v1015_v40 = vmul.f32 %v2347_v38, %v1012_v32  ;;  %vm1021_vm6 = vweird.f32 %v2347_v38 }
 0x703   :  { %2348 = vrsqrt.f32 %v1013_v39  ;;  %vm1022_vm8 = vmor %vm1020_vm7, %vm1021_vm6  ;;  %vm1030_vm10 = vweird.f32 %v1013_v39 }
 0x704   :  { %v1016_v41 = vmul.f32 %v2347_v38, %v1015_v40  ;;  %1657 = vmatpush.bf16.msrb.mxu3 %v2239_v37 }
 0x706   :  { %v1017_v42 = vmul.f32 0.5, %v1016_v41 }
 0x708   :  { %v1018_v11 = vsub.f32 1.5, %v1017_v42 }
 0x709   :  { %v2349_v43 = vpop.eup %2348 }
 0x70a   :  { %v1019_v44 = vmul.f32 %v2347_v38, %v1018_v11  ;;  %v1025_v45 = vmul.f32 %v2349_v43, %v1013_v39  ;;  %vm1031_vm9 = vweird.f32 %v2349_v43 }
 0x70b   :  { %vm1032_vm11 = vmor %vm1030_vm10, %vm1031_vm9 }
 0x70c   :  { %v1026_v46 = vmul.f32 %v2349_v43, %v1025_v45  ;;  %v1023_v47 = vsel %vm1022_vm8, %v2347_v38, %v1019_v44  ;;  %v2230_v45 = vld [vmem:[#allocation10] sm:$0xff] }
 0x70d   :  { %v1034_v50 = vmul.f32 %v1023_v47, %v2861_v55  ;;  %v2253_v55 = vld [vmem:[#allocation10 + $0xb8] sm:$0xff]  ;;  %1644 = vmatpush.bf16.msra.mxu2 %v2230_v45 }
 0x70e   :  { %v1027_v48 = vmul.f32 0.5, %v1026_v46  ;;  %1665 = vmatpush.bf16.msra.mxu0 %v2253_v55  ;;  %v2238_v46 = vld [vmem:[#allocation10 + $0x40] sm:$0xff] }
 0x70f   :  { %v1039_v58 = vmul.f32 %v2307_v51, %v1034_v50  ;;  %1658 = vmatpush.bf16.msrb.mxu3 %v2238_v46 }
 0x710   :  { %v1028_v49 = vsub.f32 1.5, %v1027_v48 }
 0x711   :  { %v2874_v62 = vadd.f32 %v2308_v59, %v1039_v58 }
 0x712   :  { %v1029_v53 = vmul.f32 %v2349_v43, %v1028_v49  ;;  %1666 = vmatpush.bf16.msra.mxu0 %v2252_v1 }
 0x714   :  { %v1033_v54 = vsel %vm1032_vm11, %v2349_v43, %v1029_v53 }
 0x715   :  { %v1035_v2 = vmul.f32 %v1033_v54, %v2866_v60  ;;  %v2260_v60 = vld [vmem:[#allocation10 + $0xf0] sm:$0xff] }
 0x716   :  { %1680 = vmatpush.bf16.msrb.mxu1 %v2260_v60  ;;  %1667 = vmatpush.bf16.msra.mxu0 %v2251_v5 }
 0x717   :  { %v1040_v61 = vmul.f32 %v2307_v51, %v1035_v2 }
 0x719   :  { %v2876_v63 = vadd.f32 %v2308_v59, %v1040_v61 }
 0x71a   :  { %1681 = vmatpush.bf16.msrb.mxu1 %v2259_v6  ;;  %1668 = vmatpush.bf16.msra.mxu0 %v2250_v12 }
 0x71b   :  { %v1078_v0 = vpack.c.bf16 %v2876_v63, %v2874_v62 }
 0x71d   :  { %1257 = vmatmul.bf16.vlgmr.msrb.gmra.mxu2 %v1078_v0  ;;  %1271 = vmatmul.bf16.vlgmr.msra.gmra.mxu3 %v1078_v0 }
 0x71e   :  { %1285 = vmatmul.bf16.vlgmr.msrb.gmra.mxu0 %v1078_v0  ;;  %1299 = vmatmul.bf16.vlgmr.msra.gmra.mxu1 %v1078_v0 }
 0x71f   :  { %1682 = vmatpush.bf16.msrb.mxu1 %v2258_v13  ;;  %1669 = vmatpush.bf16.msra.mxu0 %v2249_v29 }
 0x723   :  { %1683 = vmatpush.bf16.msrb.mxu1 %v2257_v9  ;;  %1670 = vmatpush.bf16.msra.mxu0 %v2248_v16 }
 0x727   :  { %1684 = vmatpush.bf16.msrb.mxu1 %v2256_v17  ;;  %1671 = vmatpush.bf16.msra.mxu0 %v2247_v21 }
 0x72b   :  { %1685 = vmatpush.bf16.msrb.mxu1 %v2255_v57  ;;  %1672 = vmatpush.bf16.msra.mxu0 %v2246_v30 }
 0x72f   :  { %1686 = vmatpush.bf16.msrb.mxu1 %v2254_v31 }
 0x79b   :  { %v1286_v27 = vpop.f32.mrf.mxu0  ;;  %v1300_v28 = vpop.f32.mrf.mxu1 }
 0x79c   :  { %v2887_v32 = vadd.f32 %v1286_v27, %v1083_v22  ;;  %v2889_v33 = vadd.f32 %v1300_v28, %v1084_v23 }
 0x79e   :  { %v1307_v38 = vmul.f32 %v2887_v32, %v2887_v32  ;;  %v1308_v39 = vmul.f32 %v2889_v33, %v2889_v33 }
 0x7a0   :  { %v1315_v40 = vmul.f32 %v1307_v38, %v2887_v32  ;;  %v1316_v41 = vmul.f32 %v1308_v39, %v2889_v33  ;;  %v1258_v42 = vpop.f32.mrf.mxu2  ;;  %v1272_v11 = vpop.f32.mrf.mxu3 }
 0x7a1   :  { %v2899_v43 = vadd.f32 %v1258_v42, %v1081_v34  ;;  %v2901_v44 = vadd.f32 %v1272_v11, %v1082_v35 }
 0x7a2   :  { %v1323_v47 = vmul.f32 0.044715, %v1315_v40  ;;  %v1324_v48 = vmul.f32 0.044715, %v1316_v41 }
 0x7a3   :  { %v1305_v49 = vmul.f32 %v2899_v43, %v2899_v43  ;;  %v1306_v50 = vmul.f32 %v2901_v44, %v2901_v44  ;;  %v1288_v51 = vpop.f32.mrf.mxu0  ;;  %v1302_v53 = vpop.f32.mrf.mxu1 }
 0x7a4   :  { %v1331_v54 = vadd.f32 %v1323_v47, %v2887_v32  ;;  %v1332_v2 = vadd.f32 %v1324_v48, %v2889_v33  ;;  %v1289_v58 = vadd.f32 %v1288_v51, %v1083_v22  ;;  %v2909_v59 = vadd.f32 %v1302_v53, %v1084_v23 }
 0x7a5   :  { %v1313_v61 = vmul.f32 %v1305_v49, %v2899_v43  ;;  %v1314_v0 = vmul.f32 %v1306_v50, %v2901_v44 }
 0x7a6   :  { %v1339_v55 = vmul.f32 0.7978846, %v1331_v54  ;;  %v1311_v56 = vmul.f32 %v1289_v58, %v1289_v58  ;;  %v1312_v1 = vmul.f32 %v2909_v59, %v2909_v59  ;;  %v1340_v60 = vmul.f32 0.7978846, %v1332_v2 }
 0x7a7   :  { %v1321_v3 = vmul.f32 0.044715, %v1313_v61  ;;  %v1322_v4 = vmul.f32 0.044715, %v1314_v0 }
 0x7a8   :  { %v1319_v5 = vmul.f32 %v1311_v56, %v1289_v58  ;;  %v1320_v6 = vmul.f32 %v1312_v1, %v2909_v59  ;;  %v1260_v7 = vpop.f32.mrf.mxu2  ;;  %v1274_v8 = vpop.f32.mrf.mxu3  ;;  %2350 = vtanh.f32 %v1339_v55 }
 0x7a9   :  { %v1329_v12 = vadd.f32 %v1321_v3, %v2899_v43  ;;  %v1330_v13 = vadd.f32 %v1322_v4, %v2901_v44  ;;  %v1261_v14 = vadd.f32 %v1260_v7, %v1081_v34  ;;  %v1275_v9 = vadd.f32 %v1274_v8, %v1082_v35 }
 0x7aa   :  { %v1327_v15 = vmul.f32 0.044715, %v1319_v5  ;;  %v1328_v29 = vmul.f32 0.044715, %v1320_v6  ;;  %2352 = vtanh.f32 %v1340_v60 }
 0x7ab   :  { %v1337_v26 = vmul.f32 0.7978846, %v1329_v12  ;;  %v1338_v10 = vmul.f32 0.7978846, %v1330_v13  ;;  %v1309_v16 = vmul.f32 %v1261_v14, %v1261_v14  ;;  %v1310_v19 = vmul.f32 %v1275_v9, %v1275_v9 }
 0x7ac   :  { %v1335_v17 = vadd.f32 %v1327_v15, %v1289_v58  ;;  %v1336_v18 = vadd.f32 %v1328_v29, %v2909_v59 }
 0x7ad   :  { %v1317_v20 = vmul.f32 %v1309_v16, %v1261_v14  ;;  %2354 = vtanh.f32 %v1337_v26  ;;  %v1318_v22 = vmul.f32 %v1310_v19, %v1275_v9  ;;  %v2309_v16 = vld [vmem:[#allocation12] ss:$0 sm:$0xff] }
 0x7ae   :  { %v1343_v21 = vmul.f32 0.7978846, %v1335_v17  ;;  %v1344_v57 = vmul.f32 0.7978846, %v1336_v18  ;;  %2356 = vtanh.f32 %v1338_v10  ;;  %v2351_v24 = vpop.eup %2350 }
 0x7af   :  { %v1325_v23 = vmul.f32 0.044715, %v1317_v20  ;;  %v1326_v25 = vmul.f32 0.044715, %v1318_v22  ;;  %v1355_v31 = vadd.f32 1.0, %v2351_v24 }
 0x7b0   :  { %2358 = vtanh.f32 %v1343_v21  ;;  %v2353_v27 = vpop.eup %2352 }
 0x7b1   :  { %2360 = vtanh.f32 %v1344_v57  ;;  %v1333_v28 = vadd.f32 %v1325_v23, %v1261_v14  ;;  %v1334_v30 = vadd.f32 %v1326_v25, %v1275_v9  ;;  %v1356_v36 = vadd.f32 1.0, %v2353_v27 }
 0x7b2   :  { %v1363_v41 = vmul.f32 0.5, %v1355_v31 }
 0x7b3   :  { %v1341_v34 = vmul.f32 0.7978846, %v1333_v28  ;;  %v2355_v35 = vpop.eup %2354  ;;  %v1342_v37 = vmul.f32 0.7978846, %v1334_v30  ;;  %v1364_v11 = vmul.f32 0.5, %v1356_v36 }
 0x7b4   :  { %v2357_v38 = vpop.eup %2356  ;;  %v1353_v45 = vadd.f32 1.0, %v2355_v35  ;;  %v1371_v51 = vmul.f32 %v1363_v41, %v2887_v32 }
 0x7b5   :  { %2362 = vtanh.f32 %v1341_v34  ;;  %v1354_v47 = vadd.f32 1.0, %v2357_v38  ;;  %v1372_v2 = vmul.f32 %v1364_v11, %v2889_v33 }
 0x7b6   :  { %v2359_v39 = vpop.eup %2358  ;;  %2364 = vtanh.f32 %v1342_v37  ;;  %v1361_v61 = vmul.f32 0.5, %v1353_v45 }
 0x7b7   :  { %v2361_v40 = vpop.eup %2360  ;;  %v1359_v42 = vadd.f32 1.0, %v2359_v39  ;;  %v1362_v56 = vmul.f32 0.5, %v1354_v47 }
 0x7b8   :  { %v1360_v46 = vadd.f32 1.0, %v2361_v40  ;;  %v1369_v6 = vmul.f32 %v1361_v61, %v2899_v43  ;;  %v2311_v61 = vld [vmem:[#allocation15] ss:$0 sm:$0xff] }
 0x7b9   :  { %v1367_v48 = vmul.f32 0.5, %v1359_v42  ;;  %v1370_v32 = vmul.f32 %v1362_v56, %v2901_v44 }
 0x7ba   :  { %v1368_v49 = vmul.f32 0.5, %v1360_v46 }
 0x7bb   :  { %v2363_v50 = vpop.eup %2362  ;;  %v1375_v53 = vmul.f32 %v1367_v48, %v1289_v58 }
 0x7bc   :  { %v2365_v54 = vpop.eup %2364  ;;  %v1376_v0 = vmul.f32 %v1368_v49, %v2909_v59  ;;  %v1357_v55 = vadd.f32 1.0, %v2363_v50 }
 0x7bd   :  { %v1358_v1 = vadd.f32 1.0, %v2365_v54  ;;  %v1443_v60 = vpack.c.bf16 %v1375_v53, %v1371_v51  ;;  %v2310_v53 = vld [vmem:[#allocation13] ss:$0 sm:$0xff] }
 0x7be   :  { %v1365_v3 = vmul.f32 0.5, %v1357_v55  ;;  %v1444_v4 = vpack.c.bf16 %v1376_v0, %v1372_v2 }
 0x7bf   :  { %v1366_v5 = vmul.f32 0.5, %v1358_v1  ;;  %1673 = vmatmul.bf16.vlgmr.msra.gmra.mxu0 %v1443_v60 }
 0x7c0   :  { %v1373_v7 = vmul.f32 %v1365_v3, %v1261_v14  ;;  %1687 = vmatmul.bf16.vlgmr.msrb.gmra.mxu1 %v1444_v4 }
 0x7c1   :  { %v1374_v58 = vmul.f32 %v1366_v5, %v1275_v9 }
 0x7c2   :  { %v1441_v8 = vpack.c.bf16 %v1373_v7, %v1369_v6 }
 0x7c3   :  { %v1442_v33 = vpack.c.bf16 %v1374_v58, %v1370_v32 }
 0x7c4   :  { %1645 = vmatmul.bf16.vlgmr.msra.gmra.mxu2 %v1441_v8 }
 0x7c5   :  { %1659 = vmatmul.bf16.vlgmr.msrb.gmra.mxu3 %v1442_v33 }
 0x83c   :  { %v1674_v12 = vpop.f32.mrf.mxu0 }
 0x83d   :  { %v1688_v29 = vpop.f32.mrf.mxu1 }
 0x844   :  { %v1676_v44 = vpop.f32.mrf.mxu0 }
 0x845   :  { %v1690_v20 = vpop.f32.mrf.mxu1 }
 0x847   :  { %v1646_v59 = vpop.f32.mrf.mxu2 }
 0x848   :  { %v1660_v13 = vpop.f32.mrf.mxu3 }
 0x849   :  { %v1661_v15 = vadd.f32 %v1660_v13, %v1646_v59 }
 0x84b   :  { %v1675_v26 = vadd.f32 %v1674_v12, %v1661_v15 }
 0x84d   :  { %v1689_v10 = vadd.f32 %v1688_v29, %v1675_v26 }
 0x84f   :  { %v1648_v17 = vpop.f32.mrf.mxu2  ;;  %v1693_v43 = vadd.f32 %v1689_v10, %v2874_v62 }
 0x850   :  { %v1662_v14 = vpop.f32.mrf.mxu3 }
 0x851   :  { %v1663_v18 = vadd.f32 %v1662_v14, %v1648_v17  ;;  %v1699_v19 = vadd.f32 %v2309_v16, %v1693_v43 }
 0x853   :  { %v1677_v9 = vadd.f32 %v1676_v44, %v1663_v18  ;;  %1703 = vadd.xlane.f32.xlu0 %v1699_v19 }
 0x855   :  { %v1691_v21 = vadd.f32 %v1690_v20, %v1677_v9 }
 0x857   :  { %v1694_v57 = vadd.f32 %v1691_v21, %v2876_v63 }
 0x859   :  { %v1700_v22 = vadd.f32 %v2309_v16, %v1694_v57 }
 0x85b   :  { %1705 = vadd.xlane.f32.xlu2 %v1700_v22 }
 0x8c6   :  { %v1704_v23 = vpop.xlane.xlu0 %1703 }
 0x8c7   :  { %v1707_v24 = vmul.f32 %v1704_v23, %v2858_v52 }
 0x8c9   :  { %v1709_v25 = vsub.f32 %v1699_v19, %v1707_v24 }
 0x8cb   :  { %v1711_v27 = vmul.f32 %v1709_v25, %v1709_v25 }
 0x8cd   :  { %1713 = vadd.xlane.f32.xlu1 %v1711_v27 }
 0x8ce   :  { %v1706_v28 = vpop.xlane.xlu2 %1705 }
 0x8cf   :  { %v1708_v62 = vmul.f32 %v1706_v28, %v2858_v52 }
 0x8d1   :  { %v1710_v30 = vsub.f32 %v1700_v22, %v1708_v62 }
 0x8d3   :  { %v1712_v31 = vmul.f32 %v1710_v30, %v1710_v30 }
 0x8d5   :  { %1715 = vadd.xlane.f32.xlu0 %v1712_v31 }
 0x940   :  { %v1714_v34 = vpop.xlane.xlu1 %1713 }
 0x941   :  { %v1717_v35 = vmul.f32 %v1714_v34, %v2858_v52 }
 0x943   :  { %v1719_v36 = vadd.f32 1e-12, %v1717_v35 }
 0x945   :  { %2366 = vrsqrt.f32 %v1719_v36  ;;  %vm1727_vm13 = vweird.f32 %v1719_v36 }
 0x948   :  { %v1716_v63 = vpop.xlane.xlu0 %1715 }
 0x949   :  { %v1718_v37 = vmul.f32 %v1716_v63, %v2858_v52 }
 0x94b   :  { %v2367_v38 = vpop.eup %2366  ;;  %v1720_v39 = vadd.f32 1e-12, %v1718_v37 }
 0x94c   :  { %v1722_v40 = vmul.f32 %v2367_v38, %v1719_v36  ;;  %vm1728_vm12 = vweird.f32 %v2367_v38 }
 0x94d   :  { %2368 = vrsqrt.f32 %v1720_v39  ;;  %vm1729_vm14 = vmor %vm1727_vm13, %vm1728_vm12  ;;  %vm1737_vm0 = vweird.f32 %v1720_v39 }
 0x94e   :  { %v1723_v41 = vmul.f32 %v2367_v38, %v1722_v40 }
 0x950   :  { %v1724_v42 = vmul.f32 0.5, %v1723_v41 }
 0x952   :  { %v1725_v11 = vsub.f32 1.5, %v1724_v42 }
 0x953   :  { %v2369_v45 = vpop.eup %2368 }
 0x954   :  { %v1726_v46 = vmul.f32 %v2367_v38, %v1725_v11  ;;  %v1732_v47 = vmul.f32 %v2369_v45, %v1720_v39  ;;  %vm1738_vm15 = vweird.f32 %v2369_v45 }
 0x955   :  { %vm1739_vm1 = vmor %vm1737_vm0, %vm1738_vm15 }
 0x956   :  { %v1733_v48 = vmul.f32 %v2369_v45, %v1732_v47  ;;  %v1730_v49 = vsel %vm1729_vm14, %v2367_v38, %v1726_v46 }
 0x957   :  { %v1741_v52 = vmul.f32 %v1730_v49, %v1709_v25 }
 0x958   :  { %v1734_v50 = vmul.f32 0.5, %v1733_v48 }
 0x959   :  { %v1746_v0 = vmul.f32 %v2310_v53, %v1741_v52 }
 0x95a   :  { %v1735_v51 = vsub.f32 1.5, %v1734_v50 }
 0x95b   :  { %v1751_v1 = vadd.f32 %v2311_v61, %v1746_v0 }
 0x95c   :  { %v1736_v54 = vmul.f32 %v2369_v45, %v1735_v51 }
 0x95e   :  { %v1740_v2 = vsel %vm1739_vm1, %v2369_v45, %v1736_v54 }
 0x95f   :  { %v1742_v55 = vmul.f32 %v1740_v2, %v1710_v30 }
 0x961   :  { %v1747_v56 = vmul.f32 %v2310_v53, %v1742_v55 }
 0x963   :  { %v1752_v60 = vadd.f32 %v2311_v61, %v1747_v56 }
 0x965   :  { %v2269_v3 = vpack.c.bf16 %v1752_v60, %v1751_v1 }
 0x967   :  { %2270 = vst [vmem:[%s2947_s14] sm:$0xff] %v2269_v3  }
 0x968   :  { %1761 = vsyncpa [#allocation3], 1 }
 0x969   :  { %1762 = vsyncpa [#allocation5], 1 }
 0x96a   :  { %1763 = vsyncpa [#allocation8], 1 }
 0x96b   :  { %1764 = vsyncpa [#allocation11], 1 }
 0x96c   :  { %1765 = vsyncpa [#allocation14], 1 }

</bundles_post_ra>
